<compile_context>
chip_gen: v7x
topology: tpu7x:2x2x1
jax: 0.10.0
libtpu: 0.0.40
codegen_flags: <defaults>
</compile_context>

<pallas_src>
import numpy as np
import jax
import jax.numpy as jnp
from jax.experimental import pallas as pl
from jax.experimental.pallas import tpu as pltpu

# ---------------- configuration ----------------
D_IN = 3
D_OUT = 5
D_PAD = 8                              # output channels padded 5 -> 8 (full sublanes)
D_HIDDEN = 32
N_LAYERS = 4
SKIP_IN = (4,)
BIAS = 0.5
SCALE = 1.5
DIMS = [D_IN] + [D_HIDDEN] * N_LAYERS + [D_OUT]
NUM_LAYERS = len(DIMS)                 # 6 -> 5 linear layers
SOFTPLUS_BETA = 100.0
SKIP_WIDTH = D_HIDDEN - D_IN           # 29 (pre-padding width of layer-3 output)

TB = 2048                              # batch tile = lanes per grid step
N_POINTS = 8192                        # 4 "parallel" grid steps at TB=2048


# ---------------- parameter init (mirrors geometric_init, PyTorch layout) ----
def init_params(key):
    """Returns [(W (out,in), b (out,)) for l in 0..4], un-folded / un-padded."""
    params = []
    for l in range(NUM_LAYERS - 1):
        out_dim = DIMS[l + 1] - DIMS[0] if (l + 1) in SKIP_IN else DIMS[l + 1]
        in_dim = DIMS[l]
        key, wk = jax.random.split(key)
        if l == NUM_LAYERS - 2:
            # last layer, inside_outside=True branch
            mean = -np.sqrt(np.pi) / np.sqrt(in_dim)
            w = mean + 1e-4 * jax.random.normal(wk, (out_dim, in_dim), jnp.float32)
            b = jnp.full((out_dim,), BIAS, jnp.float32)
        else:
            # multires == 0 -> generic geometric-init branch
            std = np.sqrt(2.0) / np.sqrt(out_dim)
            w = std * jax.random.normal(wk, (out_dim, in_dim), jnp.float32)
            b = jnp.zeros((out_dim,), jnp.float32)
        params.append((w, b))
    return params


# ---------------- fold constants / pad / pack for the kernel -----------------
def pack_params(params):
    """Fold SCALE, 1/sqrt(2), softplus beta and the final column-0 1/SCALE into
    the weights; pad layer-3 output 29->32 and the output channels 5->8."""
    (w0, b0), (w1, b1), (w2, b2), (w3, b3), (w4, b4) = params
    inv_sqrt2 = np.float32(1.0 / np.sqrt(2.0))
    beta = np.float32(SOFTPLUS_BETA)

    # Layer 0: fold input scaling (inputs * SCALE) AND beta into W0; beta into b0.
    # The kernel then carries g_l = beta * h_l through the hidden layers.
    w0_p = (w0 * (SCALE * beta)).astype(jnp.float32)              # (32, 3)

    # Layers 1..3: weights unchanged (g_l = sp(W_l g_{l-1} + beta*b_l));
    # layer-3 output zero-padded 29 -> 32 channels.
    w3_p = jnp.zeros((D_HIDDEN, D_HIDDEN), jnp.float32).at[:SKIP_WIDTH, :].set(w3)
    b3_p = jnp.zeros((D_HIDDEN,), jnp.float32).at[:SKIP_WIDTH].set(b3)
    wh = jnp.stack([w1, w2, w3_p]).astype(jnp.float32)            # (3, 32, 32)
    bh = (jnp.stack([b0 * beta, b1 * beta, b2 * beta, b3_p * beta])[:, :, None]
          .astype(jnp.float32))                                   # (4, 32, 1)

    # Layer 4 (skip layer): split into hidden part and raw-input part.
    # Hidden part consumes g_3 = beta*h_3 -> fold 1/beta; fold 1/sqrt(2) into
    # both parts, SCALE into the input part, and the final column-0 1/SCALE
    # into row 0 of everything.  Pad output channels 5 -> 8 with zeros.
    out_scale = np.ones((D_PAD, 1), np.float32)
    out_scale[0, 0] = 1.0 / SCALE
    out_scale = jnp.asarray(out_scale)

    w4x = jnp.zeros((D_PAD, D_HIDDEN), jnp.float32).at[:D_OUT, :SKIP_WIDTH].set(
        w4[:, :SKIP_WIDTH])
    w4x = (w4x * (inv_sqrt2 / beta)) * out_scale                  # (8, 32)

    w4i = jnp.zeros((D_PAD, D_IN), jnp.float32).at[:D_OUT, :].set(w4[:, SKIP_WIDTH:])
    w4i = (w4i * (SCALE * inv_sqrt2)) * out_scale                 # (8, 3)

    b4_p = (jnp.zeros((D_PAD, 1), jnp.float32).at[:D_OUT, 0].set(b4)) * out_scale

    return (w0_p, wh, bh,
            w4x.astype(jnp.float32), w4i.astype(jnp.float32),
            b4_p.astype(jnp.float32))


# ---------------- Pallas kernel ----------------
def _softplus_folded(v):
    # softplus(beta=100) with beta folded into the packed weights:
    # the kernel carries g = beta*h, so the activation is simply
    # max(v,0) + log1p(exp(-|v|))  (overflow-free, no x100 / x0.01 multiplies).
    return jnp.maximum(v, 0.0) + jnp.log1p(jnp.exp(-jnp.abs(v)))


def sdf_kernel(x_ref, w0_ref, wh_ref, bh_ref, w4x_ref, w4i_ref, b4_ref, o_ref):
    # x_ref: (D_IN, TB) -- batch on the lane axis; SCALE/beta folded into weights.
    x_in = x_ref[...]

    # layer 0
    h = jnp.dot(w0_ref[...], x_in, preferred_element_type=jnp.float32) + bh_ref[0]
    h = _softplus_folded(h)

    # layers 1..3 (layer 3 output zero-padded to 32 channels)
    for l in range(1, 4):
        h = jnp.dot(wh_ref[l - 1], h, preferred_element_type=jnp.float32) + bh_ref[l]
        h = _softplus_folded(h)

    # layer 4: skip connection as two accumulated matmuls (no concat);
    # 1/sqrt(2), SCALE, 1/beta and the final column-0 1/SCALE are pre-folded.
    o_ref[...] = (jnp.dot(w4x_ref[...], h, preferred_element_type=jnp.float32)
                  + jnp.dot(w4i_ref[...], x_in, preferred_element_type=jnp.float32)
                  + b4_ref[...])                                  # (D_PAD, TB), lane-dense


# ---------------- wrappers ----------------
def _const_spec(arr):
    # Constant index_map: weights/biases stay VMEM-resident across the grid.
    nd = arr.ndim
    return pl.BlockSpec(arr.shape, lambda i, _nd=nd: (0,) * _nd)


def sdf_network_forward_cm(points_cm, packed, *, tb=TB):
    """Channel-major fast path: points_cm (D_IN, N) -> (D_OUT, N).
    No transposes anywhere on this path."""
    d_in, n = points_cm.shape
    assert d_in == D_IN
    n_pad = ((n + tb - 1) // tb) * tb
    x = points_cm.astype(jnp.float32)
    if n_pad != n:
        x = jnp.pad(x, ((0, 0), (0, n_pad - n)))

    w0_p, wh, bh, w4x, w4i, b4_p = packed
    grid = (n_pad // tb,)

    in_specs = [
        pl.BlockSpec((D_IN, tb), lambda i: (0, i)),
        _const_spec(w0_p), _const_spec(wh), _const_spec(bh),
        _const_spec(w4x), _const_spec(w4i), _const_spec(b4_p),
    ]
    out_spec = pl.BlockSpec((D_PAD, tb), lambda i: (0, i))

    # Per point: ~2*(3*32 + 3*32*32 + 8*35) flops, 4*32*2 transcendentals,
    # (3+8)*4 bytes of logical HBM traffic.
    cost = pl.CostEstimate(
        flops=int(2 * 3448 * n_pad),
        transcendentals=int(256 * n_pad),
        bytes_accessed=int((D_IN + D_PAD) * 4 * n_pad),
    )

    out_cm = pl.pallas_call(
        sdf_kernel,
        out_shape=jax.ShapeDtypeStruct((D_PAD, n_pad), jnp.float32),
        grid_spec=pltpu.PrefetchScalarGridSpec(
            num_scalar_prefetch=0,
            grid=grid,
            in_specs=in_specs,
            out_specs=out_spec,
        ),
        compiler_params=pltpu.CompilerParams(
            dimension_semantics=("parallel",)),
        cost_estimate=cost,
    )(x, w0_p, wh, bh, w4x, w4i, b4_p)

    return out_cm[:D_OUT, :n]


def sdf_network_forward(points, packed, *, tb=TB):
    """Module-compatible API: points (N, D_IN) -> (N, D_OUT).
    Incurs two small XLA transposes; prefer sdf_network_forward_cm."""
    return sdf_network_forward_cm(points.T, packed, tb=tb).T


# ---------------- pure-JAX reference (original math, unfolded params) --------
def _softplus_beta100_ref(v):
    bv = SOFTPLUS_BETA * v
    return (jnp.maximum(bv, 0.0) + jnp.log1p(jnp.exp(-jnp.abs(bv)))) / SOFTPLUS_BETA


def sdf_network_ref(points, params):
    inp = points * SCALE
    x = inp
    for l, (w, b) in enumerate(params):
        if l in SKIP_IN:
            x = jnp.concatenate([x, inp], axis=1) / np.sqrt(2.0)
        x = x @ w.T + b
        if l < NUM_LAYERS - 2:
            x = _softplus_beta100_ref(x)
    return jnp.concatenate([x[:, :1] / SCALE, x[:, 1:]], axis=-1)


if __name__ == "__main__":
    key = jax.random.PRNGKey(0)
    pkey, xkey = jax.random.split(key)
    params = init_params(pkey)
    packed = pack_params(params)

    # Channel-major points (the preferred layout for this kernel).
    points_cm = jax.random.uniform(xkey, (D_IN, N_POINTS), jnp.float32,
                                   minval=-1.0, maxval=1.0)

    out_cm = jax.block_until_ready(sdf_network_forward_cm(points_cm, packed))
    ref = jax.block_until_ready(sdf_network_ref(points_cm.T, params))

    assert out_cm.shape == (D_OUT, N_POINTS)
    np.testing.assert_allclose(np.asarray(out_cm.T), np.asarray(ref),
                               rtol=5e-3, atol=5e-3)

    # Also exercise the (N,3)->(N,5) module-compatible wrapper once.
    out_rows = jax.block_until_ready(sdf_network_forward(points_cm.T, packed))
    assert out_rows.shape == (N_POINTS, D_OUT)
    np.testing.assert_allclose(np.asarray(out_rows), np.asarray(ref),
                               rtol=5e-3, atol=5e-3)

    print("KERNEL_OK")
</pallas_src>

<mosaic_0001>
module attributes {stable_mosaic.version = 11 : i64} {
  func.func @sdf_kernel(%arg0: i32, %arg1: memref<3x2048xf32, #tpu.memory_space<vmem>>, %arg2: memref<32x3xf32, #tpu.memory_space<vmem>>, %arg3: memref<3x32x32xf32, #tpu.memory_space<vmem>>, %arg4: memref<4x32x1xf32, #tpu.memory_space<vmem>>, %arg5: memref<8x32xf32, #tpu.memory_space<vmem>>, %arg6: memref<8x3xf32, #tpu.memory_space<vmem>>, %arg7: memref<8x1xf32, #tpu.memory_space<vmem>>, %arg8: memref<8x2048xf32, #tpu.memory_space<vmem>>) attributes {dimension_semantics = [#tpu.dimension_semantics<parallel>], iteration_bounds = array<i64: 4>, scalar_prefetch = 0 : i64, scratch_operands = 0 : i64, tpu.core_type = #tpu.core_type<tc>, window_params = [{transform_indices = @transform_0, window_bounds = array<i64: 3, 2048>}, {pipeline_mode = #tpu.pipeline_mode<synchronous>, transform_indices = @transform_1, window_bounds = array<i64: 32, 3>}, {pipeline_mode = #tpu.pipeline_mode<synchronous>, transform_indices = @transform_2, window_bounds = array<i64: 3, 32, 32>}, {pipeline_mode = #tpu.pipeline_mode<synchronous>, transform_indices = @transform_3, window_bounds = array<i64: 4, 32, 1>}, {pipeline_mode = #tpu.pipeline_mode<synchronous>, transform_indices = @transform_4, window_bounds = array<i64: 8, 32>}, {pipeline_mode = #tpu.pipeline_mode<synchronous>, transform_indices = @transform_5, window_bounds = array<i64: 8, 3>}, {pipeline_mode = #tpu.pipeline_mode<synchronous>, transform_indices = @transform_6, window_bounds = array<i64: 8, 1>}, {transform_indices = @transform_7, window_bounds = array<i64: 8, 2048>}]} {
    %c0 = arith.constant 0 : index
    %c0_0 = arith.constant 0 : index
    %0 = vector.load %arg1[%c0, %c0_0] : memref<3x2048xf32, #tpu.memory_space<vmem>>, vector<3x2048xf32>
    %c0_1 = arith.constant 0 : index
    %c0_2 = arith.constant 0 : index
    %1 = vector.load %arg2[%c0_1, %c0_2] : memref<32x3xf32, #tpu.memory_space<vmem>>, vector<32x3xf32>
    %cst = arith.constant dense<0.000000e+00> : vector<32x2048xf32>
    %2 = tpu.matmul %1, %0, %cst {dimension_numbers = #tpu.dot_dimension_numbers<[1], [0], [0], [1], [0, 0, 1, 1], [], []>} : vector<32x3xf32>, vector<3x2048xf32>, vector<32x2048xf32> -> vector<32x2048xf32>
    %c0_3 = arith.constant 0 : index
    %c0_4 = arith.constant 0 : index
    %c0_5 = arith.constant 0 : index
    %3 = vector.load %arg4[%c0_3, %c0_4, %c0_5] : memref<4x32x1xf32, #tpu.memory_space<vmem>>, vector<1x32x1xf32>
    %4 = vector.shape_cast %3 : vector<1x32x1xf32> to vector<32x1xf32>
    %5 = vector.broadcast %4 : vector<32x1xf32> to vector<32x2048xf32>
    %6 = arith.addf %2, %5 : vector<32x2048xf32>
    %cst_6 = arith.constant 0.000000e+00 : f32
    %7 = vector.broadcast %cst_6 : f32 to vector<32x2048xf32>
    %8 = arith.maximumf %6, %7 : vector<32x2048xf32>
    %9 = math.absf %6 : vector<32x2048xf32>
    %cst_7 = arith.constant 0.000000e+00 : f32
    %10 = vector.broadcast %cst_7 : f32 to vector<32x2048xf32>
    %11 = arith.subf %10, %9 : vector<32x2048xf32>
    %12 = math.exp %11 : vector<32x2048xf32>
    %13 = math.log1p %12 : vector<32x2048xf32>
    %14 = arith.addf %8, %13 : vector<32x2048xf32>
    %c0_8 = arith.constant 0 : index
    %c0_9 = arith.constant 0 : index
    %c0_10 = arith.constant 0 : index
    %15 = vector.load %arg3[%c0_8, %c0_9, %c0_10] : memref<3x32x32xf32, #tpu.memory_space<vmem>>, vector<1x32x32xf32>
    %16 = vector.shape_cast %15 : vector<1x32x32xf32> to vector<32x32xf32>
    %cst_11 = arith.constant dense<0.000000e+00> : vector<32x2048xf32>
    %17 = tpu.matmul %16, %14, %cst_11 {dimension_numbers = #tpu.dot_dimension_numbers<[1], [0], [0], [1], [0, 0, 1, 1], [], []>} : vector<32x32xf32>, vector<32x2048xf32>, vector<32x2048xf32> -> vector<32x2048xf32>
    %c1 = arith.constant 1 : index
    %c0_12 = arith.constant 0 : index
    %c0_13 = arith.constant 0 : index
    %18 = vector.load %arg4[%c1, %c0_12, %c0_13] : memref<4x32x1xf32, #tpu.memory_space<vmem>>, vector<1x32x1xf32>
    %19 = vector.shape_cast %18 : vector<1x32x1xf32> to vector<32x1xf32>
    %20 = vector.broadcast %19 : vector<32x1xf32> to vector<32x2048xf32>
    %21 = arith.addf %17, %20 : vector<32x2048xf32>
    %cst_14 = arith.constant 0.000000e+00 : f32
    %22 = vector.broadcast %cst_14 : f32 to vector<32x2048xf32>
    %23 = arith.maximumf %21, %22 : vector<32x2048xf32>
    %24 = math.absf %21 : vector<32x2048xf32>
    %cst_15 = arith.constant 0.000000e+00 : f32
    %25 = vector.broadcast %cst_15 : f32 to vector<32x2048xf32>
    %26 = arith.subf %25, %24 : vector<32x2048xf32>
    %27 = math.exp %26 : vector<32x2048xf32>
    %28 = math.log1p %27 : vector<32x2048xf32>
    %29 = arith.addf %23, %28 : vector<32x2048xf32>
    %c1_16 = arith.constant 1 : index
    %c0_17 = arith.constant 0 : index
    %c0_18 = arith.constant 0 : index
    %30 = vector.load %arg3[%c1_16, %c0_17, %c0_18] : memref<3x32x32xf32, #tpu.memory_space<vmem>>, vector<1x32x32xf32>
    %31 = vector.shape_cast %30 : vector<1x32x32xf32> to vector<32x32xf32>
    %cst_19 = arith.constant dense<0.000000e+00> : vector<32x2048xf32>
    %32 = tpu.matmul %31, %29, %cst_19 {dimension_numbers = #tpu.dot_dimension_numbers<[1], [0], [0], [1], [0, 0, 1, 1], [], []>} : vector<32x32xf32>, vector<32x2048xf32>, vector<32x2048xf32> -> vector<32x2048xf32>
    %c2 = arith.constant 2 : index
    %c0_20 = arith.constant 0 : index
    %c0_21 = arith.constant 0 : index
    %33 = vector.load %arg4[%c2, %c0_20, %c0_21] : memref<4x32x1xf32, #tpu.memory_space<vmem>>, vector<1x32x1xf32>
    %34 = vector.shape_cast %33 : vector<1x32x1xf32> to vector<32x1xf32>
    %35 = vector.broadcast %34 : vector<32x1xf32> to vector<32x2048xf32>
    %36 = arith.addf %32, %35 : vector<32x2048xf32>
    %cst_22 = arith.constant 0.000000e+00 : f32
    %37 = vector.broadcast %cst_22 : f32 to vector<32x2048xf32>
    %38 = arith.maximumf %36, %37 : vector<32x2048xf32>
    %39 = math.absf %36 : vector<32x2048xf32>
    %cst_23 = arith.constant 0.000000e+00 : f32
    %40 = vector.broadcast %cst_23 : f32 to vector<32x2048xf32>
    %41 = arith.subf %40, %39 : vector<32x2048xf32>
    %42 = math.exp %41 : vector<32x2048xf32>
    %43 = math.log1p %42 : vector<32x2048xf32>
    %44 = arith.addf %38, %43 : vector<32x2048xf32>
    %c2_24 = arith.constant 2 : index
    %c0_25 = arith.constant 0 : index
    %c0_26 = arith.constant 0 : index
    %45 = vector.load %arg3[%c2_24, %c0_25, %c0_26] : memref<3x32x32xf32, #tpu.memory_space<vmem>>, vector<1x32x32xf32>
    %46 = vector.shape_cast %45 : vector<1x32x32xf32> to vector<32x32xf32>
    %cst_27 = arith.constant dense<0.000000e+00> : vector<32x2048xf32>
    %47 = tpu.matmul %46, %44, %cst_27 {dimension_numbers = #tpu.dot_dimension_numbers<[1], [0], [0], [1], [0, 0, 1, 1], [], []>} : vector<32x32xf32>, vector<32x2048xf32>, vector<32x2048xf32> -> vector<32x2048xf32>
    %c3 = arith.constant 3 : index
    %c0_28 = arith.constant 0 : index
    %c0_29 = arith.constant 0 : index
    %48 = vector.load %arg4[%c3, %c0_28, %c0_29] : memref<4x32x1xf32, #tpu.memory_space<vmem>>, vector<1x32x1xf32>
    %49 = vector.shape_cast %48 : vector<1x32x1xf32> to vector<32x1xf32>
    %50 = vector.broadcast %49 : vector<32x1xf32> to vector<32x2048xf32>
    %51 = arith.addf %47, %50 : vector<32x2048xf32>
    %cst_30 = arith.constant 0.000000e+00 : f32
    %52 = vector.broadcast %cst_30 : f32 to vector<32x2048xf32>
    %53 = arith.maximumf %51, %52 : vector<32x2048xf32>
    %54 = math.absf %51 : vector<32x2048xf32>
    %cst_31 = arith.constant 0.000000e+00 : f32
    %55 = vector.broadcast %cst_31 : f32 to vector<32x2048xf32>
    %56 = arith.subf %55, %54 : vector<32x2048xf32>
    %57 = math.exp %56 : vector<32x2048xf32>
    %58 = math.log1p %57 : vector<32x2048xf32>
    %59 = arith.addf %53, %58 : vector<32x2048xf32>
    %c0_32 = arith.constant 0 : index
    %c0_33 = arith.constant 0 : index
    %60 = vector.load %arg5[%c0_32, %c0_33] : memref<8x32xf32, #tpu.memory_space<vmem>>, vector<8x32xf32>
    %cst_34 = arith.constant dense<0.000000e+00> : vector<8x2048xf32>
    %61 = tpu.matmul %60, %59, %cst_34 {dimension_numbers = #tpu.dot_dimension_numbers<[1], [0], [0], [1], [0, 0, 1, 1], [], []>} : vector<8x32xf32>, vector<32x2048xf32>, vector<8x2048xf32> -> vector<8x2048xf32>
    %c0_35 = arith.constant 0 : index
    %c0_36 = arith.constant 0 : index
    %62 = vector.load %arg6[%c0_35, %c0_36] : memref<8x3xf32, #tpu.memory_space<vmem>>, vector<8x3xf32>
    %cst_37 = arith.constant dense<0.000000e+00> : vector<8x2048xf32>
    %63 = tpu.matmul %62, %0, %cst_37 {dimension_numbers = #tpu.dot_dimension_numbers<[1], [0], [0], [1], [0, 0, 1, 1], [], []>} : vector<8x3xf32>, vector<3x2048xf32>, vector<8x2048xf32> -> vector<8x2048xf32>
    %64 = arith.addf %61, %63 : vector<8x2048xf32>
    %c0_38 = arith.constant 0 : index
    %c0_39 = arith.constant 0 : index
    %65 = vector.load %arg7[%c0_38, %c0_39] : memref<8x1xf32, #tpu.memory_space<vmem>>, vector<8x1xf32>
    %66 = vector.broadcast %65 : vector<8x1xf32> to vector<8x2048xf32>
    %67 = arith.addf %64, %66 : vector<8x2048xf32>
    %c0_40 = arith.constant 0 : index
    %c0_41 = arith.constant 0 : index
    %68 = vector.load %arg8[%c0_40, %c0_41] : memref<8x2048xf32, #tpu.memory_space<vmem>>, vector<8x2048xf32>
    tpu.vector_store %arg8[%c0_40, %c0_41], %67 {strides = array<i32>} : memref<8x2048xf32, #tpu.memory_space<vmem>>, vector<8x2048xf32>,
    return
  }
  func.func @transform_0(%arg0: i32) -> (i32, i32) {
    %c0_i32 = arith.constant 0 : i32
    %c0_i32_0 = arith.constant 0 : i32
    return %c0_i32, %arg0 : i32, i32
  }
  func.func @transform_1(%arg0: i32) -> (i32, i32) {
    %c0_i32 = arith.constant 0 : i32
    %c0_i32_0 = arith.constant 0 : i32
    %c0_i32_1 = arith.constant 0 : i32
    return %c0_i32, %c0_i32_0 : i32, i32
  }
  func.func @transform_2(%arg0: i32) -> (i32, i32, i32) {
    %c0_i32 = arith.constant 0 : i32
    %c0_i32_0 = arith.constant 0 : i32
    %c0_i32_1 = arith.constant 0 : i32
    %c0_i32_2 = arith.constant 0 : i32
    return %c0_i32, %c0_i32_0, %c0_i32_1 : i32, i32, i32
  }
  func.func @transform_3(%arg0: i32) -> (i32, i32, i32) {
    %c0_i32 = arith.constant 0 : i32
    %c0_i32_0 = arith.constant 0 : i32
    %c0_i32_1 = arith.constant 0 : i32
    %c0_i32_2 = arith.constant 0 : i32
    return %c0_i32, %c0_i32_0, %c0_i32_1 : i32, i32, i32
  }
  func.func @transform_4(%arg0: i32) -> (i32, i32) {
    %c0_i32 = arith.constant 0 : i32
    %c0_i32_0 = arith.constant 0 : i32
    %c0_i32_1 = arith.constant 0 : i32
    return %c0_i32, %c0_i32_0 : i32, i32
  }
  func.func @transform_5(%arg0: i32) -> (i32, i32) {
    %c0_i32 = arith.constant 0 : i32
    %c0_i32_0 = arith.constant 0 : i32
    %c0_i32_1 = arith.constant 0 : i32
    return %c0_i32, %c0_i32_0 : i32, i32
  }
  func.func @transform_6(%arg0: i32) -> (i32, i32) {
    %c0_i32 = arith.constant 0 : i32
    %c0_i32_0 = arith.constant 0 : i32
    %c0_i32_1 = arith.constant 0 : i32
    return %c0_i32, %c0_i32_0 : i32, i32
  }
  func.func @transform_7(%arg0: i32) -> (i32, i32) {
    %c0_i32 = arith.constant 0 : i32
    %c0_i32_0 = arith.constant 0 : i32
    return %c0_i32, %arg0 : i32, i32
  }
}

</mosaic_0001>

<bundles_post_ra>
// kernel: tpu_custom_call.1
= control target key start
LH: loop header
LB: loop body
LE: loop exit
PB: predicated region body
PF: predicated region fallthrough
CT: control target
= control target key end

     0   :  { %12 = vsyncpa [#allocation3], 0  ;;  %s17082_s0 = inlined_call_operand.hbm [shape: f32[3,8192], index: 0, kind: input, shape index: {}]   ;;  %s17083_s1 = inlined_call_operand.vmem [shape: f32[32,3], index: 1, kind: input, shape index: {}]   ;;  %s17084_s2 = inlined_call_operand.vmem [shape: f32[3,32,32], index: 2, kind: input, shape index: {}]   ;;  %s17085_s3 = inlined_call_operand.vmem [shape: f32[4,32,1], index: 3, kind: input, shape index: {}]   ;;  %s17086_s4 = inlined_call_operand.vmem [shape: f32[8,32], index: 4, kind: input, shape index: {}]   ;;  %s17087_s5 = inlined_call_operand.vmem [shape: f32[8,3], index: 5, kind: input, shape index: {}]   ;;  %s17088_s6 = inlined_call_operand.vmem [shape: f32[8,1], index: 6, kind: input, shape index: {}]   ;;  %s17089_s7 = inlined_call_operand.hbm [shape: f32[8,8192], index: 7, kind: output, shape index: {}]  }
   0x1   :  { %14 = vsyncpa [#allocation3 + $0x1], 0 }
   0x2   :  { %15 = vsyncpa [#allocation4], 0 }
   0x3   :  { %17 = vsyncpa [#allocation4 + $0x1], 0  ;;  %s10192_s24 = smov 0   ;;  %s10194_s25 = smov 0  }
   0x4   :  { %s10196_s26 = smov 0   ;;  %s10198_s27 = smov 0  }
   0x5 LB: > { %s10213_s28 = sadd.s32 4294967295, %s10146_s27   ;;  %s8476_s29 = sadd.s32 4294967294, %s10146_s27   ;;  %s10146_s27 = sphi %s10198_s27, %s18373_s27   ;;  %s10142_s26 = sphi %s10196_s26, %s18372_s26   ;;  %s10138_s25 = sphi %s10194_s25, %s18371_s25   ;;  %s10134_s24 = sphi %s10192_s24, %s18370_s24  }
   0x6   : > { %s10217_s30 = sadd.s32 1, %s10146_s27   ;;  %s30_s8 = sadd.s32 1, %s10142_s26 }
   0x7   : > { %s27_s9 = ssub.s32 %s10146_s27, %s10217_s30  ;;  %p37_p0 = scmp.ne.s32.totalorder %s10142_s26, %s10138_s25 }
   0x8   : > { %p28_p1 = scmp.eq.s32.totalorder %s27_s9, 0  ;;  %p38_p2 = scmp.eq.s32.totalorder %s10146_s27, 0 }
   0x9   : > { %p43_p3 = scmp.ne.s32.totalorder %s10138_s25, %s10134_s24  ;;  %p44_p4 = scmp.eq.s32.totalorder %s10213_s28, 0 }
   0xa   : > { %s10229_s10 = scalar_select %p28_p1, %s10142_s26, %s30_s8  }
   0xb   : > { %p10231_p5 = por %p38_p2, %p37_p0  ;;  %p10235_p6 = por %p44_p4, %p43_p3 }
   0xc   : > { %p193_p7 = scmp.eq.s32.totalorder %s10213_s28, 3  ;;  %p199_p8 = scmp.eq.s32.totalorder %s8476_s29, 3 }
   0xd   : > { %p8972_p9 = scmp.lt.s32.totalorder %s10146_s27, 4  ;;  %s237_s15 = sand.u32 1, %s10142_s26  }
   0xe   : > { %p10241_p10 = por %p193_p7, %p37_p0  ;;  %p10245_p11 = por %p199_p8, %p43_p3 }
   0xf   : > { %s8686_s16 = sshll.u32 %s10146_s27, 10  ;;  %s8479_s17 = sshll.u32 %s237_s15, 6 }
  0x10   : > { %s17220_s13 = scalar_select %p10241_p10, 1, 0 }
  0x11   : > { %s17221_s14 = scalar_select %p10245_p11, 1, 0 }
  0x12   : > { %s10254_s20 = scalar_lea.hbm %s17082_s0, %s8686_s16  ;;  %s241_s21 = scalar_lea.vmem [#allocation2], %s8479_s17 }
  0x13   : > { %s249_s22 = sshll.u32 %s241_s21, 4  ;;  %p10258_p12 = pnand %p8972_p9, %p10231_p5  ;;  %s10262_s22 = int_to_ptr.vmem [resolvable:$true] %s249_s22 }
  0x14   : > { %s238_s29 = scalar_lea.sflag [#allocation3], %s237_s15  ;;  %s10050_s8 = scalar_lea.hbm %s10254_s20, 1024 }
  0x15   : > { %p10051_p1 = scmp.ne.s32.totalorder %s10254_s20, %s10050_s8  ;;  %p10052_p2 = pneg %p10258_p12 }
  0x16   : > { %s10055_s16 = scalar_lea.hbm %s17082_s0, 4096  ;;  %p10056_p5 = scmp.lt.u32.totalorder %s10254_s20, %s17082_s0 }
  0x17   : > { %p10053_p3 = pnand %p10052_p2, %p10051_p1  ;;  %p10057_p7 = scmp.lt.u32.totalorder %s10055_s16, %s10050_s8 }
  0x18   : > { %p10059_p9 = scmp.lt.u32.totalorder %s10050_s8, %s10254_s20 }
  0x19   : > { %p10054_p4 = pneg %p10053_p3  ;;  %p10058_p8 = por %p10057_p7, %p10056_p5 }
  0x1b   : > { %p10060_p13 = por %p10059_p9, %p10058_p8 }
  0x1d   : > { %p10061_p0 = pnand %p10060_p13, %p10054_p4 }
  0x1f   : > { %10064 = shalt.err (!%p10061_p0)
}
  0x20   : > { %s10065_s15 = scalar_lea.vmem %s10262_s22, 1024  ;;  %s10148_s19 = smov [#allocation2]  }
  0x21   : > { %p10066_p1 = scmp.ne.s32.totalorder %s10262_s22, %s10065_s15  ;;  %s10070_s21 = sshll.u32 %s10148_s19, 4  ;;  %s10071_s21 = int_to_ptr.vmem [resolvable:$false] %s10070_s21 }
  0x22   : > { %s10072_s9 = scalar_lea.vmem %s10071_s21, 2048  ;;  %p10073_p10 = scmp.lt.s32.totalorder %s10262_s22, %s10071_s21 }
  0x23   : > { %p10068_p3 = pnand %p10066_p1, %p10052_p2  ;;  %p10074_p5 = scmp.lt.s32.totalorder %s10072_s9, %s10065_s15 }
  0x25   : > { %p10069_p11 = pneg %p10068_p3  ;;  %p10075_p7 = por %p10074_p5, %p10073_p10 }
  0x27   : > { %p10076_p8 = pnand %p10075_p7, %p10069_p11 }
  0x29   : > { %10079 = shalt.err (!%p10076_p8)
}
  0x2a   : > { %8967 = dma.hbm_to_vmem [thread:$0]  (!%p10258_p12), %s10254_s20, 1024, %s10262_s22, %s238_s29  }
  0x2b   : > { %p17223_p13 = scmp.lt.s32.totalorder %s10146_s27, 5  ;;  %p17224_p0 = scmp.ge.s32.totalorder %s10146_s27, 1 }
  0x2d   : > { %p255_p2 = pnand %p17224_p0, %p17223_p13 }
  0x2f   : > { %258 = sbr.rel (%p255_p2) target bundleno = 2083 (0x823), region = 48 }
  0x36   : > { %s10296_s8 = sand.u32 1, %s10138_s25  }
  0x37   : > { %s8483_s11 = sshll.u32 %s10296_s8, 6  ;;  %s261_s16 = scalar_lea.sflag [#allocation3], %s10296_s8 }
  0x38   : > { %s10300_s17 = scalar_lea.vmem [#allocation2], %s8483_s11 }
  0x39   : > { %10125 = dma.done.wait (%p10235_p6), %s261_s16, 1024  }
  0x3a   : > { %10127 = vsyncadd (%p10235_p6), %s261_s16, 4294966272  ;;  %v17091_v0 = vmov 0.0   ;;  %v10150_v1 = vmov 0   ;;  %v297_v2 = vld [vmem:[%s10300_s17] sm:$0x77]  ;;  %vm362_vm0 = vcmask 1042432  }
  0x3b   : > { %459 = vmatprep.mubr.f32.mxu0 %v17091_v0  ;;  %548 = vmatprep.mubr.f32.mxu1 %v17091_v0  ;;  %v298_v3 = vld [vmem:[%s10300_s17 + $0x8] sm:$0x77]  ;;  %v10310_v4 = vcombine.high %v297_v2, %v297_v2  ;;  %v299_v6 = vld [vmem:[%s10300_s17 + $0x10] sm:$0x77]  ;;  %v300_v7 = vld [vmem:[%s10300_s17 + $0x18] sm:$0x77] }
  0x3c   : > { %9008 = vset.pattern.permute.xlu0 %v10150_v1  ;;  %9009 = vset.pattern.permute.xlu1 %v10150_v1  ;;  %v10312_v5 = vcombine.high %v298_v3, %v298_v3  ;;  %v10319_v8 = vld [vmem:[%s17083_s1] sm:$0xff]  ;;  %vm349_vm1 = vcmask 23552   ;;  %v10325_v9 = vcombine.high %v299_v6, %v299_v6  ;;  %v10327_v10 = vcombine.high %v300_v7, %v300_v7  ;;  %v302_v12 = vld [vmem:[%s10300_s17 + $0x28] sm:$0x77]  ;;  %v311_v17 = vld [vmem:[%s17085_s3 + $0x10] sm:$0xff]  ;;  %s8484_s9 = sshll.u32 %s10296_s8, 7 }
  0x3d   : > { %17225 = vst [vmem:[#allocation8_spill] sm:$0xff] %v10310_v4  ;;  %8485 = vmatprep.subr.msk.mxu0 %vm362_vm0, %v10310_v4  ;;  %v301_v11 = vld [vmem:[%s10300_s17 + $0x20] sm:$0x77]  ;;  %v10342_v13 = vld [vmem:[%s17083_s1 + $0x8] sm:$0xff]  ;;  %v10350_v15 = vcombine.high %v302_v12, %v302_v12  ;;  %v10369_v18 = vld [vmem:[%s17083_s1 + $0x10] sm:$0xff]  ;;  %325 = vperm.xlu1 %9009, %v311_v17   ;;  %s17016_s11 = scalar_lea.vmem [#allocation5], %s8484_s9 }
  0x3e   : > { %17226 = vst [vmem:[#allocation9_spill] sm:$0xff] %v10312_v5  ;;  %8491 = vmatprep.subr.msk.mxu1 %vm362_vm0, %v10312_v5  ;;  %17227 = vst [vmem:[#allocation10_spill] sm:$0xff] %v10325_v9  ;;  %8486 = vmatpush1.msk.msra.mxu0 %vm362_vm0, %v297_v2  ;;  %v10348_v14 = vcombine.high %v301_v11, %v301_v11  ;;  %v309_v16 = vld [vmem:[%s17085_s3] sm:$0xff]  ;;  %v310_v19 = vld [vmem:[%s17085_s3 + $0x8] sm:$0xff]  ;;  %s8687_s16 = sshll.u32 %s10213_s28, 11  ;;  %s8406_s12 = sshll.u32 %s17016_s11, 4  ;;  %s17039_s12 = int_to_ptr.vmem [resolvable:$true] %s8406_s12 }
  0x3f   : > { %17228 = vst [vmem:[#allocation11_spill] sm:$0xff] %v10327_v10  ;;  %8492 = vmatpush1.msk.msra.mxu1 %vm362_vm0, %v298_v3  ;;  %8487 = vmatmul.mubr.msk.f32.vlgmr.msra.gmra.mrb[0].mxu0 %vm349_vm1, %v10319_v8  ;;  %17230 = vst [vmem:[#allocation13_spill] sm:$0xff] %v10350_v15  ;;  %v312_v20 = vld [vmem:[%s17085_s3 + $0x18] sm:$0xff]  ;;  %v303_v22 = vld [vmem:[%s10300_s17 + $0x30] sm:$0x77]  ;;  %s17037_s23 = scalar_lea.hbm %s17089_s7, %s8687_s16  ;;  %s8392_s28 = scalar_lea.sflag [#allocation4], %s10296_s8 }
  0x40   : > { %8493 = vmatmul.mubr.msk.f32.vlgmr.msra.gmra.mrb[0].mxu1 %vm349_vm1, %v10319_v8  ;;  %465 = vmatprep.mubr.f32.mxu0 %v17091_v0  ;;  %17229 = vst [vmem:[#allocation12_spill] sm:$0xff] %v10348_v14  ;;  %v10390_v21 = vld [vmem:[%s17083_s1 + $0x18] sm:$0xff]  ;;  %v8533_v24 = vld [vmem:[%s17085_s3 + $0x20] sm:$0xff]  ;;  %v8534_v25 = vld [vmem:[%s17085_s3 + $0x28] sm:$0xff]  ;;  %v10406_v26 = vcombine.high %v303_v22, %v303_v22  ;;  %s10080_s29 = scalar_lea.vmem %s17039_s12, 2048  ;;  %p18368_p10 = scmp.ne.s32.totalorder %s17220_s13, 0 }
  0x41   : > { %554 = vmatprep.mubr.f32.mxu1 %v17091_v0  ;;  %8497 = vmatprep.subr.msk.mxu0 %vm362_vm0, %v10325_v9  ;;  %v304_v23 = vld [vmem:[%s10300_s17 + $0x38] sm:$0x77]  ;;  %v8535_v28 = vld [vmem:[%s17085_s3 + $0x30] sm:$0xff]  ;;  %v8573_v30 = vld [vmem:[%s17085_s3 + $0x40] sm:$0xff]  ;;  %p10081_p6 = scmp.ne.s32.totalorder %s17039_s12, %s10080_s29  ;;  %s10151_s18 = smov [#allocation5]  }
  0x42   : > { %8503 = vmatprep.subr.msk.mxu1 %vm362_vm0, %v10327_v10  ;;  %8498 = vmatpush1.msk.msra.mxu0 %vm362_vm0, %v299_v6  ;;  %17231 = vst [vmem:[#allocation14_spill] sm:$0xff] %v10406_v26  ;;  %v10408_v27 = vcombine.high %v304_v23, %v304_v23  ;;  %v8536_v29 = vld [vmem:[%s17085_s3 + $0x38] sm:$0xff]  ;;  %v8574_v31 = vld [vmem:[%s17085_s3 + $0x48] sm:$0xff]  ;;  %v8575_v32 = vld [vmem:[%s17085_s3 + $0x50] sm:$0xff]  ;;  %s10084_s15 = sshll.u32 %s10151_s18, 4  ;;  %s10085_s15 = int_to_ptr.vmem [resolvable:$false] %s10084_s15 }
  0x43   : > { %8504 = vmatpush1.msk.msra.mxu1 %vm362_vm0, %v300_v7  ;;  %8488 = vmatmul.mubr.msk.f32.gmra.mrb[2].mxu0 %vm349_vm1, %v10342_v13  ;;  %v8576_v33 = vld [vmem:[%s17085_s3 + $0x58] sm:$0xff]  ;;  %v8613_v34 = vld [vmem:[%s17085_s3 + $0x60] sm:$0xff]  ;;  %v8614_v35 = vld [vmem:[%s17085_s3 + $0x68] sm:$0xff]  ;;  %p10082_p11 = pnand %p10081_p6, %p18368_p10  ;;  %s10086_s19 = scalar_lea.vmem %s10085_s15, 4096 }
  0x44   : > { %8494 = vmatmul.mubr.msk.f32.gmra.mrb[2].mxu1 %vm349_vm1, %v10342_v13  ;;  %471 = vmatprep.mubr.f32.mxu0 %v17091_v0  ;;  %17232 = vst [vmem:[#allocation15_spill] sm:$0xff] %v10408_v27  ;;  %v8615_v36 = vld [vmem:[%s17085_s3 + $0x70] sm:$0xff]  ;;  %v8616_v37 = vld [vmem:[%s17085_s3 + $0x78] sm:$0xff]  ;;  %v8353_v38 = vld [vmem:[%s17088_s6] sm:$0xff]  ;;  %p10087_p4 = scmp.lt.s32.totalorder %s17039_s12, %s10085_s15  ;;  %p10088_p9 = scmp.lt.s32.totalorder %s10086_s19, %s10080_s29 }
  0x45   : > { %560 = vmatprep.mubr.f32.mxu1 %v17091_v0  ;;  %8509 = vmatprep.subr.msk.mxu0 %vm362_vm0, %v10348_v14  ;;  %p10083_p12 = pneg %p10082_p11 }
  0x46   : > { %8515 = vmatprep.subr.msk.mxu1 %vm362_vm0, %v10350_v15  ;;  %315 = vperm.xlu0 %9008, %v309_v16   ;;  %p10089_p1 = por %p10088_p9, %p10087_p4 }
  0x47   : > { %8489 = vmatmul.mubr.msk.f32.gmra.mrb[4].mxu0 %vm349_vm1, %v10369_v18  ;;  %330 = vperm.xlu1 %9009, %v312_v20  }
  0x48   : > { %8495 = vmatmul.mubr.msk.f32.gmra.mrb[4].mxu1 %vm349_vm1, %v10369_v18  ;;  %477 = vmatprep.mubr.f32.mxu0 %v17091_v0  ;;  %p10090_p3 = pnand %p10089_p1, %p10083_p12 }
  0x49   : > { %566 = vmatprep.mubr.f32.mxu1 %v17091_v0 }
  0x4a   : > { %320 = vperm.xlu0 %9008, %v310_v19  }
  0x4b   : > { %8490 = vmatmul.mubr.msk.f32.gmra.mrb[6].mxu0 %vm349_vm1, %v10390_v21  ;;  %2083 = vperm.xlu1 %9009, %v8534_v25  }
  0x4c   : > { %8496 = vmatmul.mubr.msk.f32.gmra.mrb[6].mxu1 %vm349_vm1, %v10390_v21  ;;  %637 = vmatprep.mubr.f32.mxu0 %v17091_v0 }
  0x4d   : > { %726 = vmatprep.mubr.f32.mxu1 %v17091_v0 }
  0x4e   : > { %2078 = vperm.xlu0 %9008, %v8533_v24  }
  0x4f   : > { %8499 = vmatmul.mubr.msk.f32.vlgmr.msra.gmra.mrb[8].mxu0 %vm349_vm1, %v10319_v8  ;;  %2093 = vperm.xlu1 %9009, %v8536_v29  }
  0x50   : > { %8505 = vmatmul.mubr.msk.f32.vlgmr.msra.gmra.mrb[8].mxu1 %vm349_vm1, %v10319_v8  ;;  %643 = vmatprep.mubr.f32.mxu0 %v17091_v0 }
  0x51   : > { %732 = vmatprep.mubr.f32.mxu1 %v17091_v0  ;;  %8510 = vmatpush1.msk.msra.mxu0 %vm362_vm0, %v301_v11 }
  0x52   : > { %8516 = vmatpush1.msk.msra.mxu1 %vm362_vm0, %v302_v12  ;;  %8521 = vmatprep.subr.msk.mxu0 %vm362_vm0, %v10406_v26 }
  0x53   : > { %8527 = vmatprep.subr.msk.mxu1 %vm362_vm0, %v10408_v27  ;;  %8500 = vmatmul.mubr.msk.f32.gmra.mrb[10].mxu0 %vm349_vm1, %v10342_v13 }
  0x54   : > { %8506 = vmatmul.mubr.msk.f32.gmra.mrb[10].mxu1 %vm349_vm1, %v10342_v13  ;;  %649 = vmatprep.mubr.f32.mxu0 %v17091_v0 }
  0x55   : > { %738 = vmatprep.mubr.f32.mxu1 %v17091_v0  ;;  %2088 = vperm.xlu0 %9008, %v8535_v28  }
  0x56   : > { %3798 = vperm.xlu1 %9009, %v8574_v31  }
  0x57   : > { %8501 = vmatmul.mubr.msk.f32.gmra.mrb[12].mxu0 %vm349_vm1, %v10369_v18 }
  0x58   : > { %8507 = vmatmul.mubr.msk.f32.gmra.mrb[12].mxu1 %vm349_vm1, %v10369_v18  ;;  %655 = vmatprep.mubr.f32.mxu0 %v17091_v0 }
  0x59   : > { %744 = vmatprep.mubr.f32.mxu1 %v17091_v0  ;;  %3793 = vperm.xlu0 %9008, %v8573_v30  }
  0x5a   : > { %3808 = vperm.xlu1 %9009, %v8576_v33  }
  0x5b   : > { %8502 = vmatmul.mubr.msk.f32.gmra.mrb[14].mxu0 %vm349_vm1, %v10390_v21 }
  0x5c   : > { %8508 = vmatmul.mubr.msk.f32.gmra.mrb[14].mxu1 %vm349_vm1, %v10390_v21  ;;  %815 = vmatprep.mubr.f32.mxu0 %v17091_v0 }
  0x5d   : > { %904 = vmatprep.mubr.f32.mxu1 %v17091_v0  ;;  %3803 = vperm.xlu0 %9008, %v8575_v32  }
  0x5e   : > { %5512 = vperm.xlu1 %9009, %v8614_v35  }
  0x5f   : > { %8511 = vmatmul.mubr.msk.f32.vlgmr.msra.gmra.mrb[16].mxu0 %vm349_vm1, %v10319_v8 }
  0x60   : > { %8517 = vmatmul.mubr.msk.f32.vlgmr.msra.gmra.mrb[16].mxu1 %vm349_vm1, %v10319_v8  ;;  %821 = vmatprep.mubr.f32.mxu0 %v17091_v0 }
  0x61   : > { %910 = vmatprep.mubr.f32.mxu1 %v17091_v0  ;;  %8522 = vmatpush1.msk.msra.mxu0 %vm362_vm0, %v303_v22 }
  0x62   : > { %8528 = vmatpush1.msk.msra.mxu1 %vm362_vm0, %v304_v23  ;;  %5507 = vperm.xlu0 %9008, %v8613_v34  }
  0x63   : > { %8512 = vmatmul.mubr.msk.f32.gmra.mrb[18].mxu0 %vm349_vm1, %v10342_v13  ;;  %5522 = vperm.xlu1 %9009, %v8616_v37  }
  0x64   : > { %8518 = vmatmul.mubr.msk.f32.gmra.mrb[18].mxu1 %vm349_vm1, %v10342_v13  ;;  %827 = vmatprep.mubr.f32.mxu0 %v17091_v0 }
  0x65   : > { %916 = vmatprep.mubr.f32.mxu1 %v17091_v0 }
  0x66   : > { %5517 = vperm.xlu0 %9008, %v8615_v36  }
  0x67   : > { %8513 = vmatmul.mubr.msk.f32.gmra.mrb[20].mxu0 %vm349_vm1, %v10369_v18 }
  0x68   : > { %8519 = vmatmul.mubr.msk.f32.gmra.mrb[20].mxu1 %vm349_vm1, %v10369_v18  ;;  %833 = vmatprep.mubr.f32.mxu0 %v17091_v0 }
  0x69   : > { %922 = vmatprep.mubr.f32.mxu1 %v17091_v0 }
  0x6a   : > { %8356 = vperm.xlu0 %9008, %v8353_v38  }
  0x6b   : > { %8514 = vmatmul.mubr.msk.f32.gmra.mrb[22].mxu0 %vm349_vm1, %v10390_v21 }
  0x6c   : > { %8520 = vmatmul.mubr.msk.f32.gmra.mrb[22].mxu1 %vm349_vm1, %v10390_v21  ;;  %993 = vmatprep.mubr.f32.mxu0 %v17091_v0 }
  0x6d   : > { %1082 = vmatprep.mubr.f32.mxu1 %v17091_v0 }
  0x6f   : > { %8523 = vmatmul.mubr.msk.f32.vlgmr.msra.gmra.mrb[24].mxu0 %vm349_vm1, %v10319_v8 }
  0x70   : > { %8529 = vmatmul.mubr.msk.f32.vlgmr.msra.gmra.mrb[24].mxu1 %vm349_vm1, %v10319_v8  ;;  %999 = vmatprep.mubr.f32.mxu0 %v17091_v0 }
  0x71   : > { %1088 = vmatprep.mubr.f32.mxu1 %v17091_v0 }
  0x73   : > { %8524 = vmatmul.mubr.msk.f32.gmra.mrb[26].mxu0 %vm349_vm1, %v10342_v13 }
  0x74   : > { %8530 = vmatmul.mubr.msk.f32.gmra.mrb[26].mxu1 %vm349_vm1, %v10342_v13  ;;  %1005 = vmatprep.mubr.f32.mxu0 %v17091_v0 }
  0x75   : > { %1094 = vmatprep.mubr.f32.mxu1 %v17091_v0 }
  0x77   : > { %8525 = vmatmul.mubr.msk.f32.gmra.mrb[28].mxu0 %vm349_vm1, %v10369_v18 }
  0x78   : > { %8531 = vmatmul.mubr.msk.f32.gmra.mrb[28].mxu1 %vm349_vm1, %v10369_v18  ;;  %1011 = vmatprep.mubr.f32.mxu0 %v17091_v0 }
  0x79   : > { %1100 = vmatprep.mubr.f32.mxu1 %v17091_v0 }
  0x7b   : > { %8526 = vmatmul.mubr.msk.f32.gmra.mrb[30].mxu0 %vm349_vm1, %v10390_v21 }
  0x7c   : > { %8532 = vmatmul.mubr.msk.f32.gmra.mrb[30].mxu1 %vm349_vm1, %v10390_v21  ;;  %2173 = vmatprep.mubr.f32.mxu0 %v17091_v0 }
  0x7d   : > { %2262 = vmatprep.mubr.f32.mxu1 %v17091_v0 }
  0xbc   : > { %v10550_v2 = vpop.permute.xlu1 %325 }
  0xc5   : > { %v10523_v39 = vpop.permute.xlu0 %315 }
  0xc9   : > { %v10533_v48 = vpop.permute.xlu0 %320 }
 0x112   : > { %v461_v40 = vpop.f32.mrb[0].mxu0 }
 0x113   : > { %v550_v41 = vpop.f32.mrb[0].mxu1  ;;  %v10526_v42 = vadd.f32 %v461_v40, %v10523_v39  ;;  %v463_v44 = vpop.f32.mrb[1].mxu0 }
 0x114   : > { %v10529_v43 = vadd.f32 %v550_v41, %v10523_v39  ;;  %v552_v45 = vpop.f32.mrb[1].mxu1  ;;  %v10536_v49 = vadd.f32 %v463_v44, %v10523_v39 }
 0x115   : > { %v1171_v46 = vand.u32 2147483647, %v10526_v42  ;;  %v10545_v60 = vadd.f32 %v552_v45, %v10523_v39 }
 0x116   : > { %v1173_v47 = vand.u32 2147483647, %v10529_v43  ;;  %v467_v52 = vpop.f32.mrb[2].mxu0  ;;  %v1172_v61 = vand.u32 2147483647, %v10536_v49 }
 0x117   : > { %v1235_v50 = vsub.f32 0.0, %v1171_v46  ;;  %v556_v53 = vpop.f32.mrb[2].mxu1  ;;  %v10539_v54 = vadd.f32 %v467_v52, %v10533_v48  ;;  %v469_v56 = vpop.f32.mrb[3].mxu0  ;;  %v1174_v7 = vand.u32 2147483647, %v10545_v60 }
 0x118   : > { %v1237_v51 = vsub.f32 0.0, %v1173_v47  ;;  %v10542_v55 = vadd.f32 %v556_v53, %v10533_v48  ;;  %v558_v57 = vpop.f32.mrb[3].mxu1  ;;  %v10553_v3 = vadd.f32 %v469_v56, %v10533_v48  ;;  %v1236_v19 = vsub.f32 0.0, %v1172_v61 }
 0x119   : > { %v1299_v58 = vmul.f32 1.442695, %v1235_v50  ;;  %v1187_v62 = vand.u32 2147483647, %v10539_v54  ;;  %v10557_v12 = vadd.f32 %v558_v57, %v10533_v48  ;;  %v1238_v25 = vsub.f32 0.0, %v1174_v7 }
 0x11a   : > { %v1303_v59 = vmul.f32 1.442695, %v1237_v51  ;;  %v1189_v63 = vand.u32 2147483647, %v10542_v55  ;;  %v473_v1 = vpop.f32.mrb[4].mxu0 }
 0x11b   : > { %9018 = vpow2.f32 %v1299_v58  ;;  %v562_v6 = vpop.f32.mrb[4].mxu1  ;;  %v1251_v8 = vsub.f32 0.0, %v1187_v62  ;;  %v475_v13 = vpop.f32.mrb[5].mxu0  ;;  %v10564_v22 = vadd.f32 %v473_v1, %v10550_v2  ;;  %v1188_v24 = vand.u32 2147483647, %v10553_v3 }
 0x11c   : > { %9020 = vpow2.f32 %v1303_v59  ;;  %v1253_v11 = vsub.f32 0.0, %v1189_v63  ;;  %v564_v16 = vpop.f32.mrb[5].mxu1  ;;  %v1190_v28 = vand.u32 2147483647, %v10557_v12  ;;  %v1301_v32 = vmul.f32 1.442695, %v1236_v19 }
 0x11d   : > { %v1331_v20 = vmul.f32 1.442695, %v1251_v8  ;;  %v1203_v33 = vand.u32 2147483647, %v10564_v22  ;;  %v1252_v36 = vsub.f32 0.0, %v1188_v24  ;;  %v10592_v51 = vadd.f32 %v562_v6, %v10550_v2 }
 0x11e   : > { %v10559_v17 = vpop.f32.mrb[6].mxu0  ;;  %v1335_v21 = vmul.f32 1.442695, %v1253_v11  ;;  %v1305_v38 = vmul.f32 1.442695, %v1238_v25  ;;  %v1254_v40 = vsub.f32 0.0, %v1190_v28  ;;  %v10617_v24 = vadd.f32 %v475_v13, %v10550_v2 }
 0x11f   : > { %v10561_v18 = vpop.f32.mrb[6].mxu1  ;;  %v10566_v23 = vpop.f32.mrb[7].mxu0  ;;  %9022 = vpow2.f32 %v1331_v20  ;;  %v1267_v50 = vsub.f32 0.0, %v1203_v33  ;;  %v1333_v56 = vmul.f32 1.442695, %v1252_v36  ;;  %v10620_v25 = vadd.f32 %v564_v16, %v10550_v2 }
 0x120   : > { %v10570_v29 = vpop.f32.mrb[7].mxu1  ;;  %9024 = vpow2.f32 %v1335_v21  ;;  %v1337_v57 = vmul.f32 1.442695, %v1254_v40  ;;  %v1205_v63 = vand.u32 2147483647, %v10592_v51 }
 0x121   : > { %9026 = vpow2.f32 %v1301_v32  ;;  %v1363_v62 = vmul.f32 1.442695, %v1267_v50  ;;  %v1204_v36 = vand.u32 2147483647, %v10617_v24 }
 0x122   : > { %v10572_v30 = vpop.f32.mrb[8].mxu0 }
 0x123   : > { %v10574_v31 = vpop.f32.mrb[8].mxu1  ;;  %v10577_v34 = vpop.f32.mrb[9].mxu0 }
 0x124   : > { %v10579_v35 = vpop.f32.mrb[9].mxu1 }
 0x125   : > { %v10581_v37 = vpop.eup %9018 }
 0x126   : > { %v10583_v41 = vpop.eup %9020  ;;  %v1427_v44 = vadd.f32 1.0, %v10581_v37  ;;  %v10586_v45 = vpop.f32.mrb[10].mxu0  ;;  %v1430_v33 = vmul.f32 -0.5, %v10581_v37  ;;  %v1433_v26 = vand.u32 2147483647, %v10581_v37 }
 0x127   : > { %v10588_v46 = vpop.f32.mrb[10].mxu1  ;;  %v1445_v47 = vadd.f32 1.0, %v10583_v41  ;;  %v10594_v52 = vpop.f32.mrb[11].mxu0  ;;  %v1451_v15 = vand.u32 2147483647, %v10583_v41 }
 0x128   : > { %v10596_v53 = vpop.f32.mrb[11].mxu1  ;;  %9028 = vlog2.f32 %v1427_v44  ;;  %v10630_v44 = vpop.permute.xlu1 %330  ;;  %v1431_v19 = vadd.f32 1.0, %v1430_v33  ;;  %vm10683_vm2 = vcmp.lt.f32.partialorder %v1433_v26, 0.0004427343 }
 0x129   : > { %9030 = vpow2.f32 %v1305_v38  ;;  %v10602_v61 = vpop.eup %9022  ;;  %v1269_v38 = vsub.f32 0.0, %v1205_v63  ;;  %vm10687_vm3 = vcmp.lt.f32.partialorder %v1451_v15, 0.0004427343 }
 0x12a   : > { %9032 = vlog2.f32 %v1445_v47  ;;  %v10598_v58 = vpop.f32.mrb[12].mxu0  ;;  %v10609_v7 = vpop.eup %9024  ;;  %v1571_v8 = vadd.f32 1.0, %v10602_v61  ;;  %v1577_v63 = vand.u32 2147483647, %v10602_v61 }
 0x12b   : > { %v10600_v59 = vpop.f32.mrb[12].mxu1  ;;  %v10605_v1 = vpop.f32.mrb[13].mxu0  ;;  %9034 = vpow2.f32 %v1333_v56  ;;  %v1589_v21 = vadd.f32 1.0, %v10609_v7  ;;  %v1592_v13 = vmul.f32 -0.5, %v10609_v7  ;;  %v1367_v11 = vmul.f32 1.442695, %v1269_v38 }
 0x12c   : > { %v10607_v6 = vpop.f32.mrb[13].mxu1  ;;  %9036 = vpow2.f32 %v1337_v57  ;;  %v10637_v56 = vpop.eup %9026  ;;  %v1448_v57 = vmul.f32 -0.5, %v10583_v41  ;;  %vm1578_vm4 = vcmp.lt.f32.partialorder %v1577_v63, 0.0004427343 }
 0x12d   : > { %17233 = vst [vmem:[#allocation16_spill] sm:$0xff] %v10607_v6  ;;  %9038 = vlog2.f32 %v1571_v8  ;;  %v10644_v8 = vadd.f32 %v10559_v17, %v10630_v44  ;;  %v1436_v14 = vadd.f32 1.0, %v10637_v56 }
 0x12e   : > { %v10622_v28 = vpop.f32.mrb[14].mxu0  ;;  %9040 = vpow2.f32 %v1363_v62  ;;  %v1574_v62 = vmul.f32 -0.5, %v10602_v61  ;;  %v1449_v5 = vadd.f32 1.0, %v1448_v57  ;;  %v1432_v57 = vmul.f32 %v10581_v37, %v1431_v19 }
 0x12f   : > { %17234 = vst [vmem:[#allocation17_spill] sm:$0xff] %v10622_v28  ;;  %v10624_v32 = vpop.f32.mrb[14].mxu1  ;;  %v10628_v40 = vpop.f32.mrb[15].mxu0  ;;  %9042 = vlog2.f32 %v1589_v21  ;;  %v1206_v21 = vand.u32 2147483647, %v10620_v25 }
 0x130   : > { %17235 = vst [vmem:[#allocation18_spill] sm:$0xff] %v10624_v32  ;;  %17236 = vst [vmem:[#allocation19_spill] sm:$0xff] %v10628_v40  ;;  %v10635_v50 = vpop.f32.mrb[15].mxu1  ;;  %v1575_v4 = vadd.f32 1.0, %v1574_v62  ;;  %v1219_v33 = vand.u32 2147483647, %v10644_v8  ;;  %9044 = vpow2.f32 %v1367_v11  ;;  %v1450_v19 = vmul.f32 %v10583_v41, %v1449_v5 }
 0x131   : > { %17237 = vst [vmem:[#allocation20_spill] sm:$0xff] %v10635_v50  ;;  %v10670_v50 = vadd.f32 %v10561_v18, %v10630_v44  ;;  %9046 = vlog2.f32 %v1436_v14  ;;  %v17250_v41 = vmax.f32 %v10526_v42, 0.0  ;;  %v17254_v42 = vmax.f32 %v10529_v43, 0.0 }
 0x132   : > { %v9029_v0 = vpop.eup %9028  ;;  %v10648_v16 = vpop.f32.mrb[16].mxu0  ;;  %v1576_v26 = vmul.f32 %v10602_v61, %v1575_v4  ;;  %v17252_v61 = vmax.f32 %v10539_v54, 0.0 }
 0x133   : > { %17238 = vst [vmem:[#allocation21_spill] sm:$0xff] %v10648_v16  ;;  %v10650_v20 = vpop.f32.mrb[16].mxu1  ;;  %v10652_v47 = vpop.eup %9030  ;;  %v1429_v9 = vmul.f32 0.6931472, %v9029_v0  ;;  %v1221_v43 = vand.u32 2147483647, %v10670_v50 }
 0x134   : > { %17239 = vst [vmem:[#allocation22_spill] sm:$0xff] %v10650_v20  ;;  %v10656_v27 = vpop.f32.mrb[17].mxu0  ;;  %v9033_v17 = vpop.eup %9032  ;;  %v1454_v38 = vadd.f32 1.0, %v10652_v47 }
 0x135   : > { %17240 = vst [vmem:[#allocation23_spill] sm:$0xff] %v10656_v27  ;;  %v10661_v10 = vpop.f32.mrb[17].mxu1  ;;  %v10664_v20 = vpop.eup %9034  ;;  %v1268_v27 = vsub.f32 0.0, %v1204_v36  ;;  %v1447_v62 = vmul.f32 0.6931472, %v9033_v17  ;;  %v1435_v11 = vsel %vm10683_vm2, %v1432_v57, %v1429_v9 }
 0x136   : > { %17241 = vst [vmem:[#allocation24_spill] sm:$0xff] %v10661_v10  ;;  %v10672_v16 = vpop.f32.mrb[18].mxu0  ;;  %v10676_v0 = vpop.eup %9036  ;;  %v1593_v10 = vadd.f32 1.0, %v1592_v13  ;;  %9048 = vlog2.f32 %v1454_v38  ;;  %v1580_v15 = vadd.f32 1.0, %v10664_v20  ;;  %v10708_v4 = vadd.f32 %v1435_v11, %v17250_v41 }
 0x137   : > { %17242 = vst [vmem:[#allocation25_spill] sm:$0xff] %v10672_v16  ;;  %v10674_v40 = vpop.f32.mrb[18].mxu1  ;;  %v10679_v32 = vpop.f32.mrb[19].mxu0  ;;  %v1453_v16 = vsel %vm10687_vm3, %v1450_v19, %v1447_v62  ;;  %v1439_v62 = vmul.f32 -0.5, %v10637_v56  ;;  %v1365_v19 = vmul.f32 1.442695, %v1268_v27 }
 0x138   : > { %17243 = vst [vmem:[#allocation26_spill] sm:$0xff] %v10674_v40  ;;  %17244 = vst [vmem:[#allocation27_spill] sm:$0xff] %v10679_v32  ;;  %v10681_v28 = vpop.f32.mrb[19].mxu1  ;;  %v9039_v36 = vpop.eup %9038  ;;  %v1595_v40 = vand.u32 2147483647, %v10609_v7  ;;  %v1594_v5 = vmul.f32 %v10609_v7, %v1593_v10  ;;  %v1283_v7 = vsub.f32 0.0, %v1219_v33  ;;  %v10723_v18 = vadd.f32 %v1453_v16, %v17254_v42 }
 0x139   : > { %17245 = vst [vmem:[#allocation28_spill] sm:$0xff] %v10681_v28  ;;  %v10692_v37 = vpop.eup %9040  ;;  %v1573_v13 = vmul.f32 0.6931472, %v9039_v36  ;;  %v1270_v28 = vsub.f32 0.0, %v1206_v21  ;;  %17251 = vst [vmem:[#allocation29_spill] sm:$0xff] %v10708_v4  ;;  %v1598_v21 = vadd.f32 1.0, %v10676_v0  ;;  %9050 = vlog2.f32 %v1580_v15 }
 0x13a   : > { %v9043_v17 = vpop.eup %9042  ;;  %v10699_v32 = vpop.f32.mrb[20].mxu0  ;;  %vm1596_vm5 = vcmp.lt.f32.partialorder %v1595_v40, 0.0004427343  ;;  %v1715_v10 = vadd.f32 1.0, %v10692_v37  ;;  %17255 = vst [vmem:[#allocation31_spill] sm:$0xff] %v10723_v18  ;;  %v17256_v40 = vmax.f32 %v10542_v55, 0.0  ;;  %v10753_v55 = vadd.f32 %v10572_v30, %v10523_v39 }
 0x13b   : > { %v10701_v14 = vpop.f32.mrb[20].mxu1  ;;  %v1579_v6 = vsel %vm1578_vm4, %v1576_v26, %v1573_v13  ;;  %v1591_v9 = vmul.f32 0.6931472, %v9043_v17  ;;  %v10715_v38 = vpop.f32.mrb[21].mxu0  ;;  %v1395_v33 = vmul.f32 1.442695, %v1283_v7  ;;  %9052 = vlog2.f32 %v1598_v21 }
 0x13c   : > { %v10712_v63 = vadd.f32 %v1579_v6, %v17252_v61  ;;  %v10717_v57 = vpop.f32.mrb[21].mxu1  ;;  %v1457_v6 = vmul.f32 -0.5, %v10652_v47  ;;  %v1285_v61 = vsub.f32 0.0, %v1221_v43  ;;  %v1440_v7 = vadd.f32 1.0, %v1439_v62 }
 0x13d   : > { %v1597_v36 = vsel %vm1596_vm5, %v1594_v5, %v1591_v9  ;;  %v1369_v9 = vmul.f32 1.442695, %v1270_v28  ;;  %v10744_v5 = vpop.eup %9044  ;;  %9054 = vpow2.f32 %v1395_v33  ;;  %v1442_v42 = vand.u32 2147483647, %v10637_v56 }
 0x13e   : > { %17253 = vst [vmem:[#allocation30_spill] sm:$0xff] %v10712_v63  ;;  %v10729_v11 = vadd.f32 %v1597_v36, %v17256_v40  ;;  %v10731_v13 = vpop.f32.mrb[22].mxu0  ;;  %v9047_v36 = vpop.eup %9046  ;;  %v1583_v40 = vmul.f32 -0.5, %v10664_v20  ;;  %9056 = vlog2.f32 %v1715_v10  ;;  %v1601_v21 = vmul.f32 -0.5, %v10676_v0 }
 0x13f   : > { %v10733_v26 = vpop.f32.mrb[22].mxu1  ;;  %v10737_v16 = vpop.f32.mrb[23].mxu0  ;;  %9058 = vpow2.f32 %v1365_v19  ;;  %v1399_v28 = vmul.f32 1.442695, %v1285_v61  ;;  %v1458_v15 = vadd.f32 1.0, %v1457_v6  ;;  %v1718_v41 = vmul.f32 -0.5, %v10692_v37 }
 0x140   : > { %17257 = vst [vmem:[#allocation32_spill] sm:$0xff] %v10729_v11  ;;  %v10742_v27 = vpop.f32.mrb[23].mxu1  ;;  %v9049_v54 = vpop.eup %9048  ;;  %v1460_v33 = vand.u32 2147483647, %v10652_v47  ;;  %9060 = vpow2.f32 %v1369_v9  ;;  %v1438_v43 = vmul.f32 0.6931472, %v9047_v36  ;;  %v1441_v6 = vmul.f32 %v10637_v56, %v1440_v7 }
 0x141   : > { %17258 = vst [vmem:[#allocation33_spill] sm:$0xff] %v10742_v27  ;;  %9062 = vpow2.f32 %v1399_v28  ;;  %v1175_v10 = vand.u32 2147483647, %v10753_v55  ;;  %v1584_v17 = vadd.f32 1.0, %v1583_v40  ;;  %v1586_v19 = vand.u32 2147483647, %v10664_v20 }
 0x142   : > { %v1604_v61 = vand.u32 2147483647, %v10676_v0  ;;  %v1733_v30 = vadd.f32 1.0, %v10744_v5  ;;  %vm10763_vm6 = vcmp.lt.f32.partialorder %v1442_v42, 0.0004427343  ;;  %v1602_v36 = vadd.f32 1.0, %v1601_v21 }
 0x143   : > { %v1456_v9 = vmul.f32 0.6931472, %v9049_v54  ;;  %v1459_v62 = vmul.f32 %v10652_v47, %v1458_v15  ;;  %vm10768_vm7 = vcmp.lt.f32.partialorder %v1460_v33, 0.0004427343  ;;  %v1721_v40 = vand.u32 2147483647, %v10692_v37  ;;  %v9051_v4 = vpop.eup %9050 }
 0x144   : > { %v10775_v11 = vadd.f32 %v10566_v23, %v10630_v44  ;;  %v1444_v56 = vsel %vm10763_vm6, %v1441_v6, %v1438_v43  ;;  %v1719_v7 = vadd.f32 1.0, %v1718_v41  ;;  %v1736_v54 = vmul.f32 -0.5, %v10744_v5 }
 0x145   : > { %v1239_v42 = vsub.f32 0.0, %v1175_v10  ;;  %v9053_v21 = vpop.eup %9052  ;;  %v1585_v47 = vmul.f32 %v10664_v20, %v1584_v17  ;;  %vm10781_vm8 = vcmp.lt.f32.partialorder %v1586_v19, 0.0004427343  ;;  %vm10785_vm9 = vcmp.lt.f32.partialorder %v1604_v61, 0.0004427343  ;;  %v10798_v17 = vpop.f32.mrb[24].mxu0 }
 0x146   : > { %9064 = vlog2.f32 %v1733_v30  ;;  %v1462_v18 = vsel %vm10768_vm7, %v1459_v62, %v1456_v9  ;;  %v1603_v41 = vmul.f32 %v10676_v0, %v1602_v36  ;;  %v10796_v43 = vadd.f32 %v10570_v29, %v10630_v44  ;;  %17267 = vst [vmem:[#allocation34_spill] sm:$0xff] %v10798_v17  ;;  %v10810_v0 = vpop.f32.mrb[24].mxu1 }
 0x147   : > { %v10789_v23 = vpop.eup %9054  ;;  %v1307_v20 = vmul.f32 1.442695, %v1239_v42  ;;  %v17268_v19 = vmax.f32 %v10536_v49, 0.0  ;;  %v1220_v6 = vand.u32 2147483647, %v10775_v11  ;;  %v10808_v62 = vadd.f32 %v10574_v31, %v10523_v39  ;;  %17270 = vst [vmem:[#allocation36_spill] sm:$0xff] %v10810_v0 }
 0x148   : > { %v9057_v10 = vpop.eup %9056  ;;  %v1859_v30 = vadd.f32 1.0, %v10789_v23  ;;  %v1720_v9 = vmul.f32 %v10692_v37, %v1719_v7  ;;  %vm10815_vm10 = vcmp.lt.f32.partialorder %v1721_v40, 0.0004427343  ;;  %v1737_v49 = vadd.f32 1.0, %v1736_v54 }
 0x149   : > { %v10802_v61 = vadd.f32 %v1444_v56, %v17268_v19  ;;  %v10812_v29 = vpop.eup %9058  ;;  %v1739_v28 = vand.u32 2147483647, %v10744_v5  ;;  %v10820_v56 = vpop.f32.mrb[25].mxu0  ;;  %v17274_v31 = vmax.f32 %v10545_v60, 0.0  ;;  %v1582_v0 = vmul.f32 0.6931472, %v9051_v4 }
 0x14a   : > { %17273 = vst [vmem:[#allocation37_spill] sm:$0xff] %v10820_v56  ;;  %v10822_v42 = vpop.eup %9060  ;;  %v1600_v17 = vmul.f32 0.6931472, %v9053_v21  ;;  %9066 = vlog2.f32 %v1859_v30  ;;  %v1222_v37 = vand.u32 2147483647, %v10796_v43  ;;  %v10833_v40 = vadd.f32 %v10577_v34, %v10523_v39 }
 0x14b   : > { %17269 = vst [vmem:[#allocation35_spill] sm:$0xff] %v10802_v61  ;;  %v10826_v19 = vadd.f32 %v1462_v18, %v17274_v31  ;;  %v10828_v63 = vpop.eup %9062  ;;  %9068 = vpow2.f32 %v1307_v20  ;;  %v10837_v7 = vadd.f32 %v10586_v45, %v10533_v48  ;;  %v1724_v60 = vadd.f32 1.0, %v10812_v29  ;;  %v10848_v31 = vpop.f32.mrb[25].mxu1 }
 0x14c   : > { %v1877_v54 = vadd.f32 1.0, %v10828_v63  ;;  %v1284_v4 = vsub.f32 0.0, %v1220_v6  ;;  %v1177_v21 = vand.u32 2147483647, %v10808_v62  ;;  %v10843_v18 = vmul.f32 %v10744_v5, %v1737_v49  ;;  %17276 = vst [vmem:[#allocation39_spill] sm:$0xff] %v10848_v31 }
 0x14d   : > { %17275 = vst [vmem:[#allocation38_spill] sm:$0xff] %v10826_v19  ;;  %v1742_v20 = vadd.f32 1.0, %v10822_v42  ;;  %v1862_v30 = vmul.f32 -0.5, %v10789_v23  ;;  %v1191_v34 = vand.u32 2147483647, %v10837_v7  ;;  %v1588_v45 = vsel %vm10781_vm8, %v1585_v47, %v1582_v0 }
 0x14e   : > { %v1717_v56 = vmul.f32 0.6931472, %v9057_v10  ;;  %vm10852_vm11 = vcmp.lt.f32.partialorder %v1739_v28, 0.0004427343  ;;  %9070 = vlog2.f32 %v1877_v54  ;;  %v1606_v5 = vsel %vm10785_vm9, %v1603_v41, %v1600_v17 }
 0x14f   : > { %v1176_v49 = vand.u32 2147483647, %v10833_v40  ;;  %v10862_v61 = vadd.f32 %v10579_v35, %v10523_v39  ;;  %v1255_v31 = vsub.f32 0.0, %v1191_v34  ;;  %9072 = vlog2.f32 %v1724_v60 }
 0x150   : > { %v9065_v15 = vpop.eup %9064  ;;  %v1397_v47 = vmul.f32 1.442695, %v1284_v4  ;;  %v1286_v10 = vsub.f32 0.0, %v1222_v37  ;;  %v1241_v0 = vsub.f32 0.0, %v1177_v21  ;;  %9074 = vlog2.f32 %v1742_v20  ;;  %v10877_v20 = vpop.f32.mrb[26].mxu0 }
 0x151   : > { %v1863_v28 = vadd.f32 1.0, %v1862_v30  ;;  %v1880_v6 = vmul.f32 -0.5, %v10828_v63  ;;  %v1339_v54 = vmul.f32 1.442695, %v1255_v31  ;;  %v17279_v33 = vmax.f32 %v10553_v3, 0.0  ;;  %17281 = vst [vmem:[#allocation40_spill] sm:$0xff] %v10877_v20 }
 0x152   : > { %v17280_v17 = vmax.f32 %v10557_v12, 0.0  ;;  %v1723_v35 = vsel %vm10815_vm10, %v1720_v9, %v1717_v56  ;;  %v1865_v60 = vand.u32 2147483647, %v10789_v23  ;;  %v1735_v37 = vmul.f32 0.6931472, %v9065_v15 }
 0x153   : > { %v10867_v41 = vadd.f32 %v1588_v45, %v17279_v33  ;;  %v1240_v4 = vsub.f32 0.0, %v1176_v49  ;;  %v1178_v21 = vand.u32 2147483647, %v10862_v61  ;;  %9076 = vpow2.f32 %v1339_v54 }
 0x154   : > { %v10871_v27 = vadd.f32 %v1606_v5, %v17280_v17  ;;  %v9067_v30 = vpop.eup %9066  ;;  %9078 = vpow2.f32 %v1397_v47  ;;  %v1401_v34 = vmul.f32 1.442695, %v1286_v10  ;;  %v1311_v12 = vmul.f32 1.442695, %v1241_v0 }
 0x155   : > { %v10880_v31 = vpop.eup %9068  ;;  %v1861_v45 = vmul.f32 0.6931472, %v9067_v30  ;;  %v1864_v9 = vmul.f32 %v10789_v23, %v1863_v28  ;;  %v1881_v36 = vadd.f32 1.0, %v1880_v6  ;;  %v10885_v56 = vadd.f32 %v10588_v46, %v10533_v48 }
 0x156   : > { %v17282_v5 = vmax.f32 %v10564_v22, 0.0  ;;  %vm1866_vm12 = vcmp.lt.f32.partialorder %v1865_v60, 0.0004427343  ;;  %v1883_v15 = vand.u32 2147483647, %v10828_v63  ;;  %v1463_v47 = vadd.f32 1.0, %v10880_v31 }
 0x157   : > { %v1741_v10 = vsel %vm10852_vm11, %v10843_v18, %v1735_v37  ;;  %v1867_v0 = vsel %vm1866_vm12, %v1864_v9, %v1861_v45  ;;  %v1309_v23 = vmul.f32 1.442695, %v1240_v4  ;;  %v1242_v6 = vsub.f32 0.0, %v1178_v21  ;;  %v10907_v4 = vpop.f32.mrb[26].mxu1 }
 0x158   : > { %v10889_v49 = vadd.f32 %v1723_v35, %v17282_v5  ;;  %v9071_v28 = vpop.eup %9070  ;;  %v1727_v46 = vmul.f32 -0.5, %v10812_v29  ;;  %v1745_v54 = vmul.f32 -0.5, %v10822_v42  ;;  %v17284_v22 = vmax.f32 %v10644_v8, 0.0  ;;  %17286 = vst [vmem:[#allocation43_spill] sm:$0xff] %v10907_v4 }
 0x159   : > { %9080 = vpow2.f32 %v1311_v12  ;;  %v1879_v17 = vmul.f32 0.6931472, %v9071_v28  ;;  %v1882_v35 = vmul.f32 %v10828_v63, %v1881_v36  ;;  %v1193_v19 = vand.u32 2147483647, %v10885_v56  ;;  %v9073_v18 = vpop.eup %9072 }
 0x15a   : > { %17283 = vst [vmem:[#allocation41_spill] sm:$0xff] %v10889_v49  ;;  %v10900_v33 = vadd.f32 %v1867_v0, %v17284_v22  ;;  %9082 = vlog2.f32 %v1463_v47  ;;  %vm1884_vm13 = vcmp.lt.f32.partialorder %v1883_v15, 0.0004427343  ;;  %v9075_v8 = vpop.eup %9074  ;;  %v1730_v21 = vand.u32 2147483647, %v10812_v29 }
 0x15b   : > { %9084 = vpow2.f32 %v1401_v34  ;;  %v1885_v30 = vsel %vm1884_vm13, %v1882_v35, %v1879_v17  ;;  %v1313_v12 = vmul.f32 1.442695, %v1242_v6  ;;  %v17287_v63 = vmax.f32 %v10592_v51, 0.0 }
 0x15c   : > { %17285 = vst [vmem:[#allocation42_spill] sm:$0xff] %v10900_v33  ;;  %9086 = vpow2.f32 %v1309_v23  ;;  %v1728_v9 = vadd.f32 1.0, %v1727_v46  ;;  %v1746_v36 = vadd.f32 1.0, %v1745_v54  ;;  %v17289_v5 = vmax.f32 %v10670_v50, 0.0  ;;  %v10928_v54 = vpop.f32.mrb[27].mxu0 }
 0x15d   : > { %v10912_v45 = vadd.f32 %v1741_v10, %v17287_v63  ;;  %v10918_v47 = vpop.eup %9076  ;;  %v1748_v34 = vand.u32 2147483647, %v10822_v42  ;;  %v1257_v23 = vsub.f32 0.0, %v1193_v19  ;;  %v1726_v51 = vmul.f32 0.6931472, %v9073_v18  ;;  %17291 = vst [vmem:[#allocation46_spill] sm:$0xff] %v10928_v54 }
 0x15e   : > { %v10916_v15 = vadd.f32 %v1885_v30, %v17289_v5  ;;  %v10923_v6 = vpop.eup %9078  ;;  %v1744_v10 = vmul.f32 0.6931472, %v9075_v8  ;;  %v1607_v50 = vadd.f32 1.0, %v10918_v47  ;;  %vm10930_vm14 = vcmp.lt.f32.partialorder %v1730_v21, 0.0004427343  ;;  %v10939_v19 = vpop.f32.mrb[27].mxu1 }
 0x15f   : > { %17288 = vst [vmem:[#allocation44_spill] sm:$0xff] %v10912_v45  ;;  %9088 = vpow2.f32 %v1313_v12  ;;  %v10937_v35 = vadd.f32 %v10594_v52, %v10533_v48  ;;  %17294 = vst [vmem:[#allocation47_spill] sm:$0xff] %v10939_v19  ;;  %v1729_v18 = vmul.f32 %v10812_v29, %v1728_v9  ;;  %v1747_v8 = vmul.f32 %v10822_v42, %v1746_v36  ;;  %v11006_v28 = vpop.f32.mrb[28].mxu0 }
 0x160   : > { %17290 = vst [vmem:[#allocation45_spill] sm:$0xff] %v10916_v15  ;;  %v1466_v30 = vmul.f32 -0.5, %v10880_v31  ;;  %9090 = vlog2.f32 %v1607_v50  ;;  %vm10944_vm15 = vcmp.lt.f32.partialorder %v1748_v34, 0.0004427343  ;;  %v1127_v12 = vmax.f32 %v10837_v7, 0.0  ;;  %17303 = vst [vmem:[#allocation50_spill] sm:$0xff] %v11006_v28 }
 0x161   : > { %v1343_v5 = vmul.f32 1.442695, %v1257_v23  ;;  %v1732_v46 = vsel %vm10930_vm14, %v1729_v18, %v1726_v51  ;;  %v1750_v29 = vsel %vm10944_vm15, %v1747_v8, %v1744_v10  ;;  %v1868_v42 = vadd.f32 1.0, %v10923_v6 }
 0x162   : > { %v1610_v34 = vmul.f32 -0.5, %v10918_v47  ;;  %v1192_v7 = vand.u32 2147483647, %v10937_v35  ;;  %v1871_v22 = vmul.f32 -0.5, %v10923_v6  ;;  %v1874_v51 = vand.u32 2147483647, %v10923_v6 }
 0x163   : > { %v10950_v52 = vpop.eup %9080  ;;  %9092 = vpow2.f32 %v1343_v5  ;;  %v1467_v18 = vadd.f32 1.0, %v1466_v30  ;;  %v10967_v10 = vadd.f32 %v10598_v58, %v10550_v2  ;;  %v17297_v21 = vmax.f32 %v10617_v24, 0.0 }
 0x164   : > { %v9083_v36 = vpop.eup %9082  ;;  %v17299_v60 = vmax.f32 %v10620_v25, 0.0  ;;  %v1469_v63 = vand.u32 2147483647, %v10880_v31  ;;  %v10982_v17 = vadd.f32 %v10600_v59, %v10550_v2  ;;  %9094 = vlog2.f32 %v1868_v42 }
 0x165   : > { %v10961_v23 = vpop.eup %9084  ;;  %v10973_v5 = vadd.f32 %v1732_v46, %v17297_v21  ;;  %v1465_v30 = vmul.f32 0.6931472, %v9083_v36  ;;  %v1481_v58 = vadd.f32 1.0, %v10950_v52  ;;  %v10987_v37 = vadd.f32 %v10596_v53, %v10533_v48  ;;  %v11014_v53 = vpop.f32.mrb[28].mxu1 }
 0x166   : > { %v10969_v8 = vpop.eup %9086  ;;  %v10977_v50 = vadd.f32 %v1750_v29, %v17299_v60  ;;  %v1886_v24 = vadd.f32 1.0, %v10961_v23  ;;  %v1611_v46 = vadd.f32 1.0, %v1610_v34  ;;  %v1256_v25 = vsub.f32 0.0, %v1192_v7  ;;  %17304 = vst [vmem:[#allocation51_spill] sm:$0xff] %v11014_v53 }
 0x167   : > { %17298 = vst [vmem:[#allocation48_spill] sm:$0xff] %v10973_v5  ;;  %v1207_v60 = vand.u32 2147483647, %v10967_v10  ;;  %v1872_v29 = vadd.f32 1.0, %v1871_v22  ;;  %v1468_v21 = vmul.f32 %v10880_v31, %v1467_v18  ;;  %v1472_v59 = vadd.f32 1.0, %v10969_v8 }
 0x168   : > { %17300 = vst [vmem:[#allocation49_spill] sm:$0xff] %v10977_v50  ;;  %v1613_v42 = vand.u32 2147483647, %v10918_v47  ;;  %v1889_v3 = vmul.f32 -0.5, %v10961_v23  ;;  %vm10997_vm2 = vcmp.lt.f32.partialorder %v1469_v63, 0.0004427343  ;;  %9096 = vlog2.f32 %v1481_v58 }
 0x169   : > { %v10994_v36 = vpop.eup %9088  ;;  %v1271_v9 = vsub.f32 0.0, %v1207_v60  ;;  %v1209_v34 = vand.u32 2147483647, %v10982_v17  ;;  %v1892_v22 = vand.u32 2147483647, %v10961_v23  ;;  %v1471_v31 = vsel %vm10997_vm2, %v1468_v21, %v1465_v30  ;;  %v11016_v30 = vpop.f32.mrb[29].mxu0 }
 0x16a   : > { %v9091_v7 = vpop.eup %9090  ;;  %v1194_v18 = vand.u32 2147483647, %v10987_v37  ;;  %9098 = vlog2.f32 %v1886_v24  ;;  %v1612_v63 = vmul.f32 %v10918_v47, %v1611_v46  ;;  %v1341_v45 = vmul.f32 1.442695, %v1256_v25  ;;  %17305 = vst [vmem:[#allocation52_spill] sm:$0xff] %v11016_v30 }
 0x16b   : > { %v1609_v0 = vmul.f32 0.6931472, %v9091_v7  ;;  %9100 = vlog2.f32 %v1472_v59  ;;  %v1490_v60 = vadd.f32 1.0, %v10994_v36  ;;  %vm1614_vm3 = vcmp.lt.f32.partialorder %v1613_v42, 0.0004427343 }
 0x16c   : > { %v11012_v15 = vadd.f32 %v10605_v1, %v10550_v2  ;;  %v17306_v24 = vmax.f32 %v10753_v55, 0.0  ;;  %v1371_v46 = vmul.f32 1.442695, %v1271_v9  ;;  %v1273_v25 = vsub.f32 0.0, %v1209_v34  ;;  %v17309_v1 = vld [vmem:[#allocation16_spill] sm:$0xff]  ;;  %v17310_v55 = vld [vmem:[#allocation17_spill] sm:$0xff] }
 0x16d   : > { %v11018_v58 = vpop.eup %9092  ;;  %v1615_v47 = vsel %vm1614_vm3, %v1612_v63, %v1609_v0  ;;  %v1258_v7 = vsub.f32 0.0, %v1194_v18  ;;  %v11029_v49 = vadd.f32 %v17309_v1, %v10550_v2  ;;  %v1890_v53 = vadd.f32 1.0, %v1889_v3  ;;  %v11036_v0 = vpop.f32.mrb[29].mxu1 }
 0x16e   : > { %v11022_v21 = vadd.f32 %v1471_v31, %v17306_v24  ;;  %v11024_v59 = vadd.f32 %v1615_v47, %v1127_v12  ;;  %v1625_v42 = vadd.f32 1.0, %v11018_v58  ;;  %v1484_v30 = vmul.f32 -0.5, %v10950_v52  ;;  %17311 = vst [vmem:[#allocation16_spill] sm:$0xff] %v11036_v0  ;;  %v9095_v9 = vpop.eup %9094  ;;  %v17314_v24 = vld [vmem:[#allocation18_spill] sm:$0xff]  ;;  %v11066_v50 = vpop.f32.mrb[30].mxu1 }
 0x16f   : > { %9102 = vpow2.f32 %v1341_v45  ;;  %v11034_v31 = vadd.f32 %v17310_v55, %v10630_v44  ;;  %v1487_v12 = vand.u32 2147483647, %v10950_v52  ;;  %v1208_v18 = vand.u32 2147483647, %v11012_v15  ;;  %17318 = vst [vmem:[#allocation18_spill] sm:$0xff] %v11066_v50 }
 0x170   : > { %17307 = vst [vmem:[#allocation53_spill] sm:$0xff] %v11022_v21  ;;  %17308 = vst [vmem:[#allocation54_spill] sm:$0xff] %v11024_v59  ;;  %9104 = vlog2.f32 %v1625_v42  ;;  %vm11042_vm4 = vcmp.lt.f32.partialorder %v1874_v51, 0.0004427343  ;;  %v1475_v45 = vmul.f32 -0.5, %v10969_v8  ;;  %v11049_v47 = vadd.f32 %v17314_v24, %v10630_v44  ;;  %v11061_v24 = vpop.f32.mrb[30].mxu0 }
 0x171   : > { %9106 = vpow2.f32 %v1371_v46  ;;  %v1375_v63 = vmul.f32 1.442695, %v1273_v25  ;;  %v1493_v1 = vmul.f32 -0.5, %v10994_v36  ;;  %v1345_v55 = vmul.f32 1.442695, %v1258_v7  ;;  %17317 = vst [vmem:[#allocation17_spill] sm:$0xff] %v11061_v24 }
 0x172   : > { %9108 = vlog2.f32 %v1490_v60  ;;  %v1210_v42 = vand.u32 2147483647, %v11029_v49  ;;  %v1873_v34 = vmul.f32 %v10923_v6, %v1872_v29  ;;  %vm11054_vm5 = vcmp.lt.f32.partialorder %v1892_v22, 0.0004427343  ;;  %v9097_v60 = vpop.eup %9096 }
 0x173   : > { %v1628_v21 = vmul.f32 -0.5, %v11018_v58  ;;  %v1223_v46 = vand.u32 2147483647, %v11034_v31  ;;  %v1225_v25 = vand.u32 2147483647, %v11049_v47  ;;  %v1891_v59 = vmul.f32 %v10961_v23, %v1890_v53 }
 0x174   : > { %v1485_v7 = vadd.f32 1.0, %v1484_v30  ;;  %v1478_v0 = vand.u32 2147483647, %v10969_v8  ;;  %v1272_v33 = vsub.f32 0.0, %v1208_v18  ;;  %v9099_v6 = vpop.eup %9098  ;;  %v1476_v29 = vadd.f32 1.0, %v1475_v45 }
 0x175   : > { %v1496_v22 = vand.u32 2147483647, %v10994_v36  ;;  %9110 = vpow2.f32 %v1375_v63  ;;  %v1287_v28 = vsub.f32 0.0, %v1223_v46  ;;  %v9101_v5 = vpop.eup %9100  ;;  %v1870_v19 = vmul.f32 0.6931472, %v9095_v9 }
 0x176   : > { %v1494_v54 = vadd.f32 1.0, %v1493_v1  ;;  %9112 = vpow2.f32 %v1345_v55  ;;  %v1274_v24 = vsub.f32 0.0, %v1210_v42  ;;  %v1483_v4 = vmul.f32 0.6931472, %v9097_v60  ;;  %v17323_v55 = vld [vmem:[#allocation19_spill] sm:$0xff] }
 0x177   : > { %vm11068_vm6 = vcmp.lt.f32.partialorder %v1487_v12, 0.0004427343  ;;  %v1629_v53 = vadd.f32 1.0, %v1628_v21  ;;  %v1289_v30 = vsub.f32 0.0, %v1225_v25  ;;  %v1888_v18 = vmul.f32 0.6931472, %v9099_v6 }
 0x178   : > { %v1486_v45 = vmul.f32 %v10950_v52, %v1485_v7  ;;  %v1631_v63 = vand.u32 2147483647, %v11018_v58  ;;  %v1373_v46 = vmul.f32 1.442695, %v1272_v33  ;;  %v1477_v9 = vmul.f32 %v10969_v8, %v1476_v29 }
 0x179   : > { %v11074_v20 = vpop.eup %9102  ;;  %vm11077_vm7 = vcmp.lt.f32.partialorder %v1478_v0, 0.0004427343  ;;  %v1403_v12 = vmul.f32 1.442695, %v1287_v28  ;;  %v11083_v42 = vadd.f32 %v17323_v55, %v10630_v44  ;;  %v1876_v52 = vsel %vm11042_vm4, %v1873_v34, %v1870_v19  ;;  %v11092_v0 = vpop.f32.mrb[31].mxu0 }
 0x17a   : > { %v9105_v21 = vpop.eup %9104  ;;  %v1495_v25 = vmul.f32 %v10994_v36, %v1494_v54  ;;  %vm11088_vm8 = vcmp.lt.f32.partialorder %v1496_v22, 0.0004427343  ;;  %v1377_v8 = vmul.f32 1.442695, %v1274_v24  ;;  %17326 = vst [vmem:[#allocation19_spill] sm:$0xff] %v11092_v0  ;;  %v1489_v28 = vsel %vm11068_vm6, %v1486_v45, %v1483_v4 }
 0x17b   : > { %v11094_v60 = vpop.eup %9106  ;;  %v1627_v7 = vmul.f32 0.6931472, %v9105_v21  ;;  %v1630_v6 = vmul.f32 %v11018_v58, %v1629_v53  ;;  %v1407_v29 = vmul.f32 1.442695, %v1289_v30  ;;  %v1894_v54 = vsel %vm11054_vm5, %v1891_v59, %v1888_v18 }
 0x17c   : > { %v9109_v3 = vpop.eup %9108  ;;  %v1474_v19 = vmul.f32 0.6931472, %v9101_v5  ;;  %vm1632_vm9 = vcmp.lt.f32.partialorder %v1631_v63, 0.0004427343  ;;  %9114 = vpow2.f32 %v1373_v46  ;;  %v1616_v34 = vadd.f32 1.0, %v11074_v20 }
 0x17d   : > { %v1633_v36 = vsel %vm1632_vm9, %v1630_v6, %v1627_v7  ;;  %9116 = vpow2.f32 %v1403_v12  ;;  %v1224_v24 = vand.u32 2147483647, %v11083_v42  ;;  %v17327_v22 = vmax.f32 %v10808_v62, 0.0  ;;  %v17337_v7 = vld [vmem:[#allocation20_spill] sm:$0xff] }
 0x17e   : > { %v17329_v58 = vmax.f32 %v10885_v56, 0.0  ;;  %v1751_v51 = vadd.f32 1.0, %v11094_v60  ;;  %9118 = vpow2.f32 %v1377_v8  ;;  %v17331_v59 = vmax.f32 %v10775_v11, 0.0  ;;  %v11129_v11 = vpop.f32.mrb[31].mxu1 }
 0x17f   : > { %v11105_v4 = vadd.f32 %v1489_v28, %v17327_v22  ;;  %v11112_v5 = vpop.eup %9110  ;;  %v1492_v30 = vmul.f32 0.6931472, %v9109_v3  ;;  %v1619_v18 = vmul.f32 -0.5, %v11074_v20  ;;  %9120 = vpow2.f32 %v1407_v29  ;;  %17335 = vst [vmem:[#allocation59_spill] sm:$0xff] %v11129_v11 }
 0x180   : > { %v11109_v23 = vadd.f32 %v1633_v36, %v17329_v58  ;;  %v11116_v53 = vadd.f32 %v1876_v52, %v17331_v59  ;;  %v11119_v62 = vpop.eup %9112  ;;  %v17333_v45 = vmax.f32 %v10796_v43, 0.0  ;;  %9122 = vlog2.f32 %v1616_v34  ;;  %v17336_v52 = vld [vmem:[#allocation21_spill] sm:$0xff] }
 0x181   : > { %17328 = vst [vmem:[#allocation55_spill] sm:$0xff] %v11105_v4  ;;  %v1288_v21 = vsub.f32 0.0, %v1224_v24  ;;  %v11134_v8 = vadd.f32 %v17336_v52, %v10523_v39  ;;  %v1480_v43 = vsel %vm11077_vm7, %v1477_v9, %v1474_v19  ;;  %9124 = vlog2.f32 %v1751_v51  ;;  %v17338_v19 = vld [vmem:[#allocation22_spill] sm:$0xff] }
 0x182   : > { %17330 = vst [vmem:[#allocation56_spill] sm:$0xff] %v11109_v23  ;;  %17332 = vst [vmem:[#allocation57_spill] sm:$0xff] %v11116_v53  ;;  %v11123_v56 = vadd.f32 %v1894_v54, %v17333_v45  ;;  %v1769_v28 = vadd.f32 1.0, %v11112_v5  ;;  %v11141_v6 = vadd.f32 %v17337_v7, %v10630_v44  ;;  %v1498_v29 = vsel %vm11088_vm8, %v1495_v25, %v1492_v30 }
 0x183   : > { %v1620_v3 = vadd.f32 1.0, %v1619_v18  ;;  %v1637_v54 = vmul.f32 -0.5, %v11119_v62  ;;  %v1634_v34 = vadd.f32 1.0, %v11119_v62  ;;  %v1754_v1 = vmul.f32 -0.5, %v11094_v60 }
 0x184   : > { %17334 = vst [vmem:[#allocation58_spill] sm:$0xff] %v11123_v56  ;;  %v11152_v24 = vadd.f32 %v17338_v19, %v10523_v39  ;;  %v17339_v22 = vmax.f32 %v10833_v40, 0.0  ;;  %v1622_v25 = vand.u32 2147483647, %v11074_v20  ;;  %v1405_v33 = vmul.f32 1.442695, %v1288_v21 }
 0x185   : > { %v1179_v51 = vand.u32 2147483647, %v11134_v8  ;;  %v17341_v30 = vmax.f32 %v10862_v61, 0.0  ;;  %v1757_v45 = vand.u32 2147483647, %v11094_v60  ;;  %9126 = vlog2.f32 %v1769_v28  ;;  %v17347_v21 = vld [vmem:[#allocation23_spill] sm:$0xff] }
 0x186   : > { %v11156_v58 = vadd.f32 %v1480_v43, %v17339_v22  ;;  %v11160_v59 = vpop.eup %9114  ;;  %v1226_v52 = vand.u32 2147483647, %v11141_v6  ;;  %v11171_v40 = vmul.f32 %v11074_v20, %v1620_v3  ;;  %v1638_v43 = vadd.f32 1.0, %v1637_v54 }
 0x187   : > { %v11164_v18 = vadd.f32 %v1498_v29, %v17341_v30  ;;  %v11168_v7 = vpop.eup %9116  ;;  %9128 = vlog2.f32 %v1634_v34  ;;  %v1755_v61 = vadd.f32 1.0, %v1754_v1  ;;  %v1181_v28 = vand.u32 2147483647, %v11152_v24 }
 0x188   : > { %17340 = vst [vmem:[#allocation21_spill] sm:$0xff] %v11156_v58  ;;  %v11175_v22 = vpop.eup %9118  ;;  %v1895_v29 = vadd.f32 1.0, %v11168_v7  ;;  %vm11181_vm10 = vcmp.lt.f32.partialorder %v1622_v25, 0.0004427343  ;;  %v1772_v20 = vmul.f32 -0.5, %v11112_v5  ;;  %9130 = vpow2.f32 %v1405_v33 }
 0x189   : > { %17342 = vst [vmem:[#allocation20_spill] sm:$0xff] %v11164_v18  ;;  %v11179_v30 = vpop.eup %9120  ;;  %v1243_v54 = vsub.f32 0.0, %v1179_v51  ;;  %v1640_v9 = vand.u32 2147483647, %v11119_v62  ;;  %vm11188_vm11 = vcmp.lt.f32.partialorder %v1757_v45, 0.0004427343  ;;  %v11193_v25 = vmul.f32 %v11119_v62, %v1638_v43 }
 0x18a   : > { %9132 = vlog2.f32 %v1895_v29  ;;  %v1290_v1 = vsub.f32 0.0, %v1226_v52  ;;  %v9123_v36 = vpop.eup %9122  ;;  %v1775_v46 = vand.u32 2147483647, %v11112_v5  ;;  %v1760_v19 = vadd.f32 1.0, %v11160_v59 }
 0x18b   : > { %v1913_v3 = vadd.f32 1.0, %v11179_v30  ;;  %v9125_v33 = vpop.eup %9124  ;;  %v1756_v51 = vmul.f32 %v11094_v60, %v1755_v61  ;;  %v1778_v45 = vadd.f32 1.0, %v11175_v22  ;;  %v1245_v55 = vsub.f32 0.0, %v1181_v28 }
 0x18c   : > { %v11202_v29 = vadd.f32 %v17347_v21, %v10523_v39  ;;  %v1773_v52 = vadd.f32 1.0, %v1772_v20  ;;  %v1898_v62 = vmul.f32 -0.5, %v11168_v7  ;;  %v1315_v43 = vmul.f32 1.442695, %v1243_v54 }
 0x18d   : > { %9134 = vlog2.f32 %v1913_v3  ;;  %v1618_v12 = vmul.f32 0.6931472, %v9123_v36  ;;  %v1763_v4 = vmul.f32 -0.5, %v11160_v59  ;;  %v1409_v18 = vmul.f32 1.442695, %v1290_v1  ;;  %v17350_v1 = vld [vmem:[#allocation24_spill] sm:$0xff] }
 0x18e   : > { %v1753_v11 = vmul.f32 0.6931472, %v9125_v33  ;;  %vm11207_vm12 = vcmp.lt.f32.partialorder %v1775_v46, 0.0004427343  ;;  %9136 = vlog2.f32 %v1760_v19  ;;  %v1766_v21 = vand.u32 2147483647, %v11160_v59 }
 0x18f   : > { %v9127_v61 = vpop.eup %9126  ;;  %9138 = vlog2.f32 %v1778_v45  ;;  %v1916_v28 = vmul.f32 -0.5, %v11179_v30  ;;  %v1319_v20 = vmul.f32 1.442695, %v1245_v55  ;;  %v1180_v36 = vand.u32 2147483647, %v11202_v29 }
 0x190   : > { %v1774_v3 = vmul.f32 %v11112_v5, %v1773_v52  ;;  %v1899_v54 = vadd.f32 1.0, %v1898_v62  ;;  %9140 = vpow2.f32 %v1315_v43  ;;  %v11217_v46 = vadd.f32 %v17350_v1, %v10523_v39  ;;  %v17351_v62 = vld [vmem:[#allocation25_spill] sm:$0xff]  ;;  %v17352_v1 = vld [vmem:[#allocation26_spill] sm:$0xff] }
 0x191   : > { %v9129_v33 = vpop.eup %9128  ;;  %v1624_v19 = vsel %vm11181_vm10, %v11171_v40, %v1618_v12  ;;  %v1764_v23 = vadd.f32 1.0, %v1763_v4  ;;  %v1901_v45 = vand.u32 2147483647, %v11168_v7  ;;  %9142 = vpow2.f32 %v1409_v18 }
 0x192   : > { %v11223_v55 = vpop.eup %9130  ;;  %v1759_v5 = vsel %vm11188_vm11, %v1756_v51, %v1753_v11  ;;  %v1771_v52 = vmul.f32 0.6931472, %v9127_v61  ;;  %v11229_v43 = vadd.f32 %v17351_v62, %v10533_v48  ;;  %v11233_v58 = vadd.f32 %v17352_v1, %v10533_v48 }
 0x193   : > { %v1917_v12 = vadd.f32 1.0, %v1916_v28  ;;  %v1919_v4 = vand.u32 2147483647, %v11179_v30  ;;  %9144 = vpow2.f32 %v1319_v20  ;;  %v1244_v18 = vsub.f32 0.0, %v1180_v36 }
 0x194   : > { %v9133_v63 = vpop.eup %9132  ;;  %v1900_v0 = vmul.f32 %v11168_v7, %v1899_v54  ;;  %v1182_v11 = vand.u32 2147483647, %v11217_v46  ;;  %v1195_v34 = vand.u32 2147483647, %v11229_v43  ;;  %v1781_v51 = vmul.f32 -0.5, %v11175_v22 }
 0x195   : > { %v1897_v40 = vmul.f32 0.6931472, %v9133_v63  ;;  %vm1902_vm13 = vcmp.lt.f32.partialorder %v1901_v45, 0.0004427343  ;;  %v1904_v61 = vadd.f32 1.0, %v11223_v55  ;;  %v17355_v20 = vmax.f32 %v10967_v10, 0.0 }
 0x196   : > { %v1197_v62 = vand.u32 2147483647, %v11233_v58  ;;  %vm11242_vm14 = vcmp.lt.f32.partialorder %v1640_v9, 0.0004427343  ;;  %v1777_v7 = vsel %vm11207_vm12, %v1774_v3, %v1771_v52  ;;  %v1784_v54 = vand.u32 2147483647, %v11175_v22 }
 0x197   : > { %v9135_v1 = vpop.eup %9134  ;;  %v11248_v36 = vadd.f32 %v1759_v5, %v17355_v20  ;;  %v1903_v63 = vsel %vm1902_vm13, %v1900_v0, %v1897_v40  ;;  %vm11253_vm15 = vcmp.lt.f32.partialorder %v1766_v21, 0.0004427343  ;;  %v17358_v50 = vmax.f32 %v11034_v31, 0.0 }
 0x198   : > { %v1915_v56 = vmul.f32 0.6931472, %v9135_v1  ;;  %v1918_v53 = vmul.f32 %v11179_v30, %v1917_v12  ;;  %v1259_v10 = vsub.f32 0.0, %v1195_v34  ;;  %v9137_v5 = vpop.eup %9136  ;;  %vm1920_vm2 = vcmp.lt.f32.partialorder %v1919_v4, 0.0004427343 }
 0x199   : > { %v11259_v9 = vadd.f32 %v1903_v63, %v17358_v50  ;;  %v1317_v20 = vmul.f32 1.442695, %v1244_v18  ;;  %v1246_v60 = vsub.f32 0.0, %v1182_v11  ;;  %v1261_v3 = vsub.f32 0.0, %v1197_v62  ;;  %v9139_v52 = vpop.eup %9138 }
 0x19a   : > { %v17359_v0 = vmax.f32 %v10937_v35, 0.0  ;;  %v1921_v31 = vsel %vm1920_vm2, %v1918_v53, %v1915_v56  ;;  %9146 = vlog2.f32 %v1904_v61  ;;  %v11268_v50 = vpop.eup %9140  ;;  %v1636_v1 = vmul.f32 0.6931472, %v9129_v33 }
 0x19b   : > { %v17360_v30 = vmax.f32 %v10982_v17, 0.0  ;;  %v1782_v4 = vadd.f32 1.0, %v1781_v51  ;;  %v17361_v18 = vmax.f32 %v11049_v47, 0.0  ;;  %v11278_v35 = vpop.eup %9142  ;;  %v1765_v34 = vmul.f32 %v11160_v59, %v1764_v23  ;;  %v17362_v17 = vld [vmem:[#allocation27_spill] sm:$0xff] }
 0x19c   : > { %v11264_v21 = vadd.f32 %v1624_v19, %v17359_v0  ;;  %v1762_v19 = vmul.f32 0.6931472, %v9137_v5  ;;  %v1347_v62 = vmul.f32 1.442695, %v1259_v10  ;;  %v1351_v53 = vmul.f32 1.442695, %v1261_v3 }
 0x19d   : > { %v11272_v12 = vadd.f32 %v1777_v7, %v17360_v30  ;;  %v11276_v11 = vadd.f32 %v1921_v31, %v17361_v18  ;;  %9148 = vpow2.f32 %v1317_v20  ;;  %v1321_v33 = vmul.f32 1.442695, %v1246_v60  ;;  %v11287_v51 = vpop.eup %9144 }
 0x19e   : > { %v11285_v61 = vadd.f32 %v17362_v17, %v10533_v48  ;;  %vm11289_vm3 = vcmp.lt.f32.partialorder %v1784_v54, 0.0004427343  ;;  %v1907_v7 = vmul.f32 -0.5, %v11223_v55  ;;  %v1499_v23 = vadd.f32 1.0, %v11268_v50 }
 0x19f   : > { %9150 = vpow2.f32 %v1347_v62  ;;  %v1780_v59 = vmul.f32 0.6931472, %v9139_v52  ;;  %v1922_v63 = vadd.f32 1.0, %v11278_v35  ;;  %v1115_v10 = vmax.f32 %v11134_v8, 0.0 }
 0x1a0   : > { %9152 = vpow2.f32 %v1351_v53  ;;  %v1642_v5 = vsel %vm11242_vm14, %v11193_v25, %v1636_v1  ;;  %v1783_v54 = vmul.f32 %v11175_v22, %v1782_v4  ;;  %v1925_v20 = vmul.f32 -0.5, %v11278_v35 }
 0x1a1   : > { %v11304_v60 = vadd.f32 %v10699_v32, %v10550_v2  ;;  %v1768_v3 = vsel %vm11253_vm15, %v1765_v34, %v1762_v19  ;;  %v1517_v52 = vadd.f32 1.0, %v11287_v51  ;;  %9154 = vpow2.f32 %v1321_v33  ;;  %v17367_v33 = vld [vmem:[#allocation28_spill] sm:$0xff] }
 0x1a2   : > { %v1196_v0 = vand.u32 2147483647, %v11285_v61  ;;  %v1908_v31 = vadd.f32 1.0, %v1907_v7  ;;  %v1910_v28 = vand.u32 2147483647, %v11223_v55  ;;  %9156 = vlog2.f32 %v1499_v23 }
 0x1a3   : > { %v17365_v25 = vmax.f32 %v10987_v37, 0.0  ;;  %v1786_v32 = vsel %vm11289_vm3, %v1783_v54, %v1780_v59  ;;  %9158 = vlog2.f32 %v1922_v63  ;;  %v17366_v4 = vmax.f32 %v11012_v15, 0.0 }
 0x1a4   : > { %v9147_v30 = vpop.eup %9146  ;;  %v1926_v19 = vadd.f32 1.0, %v1925_v20  ;;  %v1211_v62 = vand.u32 2147483647, %v11304_v60  ;;  %v1502_v37 = vmul.f32 -0.5, %v11268_v50  ;;  %9160 = vlog2.f32 %v1517_v52 }
 0x1a5   : > { %v11314_v1 = vadd.f32 %v1642_v5, %v17365_v25  ;;  %v11321_v18 = vadd.f32 %v1768_v3, %v17366_v4  ;;  %v1260_v53 = vsub.f32 0.0, %v1196_v0  ;;  %v11328_v17 = vadd.f32 %v17367_v33, %v10533_v48 }
 0x1a6   : > { %v17368_v47 = vmax.f32 %v11029_v49, 0.0  ;;  %v1909_v15 = vmul.f32 %v11223_v55, %v1908_v31  ;;  %vm11335_vm4 = vcmp.lt.f32.partialorder %v1910_v28, 0.0004427343  ;;  %v1505_v59 = vand.u32 2147483647, %v11268_v50 }
 0x1a7   : > { %v11340_v63 = vpop.eup %9148  ;;  %v1906_v5 = vmul.f32 0.6931472, %v9147_v30  ;;  %v1928_v54 = vand.u32 2147483647, %v11278_v35  ;;  %v1275_v20 = vsub.f32 0.0, %v1211_v62  ;;  %v11345_v3 = vadd.f32 %v10701_v14, %v10550_v2 }
 0x1a8   : > { %v11332_v7 = vadd.f32 %v1786_v32, %v17368_v47  ;;  %v11350_v55 = vmul.f32 %v11278_v35, %v1926_v19  ;;  %v1520_v52 = vmul.f32 -0.5, %v11287_v51  ;;  %v1523_v0 = vand.u32 2147483647, %v11287_v51 }
 0x1a9   : > { %v11347_v49 = vpop.eup %9150  ;;  %v1503_v25 = vadd.f32 1.0, %v1502_v37  ;;  %v1349_v30 = vmul.f32 1.442695, %v1260_v53  ;;  %v1198_v14 = vand.u32 2147483647, %v11328_v17  ;;  %v1912_v37 = vsel %vm11335_vm4, %v1909_v15, %v1906_v5 }
 0x1aa   : > { %v11355_v28 = vpop.eup %9152  ;;  %v1643_v32 = vadd.f32 1.0, %v11347_v49  ;;  %vm11359_vm5 = vcmp.lt.f32.partialorder %v1505_v59, 0.0004427343  ;;  %vm11370_vm6 = vcmp.lt.f32.partialorder %v1928_v54, 0.0004427343  ;;  %v1521_v40 = vadd.f32 1.0, %v1520_v52 }
 0x1ab   : > { %v1661_v19 = vadd.f32 1.0, %v11355_v28  ;;  %v11366_v33 = vpop.eup %9154  ;;  %v1379_v53 = vmul.f32 1.442695, %v1275_v20  ;;  %v1213_v59 = vand.u32 2147483647, %v11345_v3  ;;  %v1508_v34 = vadd.f32 1.0, %v11340_v63 }
 0x1ac   : > { %9162 = vlog2.f32 %v1643_v32  ;;  %v9157_v56 = vpop.eup %9156  ;;  %v11378_v62 = vadd.f32 %v10715_v38, %v10550_v2  ;;  %v1504_v15 = vmul.f32 %v11268_v50, %v1503_v25  ;;  %vm11381_vm7 = vcmp.lt.f32.partialorder %v1523_v0, 0.0004427343 }
 0x1ad   : > { %9164 = vlog2.f32 %v1661_v19  ;;  %v9159_v45 = vpop.eup %9158  ;;  %v1262_v5 = vsub.f32 0.0, %v1198_v14  ;;  %v17377_v54 = vmax.f32 %v11083_v42, 0.0  ;;  %v1526_v52 = vadd.f32 1.0, %v11366_v33 }
 0x1ae   : > { %9166 = vpow2.f32 %v1349_v30  ;;  %v1646_v32 = vmul.f32 -0.5, %v11347_v49  ;;  %v11393_v38 = vadd.f32 %v10731_v13, %v10630_v44  ;;  %v9161_v19 = vpop.eup %9160  ;;  %v1501_v50 = vmul.f32 0.6931472, %v9157_v56 }
 0x1af   : > { %v11387_v20 = vadd.f32 %v1912_v37, %v17377_v54  ;;  %v1664_v0 = vmul.f32 -0.5, %v11355_v28  ;;  %9168 = vpow2.f32 %v1379_v53  ;;  %v1277_v25 = vsub.f32 0.0, %v1213_v59 }
 0x1b0   : > { %v1924_v30 = vmul.f32 0.6931472, %v9159_v45  ;;  %v1522_v14 = vmul.f32 %v11287_v51, %v1521_v40  ;;  %9170 = vlog2.f32 %v1508_v34  ;;  %v1212_v42 = vand.u32 2147483647, %v11378_v62 }
 0x1b1   : > { %v1511_v37 = vmul.f32 -0.5, %v11340_v63  ;;  %v1514_v54 = vand.u32 2147483647, %v11340_v63  ;;  %v1353_v35 = vmul.f32 1.442695, %v1262_v5  ;;  %v11402_v13 = vadd.f32 %v10717_v57, %v10550_v2 }
 0x1b2   : > { %v1519_v56 = vmul.f32 0.6931472, %v9161_v19  ;;  %9172 = vlog2.f32 %v1526_v52  ;;  %v1647_v22 = vadd.f32 1.0, %v1646_v32  ;;  %v1227_v53 = vand.u32 2147483647, %v11393_v38 }
 0x1b3   : > { %v1507_v40 = vsel %vm11359_vm5, %v1504_v15, %v1501_v50  ;;  %v1649_v51 = vand.u32 2147483647, %v11347_v49  ;;  %v1665_v45 = vadd.f32 1.0, %v1664_v0  ;;  %v1383_v34 = vmul.f32 1.442695, %v1277_v25 }
 0x1b4   : > { %v1930_v59 = vsel %vm11370_vm6, %v11350_v55, %v1924_v30  ;;  %v1667_v5 = vand.u32 2147483647, %v11355_v28  ;;  %v1276_v57 = vsub.f32 0.0, %v1212_v42  ;;  %v1291_v31 = vsub.f32 0.0, %v1227_v53 }
 0x1b5   : > { %v1529_v52 = vmul.f32 -0.5, %v11366_v33  ;;  %9174 = vpow2.f32 %v1353_v35  ;;  %v1214_v32 = vand.u32 2147483647, %v11402_v13  ;;  %v11416_v4 = vadd.f32 %v10733_v26, %v10630_v44 }
 0x1b6   : > { %v9163_v19 = vpop.eup %9162  ;;  %v11420_v50 = vadd.f32 %v1507_v40, %v1115_v10  ;;  %v1525_v55 = vsel %vm11381_vm7, %v1522_v14, %v1519_v56  ;;  %v1648_v0 = vmul.f32 %v11347_v49, %v1647_v22  ;;  %vm1650_vm8 = vcmp.lt.f32.partialorder %v1649_v51, 0.0004427343 }
 0x1b7   : > { %v9165_v15 = vpop.eup %9164  ;;  %v1645_v47 = vmul.f32 0.6931472, %v9163_v19  ;;  %v1666_v30 = vmul.f32 %v11355_v28, %v1665_v45  ;;  %9176 = vpow2.f32 %v1383_v34  ;;  %vm1668_vm9 = vcmp.lt.f32.partialorder %v1667_v5, 0.0004427343 }
 0x1b8   : > { %17378 = vst [vmem:[#allocation22_spill] sm:$0xff] %v11420_v50  ;;  %v11425_v25 = vpop.eup %9166  ;;  %v1663_v35 = vmul.f32 0.6931472, %v9165_v15  ;;  %v1381_v42 = vmul.f32 1.442695, %v1276_v57  ;;  %v17379_v10 = vmax.f32 %v11229_v43, 0.0  ;;  %v11446_v43 = vadd.f32 %v10737_v16, %v10630_v44 }
 0x1b9   : > { %v1651_v26 = vsel %vm1650_vm8, %v1648_v0, %v1645_v47  ;;  %v1411_v53 = vmul.f32 1.442695, %v1291_v31  ;;  %v11428_v8 = vpop.eup %9168  ;;  %v1278_v56 = vsub.f32 0.0, %v1214_v32  ;;  %v1229_v22 = vand.u32 2147483647, %v11416_v4  ;;  %v17416_v50 = vld [vmem:[#allocation43_spill] sm:$0xff] }
 0x1ba   : > { %v11432_v23 = vadd.f32 %v1651_v26, %v17379_v10  ;;  %v1669_v14 = vsel %vm1668_vm9, %v1666_v30, %v1663_v35  ;;  %v9171_v49 = vpop.eup %9170  ;;  %v17381_v40 = vmax.f32 %v11152_v24, 0.0  ;;  %v17383_v28 = vmax.f32 %v11233_v58, 0.0 }
 0x1bb   : > { %v1652_v31 = vadd.f32 1.0, %v11425_v25  ;;  %v17385_v34 = vmax.f32 %v11141_v6, 0.0  ;;  %v1512_v57 = vadd.f32 1.0, %v1511_v37  ;;  %vm11452_vm10 = vcmp.lt.f32.partialorder %v1514_v54, 0.0004427343 }
 0x1bc   : > { %17380 = vst [vmem:[#allocation23_spill] sm:$0xff] %v11432_v23  ;;  %v11437_v51 = vadd.f32 %v1525_v55, %v17381_v40  ;;  %v11441_v45 = vadd.f32 %v1669_v14, %v17383_v28  ;;  %v9173_v58 = vpop.eup %9172  ;;  %v1530_v32 = vadd.f32 1.0, %v1529_v52  ;;  %v1787_v16 = vadd.f32 1.0, %v11428_v8  ;;  %v17389_v14 = vld [vmem:[#allocation35_spill] sm:$0xff] }
 0x1bd   : > { %v11450_v5 = vadd.f32 %v1930_v59, %v17385_v34  ;;  %9178 = vpow2.f32 %v1411_v53  ;;  %v1510_v55 = vmul.f32 0.6931472, %v9171_v49  ;;  %v1385_v6 = vmul.f32 1.442695, %v1278_v56  ;;  %v17388_v53 = vld [vmem:[#allocation33_spill] sm:$0xff]  ;;  %v17390_v34 = vld [vmem:[#allocation38_spill] sm:$0xff] }
 0x1be   : > { %17382 = vst [vmem:[#allocation24_spill] sm:$0xff] %v11437_v51  ;;  %17384 = vst [vmem:[#allocation25_spill] sm:$0xff] %v11441_v45  ;;  %9180 = vpow2.f32 %v1381_v42  ;;  %v1293_v59 = vsub.f32 0.0, %v1229_v22  ;;  %v1228_v47 = vand.u32 2147483647, %v11446_v43  ;;  %v1513_v52 = vmul.f32 %v11340_v63, %v1512_v57  ;;  %v17415_v45 = vld [vmem:[#allocation40_spill] sm:$0xff] }
 0x1bf   : > { %9182 = vlog2.f32 %v1652_v31  ;;  %v11464_v0 = vpop.eup %9174  ;;  %v1528_v35 = vmul.f32 0.6931472, %v9173_v58  ;;  %v1532_v30 = vand.u32 2147483647, %v11366_v33  ;;  %v1655_v26 = vmul.f32 -0.5, %v11425_v25 }
 0x1c0   : > { %9184 = vlog2.f32 %v1787_v16  ;;  %v1415_v42 = vmul.f32 1.442695, %v1293_v59  ;;  %v11471_v10 = vadd.f32 %v17388_v53, %v10630_v44  ;;  %v8688_v56 = vpack.c.bf16 %v10867_v41, %v17389_v14  ;;  %v17394_v16 = vld [vmem:[#allocation29_spill] sm:$0xff]  ;;  %v17397_v14 = vld [vmem:[#allocation32_spill] sm:$0xff] }
 0x1c1   : > { %v11475_v22 = vpop.eup %9176  ;;  %v1516_v49 = vsel %vm11452_vm10, %v1513_v52, %v1510_v55  ;;  %v1531_v63 = vmul.f32 %v11366_v33, %v1530_v32  ;;  %v1658_v40 = vand.u32 2147483647, %v11425_v25  ;;  %9186 = vpow2.f32 %v1385_v6  ;;  %v17393_v32 = vld [vmem:[#allocation30_spill] sm:$0xff] }
 0x1c2   : > { %v1670_v28 = vadd.f32 1.0, %v11464_v0  ;;  %9188 = vpow2.f32 %v1415_v42  ;;  %v1292_v31 = vsub.f32 0.0, %v1228_v47  ;;  %8689 = vmatprep.subr.bf16.mxu0 %v8688_v56  ;;  %v8696_v57 = vpack.c.bf16 %v10871_v27, %v17390_v34  ;;  %v17398_v56 = vld [vmem:[#allocation31_spill] sm:$0xff] }
 0x1c3   : > { %vm11484_vm11 = vcmp.lt.f32.partialorder %v1532_v30, 0.0004427343  ;;  %v1673_v19 = vmul.f32 -0.5, %v11464_v0  ;;  %v17395_v55 = vpack.c.bf16 %v17393_v32, %v17394_v16  ;;  %v1656_v59 = vadd.f32 1.0, %v1655_v26 }
 0x1c4   : > { %v1534_v6 = vsel %vm11484_vm11, %v1531_v63, %v1528_v35  ;;  %v1805_v27 = vadd.f32 1.0, %v11475_v22  ;;  %v1230_v47 = vand.u32 2147483647, %v11471_v10  ;;  %8697 = vmatprep.subr.bf16.mxu1 %v8696_v57  ;;  %v17396_v52 = vmax.f32 %v11202_v29, 0.0  ;;  %v17400_v35 = vld [vmem:[#allocation34_spill] sm:$0xff] }
 0x1c5   : > { %8691 = vmatpush1.bf16.msra.mxu0 %v17395_v55  ;;  %v1790_v42 = vmul.f32 -0.5, %v11428_v8  ;;  %v17399_v34 = vpack.c.bf16 %v17397_v14, %v17398_v56  ;;  %v11509_v26 = vadd.f32 %v17400_v35, %v10523_v39  ;;  %vm11513_vm12 = vcmp.lt.f32.partialorder %v1658_v40, 0.0004427343 }
 0x1c6   : > { %v11500_v30 = vadd.f32 %v1516_v49, %v17396_v52  ;;  %9190 = vlog2.f32 %v1670_v28  ;;  %v1413_v29 = vmul.f32 1.442695, %v1292_v31  ;;  %v17403_v49 = vld [vmem:[#allocation36_spill] sm:$0xff]  ;;  %v17404_v16 = vmax.f32 %v11217_v46, 0.0 }
 0x1c7   : > { %8699 = vmatpush1.bf16.msra.mxu1 %v17399_v34  ;;  %v11511_v63 = vpop.eup %9178  ;;  %v11519_v41 = vadd.f32 %v17403_v49, %v10523_v39  ;;  %v1674_v52 = vadd.f32 1.0, %v1673_v19  ;;  %v11530_v34 = vmul.f32 %v11425_v25, %v1656_v59  ;;  %v1676_v28 = vand.u32 2147483647, %v11464_v0 }
 0x1c8   : > { %v11521_v32 = vpop.eup %9180  ;;  %v11525_v55 = vadd.f32 %v1534_v6, %v17404_v16  ;;  %v1931_v40 = vadd.f32 1.0, %v11511_v63  ;;  %9192 = vlog2.f32 %v1805_v27  ;;  %v1294_v31 = vsub.f32 0.0, %v1230_v47 }
 0x1c9   : > { %v9183_v56 = vpop.eup %9182  ;;  %v1791_v35 = vadd.f32 1.0, %v1790_v42  ;;  %v1793_v49 = vand.u32 2147483647, %v11428_v8  ;;  %v1183_v46 = vand.u32 2147483647, %v11509_v26  ;;  %v1808_v19 = vmul.f32 -0.5, %v11475_v22 }
 0x1ca   : > { %9194 = vlog2.f32 %v1931_v40  ;;  %v9185_v6 = vpop.eup %9184  ;;  %v1796_v16 = vadd.f32 1.0, %v11521_v32  ;;  %v1185_v15 = vand.u32 2147483647, %v11519_v41  ;;  %v1654_v59 = vmul.f32 0.6931472, %v9183_v56 }
 0x1cb   : > { %9196 = vpow2.f32 %v1413_v29  ;;  %v11538_v25 = vpop.eup %9186  ;;  %v11541_v27 = vmul.f32 %v11464_v0, %v1674_v52  ;;  %v1247_v42 = vsub.f32 0.0, %v1183_v46  ;;  %v1811_v24 = vand.u32 2147483647, %v11475_v22  ;;  %v17405_v29 = vld [vmem:[#allocation37_spill] sm:$0xff] }
 0x1cc   : > { %v11544_v40 = vpop.eup %9188  ;;  %v1934_v53 = vmul.f32 -0.5, %v11511_v63  ;;  %v1417_v33 = vmul.f32 1.442695, %v1294_v31  ;;  %v11550_v58 = vadd.f32 %v17405_v29, %v10523_v39  ;;  %v1789_v37 = vmul.f32 0.6931472, %v9185_v6 }
 0x1cd   : > { %vm11552_vm13 = vcmp.lt.f32.partialorder %v1793_v49, 0.0004427343  ;;  %v1949_v0 = vadd.f32 1.0, %v11544_v40  ;;  %v1249_v52 = vsub.f32 0.0, %v1185_v15  ;;  %v1792_v46 = vmul.f32 %v11428_v8, %v1791_v35 }
 0x1ce   : > { %v1809_v47 = vadd.f32 1.0, %v1808_v19  ;;  %9198 = vlog2.f32 %v1796_v16  ;;  %v1814_v14 = vadd.f32 1.0, %v11538_v25  ;;  %v1660_v31 = vsel %vm11513_vm12, %v11530_v34, %v1654_v59 }
 0x1cf   : > { %vm11562_vm14 = vcmp.lt.f32.partialorder %v1676_v28, 0.0004427343  ;;  %9200 = vlog2.f32 %v1949_v0  ;;  %v1323_v6 = vmul.f32 1.442695, %v1247_v42  ;;  %vm11567_vm15 = vcmp.lt.f32.partialorder %v1811_v24, 0.0004427343 }
 0x1d0   : > { %v9191_v54 = vpop.eup %9190  ;;  %v1935_v8 = vadd.f32 1.0, %v1934_v53  ;;  %9202 = vpow2.f32 %v1417_v33  ;;  %v1184_v57 = vand.u32 2147483647, %v11550_v58  ;;  %v1795_v34 = vsel %vm11552_vm13, %v1792_v46, %v1789_v37  ;;  %v17412_v53 = vld [vmem:[#allocation39_spill] sm:$0xff] }
 0x1d1   : > { %v1937_v28 = vand.u32 2147483647, %v11511_v63  ;;  %v1952_v19 = vmul.f32 -0.5, %v11544_v40  ;;  %v1327_v16 = vmul.f32 1.442695, %v1249_v52  ;;  %v1810_v24 = vmul.f32 %v11475_v22, %v1809_v47 }
 0x1d2   : > { %v9193_v59 = vpop.eup %9192  ;;  %v1799_v42 = vmul.f32 -0.5, %v11521_v32  ;;  %9204 = vlog2.f32 %v1814_v14  ;;  %v11581_v0 = vadd.f32 %v17412_v53, %v10523_v39  ;;  %v1672_v35 = vmul.f32 0.6931472, %v9191_v54 }
 0x1d3   : > { %v1802_v56 = vand.u32 2147483647, %v11521_v32  ;;  %v1817_v37 = vmul.f32 -0.5, %v11538_v25  ;;  %9206 = vpow2.f32 %v1323_v6  ;;  %v17413_v52 = vmax.f32 %v11304_v60, 0.0 }
 0x1d4   : > { %v9195_v33 = vpop.eup %9194  ;;  %v1936_v14 = vmul.f32 %v11511_v63, %v1935_v8  ;;  %v1248_v47 = vsub.f32 0.0, %v1184_v57  ;;  %v1807_v51 = vmul.f32 0.6931472, %v9193_v59  ;;  %vm1938_vm2 = vcmp.lt.f32.partialorder %v1937_v28, 0.0004427343  ;;  %v17419_v57 = vld [vmem:[#allocation46_spill] sm:$0xff] }
 0x1d5   : > { %v11585_v46 = vpop.eup %9196  ;;  %v11589_v49 = vadd.f32 %v1795_v34, %v17413_v52  ;;  %v1933_v22 = vmul.f32 0.6931472, %v9195_v33  ;;  %v1953_v39 = vadd.f32 1.0, %v1952_v19  ;;  %9208 = vpow2.f32 %v1327_v16 }
 0x1d6   : > { %v1186_v53 = vand.u32 2147483647, %v11581_v0  ;;  %v11595_v6 = vadd.f32 %v17415_v45, %v10533_v48  ;;  %v11599_v60 = vadd.f32 %v17416_v50, %v10533_v48  ;;  %v17417_v34 = vmax.f32 %v11393_v38, 0.0 }
 0x1d7   : > { %17414 = vst [vmem:[#allocation26_spill] sm:$0xff] %v11589_v49  ;;  %v1939_v54 = vsel %vm1938_vm2, %v1936_v14, %v1933_v22  ;;  %v1955_v63 = vand.u32 2147483647, %v11544_v40  ;;  %v1940_v8 = vadd.f32 1.0, %v11585_v46  ;;  %v11609_v28 = vadd.f32 %v17419_v57, %v10533_v48  ;;  %v17433_v14 = vld [vmem:[#allocation49_spill] sm:$0xff] }
 0x1d8   : > { %v11603_v33 = vadd.f32 %v1939_v54, %v17417_v34  ;;  %v9199_v19 = vpop.eup %9198  ;;  %v17420_v45 = vmax.f32 %v11285_v61, 0.0  ;;  %v1678_v50 = vsel %vm11562_vm14, %v11541_v27, %v1672_v35  ;;  %v1800_v38 = vadd.f32 1.0, %v1799_v42 }
 0x1d9   : > { %v1325_v59 = vmul.f32 1.442695, %v1248_v47  ;;  %v9201_v52 = vpop.eup %9200  ;;  %v1813_v22 = vsel %vm11567_vm15, %v1810_v24, %v1807_v51  ;;  %v1199_v54 = vand.u32 2147483647, %v11595_v6  ;;  %v1201_v34 = vand.u32 2147483647, %v11599_v60 }
 0x1da   : > { %17418 = vst [vmem:[#allocation27_spill] sm:$0xff] %v11603_v33  ;;  %v11613_v16 = vadd.f32 %v1660_v31, %v17420_v45  ;;  %v11624_v61 = vpop.eup %9202  ;;  %v1820_v31 = vand.u32 2147483647, %v11538_v25  ;;  %v1951_v57 = vmul.f32 0.6931472, %v9201_v52  ;;  %v1954_v27 = vmul.f32 %v11544_v40, %v1953_v39 }
 0x1db   : > { %v1250_v29 = vsub.f32 0.0, %v1186_v53  ;;  %vm11628_vm3 = vcmp.lt.f32.partialorder %v1802_v56, 0.0004427343  ;;  %v1818_v51 = vadd.f32 1.0, %v1817_v37  ;;  %vm1956_vm4 = vcmp.lt.f32.partialorder %v1955_v63, 0.0004427343 }
 0x1dc   : > { %9210 = vlog2.f32 %v1940_v8  ;;  %v1200_v15 = vand.u32 2147483647, %v11609_v28  ;;  %v9205_v24 = vpop.eup %9204  ;;  %v17423_v42 = vmax.f32 %v11328_v17, 0.0  ;;  %v17424_v45 = vmax.f32 %v11345_v3, 0.0 }
 0x1dd   : > { %v1957_v40 = vsel %vm1956_vm4, %v1954_v27, %v1951_v57  ;;  %9212 = vpow2.f32 %v1325_v59  ;;  %v11641_v56 = vpop.eup %9206  ;;  %v17426_v39 = vmax.f32 %v11416_v4, 0.0  ;;  %v1958_v53 = vadd.f32 1.0, %v11624_v61 }
 0x1de   : > { %v11635_v47 = vadd.f32 %v1678_v50, %v17423_v42  ;;  %v11639_v52 = vadd.f32 %v1813_v22, %v17424_v45  ;;  %v1263_v63 = vsub.f32 0.0, %v1199_v54  ;;  %v1265_v8 = vsub.f32 0.0, %v1201_v34  ;;  %v17430_v22 = vld [vmem:[#allocation47_spill] sm:$0xff] }
 0x1df   : > { %v11645_v37 = vadd.f32 %v1957_v40, %v17426_v39  ;;  %v1801_v17 = vmul.f32 %v11521_v32, %v1800_v38  ;;  %vm11649_vm5 = vcmp.lt.f32.partialorder %v1820_v31, 0.0004427343  ;;  %v1329_v3 = vmul.f32 1.442695, %v1250_v29  ;;  %v11657_v57 = vpop.eup %9208  ;;  %v17431_v39 = vld [vmem:[#allocation48_spill] sm:$0xff]  ;;  %v17434_v29 = vld [vmem:[#allocation58_spill] sm:$0xff] }
 0x1e0   : > { %17425 = vst [vmem:[#allocation28_spill] sm:$0xff] %v11639_v52  ;;  %v11655_v59 = vadd.f32 %v17430_v22, %v10533_v48  ;;  %v1819_v4 = vmul.f32 %v11538_v25, %v1818_v51  ;;  %v1264_v34 = vsub.f32 0.0, %v1200_v15  ;;  %v1798_v32 = vmul.f32 0.6931472, %v9199_v19  ;;  %v17432_v22 = vld [vmem:[#allocation57_spill] sm:$0xff] }
 0x1e1   : > { %17427 = vst [vmem:[#allocation33_spill] sm:$0xff] %v11645_v37  ;;  %v1943_v38 = vmul.f32 -0.5, %v11585_v46  ;;  %v1535_v31 = vadd.f32 1.0, %v11641_v56  ;;  %v1816_v42 = vmul.f32 0.6931472, %v9205_v24  ;;  %9214 = vlog2.f32 %v1958_v53  ;;  %v17461_v37 = vld [vmem:[#allocation16_spill] sm:$0xff] }
 0x1e2   : > { %v1355_v48 = vmul.f32 1.442695, %v1263_v63  ;;  %v1359_v45 = vmul.f32 1.442695, %v1265_v8  ;;  %v1961_v40 = vmul.f32 -0.5, %v11624_v61  ;;  %v1553_v25 = vadd.f32 1.0, %v11657_v57 }
 0x1e3   : > { %9216 = vpow2.f32 %v1329_v3  ;;  %v1202_v51 = vand.u32 2147483647, %v11655_v59  ;;  %v1357_v19 = vmul.f32 1.442695, %v1264_v34  ;;  %v8692_v27 = vpack.c.bf16 %v17432_v22, %v17431_v39  ;;  %v17435_v34 = vld [vmem:[#allocation50_spill] sm:$0xff]  ;;  %v17438_v22 = vld [vmem:[#allocation41_spill] sm:$0xff] }
 0x1e4   : > { %9218 = vpow2.f32 %v1355_v48  ;;  %v1804_v24 = vsel %vm11628_vm3, %v1801_v17, %v1798_v32  ;;  %v1946_v53 = vand.u32 2147483647, %v11585_v46  ;;  %v8700_v15 = vpack.c.bf16 %v17434_v29, %v17433_v14 }
 0x1e5   : > { %9220 = vlog2.f32 %v1535_v31  ;;  %v1266_v3 = vsub.f32 0.0, %v1202_v51  ;;  %8693 = vmatprep.subr.bf16.mxu0 %v8692_v27  ;;  %v11680_v48 = vadd.f32 %v17435_v34, %v10550_v2  ;;  %v1822_v35 = vsel %vm11649_vm5, %v1819_v4, %v1816_v42  ;;  %v17437_v31 = vld [vmem:[#allocation42_spill] sm:$0xff]  ;;  %v17442_v42 = vld [vmem:[#allocation44_spill] sm:$0xff] }
 0x1e6   : > { %v9211_v8 = vpop.eup %9210  ;;  %9222 = vpow2.f32 %v1359_v45  ;;  %v1944_v17 = vadd.f32 1.0, %v1943_v38  ;;  %v1962_v32 = vadd.f32 1.0, %v1961_v40  ;;  %v17439_v45 = vpack.c.bf16 %v17437_v31, %v17438_v22  ;;  %8701 = vmatprep.subr.bf16.mxu1 %v8700_v15  ;;  %v17441_v38 = vld [vmem:[#allocation45_spill] sm:$0xff]  ;;  %v11706_v15 = vld [vmem:[%s17084_s2] sm:$0xff] }
 0x1e7   : > { %17436 = vst [vmem:[#allocation35_spill] sm:$0xff] %v11680_v48  ;;  %v11682_v39 = vpop.eup %9212  ;;  %9224 = vlog2.f32 %v1553_v25  ;;  %v1538_v27 = vmul.f32 -0.5, %v11641_v56  ;;  %v1361_v14 = vmul.f32 1.442695, %v1266_v3  ;;  %v1215_v29 = vand.u32 2147483647, %v11680_v48 }
 0x1e8   : > { %8695 = vmatpush1.bf16.msra.mxu0 %v17439_v45  ;;  %9226 = vpow2.f32 %v1357_v19  ;;  %v17440_v51 = vmax.f32 %v11378_v62, 0.0  ;;  %v1942_v50 = vmul.f32 0.6931472, %v9211_v8  ;;  %v1964_v4 = vand.u32 2147483647, %v11624_v61  ;;  %v17444_v25 = vld [vmem:[#allocation51_spill] sm:$0xff] }
 0x1e9   : > { %v17443_v40 = vpack.c.bf16 %v17441_v38, %v17442_v42  ;;  %v11701_v31 = vadd.f32 %v17444_v25, %v10550_v2  ;;  %vm11708_vm6 = vcmp.lt.f32.partialorder %v1946_v53, 0.0004427343  ;;  %v1556_v19 = vmul.f32 -0.5, %v11657_v57 }
 0x1ea   : > { %v11693_v34 = vadd.f32 %v1804_v24, %v17440_v51  ;;  %v1544_v24 = vadd.f32 1.0, %v11682_v39  ;;  %9228 = vpow2.f32 %v1361_v14  ;;  %v17448_v8 = vmax.f32 %v11402_v13, 0.0 }
 0x1eb   : > { %8703 = vmatpush1.bf16.msra.mxu1 %v17443_v40  ;;  %17445 = vst [vmem:[#allocation38_spill] sm:$0xff] %v11701_v31  ;;  %v1945_v22 = vmul.f32 %v11585_v46, %v1944_v17  ;;  %v1541_v45 = vand.u32 2147483647, %v11641_v56  ;;  %vm2096_vm7 = vcmask 261120   ;;  %v9215_v51 = vpop.eup %9214  ;;  %v11721_v53 = vmul.f32 %v11624_v61, %v1962_v32  ;;  %v17451_v32 = vld [vmem:[#allocation52_spill] sm:$0xff] }
 0x1ec   : > { %v11716_v3 = vadd.f32 %v1822_v35, %v17448_v8  ;;  %v1539_v38 = vadd.f32 1.0, %v1538_v27  ;;  %v1559_v42 = vand.u32 2147483647, %v11657_v57  ;;  %v1279_v40 = vsub.f32 0.0, %v1215_v29  ;;  %8537 = vmatmul.mubr.msk.f32.vlgmr.msra.gmra.mrb[32].mxu0 %vm2096_vm7, %v11706_v15  ;;  %v11747_v29 = vld [vmem:[%s17084_s2 + $0x8] sm:$0xff] }
 0x1ed   : > { %v11728_v13 = vpop.eup %9216  ;;  %v1948_v46 = vsel %vm11708_vm6, %v1945_v22, %v1942_v50  ;;  %vm11732_vm8 = vcmp.lt.f32.partialorder %v1964_v4, 0.0004427343  ;;  %v1217_v17 = vand.u32 2147483647, %v11701_v31  ;;  %v11740_v27 = vadd.f32 %v17451_v32, %v10550_v2  ;;  %17454 = vst [vmem:[#allocation29_spill] sm:$0xff] %v11747_v29  ;;  %v17466_v22 = vld [vmem:[#allocation18_spill] sm:$0xff] }
 0x1ee   : > { %8541 = vmatmul.mubr.msk.f32.vlgmr.msra.gmra.mrb[32].mxu1 %vm2096_vm7, %v11706_v15  ;;  %v17453_v14 = vmov 0.0   ;;  %v11749_v50 = vpop.eup %9218  ;;  %v1557_v4 = vadd.f32 1.0, %v1556_v19  ;;  %9230 = vlog2.f32 %v1544_v24  ;;  %v1547_v25 = vmul.f32 -0.5, %v11682_v39 }
 0x1ef   : > { %17452 = vst [vmem:[#allocation30_spill] sm:$0xff] %v11740_v27  ;;  %2179 = vmatprep.mubr.f32.mxu0 %v17453_v14  ;;  %2268 = vmatprep.mubr.f32.mxu1 %v17453_v14  ;;  %v9221_v8 = vpop.eup %9220  ;;  %vm11753_vm9 = vcmp.lt.f32.partialorder %v1541_v45, 0.0004427343  ;;  %v1679_v32 = vadd.f32 1.0, %v11749_v50  ;;  %v17457_v19 = vmax.f32 %v11446_v43, 0.0  ;;  %v1540_v52 = vmul.f32 %v11641_v56, %v1539_v38  ;;  %v11782_v56 = vld [vmem:[%s17084_s2 + $0x10] sm:$0xff] }
 0x1f0   : > { %v11760_v54 = vpop.eup %9222  ;;  %vm11767_vm10 = vcmp.lt.f32.partialorder %v1559_v42, 0.0004427343  ;;  %v1387_v45 = vmul.f32 1.442695, %v1279_v40  ;;  %8538 = vmatmul.mubr.msk.f32.gmra.mrb[34].mxu0 %vm2096_vm7, %v11747_v29  ;;  %v1281_v43 = vsub.f32 0.0, %v1217_v17  ;;  %17460 = vst [vmem:[#allocation32_spill] sm:$0xff] %v11782_v56  ;;  %v1558_v40 = vmul.f32 %v11657_v57, %v1557_v4 }
 0x1f1   : > { %v11764_v24 = vadd.f32 %v1948_v46, %v17457_v19  ;;  %v9225_v61 = vpop.eup %9224  ;;  %9232 = vlog2.f32 %v1679_v32  ;;  %v1697_v63 = vadd.f32 1.0, %v11760_v54  ;;  %v1216_v46 = vand.u32 2147483647, %v11740_v27  ;;  %2185 = vmatprep.mubr.f32.mxu0 %v17453_v14 }
 0x1f2   : > { %8542 = vmatmul.mubr.msk.f32.gmra.mrb[34].mxu1 %vm2096_vm7, %v11747_v29  ;;  %v11784_v38 = vpop.eup %9226  ;;  %v11786_v42 = vmul.f32 0.6931472, %v9215_v51  ;;  %v1548_v32 = vadd.f32 1.0, %v1547_v25  ;;  %v1562_v17 = vadd.f32 1.0, %v11728_v13  ;;  %v1537_v19 = vmul.f32 0.6931472, %v9221_v8 }
 0x1f3   : > { %2274 = vmatprep.mubr.f32.mxu1 %v17453_v14  ;;  %9234 = vlog2.f32 %v1697_v63  ;;  %v1688_v27 = vadd.f32 1.0, %v11784_v38  ;;  %v11793_v31 = vadd.f32 %v17461_v37, %v10550_v2  ;;  %v1555_v33 = vmul.f32 0.6931472, %v9225_v61  ;;  %v17463_v51 = vld [vmem:[#allocation17_spill] sm:$0xff]  ;;  %v11809_v2 = vld [vmem:[%s17084_s2 + $0x18] sm:$0xff] }
 0x1f4   : > { %v11795_v49 = vpop.eup %9228  ;;  %v1682_v29 = vmul.f32 -0.5, %v11749_v50  ;;  %9236 = vpow2.f32 %v1387_v45  ;;  %v11800_v57 = vadd.f32 %v17463_v51, %v10630_v44  ;;  %8539 = vmatmul.mubr.msk.f32.gmra.mrb[36].mxu0 %vm2096_vm7, %v11782_v56  ;;  %17465 = vst [vmem:[#allocation36_spill] sm:$0xff] %v11809_v2  ;;  %v1391_v61 = vmul.f32 1.442695, %v1281_v43 }
 0x1f5   : > { %17462 = vst [vmem:[#allocation31_spill] sm:$0xff] %v11793_v31  ;;  %v1706_v63 = vadd.f32 1.0, %v11795_v49  ;;  %v1280_v4 = vsub.f32 0.0, %v1216_v46  ;;  %2191 = vmatprep.mubr.f32.mxu0 %v17453_v14  ;;  %v1565_v8 = vmul.f32 -0.5, %v11728_v13  ;;  %v1700_v45 = vmul.f32 -0.5, %v11760_v54 }
 0x1f6   : > { %17464 = vst [vmem:[#allocation34_spill] sm:$0xff] %v11800_v57  ;;  %8543 = vmatmul.mubr.msk.f32.gmra.mrb[36].mxu1 %vm2096_vm7, %v11782_v56  ;;  %9238 = vlog2.f32 %v1688_v27  ;;  %v1543_v51 = vsel %vm11753_vm9, %v1540_v52, %v1537_v19  ;;  %v11824_v43 = vmul.f32 %v11682_v39, %v1548_v32  ;;  %v1218_v46 = vand.u32 2147483647, %v11793_v31 }
 0x1f7   : > { %2280 = vmatprep.mubr.f32.mxu1 %v17453_v14  ;;  %9240 = vlog2.f32 %v1706_v63  ;;  %v1561_v56 = vsel %vm11767_vm10, %v1558_v40, %v1555_v33  ;;  %v1683_v25 = vadd.f32 1.0, %v1682_v29  ;;  %v1231_v48 = vand.u32 2147483647, %v11800_v57 }
 0x1f8   : > { %v9231_v37 = vpop.eup %9230  ;;  %9242 = vlog2.f32 %v1562_v17  ;;  %8540 = vmatmul.mubr.msk.f32.gmra.mrb[38].mxu0 %vm2096_vm7, %v11809_v2  ;;  %v1685_v52 = vand.u32 2147483647, %v11749_v50  ;;  %v1389_v27 = vmul.f32 1.442695, %v1280_v4  ;;  %v11837_v32 = vadd.f32 %v17466_v22, %v10630_v44 }
 0x1f9   : > { %9244 = vpow2.f32 %v1391_v61  ;;  %2351 = vmatprep.mubr.f32.mxu0 %v17453_v14  ;;  %v17468_v33 = vmax.f32 %v11509_v26, 0.0  ;;  %v1566_v62 = vadd.f32 1.0, %v1565_v8  ;;  %v1701_v40 = vadd.f32 1.0, %v1700_v45 }
 0x1fa   : > { %8544 = vmatmul.mubr.msk.f32.gmra.mrb[38].mxu1 %vm2096_vm7, %v11809_v2  ;;  %17467 = vst [vmem:[#allocation37_spill] sm:$0xff] %v11837_v32  ;;  %v1295_v17 = vsub.f32 0.0, %v1231_v48  ;;  %v17469_v63 = vmax.f32 %v11519_v41, 0.0  ;;  %v11849_v4 = vmul.f32 0.6931472, %v9231_v37  ;;  %v1282_v31 = vsub.f32 0.0, %v1218_v46 }
 0x1fb   : > { %2440 = vmatprep.mubr.f32.mxu1 %v17453_v14  ;;  %v11843_v29 = vadd.f32 %v1543_v51, %v17468_v33  ;;  %v9233_v19 = vpop.eup %9232  ;;  %v1703_v22 = vand.u32 2147483647, %v11760_v54  ;;  %v1684_v57 = vmul.f32 %v11749_v50, %v1683_v25  ;;  %v1691_v26 = vmul.f32 -0.5, %v11784_v38  ;;  %v17470_v51 = vld [vmem:[#allocation19_spill] sm:$0xff] }
 0x1fc   : > { %v11847_v61 = vadd.f32 %v1561_v56, %v17469_v63  ;;  %v1681_v2 = vmul.f32 0.6931472, %v9233_v19  ;;  %v11856_v8 = vadd.f32 %v17470_v51, %v10630_v44  ;;  %vm1686_vm11 = vcmp.lt.f32.partialorder %v1685_v52, 0.0004427343 }
 0x1fd   : > { %v9235_v48 = vpop.eup %9234  ;;  %9246 = vpow2.f32 %v1389_v27  ;;  %v1419_v41 = vmul.f32 1.442695, %v1295_v17  ;;  %v1233_v56 = vand.u32 2147483647, %v11837_v32  ;;  %v1702_v46 = vmul.f32 %v11760_v54, %v1701_v40 }
 0x1fe   : > { %v11859_v37 = vpop.eup %9236  ;;  %v1687_v45 = vsel %vm1686_vm11, %v1684_v57, %v1681_v2  ;;  %v1699_v33 = vmul.f32 0.6931472, %v9235_v48  ;;  %v1709_v50 = vmul.f32 -0.5, %v11795_v49  ;;  %v17471_v25 = vmax.f32 %v11595_v6, 0.0 }
 0x1ff   : > { %vm1704_vm12 = vcmp.lt.f32.partialorder %v1703_v22, 0.0004427343  ;;  %9248 = vpow2.f32 %v1419_v41  ;;  %v1297_v63 = vsub.f32 0.0, %v1233_v56  ;;  %v1692_v17 = vadd.f32 1.0, %v1691_v26 }
 0x200   : > { %v11865_v19 = vadd.f32 %v1687_v45, %v17471_v25  ;;  %v9239_v52 = vpop.eup %9238  ;;  %v1705_v27 = vsel %vm1704_vm12, %v1702_v46, %v1699_v33  ;;  %v1393_v51 = vmul.f32 1.442695, %v1282_v31  ;;  %v1232_v32 = vand.u32 2147483647, %v11856_v8  ;;  %v17473_v31 = vld [vmem:[#allocation21_spill] sm:$0xff] }
 0x201   : > { %v9241_v23 = vpop.eup %9240  ;;  %v17472_v54 = vmax.f32 %v11599_v60, 0.0  ;;  %v1823_v6 = vadd.f32 1.0, %v11859_v37  ;;  %v1423_v40 = vmul.f32 1.442695, %v1297_v63  ;;  %v1694_v48 = vand.u32 2147483647, %v11784_v38 }
 0x202   : > { %v8738_v57 = vpack.c.bf16 %v11865_v19, %v11843_v29  ;;  %v9243_v22 = vpop.eup %9242  ;;  %v1710_v41 = vadd.f32 1.0, %v1709_v50  ;;  %v1712_v26 = vand.u32 2147483647, %v11795_v49  ;;  %v8704_v56 = vpack.c.bf16 %v11264_v21, %v17473_v31 }
 0x203   : > { %v11872_v2 = vadd.f32 %v1705_v27, %v17472_v54  ;;  %v11879_v45 = vpop.eup %9244  ;;  %v1690_v60 = vmul.f32 0.6931472, %v9239_v52  ;;  %9250 = vpow2.f32 %v1423_v40  ;;  %v1296_v46 = vsub.f32 0.0, %v1232_v32  ;;  %v17474_v27 = vld [vmem:[#allocation59_spill] sm:$0xff]  ;;  %v17478_v32 = vld [vmem:[#allocation54_spill] sm:$0xff]  ;;  %v17479_v40 = vld [vmem:[#allocation53_spill] sm:$0xff] }
 0x204   : > { %v1568_v25 = vand.u32 2147483647, %v11728_v13  ;;  %v1708_v63 = vmul.f32 0.6931472, %v9241_v23  ;;  %9252 = vpow2.f32 %v1393_v51  ;;  %v11886_v50 = vadd.f32 %v17474_v27, %v10630_v44  ;;  %8705 = vmatprep.subr.bf16.mxu0 %v8704_v56 }
 0x205   : > { %v17475_v54 = vand.u32 2147483647, %v11682_v39  ;;  %v1564_v31 = vmul.f32 0.6931472, %v9243_v22  ;;  %v1693_v52 = vmul.f32 %v11784_v38, %v1692_v17  ;;  %9254 = vlog2.f32 %v1823_v6 }
 0x206   : > { %v17480_v33 = vpack.c.bf16 %v17478_v32, %v17479_v40  ;;  %vm11902_vm14 = vcmp.lt.f32.partialorder %v1694_v48, 0.0004427343  ;;  %v1711_v39 = vmul.f32 %v11795_v49, %v1710_v41  ;;  %v1841_v51 = vadd.f32 1.0, %v11879_v45 }
 0x207   : > { %vm11890_vm13 = vcmp.lt.f32.partialorder %v17475_v54, 0.0004427343  ;;  %v11908_v22 = vpop.eup %9246  ;;  %v1567_v38 = vmul.f32 %v11728_v13, %v1566_v62  ;;  %v1696_v17 = vsel %vm11902_vm14, %v1693_v52, %v1690_v60  ;;  %vm1713_vm15 = vcmp.lt.f32.partialorder %v1712_v26, 0.0004427343  ;;  %v17493_v52 = vld [vmem:[#allocation55_spill] sm:$0xff] }
 0x208   : > { %8707 = vmatpush1.bf16.msra.mxu0 %v17480_v33  ;;  %v1552_v44 = vsel %vm11890_vm13, %v11824_v43, %v11849_v4  ;;  %v1421_v6 = vmul.f32 1.442695, %v1296_v46  ;;  %v17483_v56 = vmax.f32 %v11471_v10, 0.0  ;;  %v17484_v43 = vsel %vm11732_vm8, %v11721_v53, %v11786_v42  ;;  %v17488_v53 = vld [vmem:[#allocation20_spill] sm:$0xff] }
 0x209   : > { %vm11922_vm2 = vcmp.lt.f32.partialorder %v1568_v25, 0.0004427343  ;;  %v1714_v48 = vsel %vm1713_vm15, %v1711_v39, %v1708_v63  ;;  %v1234_v13 = vand.u32 2147483647, %v11886_v50  ;;  %v11927_v62 = vpop.eup %9248  ;;  %v17487_v41 = vmax.f32 %v11550_v58, 0.0 }
 0x20a   : > { %v11920_v4 = vadd.f32 %v17484_v43, %v17483_v56  ;;  %v1570_v10 = vsel %vm11922_vm2, %v1567_v38, %v1564_v31  ;;  %9256 = vpow2.f32 %v1421_v6  ;;  %v8712_v35 = vpack.c.bf16 %v11314_v1, %v17488_v53  ;;  %v17492_v31 = vld [vmem:[#allocation56_spill] sm:$0xff]  ;;  %v17498_v38 = vld [vmem:[#allocation22_spill] sm:$0xff] }
 0x20b   : > { %v11931_v26 = vadd.f32 %v1552_v44, %v17487_v41  ;;  %v17489_v42 = vmax.f32 %v11609_v28, 0.0  ;;  %9258 = vlog2.f32 %v1841_v51  ;;  %v1832_v60 = vadd.f32 1.0, %v11908_v22  ;;  %v17497_v51 = vld [vmem:[#allocation23_spill] sm:$0xff] }
 0x20c   : > { %v1967_v46 = vadd.f32 1.0, %v11927_v62  ;;  %v17490_v58 = vmax.f32 %v11655_v59, 0.0  ;;  %v1298_v63 = vsub.f32 0.0, %v1234_v13  ;;  %8713 = vmatprep.subr.bf16.mxu1 %v8712_v35  ;;  %v8708_v27 = vpack.c.bf16 %v11387_v20, %v11321_v18  ;;  %v17501_v13 = vld [vmem:[#allocation24_spill] sm:$0xff] }
 0x20d   : > { %v11939_v33 = vadd.f32 %v1696_v17, %v17489_v42  ;;  %v8716_v1 = vpack.c.bf16 %v11450_v5, %v11332_v7  ;;  %v17491_v28 = vmax.f32 %v11581_v0, 0.0  ;;  %v1826_v21 = vmul.f32 -0.5, %v11859_v37  ;;  %v11961_v40 = vpop.eup %9250  ;;  %v17506_v42 = vld [vmem:[#allocation29_spill] sm:$0xff] }
 0x20e   : > { %v11945_v25 = vadd.f32 %v1714_v48, %v17490_v58  ;;  %9260 = vlog2.f32 %v1967_v46  ;;  %v17494_v59 = vpack.c.bf16 %v17492_v31, %v17493_v52  ;;  %v8720_v32 = vpack.c.bf16 %v11613_v16, %v11500_v30  ;;  %8709 = vmatprep.subr.bf16.mxu0 %v8708_v27  ;;  %v11969_v0 = vpop.eup %9252  ;;  %v17500_v48 = vld [vmem:[#allocation25_spill] sm:$0xff]  ;;  %v17507_v58 = vld [vmem:[#allocation27_spill] sm:$0xff]  ;;  %v17510_v31 = vld [vmem:[#allocation38_spill] sm:$0xff] }
 0x20f   : > { %v11953_v54 = vadd.f32 %v1570_v10, %v17491_v28  ;;  %v1425_v18 = vmul.f32 1.442695, %v1298_v63  ;;  %v8728_v7 = vpack.c.bf16 %v11635_v47, %v11525_v55  ;;  %v8724_v20 = vpack.c.bf16 %v11764_v24, %v11693_v34  ;;  %v9255_v16 = vpop.eup %9254 }
 0x210   : > { %8715 = vmatpush1.bf16.msra.mxu1 %v17494_v59  ;;  %v8732_v5 = vpack.c.bf16 %v11920_v4, %v11716_v3  ;;  %9262 = vlog2.f32 %v1832_v60  ;;  %v1985_v44 = vadd.f32 1.0, %v11961_v40  ;;  %v17495_v30 = vpack.c.bf16 %v11259_v9, %v11248_v36  ;;  %v17511_v59 = vld [vmem:[#allocation34_spill] sm:$0xff] }
 0x211   : > { %8717 = vmatprep.subr.bf16.mxu1 %v8716_v1  ;;  %v1970_v23 = vmul.f32 -0.5, %v11927_v62  ;;  %9264 = vpow2.f32 %v1425_v18  ;;  %v8736_v55 = vpack.c.bf16 %v11939_v33, %v11931_v26  ;;  %v8744_v47 = vpack.c.bf16 %v11945_v25, %v11953_v54  ;;  %v17503_v26 = vld [vmem:[#allocation35_spill] sm:$0xff]  ;;  %v17508_v25 = vld [vmem:[#allocation26_spill] sm:$0xff] }
 0x212   : > { %8711 = vmatpush1.bf16.msra.mxu0 %v17495_v30  ;;  %v1827_v34 = vadd.f32 1.0, %v1826_v21  ;;  %9266 = vlog2.f32 %v1985_v44  ;;  %v17496_v3 = vpack.c.bf16 %v11276_v11, %v11272_v12  ;;  %v1829_v36 = vand.u32 2147483647, %v11859_v37 }
 0x213   : > { %8721 = vmatprep.subr.bf16.mxu0 %v8720_v32  ;;  %v1844_v9 = vmul.f32 -0.5, %v11879_v45  ;;  %v1850_v24 = vadd.f32 1.0, %v11969_v0  ;;  %v1825_v39 = vmul.f32 0.6931472, %v9255_v16  ;;  %v17499_v17 = vpack.c.bf16 %v17497_v51, %v17498_v38  ;;  %v17515_v16 = vld [vmem:[#allocation37_spill] sm:$0xff] }
 0x214   : > { %8719 = vmatpush1.bf16.msra.mxu1 %v17496_v3  ;;  %v11992_v6 = vpop.eup %9256  ;;  %v1971_v12 = vadd.f32 1.0, %v1970_v23  ;;  %v1988_v11 = vmul.f32 -0.5, %v11961_v40  ;;  %v1828_v43 = vmul.f32 %v11859_v37, %v1827_v34  ;;  %v1973_v4 = vand.u32 2147483647, %v11927_v62  ;;  %v17516_v34 = vld [vmem:[#allocation32_spill] sm:$0xff] }
 0x215   : > { %8545 = vmatmul.mubr.msk.f32.vlgmr.msra.gmra.mrb[40].mxu0 %vm2096_vm7, %v11706_v15  ;;  %8729 = vmatprep.subr.bf16.mxu1 %v8728_v7  ;;  %v9259_v56 = vpop.eup %9258  ;;  %v1976_v49 = vadd.f32 1.0, %v11992_v6  ;;  %v17502_v41 = vpack.c.bf16 %v17500_v48, %v17501_v13  ;;  %v1151_v10 = vmax.f32 %v17503_v26, 0.0  ;;  %vm12005_vm3 = vcmp.lt.f32.partialorder %v1829_v36, 0.0004427343  ;;  %v17512_v7 = vld [vmem:[#allocation33_spill] sm:$0xff] }
 0x216   : > { %2357 = vmatprep.mubr.f32.mxu0 %v17453_v14  ;;  %8723 = vmatpush1.bf16.msra.mxu0 %v17499_v17  ;;  %v1845_v35 = vadd.f32 1.0, %v1844_v9  ;;  %9268 = vlog2.f32 %v1850_v24  ;;  %v1831_v33 = vsel %vm12005_vm3, %v1828_v43, %v1825_v39  ;;  %v1847_v60 = vand.u32 2147483647, %v11879_v45 }
 0x217   : > { %8549 = vmatmul.mubr.msk.f32.vlgmr.msra.gmra.mrb[40].mxu1 %vm2096_vm7, %v11706_v15  ;;  %8725 = vmatprep.subr.bf16.mxu0 %v8724_v20  ;;  %v1835_v46 = vmul.f32 -0.5, %v11908_v22  ;;  %9270 = vlog2.f32 %v1976_v49  ;;  %v17509_v63 = vpack.c.bf16 %v17507_v58, %v17508_v25  ;;  %v1843_v27 = vmul.f32 0.6931472, %v9259_v56  ;;  %v17513_v20 = vld [vmem:[#allocation28_spill] sm:$0xff]  ;;  %v17522_v58 = vld [vmem:[#allocation30_spill] sm:$0xff] }
 0x218   : > { %2446 = vmatprep.mubr.f32.mxu1 %v17453_v14  ;;  %8731 = vmatpush1.bf16.msra.mxu1 %v17502_v41  ;;  %v9261_v37 = vpop.eup %9260  ;;  %v1972_v28 = vmul.f32 %v11927_v62, %v1971_v12  ;;  %v1989_v54 = vadd.f32 1.0, %v1988_v11  ;;  %v1153_v52 = vmax.f32 %v17510_v31, 0.0  ;;  %v1167_v32 = vmax.f32 %v17511_v59, 0.0  ;;  %v17519_v49 = vld [vmem:[#allocation36_spill] sm:$0xff] }
 0x219   : > { %8546 = vmatmul.mubr.msk.f32.gmra.mrb[42].mxu0 %vm2096_vm7, %v17506_v42  ;;  %8733 = vmatprep.subr.bf16.mxu1 %v8732_v5  ;;  %v1969_v1 = vmul.f32 0.6931472, %v9261_v37  ;;  %vm1974_vm4 = vcmp.lt.f32.partialorder %v1973_v4, 0.0004427343  ;;  %v1991_v18 = vand.u32 2147483647, %v11961_v40  ;;  %v17514_v5 = vpack.c.bf16 %v17512_v7, %v17513_v20 }
 0x21a   : > { %2363 = vmatprep.mubr.f32.mxu0 %v17453_v14  ;;  %8727 = vmatpush1.bf16.msra.mxu0 %v17509_v63  ;;  %v9263_v21 = vpop.eup %9262  ;;  %v1846_v44 = vmul.f32 %v11879_v45, %v1845_v35  ;;  %v1169_v23 = vmax.f32 %v17515_v16, 0.0  ;;  %v12036_v36 = vadd.f32 %v1831_v33, %v1151_v10  ;;  %vm12038_vm5 = vcmp.lt.f32.partialorder %v1847_v60, 0.0004427343 }
 0x21b   : > { %8550 = vmatmul.mubr.msk.f32.gmra.mrb[42].mxu1 %vm2096_vm7, %v17506_v42  ;;  %8737 = vmatprep.subr.bf16.mxu0 %v8736_v55  ;;  %v12029_v62 = vpop.eup %9264  ;;  %v1975_v30 = vsel %vm1974_vm4, %v1972_v28, %v1969_v1  ;;  %v1979_v55 = vmul.f32 -0.5, %v11992_v6  ;;  %v1836_v51 = vadd.f32 1.0, %v1835_v46  ;;  %v1838_v17 = vand.u32 2147483647, %v11908_v22 }
 0x21c   : > { %2452 = vmatprep.mubr.f32.mxu1 %v17453_v14  ;;  %8735 = vmatpush1.bf16.msra.mxu1 %v17514_v5  ;;  %v9267_v3 = vpop.eup %9266  ;;  %v12042_v24 = vadd.f32 %v1975_v30, %v1167_v32  ;;  %v1994_v45 = vadd.f32 1.0, %v12029_v62  ;;  %v1849_v39 = vsel %vm12038_vm5, %v1846_v44, %v1843_v27  ;;  %vm1992_vm6 = vcmp.lt.f32.partialorder %v1991_v18, 0.0004427343  ;;  %v17524_v18 = vld [vmem:[#allocation31_spill] sm:$0xff] }
 0x21d   : > { %8547 = vmatmul.mubr.msk.f32.gmra.mrb[44].mxu0 %vm2096_vm7, %v17516_v34  ;;  %8745 = vmatprep.subr.bf16.mxu1 %v8744_v47  ;;  %v1987_v38 = vmul.f32 0.6931472, %v9267_v3  ;;  %v1990_v47 = vmul.f32 %v11961_v40, %v1989_v54  ;;  %v1834_v11 = vmul.f32 0.6931472, %v9263_v21  ;;  %v1853_v56 = vmul.f32 -0.5, %v11969_v0 }
 0x21e   : > { %2369 = vmatprep.mubr.f32.mxu0 %v17453_v14  ;;  %v8742_v12 = vpack.c.bf16 %v12042_v24, %v12036_v36  ;;  %9272 = vlog2.f32 %v1994_v45  ;;  %v1980_v4 = vadd.f32 1.0, %v1979_v55  ;;  %v2049_v40 = vadd.f32 %v1849_v39, %v1153_v52 }
 0x21f   : > { %8551 = vmatmul.mubr.msk.f32.gmra.mrb[44].mxu1 %vm2096_vm7, %v17516_v34  ;;  %v1993_v43 = vsel %vm1992_vm6, %v1990_v47, %v1987_v38  ;;  %v1982_v13 = vand.u32 2147483647, %v11992_v6  ;;  %v1837_v26 = vmul.f32 %v11908_v22, %v1836_v51  ;;  %v1997_v10 = vmul.f32 -0.5, %v12029_v62 }
 0x220   : > { %2458 = vmatprep.mubr.f32.mxu1 %v17453_v14  ;;  %v2065_v48 = vadd.f32 %v1993_v43, %v1169_v23  ;;  %v9269_v41 = vpop.eup %9268  ;;  %vm12064_vm8 = vcmp.lt.f32.partialorder %v1838_v17, 0.0004427343  ;;  %v1854_v60 = vadd.f32 1.0, %v1853_v56  ;;  %v1981_v22 = vmul.f32 %v11992_v6, %v1980_v4 }
 0x221   : > { %8548 = vmatmul.mubr.msk.f32.gmra.mrb[46].mxu0 %vm2096_vm7, %v17519_v49  ;;  %v9271_v53 = vpop.eup %9270  ;;  %v1840_v33 = vsel %vm12064_vm8, %v1837_v26, %v1834_v11  ;;  %v1152_v25 = vmax.f32 %v17522_v58, 0.0  ;;  %v1856_v63 = vand.u32 2147483647, %v11969_v0  ;;  %v1168_v27 = vmax.f32 %v11856_v8, 0.0 }
 0x222   : > { %2529 = vmatprep.mubr.f32.mxu0 %v17453_v14  ;;  %v8750_v37 = vpack.c.bf16 %v2065_v48, %v2049_v40  ;;  %v1978_v46 = vmul.f32 0.6931472, %v9271_v53  ;;  %vm1983_vm9 = vcmp.lt.f32.partialorder %v1982_v13, 0.0004427343  ;;  %v1852_v1 = vmul.f32 0.6931472, %v9269_v41 }
 0x223   : > { %8552 = vmatmul.mubr.msk.f32.gmra.mrb[46].mxu1 %vm2096_vm7, %v17519_v49  ;;  %v1998_v54 = vadd.f32 1.0, %v1997_v10  ;;  %v2048_v6 = vadd.f32 %v1840_v33, %v1152_v25  ;;  %v2000_v31 = vand.u32 2147483647, %v12029_v62  ;;  %v17523_v8 = vpack.c.bf16 %v11872_v2, %v11847_v61 }
 0x224   : > { %2618 = vmatprep.mubr.f32.mxu1 %v17453_v14  ;;  %v1984_v28 = vsel %vm1983_vm9, %v1981_v22, %v1978_v46  ;;  %v1855_v52 = vmul.f32 %v11969_v0, %v1854_v60  ;;  %vm1857_vm10 = vcmp.lt.f32.partialorder %v1856_v63, 0.0004427343  ;;  %v1154_v61 = vmax.f32 %v17524_v18, 0.0 }
 0x225   : > { %8553 = vmatmul.mubr.msk.f32.vlgmr.msra.gmra.mrb[48].mxu0 %vm2096_vm7, %v11706_v15  ;;  %v2064_v21 = vadd.f32 %v1984_v28, %v1168_v27  ;;  %v1999_v32 = vmul.f32 %v12029_v62, %v1998_v54  ;;  %v1170_v2 = vmax.f32 %v11886_v50, 0.0  ;;  %vm2001_vm11 = vcmp.lt.f32.partialorder %v2000_v31, 0.0004427343 }
 0x226   : > { %2535 = vmatprep.mubr.f32.mxu0 %v17453_v14  ;;  %8739 = vmatpush1.bf16.msra.mxu0 %v8738_v57  ;;  %v1858_v57 = vsel %vm1857_vm10, %v1855_v52, %v1852_v1 }
 0x227   : > { %8557 = vmatmul.mubr.msk.f32.vlgmr.msra.gmra.mrb[48].mxu1 %vm2096_vm7, %v11706_v15  ;;  %v8740_v19 = vpack.c.bf16 %v2064_v21, %v2048_v6  ;;  %v2050_v7 = vadd.f32 %v1858_v57, %v1154_v61 }
 0x228   : > { %2624 = vmatprep.mubr.f32.mxu1 %v17453_v14  ;;  %8747 = vmatpush1.bf16.msra.mxu1 %v17523_v8  ;;  %v9273_v29 = vpop.eup %9272 }
 0x229   : > { %8554 = vmatmul.mubr.msk.f32.gmra.mrb[50].mxu0 %vm2096_vm7, %v17506_v42  ;;  %v1996_v59 = vmul.f32 0.6931472, %v9273_v29  ;;  %8741 = vmatprep.subr.bf16.mxu0 %v8740_v19 }
 0x22a   : > { %2541 = vmatprep.mubr.f32.mxu0 %v17453_v14  ;;  %8743 = vmatpush1.bf16.msra.mxu0 %v8742_v12 }
 0x22b   : > { %8558 = vmatmul.mubr.msk.f32.gmra.mrb[50].mxu1 %vm2096_vm7, %v17506_v42  ;;  %v2002_v0 = vsel %vm2001_vm11, %v1999_v32, %v1996_v59 }
 0x22c   : > { %2630 = vmatprep.mubr.f32.mxu1 %v17453_v14  ;;  %v2066_v20 = vadd.f32 %v2002_v0, %v1170_v2 }
 0x22d   : > { %8555 = vmatmul.mubr.msk.f32.gmra.mrb[52].mxu0 %vm2096_vm7, %v17516_v34 }
 0x22e   : > { %2547 = vmatprep.mubr.f32.mxu0 %v17453_v14  ;;  %v8748_v5 = vpack.c.bf16 %v2066_v20, %v2050_v7 }
 0x22f   : > { %8559 = vmatmul.mubr.msk.f32.gmra.mrb[52].mxu1 %vm2096_vm7, %v17516_v34 }
 0x230   : > { %2636 = vmatprep.mubr.f32.mxu1 %v17453_v14  ;;  %8749 = vmatprep.subr.bf16.mxu1 %v8748_v5 }
 0x231   : > { %8556 = vmatmul.mubr.msk.f32.gmra.mrb[54].mxu0 %vm2096_vm7, %v17519_v49  ;;  %8751 = vmatpush1.bf16.msra.mxu1 %v8750_v37 }
 0x232   : > { %2707 = vmatprep.mubr.f32.mxu0 %v17453_v14 }
 0x233   : > { %8560 = vmatmul.mubr.msk.f32.gmra.mrb[54].mxu1 %vm2096_vm7, %v17519_v49 }
 0x234   : > { %2796 = vmatprep.mubr.f32.mxu1 %v17453_v14 }
 0x235   : > { %8561 = vmatmul.mubr.msk.f32.vlgmr.msra.gmra.mrb[56].mxu0 %vm2096_vm7, %v11706_v15 }
 0x236   : > { %2713 = vmatprep.mubr.f32.mxu0 %v17453_v14 }
 0x237   : > { %8565 = vmatmul.mubr.msk.f32.vlgmr.msra.gmra.mrb[56].mxu1 %vm2096_vm7, %v11706_v15  ;;  %v12134_v15 = vpop.permute.xlu0 %2078 }
 0x238   : > { %2802 = vmatprep.mubr.f32.mxu1 %v17453_v14 }
 0x239   : > { %8562 = vmatmul.mubr.msk.f32.gmra.mrb[58].mxu0 %vm2096_vm7, %v17506_v42 }
 0x23a   : > { %2719 = vmatprep.mubr.f32.mxu0 %v17453_v14 }
 0x23b   : > { %8566 = vmatmul.mubr.msk.f32.gmra.mrb[58].mxu1 %vm2096_vm7, %v17506_v42  ;;  %v12169_v58 = vpop.permute.xlu0 %2088 }
 0x23c   : > { %2808 = vmatprep.mubr.f32.mxu1 %v17453_v14 }
 0x23d   : > { %8563 = vmatmul.mubr.msk.f32.gmra.mrb[60].mxu0 %vm2096_vm7, %v17516_v34 }
 0x23e   : > { %2725 = vmatprep.mubr.f32.mxu0 %v17453_v14 }
 0x23f   : > { %8567 = vmatmul.mubr.msk.f32.gmra.mrb[60].mxu1 %vm2096_vm7, %v17516_v34  ;;  %v12144_v34 = vpop.permute.xlu1 %2083 }
 0x240   : > { %2814 = vmatprep.mubr.f32.mxu1 %v17453_v14 }
 0x241   : > { %8564 = vmatmul.mubr.msk.f32.gmra.mrb[62].mxu0 %vm2096_vm7, %v17519_v49 }
 0x242   : > { %3887 = vmatprep.mubr.f32.mxu0 %v17453_v14 }
 0x243   : > { %8568 = vmatmul.mubr.msk.f32.gmra.mrb[62].mxu1 %vm2096_vm7, %v17519_v49 }
 0x244   : > { %3976 = vmatprep.mubr.f32.mxu1 %v17453_v14 }
 0x2bf   : > { %v2175_v50 = vpop.f32.mrb[32].mxu0 }
 0x2c0   : > { %v12137_v62 = vadd.f32 %v2175_v50, %v12134_v15  ;;  %v2177_v30 = vpop.f32.mrb[33].mxu0 }
 0x2c1   : > { %v2264_v42 = vpop.f32.mrb[32].mxu1  ;;  %v12147_v3 = vadd.f32 %v2177_v30, %v12134_v15 }
 0x2c2   : > { %v12140_v44 = vadd.f32 %v2264_v42, %v12134_v15  ;;  %v2266_v16 = vpop.f32.mrb[33].mxu1  ;;  %v2885_v23 = vand.u32 2147483647, %v12137_v62 }
 0x2c3   : > { %v2181_v24 = vpop.f32.mrb[34].mxu0  ;;  %v12156_v11 = vadd.f32 %v2266_v16, %v12134_v15  ;;  %v2886_v56 = vand.u32 2147483647, %v12147_v3 }
 0x2c4   : > { %v2887_v55 = vand.u32 2147483647, %v12140_v44  ;;  %v2949_v36 = vsub.f32 0.0, %v2885_v23  ;;  %v12150_v39 = vadd.f32 %v2181_v24, %v12144_v34  ;;  %v2183_v38 = vpop.f32.mrb[35].mxu0 }
 0x2c5   : > { %v2270_v45 = vpop.f32.mrb[34].mxu1  ;;  %v2888_v48 = vand.u32 2147483647, %v12156_v11  ;;  %v2950_v37 = vsub.f32 0.0, %v2886_v56  ;;  %v12165_v46 = vadd.f32 %v2183_v38, %v12144_v34 }
 0x2c6   : > { %v2951_v9 = vsub.f32 0.0, %v2887_v55  ;;  %v12153_v51 = vadd.f32 %v2270_v45, %v12144_v34  ;;  %v2272_v47 = vpop.f32.mrb[35].mxu1  ;;  %v3013_v17 = vmul.f32 1.442695, %v2949_v36  ;;  %v2901_v43 = vand.u32 2147483647, %v12150_v39  ;;  %v12202_v55 = vpop.permute.xlu1 %2093 }
 0x2c7   : > { %v2187_v49 = vpop.f32.mrb[36].mxu0  ;;  %v2952_v25 = vsub.f32 0.0, %v2888_v48  ;;  %v12172_v63 = vadd.f32 %v2272_v47, %v12144_v34  ;;  %v3015_v28 = vmul.f32 1.442695, %v2950_v37  ;;  %v2902_v54 = vand.u32 2147483647, %v12165_v46 }
 0x2c8   : > { %v3017_v12 = vmul.f32 1.442695, %v2951_v9  ;;  %9274 = vpow2.f32 %v3013_v17  ;;  %v2903_v4 = vand.u32 2147483647, %v12153_v51  ;;  %v2965_v13 = vsub.f32 0.0, %v2901_v43  ;;  %v2189_v26 = vpop.f32.mrb[37].mxu0 }
 0x2c9   : > { %v2276_v40 = vpop.f32.mrb[36].mxu1  ;;  %v12177_v1 = vadd.f32 %v2187_v49, %v12169_v58  ;;  %v3019_v21 = vmul.f32 1.442695, %v2952_v25  ;;  %v2904_v31 = vand.u32 2147483647, %v12172_v63  ;;  %v2966_v57 = vsub.f32 0.0, %v2902_v54 }
 0x2ca   : > { %9276 = vpow2.f32 %v3017_v12  ;;  %v2967_v41 = vsub.f32 0.0, %v2903_v4  ;;  %v2278_v10 = vpop.f32.mrb[37].mxu1  ;;  %v3045_v33 = vmul.f32 1.442695, %v2965_v13  ;;  %v12189_v59 = vadd.f32 %v2276_v40, %v12169_v58 }
 0x2cb   : > { %v2193_v53 = vpop.f32.mrb[38].mxu0  ;;  %v2917_v29 = vand.u32 2147483647, %v12177_v1  ;;  %v2968_v32 = vsub.f32 0.0, %v2904_v31  ;;  %v3047_v2 = vmul.f32 1.442695, %v2966_v57  ;;  %v12200_v23 = vadd.f32 %v2189_v26, %v12169_v58 }
 0x2cc   : > { %v3049_v60 = vmul.f32 1.442695, %v2967_v41  ;;  %v12167_v22 = vpop.f32.mrb[39].mxu0  ;;  %9278 = vpow2.f32 %v3045_v33  ;;  %v2919_v0 = vand.u32 2147483647, %v12189_v59  ;;  %v2821_v36 = vmax.f32 %v12137_v62, 0.0 }
 0x2cd   : > { %v12162_v35 = vpop.f32.mrb[38].mxu1  ;;  %v2981_v18 = vsub.f32 0.0, %v2917_v29  ;;  %v3051_v5 = vmul.f32 1.442695, %v2968_v32  ;;  %v2823_v9 = vmax.f32 %v12140_v44, 0.0  ;;  %v12207_v24 = vadd.f32 %v2278_v10, %v12169_v58 }
 0x2ce   : > { %v12174_v27 = vpop.f32.mrb[39].mxu1  ;;  %9280 = vpow2.f32 %v3049_v60  ;;  %v2983_v16 = vsub.f32 0.0, %v2919_v0  ;;  %v12214_v17 = vadd.f32 %v2193_v53, %v12202_v55  ;;  %v2837_v43 = vmax.f32 %v12150_v39, 0.0 }
 0x2cf   : > { %9282 = vpow2.f32 %v3015_v28  ;;  %v3077_v42 = vmul.f32 1.442695, %v2981_v18  ;;  %v2918_v13 = vand.u32 2147483647, %v12200_v23  ;;  %v2839_v53 = vmax.f32 %v12153_v51, 0.0 }
 0x2d0   : > { %v3081_v48 = vmul.f32 1.442695, %v2983_v16  ;;  %v2920_v37 = vand.u32 2147483647, %v12207_v24  ;;  %v2933_v25 = vand.u32 2147483647, %v12214_v17 }
 0x2d2   : > { %v12180_v6 = vpop.eup %9274 }
 0x2d3   : > { %v3141_v52 = vadd.f32 1.0, %v12180_v6  ;;  %v3144_v30 = vmul.f32 -0.5, %v12180_v6  ;;  %v3147_v26 = vand.u32 2147483647, %v12180_v6 }
 0x2d4   : > { %v12183_v8 = vpop.eup %9276 }
 0x2d5   : > { %v3159_v19 = vadd.f32 1.0, %v12183_v8  ;;  %9284 = vlog2.f32 %v3141_v52  ;;  %v3162_v38 = vmul.f32 -0.5, %v12183_v8  ;;  %v3145_v49 = vadd.f32 1.0, %v3144_v30 }
 0x2d6   : > { %9286 = vpow2.f32 %v3019_v21  ;;  %v12191_v61 = vpop.eup %9278  ;;  %v3165_v28 = vand.u32 2147483647, %v12183_v8  ;;  %vm12235_vm12 = vcmp.lt.f32.partialorder %v3147_v26, 0.0004427343 }
 0x2d7   : > { %9288 = vlog2.f32 %v3159_v19  ;;  %v3285_v20 = vadd.f32 1.0, %v12191_v61  ;;  %v3288_v47 = vmul.f32 -0.5, %v12191_v61  ;;  %v3163_v39 = vadd.f32 1.0, %v3162_v38 }
 0x2d8   : > { %v12194_v7 = vpop.eup %9280  ;;  %v3291_v21 = vand.u32 2147483647, %v12191_v61  ;;  %v3146_v52 = vmul.f32 %v12180_v6, %v3145_v49  ;;  %vm12250_vm13 = vcmp.lt.f32.partialorder %v3165_v28, 0.0004427343  ;;  %v2997_v28 = vsub.f32 0.0, %v2933_v25 }
 0x2d9   : > { %9290 = vlog2.f32 %v3285_v20  ;;  %v3303_v50 = vadd.f32 1.0, %v12194_v7  ;;  %v12209_v45 = vpop.eup %9282  ;;  %v3306_v40 = vmul.f32 -0.5, %v12194_v7  ;;  %v3289_v60 = vadd.f32 1.0, %v3288_v47 }
 0x2da   : > { %9292 = vpow2.f32 %v3047_v2  ;;  %v3150_v10 = vadd.f32 1.0, %v12209_v45  ;;  %v3309_v18 = vand.u32 2147483647, %v12194_v7  ;;  %v2982_v2 = vsub.f32 0.0, %v2918_v13 }
 0x2db   : > { %9294 = vlog2.f32 %v3303_v50  ;;  %v3307_v19 = vadd.f32 1.0, %v3306_v40  ;;  %vm3292_vm14 = vcmp.lt.f32.partialorder %v3291_v21, 0.0004427343  ;;  %v12256_v47 = vadd.f32 %v12162_v35, %v12202_v55 }
 0x2dc   : > { %9296 = vpow2.f32 %v3051_v5  ;;  %v3164_v5 = vmul.f32 %v12183_v8, %v3163_v39  ;;  %vm3310_vm15 = vcmp.lt.f32.partialorder %v3309_v18, 0.0004427343  ;;  %v3109_v25 = vmul.f32 1.442695, %v2997_v28 }
 0x2dd   : > { %9298 = vpow2.f32 %v3077_v42  ;;  %v3290_v42 = vmul.f32 %v12191_v61, %v3289_v60  ;;  %v2984_v60 = vsub.f32 0.0, %v2920_v37  ;;  %v3153_v44 = vmul.f32 -0.5, %v12209_v45 }
 0x2de   : > { %9300 = vpow2.f32 %v3081_v48  ;;  %v3308_v48 = vmul.f32 %v12194_v7, %v3307_v19  ;;  %v2935_v19 = vand.u32 2147483647, %v12256_v47  ;;  %v3079_v32 = vmul.f32 1.442695, %v2982_v2 }
 0x2df   : > { %v9285_v12 = vpop.eup %9284  ;;  %9302 = vlog2.f32 %v3150_v10 }
 0x2e0   : > { %v12219_v4 = vpop.eup %9286  ;;  %v3143_v33 = vmul.f32 0.6931472, %v9285_v12 }
 0x2e1   : > { %v9289_v41 = vpop.eup %9288  ;;  %v3168_v54 = vadd.f32 1.0, %v12219_v4  ;;  %v3171_v38 = vmul.f32 -0.5, %v12219_v4 }
 0x2e2   : > { %v3161_v29 = vmul.f32 0.6931472, %v9289_v41  ;;  %v3149_v6 = vsel %vm12235_vm12, %v3146_v52, %v3143_v33 }
 0x2e3   : > { %v9291_v57 = vpop.eup %9290  ;;  %9304 = vlog2.f32 %v3168_v54  ;;  %v12267_v41 = vadd.f32 %v3149_v6, %v2821_v36  ;;  %v3156_v6 = vand.u32 2147483647, %v12209_v45  ;;  %v3172_v39 = vadd.f32 1.0, %v3171_v38 }
 0x2e4   : > { %v12242_v20 = vpop.eup %9292  ;;  %v3287_v50 = vmul.f32 0.6931472, %v9291_v57  ;;  %v3167_v8 = vsel %vm12250_vm13, %v3164_v5, %v3161_v29  ;;  %v12366_v36 = vadd.f32 %v12174_v27, %v12202_v55  ;;  %v17545_v27 = vmax.f32 %v12147_v3, 0.0 }
 0x2e5   : > { %v9295_v16 = vpop.eup %9294  ;;  %17529 = vst [vmem:[#allocation39_spill] sm:$0xff] %v12267_v41  ;;  %v3294_v35 = vadd.f32 1.0, %v12242_v20  ;;  %v12281_v7 = vadd.f32 %v3167_v8, %v2823_v9  ;;  %v3174_v8 = vand.u32 2147483647, %v12219_v4  ;;  %vm12320_vm2 = vcmp.lt.f32.partialorder %v3156_v6, 0.0004427343 }
 0x2e6   : > { %v12260_v49 = vpop.eup %9296  ;;  %v3293_v61 = vsel %vm3292_vm14, %v3290_v42, %v3287_v50  ;;  %v3305_v40 = vmul.f32 0.6931472, %v9295_v16  ;;  %v2999_v50 = vsub.f32 0.0, %v2935_v19  ;;  %v3297_v19 = vmul.f32 -0.5, %v12242_v20 }
 0x2e7   : > { %v12265_v13 = vpop.eup %9298  ;;  %v12269_v26 = vadd.f32 %v3293_v61, %v2837_v43  ;;  %17531 = vst [vmem:[#allocation43_spill] sm:$0xff] %v12281_v7  ;;  %v3312_v52 = vadd.f32 1.0, %v12260_v49  ;;  %9306 = vlog2.f32 %v3294_v35  ;;  %v3315_v9 = vmul.f32 -0.5, %v12260_v49 }
 0x2e8   : > { %v12233_v51 = vpop.f32.mrb[40].mxu0  ;;  %v3311_v33 = vsel %vm3310_vm15, %v3308_v48, %v3305_v40  ;;  %v3429_v37 = vadd.f32 1.0, %v12265_v13  ;;  %v12299_v18 = vpop.eup %9300  ;;  %9308 = vpow2.f32 %v3109_v25  ;;  %v3083_v40 = vmul.f32 1.442695, %v2984_v60 }
 0x2e9   : > { %v12240_v0 = vpop.f32.mrb[41].mxu0  ;;  %17530 = vst [vmem:[#allocation40_spill] sm:$0xff] %v12269_v26  ;;  %v12285_v43 = vadd.f32 %v3311_v33, %v2839_v53  ;;  %v9303_v16 = vpop.eup %9302  ;;  %9310 = vlog2.f32 %v3312_v52  ;;  %v3113_v48 = vmul.f32 1.442695, %v2999_v50  ;;  %v12312_v35 = vadd.f32 %v12233_v51, %v12134_v15 }
 0x2ea   : > { %v12248_v30 = vpop.f32.mrb[40].mxu1  ;;  %9312 = vlog2.f32 %v3429_v37  ;;  %v3154_v25 = vadd.f32 1.0, %v3153_v44  ;;  %v3152_v50 = vmul.f32 0.6931472, %v9303_v16  ;;  %v3300_v44 = vand.u32 2147483647, %v12242_v20 }
 0x2eb   : > { %v12258_v12 = vpop.f32.mrb[41].mxu1  ;;  %17532 = vst [vmem:[#allocation46_spill] sm:$0xff] %v12285_v43  ;;  %9314 = vpow2.f32 %v3079_v32  ;;  %v2889_v51 = vand.u32 2147483647, %v12312_v35  ;;  %v3432_v2 = vmul.f32 -0.5, %v12265_v13  ;;  %v3447_v32 = vadd.f32 1.0, %v12299_v18 }
 0x2ec   : > { %v12272_v10 = vpop.f32.mrb[42].mxu0  ;;  %9316 = vpow2.f32 %v3113_v48  ;;  %vm12331_vm3 = vcmp.lt.f32.partialorder %v3174_v8, 0.0004427343  ;;  %v3155_v16 = vmul.f32 %v12209_v45, %v3154_v25  ;;  %v3298_v31 = vadd.f32 1.0, %v3297_v19 }
 0x2ed   : > { %v12277_v21 = vpop.f32.mrb[43].mxu0  ;;  %v9305_v28 = vpop.eup %9304  ;;  %9318 = vpow2.f32 %v3083_v40  ;;  %v3316_v62 = vadd.f32 1.0, %v3315_v9  ;;  %v3318_v56 = vand.u32 2147483647, %v12260_v49  ;;  %v3450_v8 = vmul.f32 -0.5, %v12299_v18 }
 0x2ee   : > { %v12275_v54 = vpop.f32.mrb[42].mxu1  ;;  %v3170_v38 = vmul.f32 0.6931472, %v9305_v28  ;;  %v2953_v43 = vsub.f32 0.0, %v2889_v51  ;;  %v3158_v41 = vsel %vm12320_vm2, %v3155_v16, %v3152_v50  ;;  %vm12350_vm4 = vcmp.lt.f32.partialorder %v3300_v44, 0.0004427343 }
 0x2ef   : > { %v12288_v29 = vpop.f32.mrb[43].mxu1  ;;  %v3433_v9 = vadd.f32 1.0, %v3432_v2  ;;  %9320 = vlog2.f32 %v3447_v32  ;;  %v12356_v28 = vadd.f32 %v12167_v22, %v12202_v55  ;;  %v3173_v51 = vmul.f32 %v12219_v4, %v3172_v39 }
 0x2f0   : > { %v12292_v57 = vpop.f32.mrb[44].mxu0  ;;  %v3435_v7 = vand.u32 2147483647, %v12265_v13  ;;  %v3021_v50 = vmul.f32 1.442695, %v2953_v43  ;;  %v3299_v32 = vmul.f32 %v12242_v20, %v3298_v31  ;;  %v12372_v22 = vmul.f32 %v12260_v49, %v3316_v62 }
 0x2f1   : > { %v12297_v53 = vpop.f32.mrb[45].mxu0  ;;  %v9307_v40 = vpop.eup %9306  ;;  %v12377_v4 = vadd.f32 %v12248_v30, %v12134_v15  ;;  %v12383_v43 = vadd.f32 %v3158_v41, %v17545_v27  ;;  %vm12387_vm5 = vcmp.lt.f32.partialorder %v3318_v56, 0.0004427343  ;;  %v3451_v62 = vadd.f32 1.0, %v3450_v8 }
 0x2f2   : > { %v12303_v42 = vpop.f32.mrb[44].mxu1  ;;  %v12360_v19 = vpop.eup %9308  ;;  %v3453_v20 = vand.u32 2147483647, %v12299_v18  ;;  %v2934_v3 = vand.u32 2147483647, %v12356_v28  ;;  %v12411_v8 = vadd.f32 %v12240_v0, %v12134_v15 }
 0x2f3   : > { %v12308_v61 = vpop.f32.mrb[45].mxu1  ;;  %v9311_v2 = vpop.eup %9310  ;;  %v3573_v16 = vadd.f32 1.0, %v12360_v19  ;;  %17546 = vst [vmem:[#allocation42_spill] sm:$0xff] %v12383_v43  ;;  %vm12404_vm6 = vcmp.lt.f32.partialorder %v3435_v7, 0.0004427343  ;;  %v12432_v43 = vmul.f32 %v12299_v18, %v3451_v62 }
 0x2f4   : > { %v12314_v33 = vpop.f32.mrb[46].mxu0  ;;  %v9313_v26 = vpop.eup %9312  ;;  %v12423_v7 = vmul.f32 0.6931472, %v9311_v2  ;;  %vm12439_vm8 = vcmp.lt.f32.partialorder %v3453_v20, 0.0004427343 }
 0x2f5   : > { %v12318_v52 = vpop.f32.mrb[47].mxu0  ;;  %v12394_v30 = vpop.eup %9314  ;;  %9322 = vlog2.f32 %v3573_v16  ;;  %v3431_v2 = vmul.f32 0.6931472, %v9313_v26 }
 0x2f6   : > { %v12326_v37 = vpop.f32.mrb[46].mxu1  ;;  %v12402_v56 = vpop.eup %9316  ;;  %9324 = vpow2.f32 %v3021_v50  ;;  %v2891_v50 = vand.u32 2147483647, %v12377_v4 }
 0x2f7   : > { %v12336_v48 = vpop.f32.mrb[47].mxu1  ;;  %v3591_v16 = vadd.f32 1.0, %v12402_v56  ;;  %v12429_v0 = vpop.eup %9318  ;;  %v3594_v45 = vmul.f32 -0.5, %v12402_v56 }
 0x2f8   : > { %v12338_v60 = vpop.f32.mrb[48].mxu0 }
 0x2f9   : > { %17537 = vst [vmem:[#allocation47_spill] sm:$0xff] %v12338_v60  ;;  %v12342_v14 = vpop.f32.mrb[49].mxu0  ;;  %9326 = vlog2.f32 %v3591_v16  ;;  %v9321_v20 = vpop.eup %9320  ;;  %v2871_v16 = vmax.f32 %v12256_v47, 0.0 }
 0x2fa   : > { %17538 = vst [vmem:[#allocation48_spill] sm:$0xff] %v12342_v14  ;;  %v12346_v5 = vpop.f32.mrb[48].mxu1  ;;  %v3456_v14 = vadd.f32 1.0, %v12429_v0 }
 0x2fb   : > { %17539 = vst [vmem:[#allocation57_spill] sm:$0xff] %v12346_v5  ;;  %v12358_v25 = vpop.f32.mrb[49].mxu1 }
 0x2fc   : > { %17542 = vst [vmem:[#allocation49_spill] sm:$0xff] %v12358_v25  ;;  %v12368_v44 = vpop.f32.mrb[50].mxu0  ;;  %v12397_v25 = vmul.f32 %v12265_v13, %v3433_v9  ;;  %v12415_v13 = vadd.f32 %v12272_v10, %v12144_v34  ;;  %v17554_v9 = vmax.f32 %v12156_v11, 0.0  ;;  %v3438_v10 = vadd.f32 1.0, %v12394_v30 }
 0x2fd   : > { %17543 = vst [vmem:[#allocation58_spill] sm:$0xff] %v12368_v44  ;;  %v12379_v39 = vpop.f32.mrb[51].mxu0  ;;  %v3176_v44 = vsel %vm12331_vm3, %v3173_v51, %v3170_v38  ;;  %v2936_v38 = vand.u32 2147483647, %v12366_v36 }
 0x2fe   : > { %17544 = vst [vmem:[#allocation50_spill] sm:$0xff] %v12379_v39  ;;  %v12392_v49 = vpop.f32.mrb[50].mxu1  ;;  %v3296_v39 = vmul.f32 0.6931472, %v9307_v40  ;;  %v12421_v51 = vadd.f32 %v3176_v44, %v17554_v9  ;;  %v2905_v11 = vand.u32 2147483647, %v12415_v13  ;;  %9328 = vlog2.f32 %v3438_v10 }
 0x2ff   : > { %17549 = vst [vmem:[#allocation41_spill] sm:$0xff] %v12392_v49  ;;  %v12400_v41 = vpop.f32.mrb[51].mxu1  ;;  %v2890_v49 = vand.u32 2147483647, %v12411_v8 }
 0x300   : > { %17550 = vst [vmem:[#allocation45_spill] sm:$0xff] %v12400_v41  ;;  %v12417_v40 = vpop.f32.mrb[52].mxu0  ;;  %17555 = vst [vmem:[#allocation51_spill] sm:$0xff] %v12421_v51  ;;  %v3576_v41 = vmul.f32 -0.5, %v12360_v19  ;;  %v2998_v51 = vsub.f32 0.0, %v2934_v3  ;;  %v3302_v62 = vsel %vm12350_vm4, %v3299_v32, %v3296_v39 }
 0x301   : > { %17553 = vst [vmem:[#allocation44_spill] sm:$0xff] %v12417_v40  ;;  %v12427_v27 = vpop.f32.mrb[53].mxu0  ;;  %v3000_v40 = vsub.f32 0.0, %v2936_v38  ;;  %v3579_v3 = vand.u32 2147483647, %v12360_v19  ;;  %v17564_v38 = vmax.f32 %v12165_v46, 0.0  ;;  %v3437_v46 = vsel %vm12404_vm6, %v12397_v25, %v3431_v2 }
 0x302   : > { %17556 = vst [vmem:[#allocation52_spill] sm:$0xff] %v12427_v27  ;;  %v12437_v44 = vpop.f32.mrb[52].mxu1  ;;  %v12445_v27 = vadd.f32 %v12258_v12, %v12134_v15  ;;  %v2955_v12 = vsub.f32 0.0, %v2891_v50  ;;  %v3111_v47 = vmul.f32 1.442695, %v2998_v51  ;;  %v2954_v60 = vsub.f32 0.0, %v2890_v49 }
 0x303   : > { %17557 = vst [vmem:[#allocation16_spill] sm:$0xff] %v12437_v44  ;;  %v12447_v18 = vpop.f32.mrb[53].mxu1  ;;  %v2969_v44 = vsub.f32 0.0, %v2905_v11  ;;  %v12464_v11 = vadd.f32 %v3302_v62, %v17564_v38  ;;  %v3115_v10 = vmul.f32 1.442695, %v3000_v40  ;;  %v3595_v62 = vadd.f32 1.0, %v3594_v45 }
 0x304   : > { %17560 = vst [vmem:[#allocation17_spill] sm:$0xff] %v12447_v18  ;;  %v12452_v26 = vpop.f32.mrb[54].mxu0  ;;  %v3577_v18 = vadd.f32 1.0, %v3576_v41  ;;  %v2892_v50 = vand.u32 2147483647, %v12445_v27  ;;  %v3441_v38 = vmul.f32 -0.5, %v12394_v30 }
 0x305   : > { %17561 = vst [vmem:[#allocation18_spill] sm:$0xff] %v12452_v26  ;;  %v12457_v5 = vpop.f32.mrb[55].mxu0  ;;  %v3053_v32 = vmul.f32 1.442695, %v2969_v44  ;;  %v3320_v26 = vsel %vm12387_vm5, %v12372_v22, %v12423_v7  ;;  %v3449_v41 = vmul.f32 0.6931472, %v9321_v20  ;;  %v12489_v20 = vadd.f32 %v12275_v54, %v12144_v34 }
 0x306   : > { %17562 = vst [vmem:[#allocation19_spill] sm:$0xff] %v12457_v5  ;;  %v12460_v39 = vpop.f32.mrb[54].mxu1  ;;  %vm12478_vm9 = vcmp.lt.f32.partialorder %v3579_v3, 0.0004427343  ;;  %v3025_v22 = vmul.f32 1.442695, %v2955_v12  ;;  %v3578_v49 = vmul.f32 %v12360_v19, %v3577_v18 }
 0x307   : > { %17563 = vst [vmem:[#allocation21_spill] sm:$0xff] %v12460_v39  ;;  %v12471_v5 = vpop.f32.mrb[55].mxu1  ;;  %9330 = vpow2.f32 %v3053_v32  ;;  %v9323_v39 = vpop.eup %9322  ;;  %v3597_v25 = vand.u32 2147483647, %v12402_v56  ;;  %v2956_v6 = vsub.f32 0.0, %v2892_v50  ;;  %v17567_v3 = vmax.f32 %v12177_v1, 0.0 }
 0x308   : > { %v12473_v44 = vpop.f32.mrb[56].mxu0  ;;  %9332 = vlog2.f32 %v3456_v14  ;;  %v12484_v7 = vpop.eup %9324  ;;  %v3575_v40 = vmul.f32 0.6931472, %v9323_v39  ;;  %v3455_v19 = vsel %vm12439_vm8, %v12432_v43, %v3449_v41  ;;  %v3023_v18 = vmul.f32 1.442695, %v2954_v60 }
 0x309   : > { %v12482_v51 = vpop.f32.mrb[57].mxu0  ;;  %9334 = vpow2.f32 %v3111_v47  ;;  %v3177_v14 = vadd.f32 1.0, %v12484_v7  ;;  %v12497_v12 = vadd.f32 %v3437_v46, %v17567_v3  ;;  %v9327_v39 = vpop.eup %9326  ;;  %v3459_v47 = vmul.f32 -0.5, %v12429_v0 }
 0x30a   : > { %v12493_v2 = vpop.f32.mrb[56].mxu1  ;;  %v3581_v54 = vsel %vm12478_vm9, %v3578_v49, %v3575_v40  ;;  %v17570_v1 = vmax.f32 %v12214_v17, 0.0  ;;  %9336 = vpow2.f32 %v3025_v22  ;;  %v3593_v9 = vmul.f32 0.6931472, %v9327_v39  ;;  %v9329_v40 = vpop.eup %9328 }
 0x30b   : > { %17568 = vst [vmem:[#allocation59_spill] sm:$0xff] %v12497_v12  ;;  %v12504_v45 = vpop.f32.mrb[57].mxu1  ;;  %v3596_v43 = vmul.f32 %v12402_v56, %v3595_v62  ;;  %9338 = vlog2.f32 %v3177_v14  ;;  %v2907_v60 = vand.u32 2147483647, %v12489_v20  ;;  %vm3598_vm10 = vcmp.lt.f32.partialorder %v3597_v25, 0.0004427343 }
 0x30c   : > { %v12506_v32 = vpop.f32.mrb[58].mxu0  ;;  %v12512_v50 = vadd.f32 %v3581_v54, %v17570_v1  ;;  %9340 = vpow2.f32 %v3115_v10  ;;  %v3027_v46 = vmul.f32 1.442695, %v2956_v6  ;;  %v17573_v17 = vmax.f32 %v12172_v63, 0.0 }
 0x30d   : > { %17569 = vst [vmem:[#allocation54_spill] sm:$0xff] %v12506_v32  ;;  %v3599_v22 = vsel %vm3598_vm10, %v3596_v43, %v3593_v9  ;;  %9342 = vpow2.f32 %v3023_v18  ;;  %v17574_v56 = vmax.f32 %v12189_v59, 0.0  ;;  %v3442_v14 = vadd.f32 1.0, %v3441_v38  ;;  %v12539_v18 = vpop.f32.mrb[59].mxu0 }
 0x30e   : > { %17571 = vst [vmem:[#allocation53_spill] sm:$0xff] %v12512_v50  ;;  %v12518_v31 = vpop.f32.mrb[58].mxu1  ;;  %v12522_v49 = vadd.f32 %v3320_v26, %v17573_v17  ;;  %v3444_v25 = vand.u32 2147483647, %v12394_v30  ;;  %v12530_v10 = vadd.f32 %v3599_v22, %v2871_v16  ;;  %v3460_v54 = vadd.f32 1.0, %v3459_v47  ;;  %17577 = vst [vmem:[#allocation23_spill] sm:$0xff] %v12539_v18 }
 0x30f   : > { %17572 = vst [vmem:[#allocation20_spill] sm:$0xff] %v12518_v31  ;;  %v12527_v62 = vadd.f32 %v3455_v19, %v17574_v56  ;;  %v3462_v63 = vand.u32 2147483647, %v12429_v0  ;;  %v2971_v39 = vsub.f32 0.0, %v2907_v60  ;;  %v3440_v9 = vmul.f32 0.6931472, %v9329_v40 }
 0x310   : > { %17576 = vst [vmem:[#allocation55_spill] sm:$0xff] %v12530_v10  ;;  %9344 = vpow2.f32 %v3027_v46  ;;  %v12546_v43 = vadd.f32 %v12277_v21, %v12144_v34  ;;  %v12548_v60 = vpop.f32.mrb[59].mxu1  ;;  %v3443_v46 = vmul.f32 %v12394_v30, %v3442_v14  ;;  %vm12553_vm11 = vcmp.lt.f32.partialorder %v3444_v25, 0.0004427343 }
 0x311   : > { %17575 = vst [vmem:[#allocation56_spill] sm:$0xff] %v12527_v62  ;;  %v12532_v6 = vpop.eup %9330  ;;  %17578 = vst [vmem:[#allocation22_spill] sm:$0xff] %v12548_v60  ;;  %v3180_v22 = vmul.f32 -0.5, %v12484_v7  ;;  %v3461_v56 = vmul.f32 %v12429_v0, %v3460_v54  ;;  %vm12559_vm12 = vcmp.lt.f32.partialorder %v3462_v63, 0.0004427343  ;;  %v2841_v25 = vmax.f32 %v12415_v13, 0.0 }
 0x312   : > { %v9333_v1 = vpop.eup %9332  ;;  %v3321_v19 = vadd.f32 1.0, %v12532_v6  ;;  %v3057_v41 = vmul.f32 1.442695, %v2971_v39  ;;  %v3446_v30 = vsel %vm12553_vm11, %v3443_v46, %v3440_v9  ;;  %v3324_v54 = vmul.f32 -0.5, %v12532_v6  ;;  %v12624_v10 = vpop.f32.mrb[60].mxu1 }
 0x313   : > { %v12550_v40 = vpop.eup %9334  ;;  %v3458_v14 = vmul.f32 0.6931472, %v9333_v1  ;;  %v3181_v3 = vadd.f32 1.0, %v3180_v22  ;;  %v2906_v9 = vand.u32 2147483647, %v12546_v43  ;;  %v12579_v13 = vadd.f32 %v12292_v57, %v12169_v58  ;;  %17590 = vst [vmem:[#allocation29_spill] sm:$0xff] %v12624_v10 }
 0x314   : > { %9346 = vlog2.f32 %v3321_v19  ;;  %v12564_v47 = vpop.eup %9336  ;;  %v3582_v0 = vadd.f32 1.0, %v12550_v40  ;;  %v3585_v39 = vmul.f32 -0.5, %v12550_v40  ;;  %v17583_v46 = vmax.f32 %v12200_v23, 0.0 }
 0x315   : > { %v9339_v19 = vpop.eup %9338  ;;  %9348 = vpow2.f32 %v3057_v41  ;;  %v3588_v41 = vand.u32 2147483647, %v12550_v40  ;;  %v3183_v63 = vand.u32 2147483647, %v12484_v7  ;;  %v12591_v26 = vadd.f32 %v12303_v42, %v12169_v58 }
 0x316   : > { %v12573_v21 = vpop.eup %9340  ;;  %v12585_v17 = vadd.f32 %v3446_v30, %v17583_v46  ;;  %v3464_v22 = vsel %vm12559_vm12, %v3461_v56, %v3458_v14  ;;  %v3179_v38 = vmul.f32 0.6931472, %v9339_v19  ;;  %v3195_v57 = vadd.f32 1.0, %v12564_v47 }
 0x317   : > { %v12581_v1 = vpop.eup %9342  ;;  %v12598_v16 = vadd.f32 %v12288_v29, %v12144_v34  ;;  %9350 = vlog2.f32 %v3582_v0  ;;  %v3600_v23 = vadd.f32 1.0, %v12573_v21  ;;  %v3325_v30 = vadd.f32 1.0, %v3324_v54 }
 0x318   : > { %17584 = vst [vmem:[#allocation25_spill] sm:$0xff] %v12585_v17  ;;  %v2921_v46 = vand.u32 2147483647, %v12579_v13  ;;  %v3182_v42 = vmul.f32 %v12484_v7, %v3181_v3  ;;  %v3186_v59 = vadd.f32 1.0, %v12581_v1  ;;  %v3327_v56 = vand.u32 2147483647, %v12532_v6 }
 0x319   : > { %v2970_v14 = vsub.f32 0.0, %v2906_v9  ;;  %v3586_v19 = vadd.f32 1.0, %v3585_v39  ;;  %vm12607_vm13 = vcmp.lt.f32.partialorder %v3183_v63, 0.0004427343  ;;  %v2923_v0 = vand.u32 2147483647, %v12591_v26 }
 0x31a   : > { %v12602_v62 = vpop.eup %9344  ;;  %v2985_v29 = vsub.f32 0.0, %v2921_v46  ;;  %v3603_v12 = vmul.f32 -0.5, %v12573_v21  ;;  %v3185_v50 = vsel %vm12607_vm13, %v3182_v42, %v3179_v38  ;;  %9352 = vlog2.f32 %v3195_v57  ;;  %v12616_v3 = vpop.f32.mrb[60].mxu0 }
 0x31b   : > { %v2908_v7 = vand.u32 2147483647, %v12598_v16  ;;  %17587 = vst [vmem:[#allocation24_spill] sm:$0xff] %v12616_v3  ;;  %9354 = vlog2.f32 %v3600_v23  ;;  %v3204_v63 = vadd.f32 1.0, %v12602_v62  ;;  %v3326_v9 = vmul.f32 %v12532_v6, %v3325_v30  ;;  %v12626_v38 = vpop.f32.mrb[61].mxu0 }
 0x31c   : > { %v17588_v46 = vmax.f32 %v12207_v24, 0.0  ;;  %9356 = vlog2.f32 %v3186_v59  ;;  %vm3328_vm14 = vcmp.lt.f32.partialorder %v3327_v56, 0.0004427343  ;;  %v3055_v60 = vmul.f32 1.442695, %v2970_v14  ;;  %17591 = vst [vmem:[#allocation27_spill] sm:$0xff] %v12626_v38 }
 0x31d   : > { %v17592_v23 = vmax.f32 %v12312_v35, 0.0  ;;  %v3085_v3 = vmul.f32 1.442695, %v2985_v29  ;;  %v2987_v6 = vsub.f32 0.0, %v2923_v0  ;;  %v12639_v59 = vadd.f32 %v12297_v53, %v12169_v58 }
 0x31e   : > { %v9347_v54 = vpop.eup %9346  ;;  %v12622_v17 = vadd.f32 %v3464_v22, %v17588_v46  ;;  %v2972_v22 = vsub.f32 0.0, %v2908_v7  ;;  %v3604_v56 = vadd.f32 1.0, %v3603_v12  ;;  %v3606_v14 = vand.u32 2147483647, %v12573_v21 }
 0x31f   : > { %v3323_v39 = vmul.f32 0.6931472, %v9347_v54  ;;  %v12628_v57 = vpop.eup %9348  ;;  %v12632_v42 = vadd.f32 %v3185_v50, %v17592_v23  ;;  %9358 = vlog2.f32 %v3204_v63  ;;  %v12644_v35 = vadd.f32 %v12314_v33, %v12202_v55  ;;  %v12646_v50 = vpop.f32.mrb[61].mxu1 }
 0x320   : > { %17589 = vst [vmem:[#allocation35_spill] sm:$0xff] %v12622_v17  ;;  %v3339_v24 = vadd.f32 1.0, %v12628_v57  ;;  %17595 = vst [vmem:[#allocation34_spill] sm:$0xff] %v12646_v50  ;;  %v3201_v29 = vand.u32 2147483647, %v12564_v47  ;;  %v12658_v33 = vadd.f32 %v12308_v61, %v12169_v58  ;;  %v12662_v63 = vadd.f32 %v12326_v37, %v12202_v55  ;;  %v12674_v37 = vpop.f32.mrb[62].mxu0 }
 0x321   : > { %17593 = vst [vmem:[#allocation26_spill] sm:$0xff] %v12632_v42  ;;  %v3329_v54 = vsel %vm3328_vm14, %v3326_v9, %v3323_v39  ;;  %v9351_v53 = vpop.eup %9350  ;;  %vm12652_vm15 = vcmp.lt.f32.partialorder %v3588_v41, 0.0004427343  ;;  %v3089_v7 = vmul.f32 1.442695, %v2987_v6  ;;  %v3189_v39 = vmul.f32 -0.5, %v12581_v1 }
 0x322   : > { %v12634_v30 = vadd.f32 %v3329_v54, %v2841_v25  ;;  %v3198_v25 = vmul.f32 -0.5, %v12564_v47  ;;  %9360 = vlog2.f32 %v3339_v24  ;;  %v3059_v9 = vmul.f32 1.442695, %v2972_v22  ;;  %17600 = vst [vmem:[#allocation33_spill] sm:$0xff] %v12674_v37 }
 0x323   : > { %9362 = vpow2.f32 %v3085_v3  ;;  %v2922_v46 = vand.u32 2147483647, %v12639_v59  ;;  %v3587_v41 = vmul.f32 %v12550_v40, %v3586_v19  ;;  %vm12667_vm2 = vcmp.lt.f32.partialorder %v3606_v14, 0.0004427343 }
 0x324   : > { %17594 = vst [vmem:[#allocation38_spill] sm:$0xff] %v12634_v30  ;;  %9364 = vpow2.f32 %v3055_v60  ;;  %v3342_v3 = vmul.f32 -0.5, %v12628_v57  ;;  %v2937_v61 = vand.u32 2147483647, %v12644_v35  ;;  %v2939_v54 = vand.u32 2147483647, %v12662_v63  ;;  %v9353_v6 = vpop.eup %9352 }
 0x325   : > { %v3605_v60 = vmul.f32 %v12573_v21, %v3604_v56  ;;  %v3199_v24 = vadd.f32 1.0, %v3198_v25  ;;  %vm12677_vm3 = vcmp.lt.f32.partialorder %v3201_v29, 0.0004427343  ;;  %v3207_v40 = vmul.f32 -0.5, %v12602_v62  ;;  %v9355_v19 = vpop.eup %9354  ;;  %v12684_v30 = vpop.f32.mrb[62].mxu1 }
 0x326   : > { %v3192_v14 = vand.u32 2147483647, %v12581_v1  ;;  %9366 = vpow2.f32 %v3089_v7  ;;  %v2924_v0 = vand.u32 2147483647, %v12658_v33  ;;  %v3001_v42 = vsub.f32 0.0, %v2937_v61  ;;  %v9357_v37 = vpop.eup %9356 }
 0x327   : > { %v3584_v50 = vmul.f32 0.6931472, %v9351_v53  ;;  %v3190_v38 = vadd.f32 1.0, %v3189_v39  ;;  %v3210_v21 = vand.u32 2147483647, %v12602_v62  ;;  %v2986_v56 = vsub.f32 0.0, %v2922_v46 }
 0x328   : > { %v3197_v25 = vmul.f32 0.6931472, %v9353_v6  ;;  %v3343_v29 = vadd.f32 1.0, %v3342_v3  ;;  %9368 = vpow2.f32 %v3059_v9  ;;  %v3003_v10 = vsub.f32 0.0, %v2939_v54  ;;  %v12697_v3 = vpop.f32.mrb[63].mxu0 }
 0x329   : > { %v3602_v17 = vmul.f32 0.6931472, %v9355_v19  ;;  %v3200_v18 = vmul.f32 %v12564_v47, %v3199_v24  ;;  %v3208_v31 = vadd.f32 1.0, %v3207_v40  ;;  %v3345_v7 = vand.u32 2147483647, %v12628_v57  ;;  %v9359_v32 = vpop.eup %9358  ;;  %17605 = vst [vmem:[#allocation28_spill] sm:$0xff] %v12697_v3 }
 0x32a   : > { %vm12689_vm4 = vcmp.lt.f32.partialorder %v3192_v14, 0.0004427343  ;;  %v2988_v53 = vsub.f32 0.0, %v2924_v0  ;;  %v3117_v39 = vmul.f32 1.442695, %v3001_v42  ;;  %v12695_v46 = vadd.f32 %v12318_v52, %v12202_v55  ;;  %v17651_v3 = vld [vmem:[#allocation45_spill] sm:$0xff] }
 0x32b   : > { %v3590_v47 = vsel %vm12652_vm15, %v3587_v41, %v3584_v50  ;;  %v3191_v54 = vmul.f32 %v12581_v1, %v3190_v38  ;;  %vm12702_vm5 = vcmp.lt.f32.partialorder %v3210_v21, 0.0004427343  ;;  %v3087_v24 = vmul.f32 1.442695, %v2986_v56 }
 0x32c   : > { %v9361_v9 = vpop.eup %9360  ;;  %v3203_v42 = vsel %vm12677_vm3, %v3200_v18, %v3197_v25  ;;  %v3344_v0 = vmul.f32 %v12628_v57, %v3343_v29  ;;  %v3121_v19 = vmul.f32 1.442695, %v3003_v10  ;;  %v3608_v50 = vsel %vm12667_vm2, %v3605_v60, %v3602_v17 }
 0x32d   : > { %v12706_v40 = vpop.eup %9362  ;;  %v3341_v52 = vmul.f32 0.6931472, %v9361_v9  ;;  %v3188_v1 = vmul.f32 0.6931472, %v9357_v37  ;;  %v3209_v38 = vmul.f32 %v12602_v62, %v3208_v31  ;;  %vm3346_vm6 = vcmp.lt.f32.partialorder %v3345_v7, 0.0004427343 }
 0x32e   : > { %v12711_v14 = vpop.eup %9364  ;;  %v3091_v41 = vmul.f32 1.442695, %v2988_v53  ;;  %9370 = vpow2.f32 %v3117_v39  ;;  %v2938_v21 = vand.u32 2147483647, %v12695_v46  ;;  %v17608_v18 = vmax.f32 %v12377_v4, 0.0  ;;  %v17615_v53 = vld [vmem:[#allocation47_spill] sm:$0xff] }
 0x32f   : > { %v3347_v12 = vsel %vm3346_vm6, %v3344_v0, %v3341_v52  ;;  %v17610_v10 = vmax.f32 %v12489_v20, 0.0  ;;  %v3465_v23 = vadd.f32 1.0, %v12706_v40  ;;  %9372 = vpow2.f32 %v3087_v24 }
 0x330   : > { %v12719_v22 = vadd.f32 %v3203_v42, %v17608_v18  ;;  %v12726_v17 = vpop.eup %9366  ;;  %v17612_v31 = vmax.f32 %v12356_v28, 0.0  ;;  %v3206_v37 = vmul.f32 0.6931472, %v9359_v32  ;;  %v3330_v60 = vadd.f32 1.0, %v12711_v14  ;;  %v12745_v28 = vpop.f32.mrb[63].mxu1 }
 0x331   : > { %v12723_v57 = vadd.f32 %v3347_v12, %v17610_v10  ;;  %9374 = vpow2.f32 %v3121_v19  ;;  %v17613_v4 = vmax.f32 %v12366_v36, 0.0  ;;  %v3194_v20 = vsel %vm12689_vm4, %v3191_v54, %v3188_v1  ;;  %17614 = vst [vmem:[#allocation36_spill] sm:$0xff] %v12745_v28 }
 0x332   : > { %17609 = vst [vmem:[#allocation37_spill] sm:$0xff] %v12719_v22  ;;  %v12730_v62 = vadd.f32 %v3590_v47, %v17612_v31  ;;  %v12743_v29 = vadd.f32 %v12336_v48, %v12202_v55  ;;  %v12747_v32 = vpop.eup %9368  ;;  %v3333_v7 = vmul.f32 -0.5, %v12711_v14  ;;  %9376 = vpow2.f32 %v3091_v41 }
 0x333   : > { %17611 = vst [vmem:[#allocation32_spill] sm:$0xff] %v12723_v57  ;;  %v12735_v56 = vadd.f32 %v3608_v50, %v17613_v4  ;;  %v3002_v36 = vsub.f32 0.0, %v2938_v21  ;;  %v12752_v39 = vadd.f32 %v17615_v53, %v12134_v15  ;;  %9378 = vlog2.f32 %v3465_v23  ;;  %v17618_v50 = vld [vmem:[#allocation57_spill] sm:$0xff]  ;;  %v17625_v4 = vld [vmem:[#allocation48_spill] sm:$0xff] }
 0x334   : > { %v3483_v48 = vadd.f32 1.0, %v12726_v17  ;;  %v17616_v47 = vmax.f32 %v12411_v8, 0.0  ;;  %v3212_v24 = vsel %vm12702_vm5, %v3209_v38, %v3206_v37  ;;  %9380 = vlog2.f32 %v3330_v60  ;;  %v17630_v57 = vld [vmem:[#allocation41_spill] sm:$0xff] }
 0x335   : > { %v3351_v52 = vmul.f32 -0.5, %v12747_v32  ;;  %v2940_v19 = vand.u32 2147483647, %v12743_v29  ;;  %v12769_v1 = vadd.f32 %v17618_v50, %v12134_v15  ;;  %v3334_v12 = vadd.f32 1.0, %v3333_v7 }
 0x336   : > { %v12759_v54 = vadd.f32 %v3194_v20, %v17616_v47  ;;  %v3119_v41 = vmul.f32 1.442695, %v3002_v36  ;;  %v2893_v6 = vand.u32 2147483647, %v12752_v39  ;;  %v17619_v38 = vmax.f32 %v12445_v27, 0.0 }
 0x337   : > { %v3468_v18 = vmul.f32 -0.5, %v12706_v40  ;;  %9382 = vlog2.f32 %v3483_v48  ;;  %v3336_v31 = vand.u32 2147483647, %v12711_v14  ;;  %v3348_v37 = vadd.f32 1.0, %v12747_v32 }
 0x338   : > { %17617 = vst [vmem:[#allocation30_spill] sm:$0xff] %v12759_v54  ;;  %v12775_v21 = vadd.f32 %v3212_v24, %v17619_v38  ;;  %v12779_v23 = vpop.eup %9370  ;;  %v3471_v60 = vand.u32 2147483647, %v12706_v40  ;;  %v3352_v27 = vadd.f32 1.0, %v3351_v52  ;;  %v3004_v36 = vsub.f32 0.0, %v2940_v19 }
 0x339   : > { %v12785_v20 = vpop.eup %9372  ;;  %v3609_v7 = vadd.f32 1.0, %v12779_v23  ;;  %v2895_v53 = vand.u32 2147483647, %v12769_v1  ;;  %v12792_v47 = vmul.f32 %v12711_v14, %v3334_v12  ;;  %9384 = vpow2.f32 %v3119_v41 }
 0x33a   : > { %17620 = vst [vmem:[#allocation31_spill] sm:$0xff] %v12775_v21  ;;  %v2957_v50 = vsub.f32 0.0, %v2893_v6  ;;  %v3469_v25 = vadd.f32 1.0, %v3468_v18  ;;  %v3486_v8 = vmul.f32 -0.5, %v12726_v17  ;;  %vm12799_vm8 = vcmp.lt.f32.partialorder %v3336_v31, 0.0004427343 }
 0x33b   : > { %v12789_v48 = vpop.eup %9374  ;;  %9386 = vlog2.f32 %v3609_v7  ;;  %v3489_v14 = vand.u32 2147483647, %v12726_v17  ;;  %v3474_v12 = vadd.f32 1.0, %v12785_v20  ;;  %v12807_v24 = vmul.f32 %v12747_v32, %v3352_v27 }
 0x33c   : > { %v12797_v52 = vpop.eup %9376  ;;  %9388 = vlog2.f32 %v3348_v37  ;;  %v3627_v41 = vadd.f32 1.0, %v12789_v48  ;;  %vm12809_vm9 = vcmp.lt.f32.partialorder %v3471_v60, 0.0004427343  ;;  %v3123_v7 = vmul.f32 1.442695, %v3004_v36 }
 0x33d   : > { %v9379_v6 = vpop.eup %9378  ;;  %v2959_v31 = vsub.f32 0.0, %v2895_v53  ;;  %v3612_v61 = vmul.f32 -0.5, %v12779_v23  ;;  %v3029_v37 = vmul.f32 1.442695, %v2957_v50  ;;  %v12816_v42 = vadd.f32 %v17625_v4, %v12134_v15 }
 0x33e   : > { %v9381_v0 = vpop.eup %9380  ;;  %9390 = vlog2.f32 %v3627_v41  ;;  %v3470_v10 = vmul.f32 %v12706_v40, %v3469_v25  ;;  %v3487_v38 = vadd.f32 1.0, %v3486_v8  ;;  %v3492_v27 = vadd.f32 1.0, %v12797_v52 }
 0x33f   : > { %v3467_v9 = vmul.f32 0.6931472, %v9379_v6  ;;  %vm12821_vm10 = vcmp.lt.f32.partialorder %v3489_v14, 0.0004427343  ;;  %9392 = vlog2.f32 %v3474_v12  ;;  %v3477_v53 = vmul.f32 -0.5, %v12785_v20  ;;  %v17628_v12 = vld [vmem:[#allocation49_spill] sm:$0xff] }
 0x340   : > { %v3332_v41 = vmul.f32 0.6931472, %v9381_v0  ;;  %v3630_v4 = vmul.f32 -0.5, %v12789_v48  ;;  %9394 = vpow2.f32 %v3123_v7  ;;  %v3033_v22 = vmul.f32 1.442695, %v2959_v31 }
 0x341   : > { %v9383_v50 = vpop.eup %9382  ;;  %v3480_v40 = vand.u32 2147483647, %v12785_v20  ;;  %v3613_v25 = vadd.f32 1.0, %v3612_v61  ;;  %9396 = vpow2.f32 %v3029_v37  ;;  %v2894_v8 = vand.u32 2147483647, %v12816_v42  ;;  %v17629_v61 = vld [vmem:[#allocation58_spill] sm:$0xff] }
 0x342   : > { %v3488_v14 = vmul.f32 %v12726_v17, %v3487_v38  ;;  %9398 = vlog2.f32 %v3492_v27  ;;  %v3615_v6 = vand.u32 2147483647, %v12779_v23  ;;  %v12833_v60 = vadd.f32 %v17628_v12, %v12134_v15 }
 0x343   : > { %v12835_v0 = vpop.eup %9384  ;;  %v3473_v7 = vsel %vm12809_vm9, %v3470_v10, %v3467_v9  ;;  %v3485_v31 = vmul.f32 0.6931472, %v9383_v50  ;;  %v12841_v37 = vadd.f32 %v17629_v61, %v12144_v34  ;;  %v12845_v17 = vadd.f32 %v17630_v57, %v12144_v34 }
 0x344   : > { %v3338_v27 = vsel %vm12799_vm8, %v12792_v47, %v3332_v41  ;;  %v3631_v12 = vadd.f32 1.0, %v3630_v4  ;;  %v3633_v21 = vand.u32 2147483647, %v12789_v48  ;;  %9400 = vpow2.f32 %v3033_v22 }
 0x345   : > { %v9387_v38 = vpop.eup %9386  ;;  %v3614_v10 = vmul.f32 %v12779_v23, %v3613_v25  ;;  %v2958_v50 = vsub.f32 0.0, %v2894_v8  ;;  %v2909_v61 = vand.u32 2147483647, %v12841_v37  ;;  %v17631_v54 = vmax.f32 %v12579_v13, 0.0 }
 0x346   : > { %v9389_v18 = vpop.eup %9388  ;;  %v3611_v9 = vmul.f32 0.6931472, %v9387_v38  ;;  %v3495_v28 = vmul.f32 -0.5, %v12797_v52  ;;  %vm3616_vm11 = vcmp.lt.f32.partialorder %v3615_v6, 0.0004427343  ;;  %v3491_v22 = vsel %vm12821_vm10, %v3488_v14, %v3485_v31 }
 0x347   : > { %v12855_v57 = vadd.f32 %v3473_v7, %v17631_v54  ;;  %v2911_v47 = vand.u32 2147483647, %v12845_v17  ;;  %v3618_v4 = vadd.f32 1.0, %v12835_v0  ;;  %v2896_v23 = vand.u32 2147483647, %v12833_v60 }
 0x348   : > { %v9391_v19 = vpop.eup %9390  ;;  %v3617_v41 = vsel %vm3616_vm11, %v3614_v10, %v3611_v9  ;;  %v17633_v25 = vand.u32 2147483647, %v12747_v32  ;;  %v17636_v54 = vmax.f32 %v12644_v35, 0.0  ;;  %v3632_v7 = vmul.f32 %v12789_v48, %v3631_v12 }
 0x349   : > { %17632 = vst [vmem:[#allocation47_spill] sm:$0xff] %v12855_v57  ;;  %v3629_v6 = vmul.f32 0.6931472, %v9391_v19  ;;  %v2973_v36 = vsub.f32 0.0, %v2909_v61  ;;  %v9393_v14 = vpop.eup %9392  ;;  %v3478_v31 = vadd.f32 1.0, %v3477_v53  ;;  %v2975_v9 = vsub.f32 0.0, %v2911_v47 }
 0x34a   : > { %vm12865_vm12 = vcmp.lt.f32.partialorder %v17633_v25, 0.0004427343  ;;  %v12871_v8 = vadd.f32 %v3617_v41, %v17636_v54  ;;  %vm3634_vm13 = vcmp.lt.f32.partialorder %v3633_v21, 0.0004427343  ;;  %v3031_v38 = vmul.f32 1.442695, %v2958_v50  ;;  %v12874_v10 = vpop.eup %9394 }
 0x34b   : > { %v17638_v32 = vmax.f32 %v12546_v43, 0.0  ;;  %vm12880_vm14 = vcmp.lt.f32.partialorder %v3480_v40, 0.0004427343  ;;  %v3498_v35 = vand.u32 2147483647, %v12797_v52  ;;  %v3635_v12 = vsel %vm3634_vm13, %v3632_v7, %v3629_v6  ;;  %v12887_v53 = vpop.eup %9396 }
 0x34c   : > { %17637 = vst [vmem:[#allocation57_spill] sm:$0xff] %v12871_v8  ;;  %v17641_v21 = vmax.f32 %v12591_v26, 0.0  ;;  %v3496_v61 = vadd.f32 1.0, %v3495_v28  ;;  %v17643_v43 = vmax.f32 %v12662_v63, 0.0  ;;  %v2960_v40 = vsub.f32 0.0, %v2896_v23  ;;  %v9399_v47 = vpop.eup %9398  ;;  %v17645_v26 = vld [vmem:[#allocation50_spill] sm:$0xff] }
 0x34d   : > { %v12878_v25 = vadd.f32 %v3338_v27, %v17638_v32  ;;  %v3350_v19 = vmul.f32 0.6931472, %v9389_v18  ;;  %9402 = vlog2.f32 %v3618_v4  ;;  %v3061_v41 = vmul.f32 1.442695, %v2973_v36 }
 0x34e   : > { %v12891_v50 = vadd.f32 %v3491_v22, %v17641_v21  ;;  %v12895_v27 = vadd.f32 %v3635_v12, %v17643_v43  ;;  %v3065_v54 = vmul.f32 1.442695, %v2975_v9  ;;  %v3636_v7 = vadd.f32 1.0, %v12874_v10  ;;  %v12904_v28 = vpop.eup %9400 }
 0x34f   : > { %9404 = vpow2.f32 %v3031_v38  ;;  %v12902_v22 = vadd.f32 %v17645_v26, %v12144_v34  ;;  %v3476_v63 = vmul.f32 0.6931472, %v9393_v14  ;;  %v3479_v23 = vmul.f32 %v12785_v20, %v3478_v31  ;;  %v17648_v14 = vld [vmem:[#allocation44_spill] sm:$0xff] }
 0x350   : > { %17642 = vst [vmem:[#allocation48_spill] sm:$0xff] %v12891_v50  ;;  %17644 = vst [vmem:[#allocation49_spill] sm:$0xff] %v12895_v27  ;;  %v3213_v18 = vadd.f32 1.0, %v12887_v53  ;;  %9406 = vpow2.f32 %v3061_v41  ;;  %v3494_v4 = vmul.f32 0.6931472, %v9399_v47  ;;  %v3621_v36 = vmul.f32 -0.5, %v12835_v0 }
 0x351   : > { %v3035_v9 = vmul.f32 1.442695, %v2960_v40  ;;  %9408 = vpow2.f32 %v3065_v54  ;;  %v3497_v32 = vmul.f32 %v12797_v52, %v3496_v61  ;;  %vm12910_vm15 = vcmp.lt.f32.partialorder %v3498_v35, 0.0004427343  ;;  %v17663_v61 = vld [vmem:[#allocation52_spill] sm:$0xff] }
 0x352   : > { %v3639_v12 = vmul.f32 -0.5, %v12874_v10  ;;  %v12917_v21 = vadd.f32 %v17648_v14, %v12169_v58  ;;  %v3356_v20 = vsel %vm12865_vm12, %v12807_v24, %v3350_v19  ;;  %9410 = vlog2.f32 %v3636_v7 }
 0x353   : > { %v3231_v31 = vadd.f32 1.0, %v12904_v28  ;;  %v2910_v43 = vand.u32 2147483647, %v12902_v22  ;;  %v3624_v52 = vand.u32 2147483647, %v12835_v0  ;;  %9412 = vlog2.f32 %v3213_v18 }
 0x354   : > { %v3482_v40 = vsel %vm12880_vm14, %v3479_v23, %v3476_v63  ;;  %v3500_v47 = vsel %vm12910_vm15, %v3497_v32, %v3494_v4  ;;  %v3622_v13 = vadd.f32 1.0, %v3621_v36  ;;  %9414 = vpow2.f32 %v3035_v9 }
 0x355   : > { %v17649_v24 = vmax.f32 %v12598_v16, 0.0  ;;  %v3640_v41 = vadd.f32 1.0, %v3639_v12  ;;  %v3216_v54 = vmul.f32 -0.5, %v12887_v53  ;;  %v2925_v7 = vand.u32 2147483647, %v12917_v21 }
 0x356   : > { %9416 = vlog2.f32 %v3231_v31  ;;  %v2974_v18 = vsub.f32 0.0, %v2910_v43  ;;  %v12940_v63 = vadd.f32 %v17651_v3, %v12144_v34  ;;  %v17652_v4 = vmax.f32 %v12639_v59, 0.0  ;;  %v17658_v31 = vld [vmem:[#allocation16_spill] sm:$0xff] }
 0x357   : > { %v12933_v19 = vadd.f32 %v3356_v20, %v17649_v24  ;;  %v9403_v23 = vpop.eup %9402  ;;  %v17654_v16 = vmax.f32 %v12658_v33, 0.0  ;;  %vm12950_vm2 = vcmp.lt.f32.partialorder %v3624_v52, 0.0004427343  ;;  %v12958_v14 = vmul.f32 %v12835_v0, %v3622_v13 }
 0x358   : > { %v12944_v36 = vadd.f32 %v3482_v40, %v17652_v4  ;;  %v3642_v20 = vand.u32 2147483647, %v12874_v10  ;;  %v2989_v59 = vsub.f32 0.0, %v2925_v7  ;;  %v12963_v43 = vadd.f32 %v17658_v31, %v12169_v58 }
 0x359   : > { %17650 = vst [vmem:[#allocation58_spill] sm:$0xff] %v12933_v19  ;;  %v12948_v9 = vadd.f32 %v3500_v47, %v17654_v16  ;;  %v12955_v12 = vpop.eup %9404  ;;  %v12968_v52 = vmul.f32 %v12874_v10, %v3640_v41  ;;  %v3217_v40 = vadd.f32 1.0, %v3216_v54  ;;  %v3219_v47 = vand.u32 2147483647, %v12887_v53 }
 0x35a   : > { %17653 = vst [vmem:[#allocation41_spill] sm:$0xff] %v12944_v36  ;;  %v12965_v33 = vpop.eup %9406  ;;  %v3234_v0 = vmul.f32 -0.5, %v12904_v28  ;;  %v3063_v7 = vmul.f32 1.442695, %v2974_v18  ;;  %v2912_v4 = vand.u32 2147483647, %v12940_v63 }
 0x35b   : > { %17655 = vst [vmem:[#allocation50_spill] sm:$0xff] %v12948_v9  ;;  %v12972_v3 = vpop.eup %9408  ;;  %v3357_v13 = vadd.f32 1.0, %v12965_v33  ;;  %v12977_v16 = vmul.f32 0.6931472, %v9403_v23  ;;  %v3237_v31 = vand.u32 2147483647, %v12904_v28 }
 0x35c   : > { %v3375_v41 = vadd.f32 1.0, %v12972_v3  ;;  %v9411_v54 = vpop.eup %9410  ;;  %v3093_v48 = vmul.f32 1.442695, %v2989_v59  ;;  %v2927_v38 = vand.u32 2147483647, %v12963_v43  ;;  %v3222_v10 = vadd.f32 1.0, %v12955_v12 }
 0x35d   : > { %9418 = vlog2.f32 %v3357_v13  ;;  %v9413_v26 = vpop.eup %9412  ;;  %vm12984_vm3 = vcmp.lt.f32.partialorder %v3642_v20, 0.0004427343  ;;  %vm12988_vm4 = vcmp.lt.f32.partialorder %v3219_v47, 0.0004427343  ;;  %v12995_v13 = vadd.f32 %v17663_v61, %v12169_v58  ;;  %v17666_v61 = vld [vmem:[#allocation18_spill] sm:$0xff]  ;;  %v17668_v23 = vld [vmem:[#allocation21_spill] sm:$0xff] }
 0x35e   : > { %9420 = vlog2.f32 %v3375_v41  ;;  %v12997_v6 = vpop.eup %9414  ;;  %v3218_v59 = vmul.f32 %v12887_v53, %v3217_v40  ;;  %v3235_v24 = vadd.f32 1.0, %v3234_v0  ;;  %v2976_v20 = vsub.f32 0.0, %v2912_v4 }
 0x35f   : > { %9422 = vpow2.f32 %v3063_v7  ;;  %v3626_v47 = vsel %vm12950_vm2, %v12958_v14, %v12977_v16  ;;  %vm13004_vm5 = vcmp.lt.f32.partialorder %v3237_v31, 0.0004427343  ;;  %v3360_v41 = vmul.f32 -0.5, %v12965_v33 }
 0x360   : > { %v13011_v50 = vadd.f32 %v17666_v61, %v12202_v55  ;;  %v9417_v27 = vpop.eup %9416  ;;  %v3215_v53 = vmul.f32 0.6931472, %v9413_v26  ;;  %v3378_v40 = vmul.f32 -0.5, %v12972_v3  ;;  %9424 = vpow2.f32 %v3093_v48  ;;  %v17667_v61 = vld [vmem:[#allocation17_spill] sm:$0xff] }
 0x361   : > { %v2991_v0 = vsub.f32 0.0, %v2927_v38  ;;  %v3638_v7 = vmul.f32 0.6931472, %v9411_v54  ;;  %9426 = vlog2.f32 %v3222_v10  ;;  %v3240_v32 = vadd.f32 1.0, %v12997_v6 }
 0x362   : > { %v2926_v14 = vand.u32 2147483647, %v12995_v13  ;;  %v3236_v4 = vmul.f32 %v12904_v28, %v3235_v24  ;;  %v3228_v16 = vand.u32 2147483647, %v12955_v12  ;;  %v3067_v31 = vmul.f32 1.442695, %v2976_v20 }
 0x363   : > { %v13020_v57 = vadd.f32 %v17667_v61, %v12169_v58  ;;  %v3233_v26 = vmul.f32 0.6931472, %v9417_v27  ;;  %v3225_v8 = vmul.f32 -0.5, %v12955_v12  ;;  %v3361_v48 = vadd.f32 1.0, %v3360_v41 }
 0x364   : > { %v2941_v38 = vand.u32 2147483647, %v13011_v50  ;;  %v3221_v10 = vsel %vm12988_vm4, %v3218_v59, %v3215_v53  ;;  %v3363_v54 = vand.u32 2147483647, %v12965_v33  ;;  %v3379_v9 = vadd.f32 1.0, %v3378_v40 }
 0x365   : > { %v3097_v28 = vmul.f32 1.442695, %v2991_v0  ;;  %9428 = vlog2.f32 %v3240_v32  ;;  %v3381_v24 = vand.u32 2147483647, %v12972_v3  ;;  %v2990_v20 = vsub.f32 0.0, %v2926_v14 }
 0x366   : > { %v3005_v36 = vsub.f32 0.0, %v2941_v38  ;;  %v3644_v27 = vsel %vm12984_vm3, %v12968_v52, %v3638_v7  ;;  %9430 = vpow2.f32 %v3067_v31  ;;  %v2928_v41 = vand.u32 2147483647, %v13020_v57 }
 0x367   : > { %v9419_v61 = vpop.eup %9418  ;;  %v13034_v59 = vadd.f32 %v17668_v23, %v12202_v55  ;;  %v17669_v40 = vmax.f32 %v12752_v39, 0.0  ;;  %v3239_v32 = vsel %vm13004_vm5, %v3236_v4, %v3233_v26  ;;  %v3362_v38 = vmul.f32 %v12965_v33, %v3361_v48 }
 0x368   : > { %v9421_v53 = vpop.eup %9420  ;;  %v3359_v14 = vmul.f32 0.6931472, %v9419_v61  ;;  %vm3364_vm6 = vcmp.lt.f32.partialorder %v3363_v54, 0.0004427343  ;;  %v3380_v7 = vmul.f32 %v12972_v3, %v3379_v9  ;;  %9432 = vpow2.f32 %v3097_v28  ;;  %v17673_v28 = vld [vmem:[#allocation19_spill] sm:$0xff] }
 0x369   : > { %v13038_v0 = vadd.f32 %v3221_v10, %v17669_v40  ;;  %v13043_v18 = vpop.eup %9422  ;;  %v3377_v52 = vmul.f32 0.6931472, %v9421_v53  ;;  %vm3382_vm8 = vcmp.lt.f32.partialorder %v3381_v24, 0.0004427343  ;;  %v3095_v23 = vmul.f32 1.442695, %v2990_v20 }
 0x36a   : > { %v3365_v31 = vsel %vm3364_vm6, %v3362_v38, %v3359_v14  ;;  %v3125_v19 = vmul.f32 1.442695, %v3005_v36  ;;  %v13046_v39 = vpop.eup %9424  ;;  %v17670_v10 = vmax.f32 %v12841_v37, 0.0  ;;  %v2992_v26 = vsub.f32 0.0, %v2928_v41 }
 0x36b   : > { %v3383_v4 = vsel %vm3382_vm8, %v3380_v7, %v3377_v52  ;;  %v2943_v33 = vand.u32 2147483647, %v13034_v59  ;;  %v9427_v48 = vpop.eup %9426  ;;  %v17671_v54 = vmax.f32 %v12769_v1, 0.0  ;;  %v17672_v9 = vmax.f32 %v12845_v17, 0.0 }
 0x36c   : > { %v13050_v35 = vadd.f32 %v3365_v31, %v17670_v10  ;;  %v3366_v36 = vadd.f32 1.0, %v13043_v18  ;;  %v13064_v37 = vadd.f32 %v17673_v28, %v12202_v55  ;;  %v17674_v24 = vmax.f32 %v12695_v46, 0.0 }
 0x36d   : > { %v13055_v61 = vadd.f32 %v3239_v32, %v17671_v54  ;;  %v13059_v3 = vadd.f32 %v3383_v4, %v17672_v9  ;;  %v3226_v41 = vadd.f32 1.0, %v3225_v8  ;;  %v3243_v53 = vmul.f32 -0.5, %v12997_v6 }
 0x36e   : > { %v13068_v20 = vadd.f32 %v3626_v47, %v17674_v24  ;;  %v17675_v17 = vmax.f32 %v12743_v29, 0.0  ;;  %v3501_v14 = vadd.f32 1.0, %v13046_v39  ;;  %9434 = vpow2.f32 %v3125_v19  ;;  %v17679_v24 = vld [vmem:[#allocation51_spill] sm:$0xff] }
 0x36f   : > { %v3224_v38 = vmul.f32 0.6931472, %v9427_v48  ;;  %9436 = vpow2.f32 %v3095_v23  ;;  %v3099_v46 = vmul.f32 1.442695, %v2992_v26  ;;  %v3007_v47 = vsub.f32 0.0, %v2943_v33  ;;  %v9429_v8 = vpop.eup %9428  ;;  %v17678_v26 = vld [vmem:[#allocation42_spill] sm:$0xff] }
 0x370   : > { %v13075_v40 = vadd.f32 %v3644_v27, %v17675_v17  ;;  %vm13080_vm9 = vcmp.lt.f32.partialorder %v3228_v16, 0.0004427343  ;;  %9438 = vlog2.f32 %v3366_v36  ;;  %v2942_v27 = vand.u32 2147483647, %v13064_v37  ;;  %v13086_v7 = vpop.eup %9430 }
 0x371   : > { %v3227_v31 = vmul.f32 %v12955_v12, %v3226_v41  ;;  %v3244_v10 = vadd.f32 1.0, %v3243_v53  ;;  %v3246_v19 = vand.u32 2147483647, %v12997_v6  ;;  %v2861_v23 = vmax.f32 %v12917_v21, 0.0  ;;  %v17700_v21 = vld [vmem:[#allocation20_spill] sm:$0xff] }
 0x372   : > { %9440 = vlog2.f32 %v3501_v14  ;;  %v3129_v4 = vmul.f32 1.442695, %v3007_v47  ;;  %v13093_v16 = vadd.f32 %v12471_v5, %v12202_v55  ;;  %v8752_v33 = vpack.c.bf16 %v12464_v11, %v17678_v26  ;;  %v13097_v48 = vpop.eup %9432  ;;  %v17682_v14 = vld [vmem:[#allocation40_spill] sm:$0xff] }
 0x373   : > { %v3230_v54 = vsel %vm13080_vm9, %v3227_v31, %v3224_v38  ;;  %v3242_v12 = vmul.f32 0.6931472, %v9429_v8  ;;  %v3369_v9 = vmul.f32 -0.5, %v13043_v18  ;;  %9442 = vpow2.f32 %v3099_v46  ;;  %v17683_v38 = vld [vmem:[#allocation39_spill] sm:$0xff] }
 0x374   : > { %v3384_v36 = vadd.f32 1.0, %v13086_v7  ;;  %9444 = vpow2.f32 %v3129_v4  ;;  %v3006_v28 = vsub.f32 0.0, %v2942_v27  ;;  %8753 = vmatprep.subr.bf16.mxu0 %v8752_v33  ;;  %v8760_v5 = vpack.c.bf16 %v12522_v49, %v17679_v24  ;;  %v17687_v4 = vld [vmem:[#allocation43_spill] sm:$0xff] }
 0x375   : > { %v3245_v41 = vmul.f32 %v12997_v6, %v3244_v10  ;;  %vm13106_vm10 = vcmp.lt.f32.partialorder %v3246_v19, 0.0004427343  ;;  %v3372_v53 = vand.u32 2147483647, %v13043_v18  ;;  %v2863_v17 = vmax.f32 %v12963_v43, 0.0  ;;  %v17686_v19 = vld [vmem:[#allocation46_spill] sm:$0xff] }
 0x376   : > { %v17684_v46 = vpack.c.bf16 %v17682_v14, %v17683_v38  ;;  %v3387_v47 = vmul.f32 -0.5, %v13086_v7  ;;  %v3519_v8 = vadd.f32 1.0, %v13097_v48  ;;  %v2944_v6 = vand.u32 2147483647, %v13093_v16  ;;  %8761 = vmatprep.subr.bf16.mxu1 %v8760_v5  ;;  %v17715_v5 = vld [vmem:[#allocation53_spill] sm:$0xff] }
 0x377   : > { %v17685_v52 = vmax.f32 %v12816_v42, 0.0  ;;  %v3248_v31 = vsel %vm13106_vm10, %v3245_v41, %v3242_v12  ;;  %v3370_v10 = vadd.f32 1.0, %v3369_v9  ;;  %v17688_v26 = vpack.c.bf16 %v17686_v19, %v17687_v4 }
 0x378   : > { %8755 = vmatpush1.bf16.msra.mxu0 %v17684_v46  ;;  %v13130_v33 = vadd.f32 %v12473_v44, %v12134_v15  ;;  %v13132_v24 = vpop.eup %9434  ;;  %9446 = vlog2.f32 %v3384_v36  ;;  %v3127_v42 = vmul.f32 1.442695, %v3006_v28  ;;  %vm13141_vm11 = vcmp.lt.f32.partialorder %v3372_v53, 0.0004427343 }
 0x379   : > { %v13121_v27 = vadd.f32 %v3230_v54, %v17685_v52  ;;  %8763 = vmatpush1.bf16.msra.mxu1 %v17688_v26  ;;  %v13137_v54 = vadd.f32 %v12493_v2, %v12134_v15  ;;  %v13139_v12 = vpop.eup %9436  ;;  %v3504_v41 = vmul.f32 -0.5, %v13046_v39  ;;  %v2877_v44 = vmax.f32 %v13011_v50, 0.0 }
 0x37a   : > { %v3645_v11 = vadd.f32 1.0, %v13132_v24  ;;  %v9439_v36 = vpop.eup %9438  ;;  %v17691_v14 = vmax.f32 %v12833_v60, 0.0  ;;  %v3388_v38 = vadd.f32 1.0, %v3387_v47  ;;  %9448 = vlog2.f32 %v3519_v8 }
 0x37b   : > { %v3008_v2 = vsub.f32 0.0, %v2944_v6  ;;  %v13153_v46 = vmul.f32 %v13043_v18, %v3370_v10  ;;  %v3507_v53 = vand.u32 2147483647, %v13046_v39  ;;  %v2897_v52 = vand.u32 2147483647, %v13130_v33 }
 0x37c   : > { %v13150_v28 = vadd.f32 %v3248_v31, %v17691_v14  ;;  %9450 = vlog2.f32 %v3645_v11  ;;  %v9441_v19 = vpop.eup %9440  ;;  %v3522_v4 = vmul.f32 -0.5, %v13097_v48  ;;  %v3510_v26 = vadd.f32 1.0, %v13139_v12 }
 0x37d   : > { %9452 = vpow2.f32 %v3127_v42  ;;  %v2899_v60 = vand.u32 2147483647, %v13137_v54  ;;  %v13160_v31 = vpop.eup %9442  ;;  %v3368_v47 = vmul.f32 0.6931472, %v9439_v36  ;;  %v3390_v8 = vand.u32 2147483647, %v13086_v7 }
 0x37e   : > { %v3505_v18 = vadd.f32 1.0, %v3504_v41  ;;  %v2961_v6 = vsub.f32 0.0, %v2897_v52  ;;  %v13163_v10 = vpop.eup %9444  ;;  %v13166_v11 = vmul.f32 %v13086_v7, %v3388_v38  ;;  %v3525_v14 = vand.u32 2147483647, %v13097_v48 }
 0x37f   : > { %v3648_v32 = vmul.f32 -0.5, %v13132_v24  ;;  %v3131_v1 = vmul.f32 1.442695, %v3008_v2  ;;  %v3503_v42 = vmul.f32 0.6931472, %v9441_v19  ;;  %v3663_v49 = vadd.f32 1.0, %v13163_v10 }
 0x380   : > { %v2963_v36 = vsub.f32 0.0, %v2899_v60  ;;  %vm13172_vm12 = vcmp.lt.f32.partialorder %v3507_v53, 0.0004427343  ;;  %v3523_v41 = vadd.f32 1.0, %v3522_v4  ;;  %9454 = vlog2.f32 %v3510_v26 }
 0x381   : > { %v3528_v7 = vadd.f32 1.0, %v13160_v31  ;;  %v3374_v38 = vsel %vm13141_vm11, %v13153_v46, %v3368_v47  ;;  %v3506_v2 = vmul.f32 %v13046_v39, %v3505_v18  ;;  %9456 = vlog2.f32 %v3663_v49 }
 0x382   : > { %v3037_v52 = vmul.f32 1.442695, %v2961_v6  ;;  %v9447_v19 = vpop.eup %9446  ;;  %vm13181_vm13 = vcmp.lt.f32.partialorder %v3525_v14, 0.0004427343  ;;  %v3649_v53 = vadd.f32 1.0, %v3648_v32  ;;  %9458 = vpow2.f32 %v3131_v1 }
 0x383   : > { %v13188_v4 = vadd.f32 %v12482_v51, %v12134_v15  ;;  %vm13190_vm14 = vcmp.lt.f32.partialorder %v3390_v8, 0.0004427343  ;;  %v3509_v39 = vsel %vm13172_vm12, %v3506_v2, %v3503_v42  ;;  %v3651_v49 = vand.u32 2147483647, %v13132_v24 }
 0x384   : > { %v3666_v46 = vmul.f32 -0.5, %v13163_v10  ;;  %v3041_v26 = vmul.f32 1.442695, %v2963_v36  ;;  %v9449_v32 = vpop.eup %9448  ;;  %v3524_v47 = vmul.f32 %v13097_v48, %v3523_v41  ;;  %9460 = vlog2.f32 %v3528_v7 }
 0x385   : > { %v13202_v51 = vadd.f32 %v12504_v45, %v12134_v15  ;;  %v3386_v18 = vmul.f32 0.6931472, %v9447_v19  ;;  %v3513_v29 = vmul.f32 -0.5, %v13139_v12  ;;  %v3516_v6 = vand.u32 2147483647, %v13139_v12 }
 0x386   : > { %v9451_v8 = vpop.eup %9450  ;;  %9462 = vpow2.f32 %v3037_v52  ;;  %v13210_v42 = vadd.f32 %v3509_v39, %v2861_v23  ;;  %v3650_v36 = vmul.f32 %v13132_v24, %v3649_v53  ;;  %v2898_v41 = vand.u32 2147483647, %v13188_v4  ;;  %v17699_v52 = vld [vmem:[#allocation54_spill] sm:$0xff] }
 0x387   : > { %v13206_v14 = vpop.eup %9452  ;;  %v3647_v48 = vmul.f32 0.6931472, %v9451_v8  ;;  %v3521_v15 = vmul.f32 0.6931472, %v9449_v32  ;;  %vm3652_vm15 = vcmp.lt.f32.partialorder %v3651_v49, 0.0004427343  ;;  %9464 = vpow2.f32 %v3041_v26 }
 0x388   : > { %17698 = vst [vmem:[#allocation44_spill] sm:$0xff] %v13210_v42  ;;  %v3667_v45 = vadd.f32 1.0, %v3666_v46  ;;  %v2900_v2 = vand.u32 2147483647, %v13202_v51  ;;  %v13217_v19 = vadd.f32 %v17699_v52, %v12144_v34  ;;  %v13221_v23 = vadd.f32 %v17700_v21, %v12144_v34  ;;  %v17701_v49 = vld [vmem:[#allocation23_spill] sm:$0xff] }
 0x389   : > { %v3653_v7 = vsel %vm3652_vm15, %v3650_v36, %v3647_v48  ;;  %v3669_v53 = vand.u32 2147483647, %v13163_v10  ;;  %v3654_v39 = vadd.f32 1.0, %v13206_v14  ;;  %v13231_v46 = vadd.f32 %v17701_v49, %v12144_v34 }
 0x38a   : > { %v13225_v24 = vadd.f32 %v3653_v7, %v2877_v44  ;;  %v9455_v26 = vpop.eup %9454  ;;  %v17702_v32 = vmax.f32 %v12902_v22, 0.0  ;;  %v3514_v48 = vadd.f32 1.0, %v3513_v29  ;;  %v3531_v36 = vmul.f32 -0.5, %v13160_v31 }
 0x38b   : > { %v2962_v52 = vsub.f32 0.0, %v2898_v41  ;;  %v9457_v50 = vpop.eup %9456  ;;  %v3527_v44 = vsel %vm13181_vm13, %v3524_v47, %v3521_v15  ;;  %v2913_v21 = vand.u32 2147483647, %v13217_v19  ;;  %v2915_v49 = vand.u32 2147483647, %v13221_v23 }
 0x38c   : > { %v13235_v8 = vadd.f32 %v3374_v38, %v17702_v32  ;;  %v13244_v1 = vpop.eup %9458  ;;  %v3392_v22 = vsel %vm13190_vm14, %v13166_v11, %v3386_v18  ;;  %v3665_v38 = vmul.f32 0.6931472, %v9457_v50  ;;  %v3668_v29 = vmul.f32 %v13163_v10, %v3667_v45 }
 0x38d   : > { %v2964_v41 = vsub.f32 0.0, %v2900_v2  ;;  %vm13250_vm2 = vcmp.lt.f32.partialorder %v3516_v6, 0.0004427343  ;;  %v3534_v47 = vand.u32 2147483647, %v13160_v31  ;;  %9466 = vlog2.f32 %v3654_v39 }
 0x38e   : > { %vm3670_vm3 = vcmp.lt.f32.partialorder %v3669_v53, 0.0004427343  ;;  %v2914_v15 = vand.u32 2147483647, %v13231_v46  ;;  %v9461_v32 = vpop.eup %9460  ;;  %v13258_v7 = vadd.f32 %v3527_v44, %v2863_v17  ;;  %v3532_v11 = vadd.f32 1.0, %v3531_v36  ;;  %v17709_v36 = vld [vmem:[#allocation22_spill] sm:$0xff] }
 0x38f   : > { %v3671_v9 = vsel %vm3670_vm3, %v3668_v29, %v3665_v38  ;;  %v3039_v18 = vmul.f32 1.442695, %v2962_v52  ;;  %v17706_v6 = vmax.f32 %v13034_v59, 0.0  ;;  %v3672_v2 = vadd.f32 1.0, %v13244_v1  ;;  %v13335_v59 = vld [vmem:[%s17084_s2 + $0x28] sm:$0xff] }
 0x390   : > { %17705 = vst [vmem:[#allocation45_spill] sm:$0xff] %v13258_v7  ;;  %v13260_v10 = vpop.eup %9462  ;;  %v2977_v53 = vsub.f32 0.0, %v2913_v21  ;;  %v2979_v39 = vsub.f32 0.0, %v2915_v49  ;;  %v17708_v50 = vmax.f32 %v12940_v63, 0.0  ;;  %v3515_v43 = vmul.f32 %v13139_v12, %v3514_v48 }
 0x391   : > { %v13264_v45 = vadd.f32 %v3671_v9, %v17706_v6  ;;  %v3043_v17 = vmul.f32 1.442695, %v2964_v41  ;;  %v13274_v52 = vadd.f32 %v17709_v36, %v12144_v34  ;;  %v13276_v44 = vpop.eup %9464  ;;  %vm13278_vm4 = vcmp.lt.f32.partialorder %v3534_v47, 0.0004427343  ;;  %v17714_v36 = vld [vmem:[#allocation24_spill] sm:$0xff] }
 0x392   : > { %v13269_v60 = vadd.f32 %v3392_v22, %v17708_v50  ;;  %v2978_v49 = vsub.f32 0.0, %v2914_v15  ;;  %v3512_v22 = vmul.f32 0.6931472, %v9455_v26  ;;  %v3533_v12 = vmul.f32 %v13160_v31, %v3532_v11  ;;  %v17712_v31 = vld [vmem:[#allocation25_spill] sm:$0xff]  ;;  %v17713_v50 = vld [vmem:[#allocation35_spill] sm:$0xff] }
 0x393   : > { %17707 = vst [vmem:[#allocation16_spill] sm:$0xff] %v13264_v45  ;;  %v3249_v48 = vadd.f32 1.0, %v13260_v10  ;;  %9468 = vpow2.f32 %v3039_v18  ;;  %v3069_v38 = vmul.f32 1.442695, %v2977_v53  ;;  %v3073_v29 = vmul.f32 1.442695, %v2979_v39 }
 0x394   : > { %9470 = vlog2.f32 %v3672_v2  ;;  %v3657_v41 = vmul.f32 -0.5, %v13206_v14  ;;  %v3267_v47 = vadd.f32 1.0, %v13276_v44  ;;  %v2916_v9 = vand.u32 2147483647, %v13274_v52 }
 0x395   : > { %9472 = vpow2.f32 %v3043_v17  ;;  %v3675_v15 = vmul.f32 -0.5, %v13244_v1  ;;  %v3071_v26 = vmul.f32 1.442695, %v2978_v49  ;;  %v8756_v11 = vpack.c.bf16 %v12730_v62, %v17712_v31 }
 0x396   : > { %9474 = vpow2.f32 %v3069_v38  ;;  %v3518_v18 = vsel %vm13250_vm2, %v3515_v43, %v3512_v22  ;;  %v3530_v6 = vmul.f32 0.6931472, %v9461_v32  ;;  %v2980_v39 = vsub.f32 0.0, %v2916_v9  ;;  %v17716_v32 = vld [vmem:[#allocation59_spill] sm:$0xff]  ;;  %v17718_v22 = vld [vmem:[#allocation29_spill] sm:$0xff] }
 0x397   : > { %9476 = vlog2.f32 %v3249_v48  ;;  %v9467_v53 = vpop.eup %9466  ;;  %8757 = vmatprep.subr.bf16.mxu0 %v8756_v11  ;;  %v8764_v17 = vpack.c.bf16 %v12735_v56, %v17713_v50  ;;  %v13301_v49 = vadd.f32 %v17714_v36, %v12169_v58  ;;  %v3658_v38 = vadd.f32 1.0, %v3657_v41  ;;  %v13314_v56 = vld [vmem:[%s17084_s2 + $0x20] sm:$0xff]  ;;  %v17719_v50 = vld [vmem:[#allocation55_spill] sm:$0xff] }
 0x398   : > { %9478 = vpow2.f32 %v3073_v29  ;;  %v3660_v62 = vand.u32 2147483647, %v13206_v14  ;;  %v17717_v43 = vpack.c.bf16 %v17715_v5, %v17716_v32  ;;  %v13309_v48 = vadd.f32 %v17718_v22, %v12169_v58  ;;  %v17720_v36 = vld [vmem:[#allocation56_spill] sm:$0xff] }
 0x399   : > { %9480 = vlog2.f32 %v3267_v47  ;;  %v3676_v29 = vadd.f32 1.0, %v3675_v15  ;;  %v3252_v9 = vmul.f32 -0.5, %v13260_v10  ;;  %v3075_v41 = vmul.f32 1.442695, %v2980_v39  ;;  %8765 = vmatprep.subr.bf16.mxu1 %v8764_v17 }
 0x39a   : > { %8759 = vmatpush1.bf16.msra.mxu0 %v17717_v43  ;;  %9482 = vpow2.f32 %v3071_v26  ;;  %v3536_v47 = vsel %vm13278_vm4, %v3533_v12, %v3530_v6  ;;  %v3656_v31 = vmul.f32 0.6931472, %v9467_v53  ;;  %v3270_v11 = vmul.f32 -0.5, %v13276_v44  ;;  %v17727_v26 = vld [vmem:[#allocation27_spill] sm:$0xff] }
 0x39b   : > { %v17721_v5 = vpack.c.bf16 %v17719_v50, %v17720_v36  ;;  %v2929_v32 = vand.u32 2147483647, %v13301_v49  ;;  %v17722_v43 = vmax.f32 %v12995_v13, 0.0  ;;  %9484 = vpow2.f32 %v3075_v41 }
 0x39c   : > { %v2931_v39 = vand.u32 2147483647, %v13309_v48  ;;  %v3659_v6 = vmul.f32 %v13206_v14, %v3658_v38  ;;  %vm13340_vm5 = vcmp.lt.f32.partialorder %v3660_v62, 0.0004427343  ;;  %v3255_v53 = vand.u32 2147483647, %v13260_v10 }
 0x39d   : > { %8767 = vmatpush1.bf16.msra.mxu1 %v17721_v5  ;;  %v13326_v15 = vadd.f32 %v3518_v18, %v17722_v43  ;;  %8577 = vmatmul.mubr.msk.f32.vlgmr.msra.gmra.mrb[64].mxu0 %vm2096_vm7, %v13314_v56  ;;  %v13337_v12 = vpop.eup %9468  ;;  %v17725_v17 = vmov 0.0   ;;  %v17726_v41 = vmax.f32 %v13020_v57, 0.0  ;;  %v13352_v36 = vmul.f32 %v13244_v1, %v3676_v29 }
 0x39e   : > { %3893 = vmatprep.mubr.f32.mxu0 %v17725_v17  ;;  %v9471_v22 = vpop.eup %9470  ;;  %v3253_v5 = vadd.f32 1.0, %v3252_v9  ;;  %v3273_v14 = vand.u32 2147483647, %v13276_v44  ;;  %v3662_v62 = vsel %vm13340_vm5, %v3659_v6, %v3656_v31  ;;  %v3271_v43 = vadd.f32 1.0, %v3270_v11 }
 0x39f   : > { %v13349_v50 = vadd.f32 %v3536_v47, %v17726_v41  ;;  %v13357_v38 = vpop.eup %9472  ;;  %v2993_v57 = vsub.f32 0.0, %v2929_v32  ;;  %v3258_v29 = vadd.f32 1.0, %v13337_v12  ;;  %v2995_v41 = vsub.f32 0.0, %v2931_v39 }
 0x3a0   : > { %8581 = vmatmul.mubr.msk.f32.vlgmr.msra.gmra.mrb[64].mxu1 %vm2096_vm7, %v13314_v56  ;;  %v13363_v47 = vpop.eup %9474  ;;  %v13369_v2 = vadd.f32 %v17727_v26, %v12169_v58  ;;  %vm13373_vm6 = vcmp.lt.f32.partialorder %v3255_v53, 0.0004427343  ;;  %v13384_v26 = vld [vmem:[%s17084_s2 + $0x30] sm:$0xff]  ;;  %v17732_v53 = vmax.f32 %v13064_v37, 0.0  ;;  %v13392_v21 = vmul.f32 0.6931472, %v9471_v22 }
 0x3a1   : > { %3982 = vmatprep.mubr.f32.mxu1 %v17725_v17  ;;  %8578 = vmatmul.mubr.msk.f32.gmra.mrb[66].mxu0 %vm2096_vm7, %v13335_v59  ;;  %v9477_v31 = vpop.eup %9476  ;;  %v3393_v32 = vadd.f32 1.0, %v13363_v47  ;;  %17731 = vst [vmem:[#allocation18_spill] sm:$0xff] %v13384_v26  ;;  %v3254_v18 = vmul.f32 %v13260_v10, %v3253_v5  ;;  %vm13395_vm8 = vcmp.lt.f32.partialorder %v3273_v14, 0.0004427343  ;;  %v3272_v34 = vmul.f32 %v13276_v44, %v3271_v43  ;;  %v17735_v14 = vld [vmem:[#allocation34_spill] sm:$0xff] }
 0x3a2   : > { %17728 = vst [vmem:[#allocation52_spill] sm:$0xff] %v13369_v2  ;;  %3899 = vmatprep.mubr.f32.mxu0 %v17725_v17  ;;  %v13386_v39 = vpop.eup %9478  ;;  %v13390_v9 = vadd.f32 %v3662_v62, %v17732_v53  ;;  %v3101_v37 = vmul.f32 1.442695, %v2993_v57  ;;  %v3105_v10 = vmul.f32 1.442695, %v2995_v41  ;;  %v13409_v62 = vadd.f32 %v17735_v14, %v12169_v58 }
 0x3a3   : > { %v9481_v13 = vpop.eup %9480  ;;  %9486 = vlog2.f32 %v3393_v32  ;;  %v3411_v63 = vadd.f32 1.0, %v13386_v39  ;;  %v2930_v5 = vand.u32 2147483647, %v13369_v2  ;;  %v3251_v44 = vmul.f32 0.6931472, %v9477_v31  ;;  %v17738_v31 = vld [vmem:[#allocation33_spill] sm:$0xff] }
 0x3a4   : > { %8582 = vmatmul.mubr.msk.f32.gmra.mrb[66].mxu1 %vm2096_vm7, %v13335_v59  ;;  %v13404_v22 = vpop.eup %9482  ;;  %9488 = vlog2.f32 %v3258_v29  ;;  %17736 = vst [vmem:[#allocation17_spill] sm:$0xff] %v13409_v62  ;;  %v3261_v43 = vmul.f32 -0.5, %v13337_v12  ;;  %v13419_v29 = vld [vmem:[%s17084_s2 + $0x38] sm:$0xff]  ;;  %v3269_v58 = vmul.f32 0.6931472, %v9481_v13  ;;  %v3396_v53 = vmul.f32 -0.5, %v13363_v47 }
 0x3a5   : > { %3988 = vmatprep.mubr.f32.mxu1 %v17725_v17  ;;  %8579 = vmatmul.mubr.msk.f32.gmra.mrb[68].mxu0 %vm2096_vm7, %v13384_v26  ;;  %9490 = vlog2.f32 %v3411_v63  ;;  %v3402_v57 = vadd.f32 1.0, %v13404_v22  ;;  %17737 = vst [vmem:[#allocation21_spill] sm:$0xff] %v13419_v29  ;;  %v13421_v41 = vpop.eup %9484  ;;  %v13427_v14 = vadd.f32 %v17738_v31, %v12202_v55  ;;  %v3276_v63 = vadd.f32 1.0, %v13357_v38 }
 0x3a6   : > { %3905 = vmatprep.mubr.f32.mxu0 %v17725_v17  ;;  %v3414_v2 = vmul.f32 -0.5, %v13386_v39  ;;  %v3420_v7 = vadd.f32 1.0, %v13421_v41  ;;  %9492 = vpow2.f32 %v3101_v37  ;;  %v2994_v13 = vsub.f32 0.0, %v2930_v5 }
 0x3a7   : > { %9494 = vpow2.f32 %v3105_v10  ;;  %v2932_v32 = vand.u32 2147483647, %v13409_v62  ;;  %v13438_v31 = vadd.f32 %v12684_v30, %v12202_v55  ;;  %v3279_v45 = vmul.f32 -0.5, %v13357_v38 }
 0x3a8   : > { %8583 = vmatmul.mubr.msk.f32.gmra.mrb[68].mxu1 %vm2096_vm7, %v13384_v26  ;;  %v3257_v26 = vsel %vm13373_vm6, %v3254_v18, %v3251_v44  ;;  %v3399_v37 = vand.u32 2147483647, %v13363_v47  ;;  %9496 = vlog2.f32 %v3402_v57  ;;  %v3275_v10 = vsel %vm13395_vm8, %v3272_v34, %v3269_v58 }
 0x3a9   : > { %3994 = vmatprep.mubr.f32.mxu1 %v17725_v17  ;;  %8580 = vmatmul.mubr.msk.f32.gmra.mrb[70].mxu0 %vm2096_vm7, %v13419_v29  ;;  %v3397_v5 = vadd.f32 1.0, %v3396_v53  ;;  %9498 = vlog2.f32 %v3420_v7  ;;  %v2945_v30 = vand.u32 2147483647, %v13427_v14  ;;  %v3262_v62 = vadd.f32 1.0, %v3261_v43 }
 0x3aa   : > { %4065 = vmatprep.mubr.f32.mxu0 %v17725_v17  ;;  %9500 = vlog2.f32 %v3276_v63  ;;  %v3415_v18 = vadd.f32 1.0, %v3414_v2  ;;  %v3417_v11 = vand.u32 2147483647, %v13386_v39  ;;  %v3103_v44 = vmul.f32 1.442695, %v2994_v13 }
 0x3ab   : > { %v2996_v57 = vsub.f32 0.0, %v2932_v32  ;;  %v3009_v42 = vsub.f32 0.0, %v2945_v30  ;;  %v2947_v6 = vand.u32 2147483647, %v13438_v31  ;;  %v17739_v7 = vmax.f32 %v13130_v33, 0.0 }
 0x3ac   : > { %8584 = vmatmul.mubr.msk.f32.gmra.mrb[70].mxu1 %vm2096_vm7, %v13419_v29  ;;  %v17740_v53 = vmax.f32 %v13137_v54, 0.0  ;;  %v3280_v43 = vadd.f32 1.0, %v3279_v45  ;;  %vm13463_vm9 = vcmp.lt.f32.partialorder %v3399_v37, 0.0004427343  ;;  %v17743_v32 = vand.u32 2147483647, %v13244_v1 }
 0x3ad   : > { %4154 = vmatprep.mubr.f32.mxu1 %v17725_v17  ;;  %v9487_v34 = vpop.eup %9486  ;;  %v13457_v58 = vadd.f32 %v3257_v26, %v17739_v7  ;;  %v3398_v33 = vmul.f32 %v13363_v47, %v3397_v5  ;;  %v3405_v26 = vmul.f32 -0.5, %v13404_v22  ;;  %v3011_v54 = vsub.f32 0.0, %v2947_v6  ;;  %v17748_v1 = vld [vmem:[#allocation28_spill] sm:$0xff] }
 0x3ae   : > { %v13461_v29 = vadd.f32 %v3275_v10, %v17740_v53  ;;  %v9489_v63 = vpop.eup %9488  ;;  %vm13469_vm10 = vcmp.lt.f32.partialorder %v17743_v32, 0.0004427343  ;;  %v3395_v30 = vmul.f32 0.6931472, %v9487_v34  ;;  %v3416_v45 = vmul.f32 %v13386_v39, %v3415_v18 }
 0x3af   : > { %v9491_v10 = vpop.eup %9490  ;;  %vm13476_vm11 = vcmp.lt.f32.partialorder %v3417_v11, 0.0004427343  ;;  %v3133_v7 = vmul.f32 1.442695, %v3009_v42  ;;  %v13482_v53 = vadd.f32 %v17748_v1, %v12202_v55  ;;  %9502 = vpow2.f32 %v3103_v44 }
 0x3b0   : > { %v3401_v34 = vsel %vm13463_vm9, %v3398_v33, %v3395_v30  ;;  %v3413_v32 = vmul.f32 0.6931472, %v9491_v10  ;;  %v3107_v47 = vmul.f32 1.442695, %v2996_v57  ;;  %v13486_v5 = vpop.eup %9492  ;;  %v17749_v6 = vmax.f32 %v13217_v19, 0.0 }
 0x3b1   : > { %v3423_v18 = vmul.f32 -0.5, %v13421_v41  ;;  %9504 = vpow2.f32 %v3133_v7  ;;  %v3137_v42 = vmul.f32 1.442695, %v3011_v54  ;;  %v13493_v11 = vpop.eup %9494  ;;  %v3260_v1 = vmul.f32 0.6931472, %v9489_v63  ;;  %v17751_v54 = vld [vmem:[#allocation36_spill] sm:$0xff] }
 0x3b2   : > { %v13490_v39 = vadd.f32 %v3401_v34, %v17749_v6  ;;  %v3419_v2 = vsel %vm13476_vm11, %v3416_v45, %v3413_v32  ;;  %v3408_v30 = vand.u32 2147483647, %v13404_v22  ;;  %v2946_v44 = vand.u32 2147483647, %v13482_v53  ;;  %v9497_v57 = vpop.eup %9496  ;;  %v17753_v34 = vld [vmem:[#allocation30_spill] sm:$0xff] }
 0x3b3   : > { %v17750_v33 = vmax.f32 %v13221_v23, 0.0  ;;  %9506 = vpow2.f32 %v3137_v42  ;;  %v13507_v7 = vadd.f32 %v17751_v54, %v12202_v55  ;;  %v9499_v63 = vpop.eup %9498  ;;  %v3406_v37 = vadd.f32 1.0, %v3405_v26 }
 0x3b4   : > { %v3537_v45 = vadd.f32 1.0, %v13486_v5  ;;  %9508 = vpow2.f32 %v3107_v47  ;;  %v8768_v32 = vpack.c.bf16 %v12878_v25, %v17753_v34  ;;  %v9501_v6 = vpop.eup %9500  ;;  %v3424_v23 = vadd.f32 1.0, %v3423_v18  ;;  %v17758_v34 = vld [vmem:[#allocation26_spill] sm:$0xff] }
 0x3b5   : > { %v13503_v10 = vadd.f32 %v3419_v2, %v17750_v33  ;;  %17752 = vst [vmem:[#allocation19_spill] sm:$0xff] %v13507_v7  ;;  %v3555_v2 = vadd.f32 1.0, %v13493_v11  ;;  %v3010_v42 = vsub.f32 0.0, %v2946_v44  ;;  %v3263_v33 = vmul.f32 %v13337_v12, %v3262_v62 }
 0x3b6   : > { %v3404_v55 = vmul.f32 0.6931472, %v9497_v57  ;;  %v3426_v54 = vand.u32 2147483647, %v13421_v41  ;;  %v2948_v26 = vand.u32 2147483647, %v13507_v7  ;;  %8769 = vmatprep.subr.bf16.mxu0 %v8768_v32  ;;  %v3680_v25 = vsel %vm13469_vm10, %v13352_v36, %v13392_v21 }
 0x3b7   : > { %v17754_v47 = vand.u32 2147483647, %v13337_v12  ;;  %v3282_v44 = vand.u32 2147483647, %v13357_v38  ;;  %v3422_v62 = vmul.f32 0.6931472, %v9499_v63  ;;  %v3407_v13 = vmul.f32 %v13404_v22, %v3406_v37 }
 0x3b8   : > { %v17757_v57 = vld [vmem:[#allocation38_spill] sm:$0xff]  ;;  %v3278_v7 = vmul.f32 0.6931472, %v9501_v6  ;;  %9510 = vlog2.f32 %v3537_v45  ;;  %vm13535_vm13 = vcmp.lt.f32.partialorder %v3408_v30, 0.0004427343  ;;  %v3425_v12 = vmul.f32 %v13421_v41, %v3424_v23  ;;  %v17766_v45 = vld [vmem:[#allocation31_spill] sm:$0xff] }
 0x3b9   : > { %vm13524_vm12 = vcmp.lt.f32.partialorder %v17754_v47, 0.0004427343  ;;  %v17759_v19 = vpack.c.bf16 %v17757_v57, %v17758_v34  ;;  %9512 = vlog2.f32 %v3555_v2  ;;  %v3135_v36 = vmul.f32 1.442695, %v3010_v42  ;;  %v13540_v63 = vpop.eup %9502  ;;  %v17775_v21 = vld [vmem:[#allocation37_spill] sm:$0xff] }
 0x3ba   : > { %v3266_v32 = vsel %vm13524_vm12, %v3263_v33, %v3260_v1  ;;  %v3281_v47 = vmul.f32 %v13357_v38, %v3280_v43  ;;  %vm13545_vm14 = vcmp.lt.f32.partialorder %v3426_v54, 0.0004427343  ;;  %v3012_v22 = vsub.f32 0.0, %v2948_v26  ;;  %v17767_v38 = vld [vmem:[#allocation58_spill] sm:$0xff]  ;;  %v17779_v1 = vld [vmem:[#allocation47_spill] sm:$0xff] }
 0x3bb   : > { %8771 = vmatpush1.bf16.msra.mxu0 %v17759_v19  ;;  %v3410_v19 = vsel %vm13535_vm13, %v3407_v13, %v3404_v55  ;;  %v13549_v30 = vpop.eup %9504  ;;  %vm13551_vm15 = vcmp.lt.f32.partialorder %v3282_v44, 0.0004427343  ;;  %v3428_v41 = vsel %vm13545_vm14, %v3425_v12, %v3422_v62  ;;  %9514 = vpow2.f32 %v3135_v36  ;;  %v17772_v62 = vld [vmem:[#allocation50_spill] sm:$0xff]  ;;  %v17774_v13 = vld [vmem:[#allocation32_spill] sm:$0xff] }
 0x3bc   : > { %v8776_v43 = vpack.c.bf16 %v17767_v38, %v17766_v45  ;;  %v17768_v6 = vmax.f32 %v13093_v16, 0.0  ;;  %v17769_v2 = vmax.f32 %v13188_v4, 0.0  ;;  %v3284_v33 = vsel %vm13551_vm15, %v3281_v47, %v3278_v7  ;;  %v17771_v16 = vld [vmem:[#allocation41_spill] sm:$0xff] }
 0x3bd   : > { %v3681_v55 = vadd.f32 1.0, %v13549_v30  ;;  %v13570_v54 = vpop.eup %9506  ;;  %v17770_v26 = vmax.f32 %v13231_v46, 0.0  ;;  %v3139_v44 = vmul.f32 1.442695, %v3012_v22  ;;  %v8780_v4 = vpack.c.bf16 %v13075_v40, %v17772_v62 }
 0x3be   : > { %v13561_v23 = vadd.f32 %v3680_v25, %v17768_v6  ;;  %v13565_v42 = vadd.f32 %v3266_v32, %v17769_v2  ;;  %8777 = vmatprep.subr.bf16.mxu1 %v8776_v43  ;;  %v8772_v25 = vpack.c.bf16 %v13068_v20, %v17771_v16  ;;  %v13580_v57 = vpop.eup %9508  ;;  %v17773_v7 = vmax.f32 %v13274_v52, 0.0  ;;  %v17781_v43 = vld [vmem:[#allocation49_spill] sm:$0xff]  ;;  %v17782_v6 = vld [vmem:[#allocation48_spill] sm:$0xff] }
 0x3bf   : > { %v13574_v18 = vadd.f32 %v3410_v19, %v17770_v26  ;;  %v3546_v32 = vadd.f32 1.0, %v13540_v63  ;;  %9516 = vlog2.f32 %v3681_v55  ;;  %v3699_v46 = vadd.f32 1.0, %v13570_v54  ;;  %v17778_v19 = vld [vmem:[#allocation57_spill] sm:$0xff] }
 0x3c0   : > { %v13584_v34 = vadd.f32 %v3428_v41, %v17773_v7  ;;  %v17776_v12 = vpack.c.bf16 %v17774_v13, %v17775_v21  ;;  %v17777_v20 = vmax.f32 %v13202_v51, 0.0  ;;  %v3540_v40 = vmul.f32 -0.5, %v13486_v5  ;;  %8773 = vmatprep.subr.bf16.mxu0 %v8772_v25 }
 0x3c1   : > { %9518 = vpow2.f32 %v3139_v44  ;;  %v8784_v52 = vpack.c.bf16 %v13235_v8, %v13121_v27  ;;  %v3558_v47 = vmul.f32 -0.5, %v13493_v11  ;;  %v17780_v22 = vpack.c.bf16 %v17778_v19, %v17779_v1 }
 0x3c2   : > { %8779 = vmatpush1.bf16.msra.mxu1 %v17776_v12  ;;  %v13593_v36 = vadd.f32 %v3284_v33, %v17777_v20  ;;  %9520 = vlog2.f32 %v3699_v46  ;;  %v8792_v51 = vpack.c.bf16 %v13269_v60, %v13150_v28  ;;  %v8788_v37 = vpack.c.bf16 %v13390_v9, %v13326_v15  ;;  %v9511_v38 = vpop.eup %9510 }
 0x3c3   : > { %8781 = vmatprep.subr.bf16.mxu1 %v8780_v4  ;;  %8775 = vmatpush1.bf16.msra.mxu0 %v17780_v22  ;;  %v3564_v41 = vadd.f32 1.0, %v13580_v57  ;;  %v3684_v45 = vmul.f32 -0.5, %v13549_v30  ;;  %v8796_v27 = vpack.c.bf16 %v13561_v23, %v13349_v50  ;;  %v8800_v8 = vpack.c.bf16 %v13574_v18, %v13565_v42  ;;  %v9513_v60 = vpop.eup %9512 }
 0x3c4   : > { %8785 = vmatprep.subr.bf16.mxu0 %v8784_v52  ;;  %9522 = vlog2.f32 %v3546_v32  ;;  %v17783_v2 = vpack.c.bf16 %v17781_v43, %v17782_v6  ;;  %v8808_v28 = vpack.c.bf16 %v13584_v34, %v13593_v36  ;;  %v3541_v15 = vadd.f32 1.0, %v3540_v40  ;;  %v17792_v52 = vld [vmem:[#allocation16_spill] sm:$0xff] }
 0x3c5   : > { %v3543_v9 = vand.u32 2147483647, %v13486_v5  ;;  %v3702_v33 = vmul.f32 -0.5, %v13570_v54  ;;  %v3559_v50 = vadd.f32 1.0, %v3558_v47  ;;  %v3561_v23 = vand.u32 2147483647, %v13493_v11  ;;  %v13626_v55 = vpop.eup %9514 }
 0x3c6   : > { %8783 = vmatpush1.bf16.msra.mxu1 %v17783_v2  ;;  %8585 = vmatmul.mubr.msk.f32.vlgmr.msra.gmra.mrb[72].mxu0 %vm2096_vm7, %v13314_v56  ;;  %v17784_v42 = vpack.c.bf16 %v13050_v35, %v13038_v0  ;;  %v2865_v26 = vmax.f32 %v13301_v49, 0.0  ;;  %v3539_v18 = vmul.f32 0.6931472, %v9511_v38  ;;  %9524 = vlog2.f32 %v3564_v41  ;;  %v17793_v47 = vld [vmem:[#allocation45_spill] sm:$0xff] }
 0x3c7   : > { %8793 = vmatprep.subr.bf16.mxu1 %v8792_v51  ;;  %4071 = vmatprep.mubr.f32.mxu0 %v17725_v17  ;;  %v3685_v44 = vadd.f32 1.0, %v3684_v45  ;;  %v2867_v16 = vmax.f32 %v13309_v48, 0.0  ;;  %v3557_v25 = vmul.f32 0.6931472, %v9513_v60  ;;  %v3687_v62 = vand.u32 2147483647, %v13549_v30 }
 0x3c8   : > { %8787 = vmatpush1.bf16.msra.mxu0 %v17784_v42  ;;  %v3690_v4 = vadd.f32 1.0, %v13626_v55  ;;  %v17785_v0 = vpack.c.bf16 %v13059_v3, %v13055_v61  ;;  %v3542_v35 = vmul.f32 %v13486_v5, %v3541_v15  ;;  %vm13639_vm2 = vcmp.lt.f32.partialorder %v3543_v9, 0.0004427343  ;;  %v17790_v3 = vld [vmem:[#allocation44_spill] sm:$0xff] }
 0x3c9   : > { %8589 = vmatmul.mubr.msk.f32.vlgmr.msra.gmra.mrb[72].mxu1 %vm2096_vm7, %v13314_v56  ;;  %8789 = vmatprep.subr.bf16.mxu0 %v8788_v37  ;;  %v2881_v7 = vmax.f32 %v13427_v14, 0.0  ;;  %v3703_v48 = vadd.f32 1.0, %v3702_v33  ;;  %v9517_v34 = vpop.eup %9516  ;;  %v3560_v32 = vmul.f32 %v13493_v11, %v3559_v50  ;;  %vm13647_vm3 = vcmp.lt.f32.partialorder %v3561_v23, 0.0004427343  ;;  %v17795_v37 = vld [vmem:[#allocation18_spill] sm:$0xff]  ;;  %v17796_v33 = vld [vmem:[#allocation21_spill] sm:$0xff] }
 0x3ca   : > { %4160 = vmatprep.mubr.f32.mxu1 %v17725_v17  ;;  %8795 = vmatpush1.bf16.msra.mxu1 %v17785_v0  ;;  %v3705_v61 = vand.u32 2147483647, %v13570_v54  ;;  %9526 = vlog2.f32 %v3690_v4  ;;  %v17791_v14 = vpack.c.bf16 %v13225_v24, %v17790_v3  ;;  %v3545_v13 = vsel %vm13639_vm2, %v3542_v35, %v3539_v18  ;;  %v17799_v35 = vld [vmem:[#allocation52_spill] sm:$0xff] }
 0x3cb   : > { %8586 = vmatmul.mubr.msk.f32.gmra.mrb[74].mxu0 %vm2096_vm7, %v13335_v59  ;;  %8797 = vmatprep.subr.bf16.mxu1 %v8796_v27  ;;  %v13656_v5 = vpop.eup %9518  ;;  %v3549_v11 = vmul.f32 -0.5, %v13540_v63  ;;  %v3683_v21 = vmul.f32 0.6931472, %v9517_v34  ;;  %v3686_v12 = vmul.f32 %v13549_v30, %v3685_v44  ;;  %v3563_v36 = vsel %vm13647_vm3, %v3560_v32, %v3557_v25 }
 0x3cc   : > { %4077 = vmatprep.mubr.f32.mxu0 %v17725_v17  ;;  %8791 = vmatpush1.bf16.msra.mxu0 %v17791_v14  ;;  %v9521_v20 = vpop.eup %9520  ;;  %vm3688_vm4 = vcmp.lt.f32.partialorder %v3687_v62, 0.0004427343  ;;  %v2883_v24 = vmax.f32 %v13438_v31, 0.0  ;;  %v3708_v40 = vadd.f32 1.0, %v13656_v5  ;;  %v17794_v19 = vpack.c.bf16 %v17792_v52, %v17793_v47 }
 0x3cd   : > { %8590 = vmatmul.mubr.msk.f32.gmra.mrb[74].mxu1 %vm2096_vm7, %v13335_v59  ;;  %8801 = vmatprep.subr.bf16.mxu0 %v8800_v8  ;;  %v3689_v30 = vsel %vm3688_vm4, %v3686_v12, %v3683_v21  ;;  %v3701_v1 = vmul.f32 0.6931472, %v9521_v20  ;;  %v3704_v22 = vmul.f32 %v13570_v54, %v3703_v48  ;;  %v3693_v51 = vmul.f32 -0.5, %v13626_v55 }
 0x3ce   : > { %4166 = vmatprep.mubr.f32.mxu1 %v17725_v17  ;;  %8799 = vmatpush1.bf16.msra.mxu1 %v17794_v19  ;;  %v9523_v41 = vpop.eup %9522  ;;  %v13676_v31 = vadd.f32 %v3545_v13, %v2865_v26  ;;  %v13678_v45 = vadd.f32 %v3689_v30, %v2881_v7  ;;  %vm3706_vm5 = vcmp.lt.f32.partialorder %v3705_v61, 0.0004427343  ;;  %9528 = vlog2.f32 %v3708_v40  ;;  %v13778_v30 = vpop.permute.xlu1 %3798 }
 0x3cf   : > { %8587 = vmatmul.mubr.msk.f32.gmra.mrb[76].mxu0 %vm2096_vm7, %v17795_v37  ;;  %8809 = vmatprep.subr.bf16.mxu1 %v8808_v28  ;;  %v3550_v27 = vadd.f32 1.0, %v3549_v11  ;;  %v3567_v8 = vmul.f32 -0.5, %v13580_v57  ;;  %v3707_v38 = vsel %vm3706_vm5, %v3704_v22, %v3701_v1  ;;  %v13684_v54 = vadd.f32 %v3563_v36, %v2867_v16  ;;  %v17803_v11 = vld [vmem:[#allocation19_spill] sm:$0xff] }
 0x3d0   : > { %4083 = vmatprep.mubr.f32.mxu0 %v17725_v17  ;;  %v3552_v43 = vand.u32 2147483647, %v13540_v63  ;;  %v8806_v6 = vpack.c.bf16 %v13678_v45, %v13676_v31  ;;  %v3779_v2 = vadd.f32 %v3707_v38, %v2883_v24  ;;  %v9525_v28 = vpop.eup %9524  ;;  %v3548_v60 = vmul.f32 0.6931472, %v9523_v41 }
 0x3d1   : > { %8591 = vmatmul.mubr.msk.f32.gmra.mrb[76].mxu1 %vm2096_vm7, %v17795_v37  ;;  %v3694_v15 = vadd.f32 1.0, %v3693_v51  ;;  %v3711_v9 = vmul.f32 -0.5, %v13656_v5  ;;  %v3696_v23 = vand.u32 2147483647, %v13626_v55  ;;  %v3551_v42 = vmul.f32 %v13540_v63, %v3550_v27 }
 0x3d2   : > { %4172 = vmatprep.mubr.f32.mxu1 %v17725_v17  ;;  %v8814_v50 = vpack.c.bf16 %v3779_v2, %v13684_v54  ;;  %v3568_v26 = vadd.f32 1.0, %v3567_v8  ;;  %vm13699_vm6 = vcmp.lt.f32.partialorder %v3552_v43, 0.0004427343  ;;  %v3566_v16 = vmul.f32 0.6931472, %v9525_v28 }
 0x3d3   : > { %8588 = vmatmul.mubr.msk.f32.gmra.mrb[78].mxu0 %vm2096_vm7, %v17796_v33  ;;  %v3570_v25 = vand.u32 2147483647, %v13580_v57  ;;  %v3554_v62 = vsel %vm13699_vm6, %v3551_v42, %v3548_v60  ;;  %v3695_v63 = vmul.f32 %v13626_v55, %v3694_v15  ;;  %v3712_v0 = vadd.f32 1.0, %v3711_v9 }
 0x3d4   : > { %4243 = vmatprep.mubr.f32.mxu0 %v17725_v17  ;;  %v9527_v18 = vpop.eup %9526  ;;  %v2866_v49 = vmax.f32 %v17799_v35, 0.0  ;;  %v2882_v7 = vmax.f32 %v13482_v53, 0.0  ;;  %vm3697_vm8 = vcmp.lt.f32.partialorder %v3696_v23, 0.0004427343  ;;  %v3714_v48 = vand.u32 2147483647, %v13656_v5 }
 0x3d5   : > { %8592 = vmatmul.mubr.msk.f32.gmra.mrb[78].mxu1 %vm2096_vm7, %v17796_v33  ;;  %v3692_v4 = vmul.f32 0.6931472, %v9527_v18  ;;  %v17800_v34 = vpack.c.bf16 %v13490_v39, %v13457_v58  ;;  %v3569_v32 = vmul.f32 %v13580_v57, %v3568_v26  ;;  %vm3571_vm9 = vcmp.lt.f32.partialorder %v3570_v25, 0.0004427343  ;;  %v17802_v39 = vld [vmem:[#allocation17_spill] sm:$0xff] }
 0x3d6   : > { %4332 = vmatprep.mubr.f32.mxu1 %v17725_v17  ;;  %v3762_v61 = vadd.f32 %v3554_v62, %v2866_v49  ;;  %v17801_v53 = vpack.c.bf16 %v13503_v10, %v13461_v29  ;;  %v3713_v58 = vmul.f32 %v13656_v5, %v3712_v0  ;;  %v2868_v57 = vmax.f32 %v17802_v39, 0.0 }
 0x3d7   : > { %8593 = vmatmul.mubr.msk.f32.vlgmr.msra.gmra.mrb[80].mxu0 %vm2096_vm7, %v13314_v56  ;;  %v3698_v55 = vsel %vm3697_vm8, %v3695_v63, %v3692_v4  ;;  %v3572_v14 = vsel %vm3571_vm9, %v3569_v32, %v3566_v16  ;;  %v2884_v21 = vmax.f32 %v17803_v11, 0.0  ;;  %vm3715_vm10 = vcmp.lt.f32.partialorder %v3714_v48, 0.0004427343 }
 0x3d8   : > { %4249 = vmatprep.mubr.f32.mxu0 %v17725_v17  ;;  %8803 = vmatpush1.bf16.msra.mxu0 %v17800_v34  ;;  %v9529_v46 = vpop.eup %9528  ;;  %v3778_v3 = vadd.f32 %v3698_v55, %v2882_v7  ;;  %v3764_v29 = vadd.f32 %v3572_v14, %v2868_v57 }
 0x3d9   : > { %8597 = vmatmul.mubr.msk.f32.vlgmr.msra.gmra.mrb[80].mxu1 %vm2096_vm7, %v13314_v56  ;;  %v3710_v13 = vmul.f32 0.6931472, %v9529_v46 }
 0x3da   : > { %4338 = vmatprep.mubr.f32.mxu1 %v17725_v17  ;;  %8811 = vmatpush1.bf16.msra.mxu1 %v17801_v53  ;;  %v8804_v12 = vpack.c.bf16 %v3778_v3, %v3762_v61 }
 0x3db   : > { %8594 = vmatmul.mubr.msk.f32.gmra.mrb[82].mxu0 %vm2096_vm7, %v13335_v59  ;;  %v3716_v20 = vsel %vm3715_vm10, %v3713_v58, %v3710_v13 }
 0x3dc   : > { %4255 = vmatprep.mubr.f32.mxu0 %v17725_v17  ;;  %v3780_v10 = vadd.f32 %v3716_v20, %v2884_v21  ;;  %8805 = vmatprep.subr.bf16.mxu0 %v8804_v12 }
 0x3dd   : > { %8598 = vmatmul.mubr.msk.f32.gmra.mrb[82].mxu1 %vm2096_vm7, %v13335_v59  ;;  %8807 = vmatpush1.bf16.msra.mxu0 %v8806_v6 }
 0x3de   : > { %4344 = vmatprep.mubr.f32.mxu1 %v17725_v17  ;;  %v8812_v5 = vpack.c.bf16 %v3780_v10, %v3764_v29 }
 0x3df   : > { %8595 = vmatmul.mubr.msk.f32.gmra.mrb[84].mxu0 %vm2096_vm7, %v17795_v37 }
 0x3e0   : > { %4261 = vmatprep.mubr.f32.mxu0 %v17725_v17  ;;  %8813 = vmatprep.subr.bf16.mxu1 %v8812_v5 }
 0x3e1   : > { %8599 = vmatmul.mubr.msk.f32.gmra.mrb[84].mxu1 %vm2096_vm7, %v17795_v37 }
 0x3e2   : > { %4350 = vmatprep.mubr.f32.mxu1 %v17725_v17  ;;  %8815 = vmatpush1.bf16.msra.mxu1 %v8814_v50 }
 0x3e3   : > { %8596 = vmatmul.mubr.msk.f32.gmra.mrb[86].mxu0 %vm2096_vm7, %v17796_v33 }
 0x3e4   : > { %4421 = vmatprep.mubr.f32.mxu0 %v17725_v17 }
 0x3e5   : > { %8600 = vmatmul.mubr.msk.f32.gmra.mrb[86].mxu1 %vm2096_vm7, %v17796_v33 }
 0x3e6   : > { %4510 = vmatprep.mubr.f32.mxu1 %v17725_v17 }
 0x3e7   : > { %8601 = vmatmul.mubr.msk.f32.vlgmr.msra.gmra.mrb[88].mxu0 %vm2096_vm7, %v13314_v56 }
 0x3e8   : > { %4427 = vmatprep.mubr.f32.mxu0 %v17725_v17 }
 0x3e9   : > { %8605 = vmatmul.mubr.msk.f32.vlgmr.msra.gmra.mrb[88].mxu1 %vm2096_vm7, %v13314_v56  ;;  %v13769_v56 = vpop.permute.xlu0 %3793 }
 0x3ea   : > { %4516 = vmatprep.mubr.f32.mxu1 %v17725_v17 }
 0x3eb   : > { %8602 = vmatmul.mubr.msk.f32.gmra.mrb[90].mxu0 %vm2096_vm7, %v13335_v59 }
 0x3ec   : > { %4433 = vmatprep.mubr.f32.mxu0 %v17725_v17 }
 0x3ed   : > { %8606 = vmatmul.mubr.msk.f32.gmra.mrb[90].mxu1 %vm2096_vm7, %v13335_v59  ;;  %v13802_v63 = vpop.permute.xlu0 %3803 }
 0x3ee   : > { %4522 = vmatprep.mubr.f32.mxu1 %v17725_v17 }
 0x3ef   : > { %8603 = vmatmul.mubr.msk.f32.gmra.mrb[92].mxu0 %vm2096_vm7, %v17795_v37 }
 0x3f0   : > { %4439 = vmatprep.mubr.f32.mxu0 %v17725_v17 }
 0x3f1   : > { %8607 = vmatmul.mubr.msk.f32.gmra.mrb[92].mxu1 %vm2096_vm7, %v17795_v37 }
 0x3f2   : > { %4528 = vmatprep.mubr.f32.mxu1 %v17725_v17 }
 0x3f3   : > { %8604 = vmatmul.mubr.msk.f32.gmra.mrb[94].mxu0 %vm2096_vm7, %v17796_v33 }
 0x3f4   : > { %5601 = vmatprep.mubr.f32.mxu0 %v17725_v17 }
 0x3f5   : > { %8608 = vmatmul.mubr.msk.f32.gmra.mrb[94].mxu1 %vm2096_vm7, %v17796_v33 }
 0x3f6   : > { %5690 = vmatprep.mubr.f32.mxu1 %v17725_v17 }
 0x470   : > { %v3889_v59 = vpop.f32.mrb[64].mxu0 }
 0x471   : > { %v13772_v36 = vadd.f32 %v3889_v59, %v13769_v56  ;;  %v3891_v24 = vpop.f32.mrb[65].mxu0 }
 0x472   : > { %v13782_v37 = vadd.f32 %v3891_v24, %v13769_v56 }
 0x473   : > { %v3978_v40 = vpop.f32.mrb[64].mxu1  ;;  %v4599_v52 = vand.u32 2147483647, %v13772_v36 }
 0x474   : > { %v13776_v47 = vadd.f32 %v3978_v40, %v13769_v56  ;;  %v3980_v19 = vpop.f32.mrb[65].mxu1  ;;  %v3895_v1 = vpop.f32.mrb[66].mxu0  ;;  %v4600_v60 = vand.u32 2147483647, %v13782_v37 }
 0x475   : > { %v4663_v22 = vsub.f32 0.0, %v4599_v52  ;;  %v13785_v41 = vadd.f32 %v3895_v1, %v13778_v30  ;;  %v3897_v31 = vpop.f32.mrb[67].mxu0  ;;  %v13788_v38 = vadd.f32 %v3980_v19, %v13769_v56  ;;  %v13836_v40 = vpop.permute.xlu1 %3808 }
 0x476   : > { %v4601_v51 = vand.u32 2147483647, %v13776_v47  ;;  %v13798_v26 = vadd.f32 %v3897_v31, %v13778_v30  ;;  %v4664_v25 = vsub.f32 0.0, %v4600_v60 }
 0x477   : > { %v3984_v45 = vpop.f32.mrb[66].mxu1  ;;  %v4727_v27 = vmul.f32 1.442695, %v4663_v22  ;;  %v4615_v54 = vand.u32 2147483647, %v13785_v41  ;;  %v4535_v22 = vmax.f32 %v13772_v36, 0.0 }
 0x478   : > { %v4665_v8 = vsub.f32 0.0, %v4601_v51  ;;  %v13792_v43 = vadd.f32 %v3984_v45, %v13778_v30  ;;  %v3986_v6 = vpop.f32.mrb[67].mxu1  ;;  %v3901_v2 = vpop.f32.mrb[68].mxu0  ;;  %v4602_v23 = vand.u32 2147483647, %v13788_v38 }
 0x479   : > { %9530 = vpow2.f32 %v4727_v27  ;;  %v4679_v15 = vsub.f32 0.0, %v4615_v54  ;;  %v3903_v9 = vpop.f32.mrb[69].mxu0  ;;  %v4616_v35 = vand.u32 2147483647, %v13798_v26  ;;  %v13808_v7 = vadd.f32 %v3901_v2, %v13802_v63 }
 0x47a   : > { %v4731_v28 = vmul.f32 1.442695, %v4665_v8  ;;  %v4617_v33 = vand.u32 2147483647, %v13792_v43  ;;  %v4666_v0 = vsub.f32 0.0, %v4602_v23  ;;  %v13815_v61 = vadd.f32 %v3986_v6, %v13778_v30 }
 0x47b   : > { %v3990_v50 = vpop.f32.mrb[68].mxu1  ;;  %v4759_v42 = vmul.f32 1.442695, %v4679_v15  ;;  %v4729_v34 = vmul.f32 1.442695, %v4664_v25  ;;  %v4680_v46 = vsub.f32 0.0, %v4616_v35  ;;  %v13834_v24 = vadd.f32 %v3903_v9, %v13802_v63 }
 0x47c   : > { %9532 = vpow2.f32 %v4731_v28  ;;  %v3992_v18 = vpop.f32.mrb[69].mxu1  ;;  %v4681_v44 = vsub.f32 0.0, %v4617_v33  ;;  %v3907_v16 = vpop.f32.mrb[70].mxu0  ;;  %v4733_v55 = vmul.f32 1.442695, %v4666_v0  ;;  %v13822_v13 = vadd.f32 %v3990_v50, %v13802_v63 }
 0x47d   : > { %9534 = vpow2.f32 %v4759_v42  ;;  %v13800_v62 = vpop.f32.mrb[71].mxu0  ;;  %v4631_v53 = vand.u32 2147483647, %v13808_v7  ;;  %v4761_v57 = vmul.f32 1.442695, %v4680_v46  ;;  %v13840_v1 = vadd.f32 %v3992_v18, %v13802_v63 }
 0x47e   : > { %v4763_v4 = vmul.f32 1.442695, %v4681_v44  ;;  %v4618_v11 = vand.u32 2147483647, %v13815_v61  ;;  %v4633_v12 = vand.u32 2147483647, %v13822_v13  ;;  %v13845_v31 = vadd.f32 %v3907_v16, %v13836_v40 }
 0x47f   : > { %v13805_v49 = vpop.f32.mrb[70].mxu1  ;;  %v4695_v21 = vsub.f32 0.0, %v4631_v53  ;;  %v4537_v27 = vmax.f32 %v13776_v47, 0.0  ;;  %v4551_v28 = vmax.f32 %v13785_v41, 0.0  ;;  %v4632_v36 = vand.u32 2147483647, %v13834_v24 }
 0x480   : > { %9536 = vpow2.f32 %v4763_v4  ;;  %v13810_v48 = vpop.f32.mrb[71].mxu1  ;;  %v4682_v5 = vsub.f32 0.0, %v4618_v11  ;;  %v4697_v19 = vsub.f32 0.0, %v4633_v12  ;;  %v4553_v33 = vmax.f32 %v13792_v43, 0.0 }
 0x481   : > { %9538 = vpow2.f32 %v4729_v34  ;;  %v4791_v59 = vmul.f32 1.442695, %v4695_v21  ;;  %v4634_v47 = vand.u32 2147483647, %v13840_v1  ;;  %v4647_v41 = vand.u32 2147483647, %v13845_v31 }
 0x482   : > { %v4765_v6 = vmul.f32 1.442695, %v4682_v5  ;;  %v4795_v50 = vmul.f32 1.442695, %v4697_v19  ;;  %v4696_v34 = vsub.f32 0.0, %v4632_v36 }
 0x483   : > { %v13812_v32 = vpop.eup %9530 }
 0x484   : > { %v4855_v3 = vadd.f32 1.0, %v13812_v32  ;;  %v4858_v52 = vmul.f32 -0.5, %v13812_v32  ;;  %v4861_v42 = vand.u32 2147483647, %v13812_v32 }
 0x486   : > { %v13819_v14 = vpop.eup %9532  ;;  %9540 = vlog2.f32 %v4855_v3  ;;  %v4859_v9 = vadd.f32 1.0, %v4858_v52  ;;  %vm13869_vm11 = vcmp.lt.f32.partialorder %v4861_v42, 0.0004427343 }
 0x487   : > { %v4873_v58 = vadd.f32 1.0, %v13819_v14  ;;  %v13825_v39 = vpop.eup %9534  ;;  %9542 = vpow2.f32 %v4733_v55  ;;  %v4876_v51 = vmul.f32 -0.5, %v13819_v14  ;;  %v4879_v25 = vand.u32 2147483647, %v13819_v14 }
 0x488   : > { %v4999_v29 = vadd.f32 1.0, %v13825_v39  ;;  %v5002_v54 = vmul.f32 -0.5, %v13825_v39  ;;  %v5005_v35 = vand.u32 2147483647, %v13825_v39  ;;  %v4860_v46 = vmul.f32 %v13812_v32, %v4859_v9 }
 0x489   : > { %9544 = vlog2.f32 %v4873_v58  ;;  %v4877_v18 = vadd.f32 1.0, %v4876_v51  ;;  %vm13877_vm12 = vcmp.lt.f32.partialorder %v4879_v25, 0.0004427343 }
 0x48a   : > { %v13829_v20 = vpop.eup %9536  ;;  %9546 = vpow2.f32 %v4761_v57  ;;  %v5003_v4 = vadd.f32 1.0, %v5002_v54  ;;  %vm5006_vm13 = vcmp.lt.f32.partialorder %v5005_v35, 0.0004427343 }
 0x48b   : > { %v5017_v10 = vadd.f32 1.0, %v13829_v20  ;;  %9548 = vlog2.f32 %v4999_v29  ;;  %v13847_v45 = vpop.eup %9538  ;;  %v5020_v60 = vmul.f32 -0.5, %v13829_v20  ;;  %v5023_v53 = vand.u32 2147483647, %v13829_v20 }
 0x48c   : > { %v4864_v44 = vadd.f32 1.0, %v13847_v45  ;;  %v4878_v11 = vmul.f32 %v13819_v14, %v4877_v18  ;;  %v4867_v21 = vmul.f32 -0.5, %v13847_v45  ;;  %v5004_v5 = vmul.f32 %v13825_v39, %v5003_v4 }
 0x48d   : > { %9550 = vlog2.f32 %v5017_v10  ;;  %v5021_v43 = vadd.f32 1.0, %v5020_v60  ;;  %vm5024_vm14 = vcmp.lt.f32.partialorder %v5023_v53, 0.0004427343 }
 0x48e   : > { %9552 = vpow2.f32 %v4791_v59 }
 0x48f   : > { %9554 = vpow2.f32 %v4765_v6  ;;  %v5022_v19 = vmul.f32 %v13829_v20, %v5021_v43  ;;  %v4868_v43 = vadd.f32 1.0, %v4867_v21 }
 0x490   : > { %v9541_v2 = vpop.eup %9540  ;;  %9556 = vpow2.f32 %v4795_v50  ;;  %v4711_v50 = vsub.f32 0.0, %v4647_v41  ;;  %v13912_v41 = vadd.f32 %v13805_v49, %v13836_v40 }
 0x491   : > { %v13855_v15 = vpop.eup %9542  ;;  %v4857_v16 = vmul.f32 0.6931472, %v9541_v2  ;;  %9558 = vlog2.f32 %v4864_v44  ;;  %v4698_v44 = vsub.f32 0.0, %v4634_v47 }
 0x492   : > { %v4882_v3 = vadd.f32 1.0, %v13855_v15 }
 0x493   : > { %v9545_v23 = vpop.eup %9544  ;;  %v4863_v29 = vsel %vm13869_vm11, %v4860_v46, %v4857_v16  ;;  %v4870_v46 = vand.u32 2147483647, %v13847_v45  ;;  %v4797_v57 = vmul.f32 1.442695, %v4698_v44 }
 0x494   : > { %v4875_v0 = vmul.f32 0.6931472, %v9545_v23  ;;  %v13864_v55 = vpop.eup %9546  ;;  %9560 = vlog2.f32 %v4882_v3  ;;  %v13894_v39 = vadd.f32 %v4863_v29, %v4535_v22  ;;  %v4793_v3 = vmul.f32 1.442695, %v4696_v34 }
 0x495   : > { %v9549_v58 = vpop.eup %9548  ;;  %v5008_v6 = vadd.f32 1.0, %v13864_v55  ;;  %vm13946_vm15 = vcmp.lt.f32.partialorder %v4870_v46, 0.0004427343 }
 0x496   : > { %v5001_v10 = vmul.f32 0.6931472, %v9549_v58  ;;  %v4881_v52 = vsel %vm13877_vm12, %v4878_v11, %v4875_v0  ;;  %17808 = vst [vmem:[#allocation42_spill] sm:$0xff] %v13894_v39  ;;  %v4885_v58 = vmul.f32 -0.5, %v13855_v15  ;;  %v4649_v11 = vand.u32 2147483647, %v13912_v41 }
 0x497   : > { %v9551_v12 = vpop.eup %9550  ;;  %v13900_v20 = vadd.f32 %v4881_v52, %v4537_v27  ;;  %9562 = vlog2.f32 %v5008_v6  ;;  %v4888_v52 = vand.u32 2147483647, %v13855_v15 }
 0x498   : > { %v5019_v14 = vmul.f32 0.6931472, %v9551_v12  ;;  %v5007_v54 = vsel %vm5006_vm13, %v5004_v5, %v5001_v10  ;;  %v13892_v60 = vpop.eup %9552 }
 0x499   : > { %v13882_v59 = vpop.f32.mrb[72].mxu0  ;;  %v13896_v36 = vadd.f32 %v5007_v54, %v4551_v28  ;;  %17810 = vst [vmem:[#allocation40_spill] sm:$0xff] %v13900_v20  ;;  %v4823_v28 = vmul.f32 1.442695, %v4711_v50  ;;  %v13916_v27 = vpop.eup %9554  ;;  %v5143_v0 = vadd.f32 1.0, %v13892_v60  ;;  %v5146_v25 = vmul.f32 -0.5, %v13892_v60 }
 0x49a   : > { %v13887_v51 = vpop.f32.mrb[73].mxu0  ;;  %v5025_v9 = vsel %vm5024_vm14, %v5022_v19, %v5019_v14  ;;  %v13927_v53 = vpop.eup %9556  ;;  %v5026_v32 = vadd.f32 1.0, %v13916_v27  ;;  %v4713_v14 = vsub.f32 0.0, %v4649_v11  ;;  %v13942_v19 = vadd.f32 %v13800_v62, %v13836_v40 }
 0x49b   : > { %17809 = vst [vmem:[#allocation51_spill] sm:$0xff] %v13896_v36  ;;  %v13903_v18 = vadd.f32 %v5025_v9, %v4553_v33  ;;  %9564 = vpow2.f32 %v4823_v28  ;;  %v9559_v29 = vpop.eup %9558  ;;  %v5011_v9 = vmul.f32 -0.5, %v13864_v55  ;;  %v4886_v11 = vadd.f32 1.0, %v4885_v58 }
 0x49c   : > { %v13890_v2 = vpop.f32.mrb[72].mxu1  ;;  %9566 = vlog2.f32 %v5143_v0  ;;  %v4869_v0 = vmul.f32 %v13847_v45, %v4868_v43  ;;  %v4827_v62 = vmul.f32 1.442695, %v4713_v14  ;;  %v4866_v33 = vmul.f32 0.6931472, %v9559_v29 }
 0x49d   : > { %v13898_v23 = vpop.f32.mrb[73].mxu1  ;;  %17811 = vst [vmem:[#allocation39_spill] sm:$0xff] %v13903_v18  ;;  %9568 = vpow2.f32 %v4793_v3  ;;  %v5029_v46 = vmul.f32 -0.5, %v13916_v27  ;;  %vm13957_vm2 = vcmp.lt.f32.partialorder %v4888_v52, 0.0004427343  ;;  %v13964_v50 = vadd.f32 %v13882_v59, %v13769_v56 }
 0x49e   : > { %v13905_v16 = vpop.f32.mrb[74].mxu0  ;;  %v9561_v28 = vpop.eup %9560  ;;  %9570 = vpow2.f32 %v4797_v57  ;;  %v4648_v3 = vand.u32 2147483647, %v13942_v19  ;;  %v5012_v58 = vadd.f32 1.0, %v5011_v9  ;;  %v5014_v57 = vand.u32 2147483647, %v13864_v55 }
 0x49f   : > { %v13914_v4 = vpop.f32.mrb[75].mxu0  ;;  %9572 = vlog2.f32 %v5026_v32  ;;  %v5161_v29 = vadd.f32 1.0, %v13927_v53  ;;  %v13974_v32 = vadd.f32 %v13890_v2, %v13769_v56  ;;  %v4884_v59 = vmul.f32 0.6931472, %v9561_v28 }
 0x4a0   : > { %v13922_v35 = vpop.f32.mrb[74].mxu1  ;;  %9574 = vpow2.f32 %v4827_v62  ;;  %v4887_v10 = vmul.f32 %v13855_v15, %v4886_v11  ;;  %v5032_v47 = vand.u32 2147483647, %v13916_v27  ;;  %v5164_v9 = vmul.f32 -0.5, %v13927_v53 }
 0x4a1   : > { %v13925_v49 = vpop.f32.mrb[75].mxu1  ;;  %v9563_v62 = vpop.eup %9562  ;;  %v4872_v2 = vsel %vm13946_vm15, %v4869_v0, %v4866_v33  ;;  %v5030_v42 = vadd.f32 1.0, %v5029_v46  ;;  %v5147_v8 = vadd.f32 1.0, %v5146_v25  ;;  %v5149_v17 = vand.u32 2147483647, %v13892_v60 }
 0x4a2   : > { %v13931_v12 = vpop.f32.mrb[76].mxu0  ;;  %v4712_v15 = vsub.f32 0.0, %v4648_v3  ;;  %v13995_v11 = vadd.f32 %v13810_v48, %v13836_v40  ;;  %v4603_v18 = vand.u32 2147483647, %v13964_v50  ;;  %vm14000_vm3 = vcmp.lt.f32.partialorder %v5014_v57, 0.0004427343 }
 0x4a3   : > { %v13937_v5 = vpop.f32.mrb[77].mxu0  ;;  %9576 = vlog2.f32 %v5161_v29  ;;  %v4605_v33 = vand.u32 2147483647, %v13974_v32  ;;  %v4890_v48 = vsel %vm13957_vm2, %v4887_v10, %v4884_v59  ;;  %v5010_v3 = vmul.f32 0.6931472, %v9563_v62 }
 0x4a4   : > { %v13944_v54 = vpop.f32.mrb[76].mxu1  ;;  %v5165_v36 = vadd.f32 1.0, %v5164_v9  ;;  %v5013_v25 = vmul.f32 %v13864_v55, %v5012_v58  ;;  %vm14022_vm4 = vcmp.lt.f32.partialorder %v5149_v17, 0.0004427343  ;;  %v5148_v62 = vmul.f32 %v13892_v60, %v5147_v8 }
 0x4a5   : > { %v13952_v44 = vpop.f32.mrb[77].mxu1  ;;  %v13985_v22 = vpop.eup %9564  ;;  %v4825_v59 = vmul.f32 1.442695, %v4712_v15  ;;  %vm14038_vm5 = vcmp.lt.f32.partialorder %v5032_v47, 0.0004427343  ;;  %v4669_v8 = vsub.f32 0.0, %v4605_v33  ;;  %v14056_v15 = vadd.f32 %v13887_v51, %v13769_v56 }
 0x4a6   : > { %v13966_v45 = vpop.f32.mrb[78].mxu0  ;;  %v5287_v28 = vadd.f32 1.0, %v13985_v22  ;;  %v9567_v46 = vpop.eup %9566  ;;  %v5167_v58 = vand.u32 2147483647, %v13927_v53  ;;  %v14064_v6 = vadd.f32 %v13905_v16, %v13778_v30  ;;  %v14070_v51 = vadd.f32 %v13898_v23, %v13769_v56 }
 0x4a7   : > { %v13976_v52 = vpop.f32.mrb[79].mxu0  ;;  %v14012_v57 = vpop.eup %9568  ;;  %v4739_v16 = vmul.f32 1.442695, %v4669_v8  ;;  %v5293_v23 = vand.u32 2147483647, %v13985_v22 }
 0x4a8   : > { %v13968_v43 = vpop.f32.mrb[78].mxu1  ;;  %9578 = vlog2.f32 %v5287_v28  ;;  %v14028_v34 = vpop.eup %9570  ;;  %v5152_v47 = vadd.f32 1.0, %v14012_v57  ;;  %vm14074_vm6 = vcmp.lt.f32.partialorder %v5167_v58, 0.0004427343 }
 0x4a9   : > { %v13978_v14 = vpop.f32.mrb[79].mxu1  ;;  %v9573_v55 = vpop.eup %9572  ;;  %v5170_v33 = vadd.f32 1.0, %v14028_v34  ;;  %9580 = vpow2.f32 %v4825_v59  ;;  %v17836_v59 = vmax.f32 %v13798_v26, 0.0  ;;  %vm5294_vm8 = vcmp.lt.f32.partialorder %v5293_v23, 0.0004427343 }
 0x4aa   : > { %17816 = vst [vmem:[#allocation46_spill] sm:$0xff] %v13978_v14  ;;  %v13983_v21 = vpop.f32.mrb[80].mxu0  ;;  %v14020_v14 = vmul.f32 %v13916_v27, %v5030_v42  ;;  %v17826_v42 = vmax.f32 %v13788_v38, 0.0  ;;  %v14046_v28 = vpop.eup %9574  ;;  %v14051_v38 = vmul.f32 %v13927_v53, %v5165_v36 }
 0x4ab   : > { %v13990_v20 = vpop.f32.mrb[81].mxu0  ;;  %v5308_v26 = vmul.f32 -0.5, %v14046_v28 }
 0x4ac   : > { %17817 = vst [vmem:[#allocation43_spill] sm:$0xff] %v13990_v20  ;;  %v13998_v39 = vpop.f32.mrb[80].mxu1  ;;  %v14036_v27 = vadd.f32 %v4890_v48, %v17826_v42  ;;  %v5145_v42 = vmul.f32 0.6931472, %v9567_v46  ;;  %v5028_v46 = vmul.f32 0.6931472, %v9573_v55 }
 0x4ad   : > { %17818 = vst [vmem:[#allocation54_spill] sm:$0xff] %v13998_v39  ;;  %v14006_v0 = vpop.f32.mrb[81].mxu1  ;;  %v17822_v39 = vmax.f32 %v13782_v37, 0.0  ;;  %v4650_v37 = vand.u32 2147483647, %v13995_v11 }
 0x4ae   : > { %17821 = vst [vmem:[#allocation20_spill] sm:$0xff] %v14006_v0  ;;  %v14010_v20 = vpop.f32.mrb[82].mxu0  ;;  %17827 = vst [vmem:[#allocation22_spill] sm:$0xff] %v14036_v27  ;;  %v5305_v27 = vadd.f32 1.0, %v14046_v28  ;;  %v5151_v55 = vsel %vm14022_vm4, %v5148_v62, %v5145_v42  ;;  %v14099_v62 = vadd.f32 %v13922_v35, %v13778_v30 }
 0x4af   : > { %v14016_v29 = vadd.f32 %v4872_v2, %v17822_v39  ;;  %v14026_v10 = vpop.f32.mrb[83].mxu0  ;;  %v4667_v39 = vsub.f32 0.0, %v4603_v18  ;;  %v5290_v2 = vmul.f32 -0.5, %v13985_v22  ;;  %v5016_v18 = vsel %vm14000_vm3, %v5013_v25, %v5010_v3 }
 0x4b0   : > { %v14032_v9 = vpop.f32.mrb[82].mxu1  ;;  %v4714_v36 = vsub.f32 0.0, %v4650_v37  ;;  %9582 = vlog2.f32 %v5305_v27  ;;  %v14082_v37 = vadd.f32 %v5016_v18, %v17836_v59  ;;  %v4619_v27 = vand.u32 2147483647, %v14064_v6 }
 0x4b1   : > { %17823 = vst [vmem:[#allocation23_spill] sm:$0xff] %v14016_v29  ;;  %v14044_v60 = vpop.f32.mrb[83].mxu1  ;;  %v4735_v53 = vmul.f32 1.442695, %v4667_v39  ;;  %9584 = vlog2.f32 %v5152_v47  ;;  %v4604_v39 = vand.u32 2147483647, %v14056_v15 }
 0x4b2   : > { %17830 = vst [vmem:[#allocation25_spill] sm:$0xff] %v14044_v60  ;;  %v14058_v48 = vpop.f32.mrb[84].mxu0  ;;  %17837 = vst [vmem:[#allocation59_spill] sm:$0xff] %v14082_v37  ;;  %9586 = vlog2.f32 %v5170_v33  ;;  %v4829_v18 = vmul.f32 1.442695, %v4714_v36  ;;  %v5034_v36 = vsel %vm14038_vm5, %v14020_v14, %v5028_v46  ;;  %v5309_v14 = vadd.f32 1.0, %v5308_v26 }
 0x4b3   : > { %17831 = vst [vmem:[#allocation35_spill] sm:$0xff] %v14058_v48  ;;  %v14066_v25 = vpop.f32.mrb[85].mxu0  ;;  %v5291_v48 = vadd.f32 1.0, %v5290_v2  ;;  %9588 = vpow2.f32 %v4735_v53  ;;  %v4606_v47 = vand.u32 2147483647, %v14070_v51  ;;  %v4668_v58 = vsub.f32 0.0, %v4604_v39 }
 0x4b4   : > { %17832 = vst [vmem:[#allocation24_spill] sm:$0xff] %v14066_v25  ;;  %v14072_v3 = vpop.f32.mrb[84].mxu1  ;;  %v9577_v25 = vpop.eup %9576  ;;  %9590 = vpow2.f32 %v4739_v16  ;;  %v17849_v46 = vmax.f32 %v13815_v61, 0.0  ;;  %v4621_v39 = vand.u32 2147483647, %v14099_v62  ;;  %v5155_v26 = vmul.f32 -0.5, %v14012_v57 }
 0x4b5   : > { %v14078_v60 = vpop.f32.mrb[85].mxu1  ;;  %v9579_v8 = vpop.eup %9578  ;;  %v5292_v0 = vmul.f32 %v13985_v22, %v5291_v48  ;;  %v5163_v53 = vmul.f32 0.6931472, %v9577_v25  ;;  %v17843_v22 = vmax.f32 %v13808_v7, 0.0  ;;  %9592 = vpow2.f32 %v4829_v18 }
 0x4b6   : > { %17835 = vst [vmem:[#allocation53_spill] sm:$0xff] %v14078_v60  ;;  %v14090_v2 = vpop.f32.mrb[86].mxu0  ;;  %v5289_v37 = vmul.f32 0.6931472, %v9579_v8  ;;  %v4683_v8 = vsub.f32 0.0, %v4619_v27  ;;  %v4670_v17 = vsub.f32 0.0, %v4606_v47  ;;  %v14125_v7 = vadd.f32 %v5034_v36, %v17849_v46 }
 0x4b7   : > { %17838 = vst [vmem:[#allocation29_spill] sm:$0xff] %v14090_v2  ;;  %v14101_v42 = vpop.f32.mrb[87].mxu0  ;;  %v14112_v48 = vadd.f32 %v5151_v55, %v17843_v22  ;;  %v5169_v27 = vsel %vm14074_vm6, %v14051_v38, %v5163_v53  ;;  %v4737_v18 = vmul.f32 1.442695, %v4668_v58  ;;  %v5310_v29 = vmul.f32 %v14046_v28, %v5309_v14 }
 0x4b8   : > { %v14094_v59 = vpop.f32.mrb[86].mxu1  ;;  %17840 = vst [vmem:[#allocation56_spill] sm:$0xff] %v14101_v42  ;;  %v5295_v16 = vsel %vm5294_vm8, %v5292_v0, %v5289_v37  ;;  %17850 = vst [vmem:[#allocation38_spill] sm:$0xff] %v14125_v7  ;;  %v5311_v37 = vand.u32 2147483647, %v14046_v28  ;;  %v17854_v61 = vmax.f32 %v13822_v13, 0.0 }
 0x4b9   : > { %17839 = vst [vmem:[#allocation55_spill] sm:$0xff] %v14094_v59  ;;  %v14103_v33 = vpop.f32.mrb[87].mxu1  ;;  %17844 = vst [vmem:[#allocation33_spill] sm:$0xff] %v14112_v48  ;;  %v4741_v53 = vmul.f32 1.442695, %v4670_v17  ;;  %v4685_v36 = vsub.f32 0.0, %v4621_v39  ;;  %9594 = vpow2.f32 %v4737_v18  ;;  %v14172_v18 = vadd.f32 %v13931_v12, %v13802_v63 }
 0x4ba   : > { %17841 = vst [vmem:[#allocation27_spill] sm:$0xff] %v14103_v33  ;;  %v14108_v59 = vpop.f32.mrb[88].mxu0  ;;  %v17846_v33 = vmax.f32 %v13845_v31, 0.0  ;;  %v14132_v31 = vpop.eup %9580  ;;  %v14151_v48 = vadd.f32 %v5169_v27, %v17854_v61  ;;  %vm5312_vm9 = vcmp.lt.f32.partialorder %v5311_v37, 0.0004427343  ;;  %v17857_v13 = vmax.f32 %v13912_v41, 0.0 }
 0x4bb   : > { %17842 = vst [vmem:[#allocation34_spill] sm:$0xff] %v14108_v59  ;;  %v14115_v42 = vpop.f32.mrb[89].mxu0  ;;  %v9583_v0 = vpop.eup %9582  ;;  %v5176_v28 = vand.u32 2147483647, %v14028_v34  ;;  %v4771_v61 = vmul.f32 1.442695, %v4685_v36 }
 0x4bc   : > { %17845 = vst [vmem:[#allocation28_spill] sm:$0xff] %v14115_v42  ;;  %v14119_v2 = vadd.f32 %v5295_v16, %v17846_v33  ;;  %v14121_v25 = vpop.f32.mrb[88].mxu1  ;;  %v5173_v33 = vmul.f32 -0.5, %v14028_v34  ;;  %v4767_v16 = vmul.f32 1.442695, %v4683_v8  ;;  %v9585_v46 = vpop.eup %9584  ;;  %17855 = vst [vmem:[#allocation41_spill] sm:$0xff] %v14151_v48 }
 0x4bd   : > { %17848 = vst [vmem:[#allocation30_spill] sm:$0xff] %v14121_v25  ;;  %v14130_v55 = vpop.f32.mrb[89].mxu1  ;;  %v5307_v23 = vmul.f32 0.6931472, %v9583_v0  ;;  %v9587_v58 = vpop.eup %9586  ;;  %v5156_v0 = vadd.f32 1.0, %v5155_v26  ;;  %v5296_v39 = vadd.f32 1.0, %v14132_v31 }
 0x4be   : > { %17847 = vst [vmem:[#allocation36_spill] sm:$0xff] %v14119_v2  ;;  %17851 = vst [vmem:[#allocation26_spill] sm:$0xff] %v14130_v55  ;;  %v14140_v47 = vpop.f32.mrb[90].mxu0  ;;  %v5158_v2 = vand.u32 2147483647, %v14012_v57  ;;  %v14156_v8 = vpop.eup %9588  ;;  %v5174_v38 = vadd.f32 1.0, %v5173_v33  ;;  %9596 = vpow2.f32 %v4767_v16 }
 0x4bf   : > { %17852 = vst [vmem:[#allocation31_spill] sm:$0xff] %v14140_v47  ;;  %v14154_v22 = vpop.f32.mrb[91].mxu0  ;;  %v5313_v14 = vsel %vm5312_vm9, %v5310_v29, %v5307_v23  ;;  %v14159_v17 = vpop.eup %9590  ;;  %v5154_v37 = vmul.f32 0.6931472, %v9585_v46  ;;  %9598 = vpow2.f32 %v4741_v53  ;;  %v4891_v23 = vadd.f32 1.0, %v14156_v8 }
 0x4c0   : > { %v14147_v35 = vpop.f32.mrb[90].mxu1  ;;  %17856 = vst [vmem:[#allocation50_spill] sm:$0xff] %v14154_v22  ;;  %v14163_v27 = vadd.f32 %v5313_v14, %v17857_v13  ;;  %v5299_v22 = vmul.f32 -0.5, %v14132_v31  ;;  %9600 = vpow2.f32 %v4771_v61  ;;  %v14176_v33 = vpop.eup %9592  ;;  %v5157_v36 = vmul.f32 %v14012_v57, %v5156_v0 }
 0x4c1   : > { %17853 = vst [vmem:[#allocation58_spill] sm:$0xff] %v14147_v35  ;;  %v14174_v41 = vpop.f32.mrb[91].mxu1  ;;  %vm14179_vm10 = vcmp.lt.f32.partialorder %v5158_v2, 0.0004427343  ;;  %v5172_v46 = vmul.f32 0.6931472, %v9587_v58  ;;  %v5175_v53 = vmul.f32 %v14028_v34, %v5174_v38  ;;  %v14192_v13 = vadd.f32 %v13914_v4, %v13778_v30 }
 0x4c2   : > { %17858 = vst [vmem:[#allocation32_spill] sm:$0xff] %v14163_v27  ;;  %17859 = vst [vmem:[#allocation37_spill] sm:$0xff] %v14174_v41  ;;  %v4909_v29 = vadd.f32 1.0, %v14159_v17  ;;  %vm14185_vm11 = vcmp.lt.f32.partialorder %v5176_v28, 0.0004427343  ;;  %v5160_v57 = vsel %vm14179_vm10, %v5157_v36, %v5154_v37  ;;  %9602 = vlog2.f32 %v5296_v39  ;;  %v14245_v48 = vpop.f32.mrb[92].mxu0 }
 0x4c3   : > { %v5300_v2 = vadd.f32 1.0, %v5299_v22  ;;  %v14198_v58 = vadd.f32 %v13925_v49, %v13778_v30  ;;  %v5317_v34 = vmul.f32 -0.5, %v14176_v33  ;;  %9604 = vlog2.f32 %v4891_v23  ;;  %v14213_v23 = vpop.eup %9594  ;;  %17868 = vst [vmem:[#allocation49_spill] sm:$0xff] %v14245_v48 }
 0x4c4   : > { %v4635_v38 = vand.u32 2147483647, %v14172_v18  ;;  %v14204_v0 = vadd.f32 %v13944_v54, %v13802_v63  ;;  %v5178_v4 = vsel %vm14185_vm11, %v5175_v53, %v5172_v46  ;;  %v4894_v28 = vmul.f32 -0.5, %v14156_v8  ;;  %v14247_v27 = vpop.f32.mrb[92].mxu1 }
 0x4c5   : > { %9606 = vlog2.f32 %v4909_v29  ;;  %v5314_v49 = vadd.f32 1.0, %v14176_v33  ;;  %v4620_v37 = vand.u32 2147483647, %v14192_v13  ;;  %v17864_v54 = vmax.f32 %v13834_v24, 0.0  ;;  %17869 = vst [vmem:[#allocation48_spill] sm:$0xff] %v14247_v27 }
 0x4c6   : > { %v4699_v39 = vsub.f32 0.0, %v4635_v38  ;;  %v14220_v16 = vmul.f32 %v14132_v31, %v5300_v2  ;;  %v5302_v46 = vand.u32 2147483647, %v14132_v31  ;;  %v4622_v29 = vand.u32 2147483647, %v14198_v58 }
 0x4c7   : > { %v14217_v36 = vadd.f32 %v5160_v57, %v17864_v54  ;;  %v17866_v14 = vmax.f32 %v13840_v1, 0.0  ;;  %v5318_v38 = vadd.f32 1.0, %v5317_v34  ;;  %v4637_v61 = vand.u32 2147483647, %v14204_v0 }
 0x4c8   : > { %v14224_v53 = vpop.eup %9596  ;;  %v4799_v12 = vmul.f32 1.442695, %v4699_v39  ;;  %v4895_v57 = vadd.f32 1.0, %v4894_v28  ;;  %v4897_v2 = vand.u32 2147483647, %v14156_v8  ;;  %v4912_v54 = vmul.f32 -0.5, %v14159_v17 }
 0x4c9   : > { %17865 = vst [vmem:[#allocation57_spill] sm:$0xff] %v14217_v36  ;;  %v14228_v26 = vadd.f32 %v5178_v4, %v17866_v14  ;;  %v14231_v24 = vpop.eup %9598  ;;  %v5035_v31 = vadd.f32 1.0, %v14224_v53  ;;  %9608 = vlog2.f32 %v5314_v49  ;;  %v5320_v1 = vand.u32 2147483647, %v14176_v33  ;;  %v14265_v36 = vpop.f32.mrb[93].mxu1 }
 0x4ca   : > { %v14236_v22 = vpop.eup %9600  ;;  %v4915_v4 = vand.u32 2147483647, %v14159_v17  ;;  %v4684_v34 = vsub.f32 0.0, %v4620_v37  ;;  %v4686_v14 = vsub.f32 0.0, %v4622_v29  ;;  %v14243_v28 = vadd.f32 %v13937_v5, %v13802_v63  ;;  %v14257_v29 = vpop.f32.mrb[93].mxu0  ;;  %17875 = vst [vmem:[#allocation16_spill] sm:$0xff] %v14265_v36 }
 0x4cb   : > { %17867 = vst [vmem:[#allocation47_spill] sm:$0xff] %v14228_v26  ;;  %9610 = vlog2.f32 %v5035_v31  ;;  %v5053_v39 = vadd.f32 1.0, %v14236_v22  ;;  %vm14249_vm12 = vcmp.lt.f32.partialorder %v5302_v46, 0.0004427343  ;;  %v14254_v49 = vmul.f32 %v14176_v33, %v5318_v38  ;;  %17872 = vst [vmem:[#allocation44_spill] sm:$0xff] %v14257_v29  ;;  %v14309_v26 = vpop.f32.mrb[94].mxu1 }
 0x4cc   : > { %v4900_v37 = vadd.f32 1.0, %v14213_v23  ;;  %9612 = vpow2.f32 %v4799_v12  ;;  %v4701_v31 = vsub.f32 0.0, %v4637_v61  ;;  %v9603_v41 = vpop.eup %9602  ;;  %v4896_v5 = vmul.f32 %v14156_v8, %v4895_v57 }
 0x4cd   : > { %vm14260_vm13 = vcmp.lt.f32.partialorder %v4897_v2, 0.0004427343  ;;  %v4913_v46 = vadd.f32 1.0, %v4912_v54  ;;  %v4918_v27 = vadd.f32 1.0, %v14231_v24  ;;  %9614 = vlog2.f32 %v5053_v39  ;;  %v9605_v33 = vpop.eup %9604 }
 0x4ce   : > { %v4903_v38 = vmul.f32 -0.5, %v14213_v23  ;;  %v5038_v12 = vmul.f32 -0.5, %v14224_v53  ;;  %v4769_v61 = vmul.f32 1.442695, %v4684_v34  ;;  %v14271_v29 = vadd.f32 %v13952_v44, %v13802_v63 }
 0x4cf   : > { %v9607_v8 = vpop.eup %9606  ;;  %vm14273_vm14 = vcmp.lt.f32.partialorder %v4915_v4, 0.0004427343  ;;  %v4773_v2 = vmul.f32 1.442695, %v4686_v14  ;;  %v4636_v54 = vand.u32 2147483647, %v14243_v28  ;;  %v14280_v39 = vadd.f32 %v13966_v45, %v13836_v40 }
 0x4d0   : > { %9616 = vlog2.f32 %v4900_v37  ;;  %v5056_v36 = vmul.f32 -0.5, %v14236_v22  ;;  %v4803_v34 = vmul.f32 1.442695, %v4701_v31  ;;  %v14285_v44 = vadd.f32 %v13968_v43, %v13836_v40 }
 0x4d1   : > { %v5298_v35 = vmul.f32 0.6931472, %v9603_v41  ;;  %v4906_v4 = vand.u32 2147483647, %v14213_v23  ;;  %9618 = vlog2.f32 %v4918_v27  ;;  %v4638_v14 = vand.u32 2147483647, %v14271_v29 }
 0x4d2   : > { %v4893_v55 = vmul.f32 0.6931472, %v9605_v33  ;;  %v4911_v47 = vmul.f32 0.6931472, %v9607_v8  ;;  %v5039_v42 = vadd.f32 1.0, %v5038_v12  ;;  %9620 = vpow2.f32 %v4769_v61  ;;  %v14293_v27 = vpop.f32.mrb[94].mxu0 }
 0x4d3   : > { %v5041_v45 = vand.u32 2147483647, %v14224_v53  ;;  %9622 = vpow2.f32 %v4773_v2  ;;  %v4700_v37 = vsub.f32 0.0, %v4636_v54  ;;  %v4651_v31 = vand.u32 2147483647, %v14280_v39  ;;  %v9609_v25 = vpop.eup %9608  ;;  %17878 = vst [vmem:[#allocation45_spill] sm:$0xff] %v14293_v27 }
 0x4d4   : > { %v4914_v43 = vmul.f32 %v14159_v17, %v4913_v46  ;;  %v5057_v59 = vadd.f32 1.0, %v5056_v36  ;;  %9624 = vpow2.f32 %v4803_v34  ;;  %v4653_v41 = vand.u32 2147483647, %v14285_v44  ;;  %v14326_v57 = vpop.f32.mrb[95].mxu0 }
 0x4d5   : > { %v9611_v7 = vpop.eup %9610  ;;  %v5304_v33 = vsel %vm14249_vm12, %v14220_v16, %v5298_v35  ;;  %v4904_v12 = vadd.f32 1.0, %v4903_v38  ;;  %v5059_v61 = vand.u32 2147483647, %v14236_v22  ;;  %v4702_v8 = vsub.f32 0.0, %v4638_v14 }
 0x4d6   : > { %v14299_v2 = vpop.eup %9612  ;;  %vm14301_vm15 = vcmp.lt.f32.partialorder %v5320_v1, 0.0004427343  ;;  %v4899_v17 = vsel %vm14260_vm13, %v4896_v5, %v4893_v55  ;;  %v4921_v36 = vmul.f32 -0.5, %v14231_v24  ;;  %v5037_v46 = vmul.f32 0.6931472, %v9611_v7 }
 0x4d7   : > { %v5040_v34 = vmul.f32 %v14224_v53, %v5039_v42  ;;  %v9615_v35 = vpop.eup %9614  ;;  %v4917_v16 = vsel %vm14273_vm14, %v4914_v43, %v4911_v47  ;;  %vm5042_vm2 = vcmp.lt.f32.partialorder %v5041_v45, 0.0004427343  ;;  %v4801_v38 = vmul.f32 1.442695, %v4700_v37 }
 0x4d8   : > { %v4715_v1 = vsub.f32 0.0, %v4651_v31  ;;  %v5055_v27 = vmul.f32 0.6931472, %v9615_v35  ;;  %v5058_v60 = vmul.f32 %v14236_v22, %v5057_v59  ;;  %v4717_v48 = vsub.f32 0.0, %v4653_v41 }
 0x4d9   : > { %v5043_v14 = vsel %vm5042_vm2, %v5040_v34, %v5037_v46  ;;  %v17881_v55 = vmax.f32 %v13964_v50, 0.0  ;;  %vm14318_vm3 = vcmp.lt.f32.partialorder %v4906_v4, 0.0004427343  ;;  %v17885_v7 = vmax.f32 %v14064_v6, 0.0 }
 0x4da   : > { %vm5060_vm4 = vcmp.lt.f32.partialorder %v5059_v61, 0.0004427343  ;;  %v4805_v47 = vmul.f32 1.442695, %v4702_v8  ;;  %v9617_v45 = vpop.eup %9616  ;;  %v5316_v37 = vmul.f32 0.6931472, %v9609_v25  ;;  %v14341_v8 = vadd.f32 %v13976_v52, %v13836_v40 }
 0x4db   : > { %v14316_v5 = vadd.f32 %v4899_v17, %v17881_v55  ;;  %v14324_v53 = vadd.f32 %v5043_v14, %v17885_v7  ;;  %v17887_v59 = vmax.f32 %v13974_v32, 0.0  ;;  %v5061_v50 = vsel %vm5060_vm4, %v5058_v60, %v5055_v27  ;;  %v9619_v31 = vpop.eup %9618 }
 0x4dc   : > { %v5179_v4 = vadd.f32 1.0, %v14299_v2  ;;  %v17889_v6 = vmax.f32 %v14099_v62, 0.0  ;;  %v4831_v61 = vmul.f32 1.442695, %v4715_v1  ;;  %v14343_v25 = vpop.eup %9620  ;;  %v4905_v32 = vmul.f32 %v14213_v23, %v4904_v12 }
 0x4dd   : > { %17882 = vst [vmem:[#allocation18_spill] sm:$0xff] %v14316_v5  ;;  %17886 = vst [vmem:[#allocation21_spill] sm:$0xff] %v14324_v53  ;;  %v14330_v22 = vadd.f32 %v4917_v16, %v17887_v59  ;;  %v4922_v60 = vadd.f32 1.0, %v4921_v36  ;;  %9626 = vpow2.f32 %v4801_v38  ;;  %v4835_v27 = vmul.f32 1.442695, %v4717_v48  ;;  %v14346_v17 = vpop.eup %9622  ;;  %v14363_v36 = vpop.f32.mrb[95].mxu1 }
 0x4de   : > { %v14337_v41 = vadd.f32 %v5061_v50, %v17889_v6  ;;  %v17891_v46 = vmax.f32 %v13942_v19, 0.0  ;;  %v4924_v62 = vand.u32 2147483647, %v14231_v24  ;;  %9628 = vpow2.f32 %v4805_v47  ;;  %v14355_v52 = vpop.eup %9624  ;;  %17892 = vst [vmem:[#allocation19_spill] sm:$0xff] %v14363_v36  ;;  %v17904_v59 = vld [vmem:[#allocation43_spill] sm:$0xff] }
 0x4df   : > { %17888 = vst [vmem:[#allocation52_spill] sm:$0xff] %v14330_v22  ;;  %v4902_v16 = vmul.f32 0.6931472, %v9617_v45  ;;  %v4920_v1 = vmul.f32 0.6931472, %v9619_v31  ;;  %9630 = vlog2.f32 %v5179_v4  ;;  %v5322_v12 = vsel %vm14301_vm15, %v14254_v49, %v5316_v37 }
 0x4e0   : > { %17890 = vst [vmem:[#allocation17_spill] sm:$0xff] %v14337_v41  ;;  %v14350_v34 = vadd.f32 %v5304_v33, %v17891_v46  ;;  %v5044_v19 = vadd.f32 1.0, %v14343_v25  ;;  %9632 = vpow2.f32 %v4831_v61  ;;  %v4652_v33 = vand.u32 2147483647, %v14341_v8 }
 0x4e1   : > { %v4923_v38 = vmul.f32 %v14231_v24, %v4922_v60  ;;  %v5047_v14 = vmul.f32 -0.5, %v14343_v25  ;;  %v5065_v48 = vmul.f32 -0.5, %v14346_v17  ;;  %9634 = vpow2.f32 %v4835_v27  ;;  %v17896_v60 = vld [vmem:[#allocation46_spill] sm:$0xff] }
 0x4e2   : > { %vm14368_vm5 = vcmp.lt.f32.partialorder %v4924_v62, 0.0004427343  ;;  %v5197_v7 = vadd.f32 1.0, %v14355_v52  ;;  %v17895_v47 = vmax.f32 %v13995_v11, 0.0  ;;  %v4908_v24 = vsel %vm14318_vm3, %v4905_v32, %v4902_v16 }
 0x4e3   : > { %v4926_v37 = vsel %vm14368_vm5, %v4923_v38, %v4920_v1  ;;  %9636 = vlog2.f32 %v5044_v19  ;;  %v5062_v50 = vadd.f32 1.0, %v14346_v17  ;;  %v4716_v4 = vsub.f32 0.0, %v4652_v33  ;;  %v17901_v33 = vld [vmem:[#allocation54_spill] sm:$0xff] }
 0x4e4   : > { %v14377_v45 = vadd.f32 %v5322_v12, %v17895_v47  ;;  %v14387_v31 = vadd.f32 %v13983_v21, %v13769_v56  ;;  %v5048_v6 = vadd.f32 1.0, %v5047_v14  ;;  %v5066_v11 = vadd.f32 1.0, %v5065_v48 }
 0x4e5   : > { %v5182_v61 = vmul.f32 -0.5, %v14299_v2  ;;  %v5185_v32 = vand.u32 2147483647, %v14299_v2  ;;  %9638 = vlog2.f32 %v5197_v7  ;;  %v14394_v27 = vadd.f32 %v17896_v60, %v13836_v40 }
 0x4e6   : > { %v4607_v46 = vand.u32 2147483647, %v14387_v31  ;;  %v17897_v21 = vmax.f32 %v14056_v15, 0.0  ;;  %v17899_v1 = vmax.f32 %v14070_v51, 0.0  ;;  %v14410_v38 = vadd.f32 %v17901_v33, %v13769_v56 }
 0x4e7   : > { %v14397_v62 = vpop.eup %9626  ;;  %v5050_v48 = vand.u32 2147483647, %v14343_v25  ;;  %9640 = vlog2.f32 %v5062_v50  ;;  %v4833_v55 = vmul.f32 1.442695, %v4716_v4  ;;  %v14416_v47 = vmul.f32 %v14343_v25, %v5048_v6 }
 0x4e8   : > { %v14401_v16 = vadd.f32 %v4908_v24, %v17897_v21  ;;  %v14405_v12 = vadd.f32 %v4926_v37, %v17899_v1  ;;  %v14412_v14 = vpop.eup %9628  ;;  %v4671_v7 = vsub.f32 0.0, %v4607_v46  ;;  %v5068_v51 = vand.u32 2147483647, %v14346_v17 }
 0x4e9   : > { %v9631_v15 = vpop.eup %9630  ;;  %v5183_v24 = vadd.f32 1.0, %v5182_v61  ;;  %v14423_v21 = vmul.f32 %v14346_v17, %v5066_v11  ;;  %vm14425_vm6 = vcmp.lt.f32.partialorder %v5185_v32, 0.0004427343  ;;  %v4654_v50 = vand.u32 2147483647, %v14394_v27 }
 0x4ea   : > { %17898 = vst [vmem:[#allocation46_spill] sm:$0xff] %v14401_v16  ;;  %17900 = vst [vmem:[#allocation60_spill] sm:$0xff] %v14405_v12  ;;  %v14420_v60 = vpop.eup %9632  ;;  %v4609_v4 = vand.u32 2147483647, %v14410_v38  ;;  %v5200_v6 = vmul.f32 -0.5, %v14355_v52  ;;  %v5188_v17 = vadd.f32 1.0, %v14397_v62  ;;  %9642 = vpow2.f32 %v4833_v55 }
 0x4eb   : > { %v14431_v25 = vpop.eup %9634  ;;  %v5203_v61 = vand.u32 2147483647, %v14355_v52  ;;  %v5323_v46 = vadd.f32 1.0, %v14420_v60  ;;  %v4743_v33 = vmul.f32 1.442695, %v4671_v7  ;;  %v5191_v11 = vmul.f32 -0.5, %v14397_v62 }
 0x4ec   : > { %v5341_v32 = vadd.f32 1.0, %v14431_v25  ;;  %v5181_v35 = vmul.f32 0.6931472, %v9631_v15  ;;  %v5184_v43 = vmul.f32 %v14299_v2, %v5183_v24  ;;  %v5206_v42 = vadd.f32 1.0, %v14412_v14 }
 0x4ed   : > { %9644 = vlog2.f32 %v5323_v46  ;;  %v9637_v49 = vpop.eup %9636  ;;  %v4718_v23 = vsub.f32 0.0, %v4654_v50  ;;  %v4673_v37 = vsub.f32 0.0, %v4609_v4  ;;  %v14443_v7 = vadd.f32 %v17904_v59, %v13769_v56 }
 0x4ee   : > { %9646 = vlog2.f32 %v5341_v32  ;;  %v5201_v19 = vadd.f32 1.0, %v5200_v6  ;;  %vm14445_vm8 = vcmp.lt.f32.partialorder %v5203_v61, 0.0004427343  ;;  %v5192_v15 = vadd.f32 1.0, %v5191_v11  ;;  %v17907_v6 = vld [vmem:[#allocation20_spill] sm:$0xff] }
 0x4ef   : > { %9648 = vpow2.f32 %v4743_v33  ;;  %v9639_v2 = vpop.eup %9638  ;;  %v5326_v24 = vmul.f32 -0.5, %v14420_v60  ;;  %v5344_v50 = vmul.f32 -0.5, %v14431_v25  ;;  %v14452_v4 = vmul.f32 0.6931472, %v9637_v49 }
 0x4f0   : > { %9650 = vlog2.f32 %v5188_v17  ;;  %v5209_v59 = vmul.f32 -0.5, %v14412_v14  ;;  %v4747_v46 = vmul.f32 1.442695, %v4673_v37  ;;  %v14457_v61 = vadd.f32 %v17907_v6, %v13769_v56 }
 0x4f1   : > { %v9641_v32 = vpop.eup %9640  ;;  %v5187_v33 = vsel %vm14425_vm6, %v5184_v43, %v5181_v35  ;;  %9652 = vlog2.f32 %v5206_v42  ;;  %v4837_v17 = vmul.f32 1.442695, %v4718_v23  ;;  %v4608_v11 = vand.u32 2147483647, %v14443_v7 }
 0x4f2   : > { %v5199_v55 = vmul.f32 0.6931472, %v9639_v2  ;;  %9654 = vpow2.f32 %v4747_v46  ;;  %v14464_v49 = vadd.f32 %v14010_v20, %v13778_v30  ;;  %v14468_v37 = vadd.f32 %v14032_v9, %v13778_v30 }
 0x4f3   : > { %v5202_v6 = vmul.f32 %v14355_v52, %v5201_v19  ;;  %v5327_v22 = vadd.f32 1.0, %v5326_v24  ;;  %v5329_v1 = vand.u32 2147483647, %v14420_v60  ;;  %v5345_v43 = vadd.f32 1.0, %v5344_v50 }
 0x4f4   : > { %vm14472_vm9 = vcmp.lt.f32.partialorder %v5050_v48, 0.0004427343  ;;  %v14476_v23 = vmul.f32 0.6931472, %v9641_v32  ;;  %v14479_v42 = vmul.f32 %v14397_v62, %v5192_v15  ;;  %v4610_v20 = vand.u32 2147483647, %v14457_v61  ;;  %v14483_v2 = vpop.eup %9642 }
 0x4f5   : > { %v4623_v9 = vand.u32 2147483647, %v14464_v49  ;;  %vm14485_vm10 = vcmp.lt.f32.partialorder %v5068_v51, 0.0004427343  ;;  %v17912_v19 = vmax.f32 %v14172_v18, 0.0  ;;  %v5210_v24 = vadd.f32 1.0, %v5209_v59 }
 0x4f6   : > { %v5347_v50 = vand.u32 2147483647, %v14431_v25  ;;  %v4672_v46 = vsub.f32 0.0, %v4608_v11  ;;  %v5205_v32 = vsel %vm14445_vm8, %v5202_v6, %v5199_v55  ;;  %9656 = vpow2.f32 %v4837_v17 }
 0x4f7   : > { %v14491_v48 = vadd.f32 %v5187_v33, %v17912_v19  ;;  %v9645_v15 = vpop.eup %9644  ;;  %v4687_v41 = vsub.f32 0.0, %v4623_v9  ;;  %v4625_v5 = vand.u32 2147483647, %v14468_v37  ;;  %v5328_v12 = vmul.f32 %v14420_v60, %v5327_v22 }
 0x4f8   : > { %v9647_v51 = vpop.eup %9646  ;;  %v5325_v53 = vmul.f32 0.6931472, %v9645_v15  ;;  %vm5330_vm11 = vcmp.lt.f32.partialorder %v5329_v1, 0.0004427343  ;;  %v5346_v18 = vmul.f32 %v14431_v25, %v5345_v43  ;;  %v4674_v19 = vsub.f32 0.0, %v4610_v20 }
 0x4f9   : > { %17913 = vst [vmem:[#allocation54_spill] sm:$0xff] %v14491_v48  ;;  %v14499_v33 = vpop.eup %9648  ;;  %v5343_v59 = vmul.f32 0.6931472, %v9647_v51  ;;  %v4775_v11 = vmul.f32 1.442695, %v4687_v41  ;;  %v4689_v16 = vsub.f32 0.0, %v4625_v5  ;;  %v15083_v48 = vadd.f32 %v14309_v26, %v13836_v40 }
 0x4fa   : > { %v9651_v36 = vpop.eup %9650  ;;  %v5331_v54 = vsel %vm5330_vm11, %v5328_v12, %v5325_v53  ;;  %vm5348_vm12 = vcmp.lt.f32.partialorder %v5347_v50, 0.0004427343  ;;  %v5332_v55 = vadd.f32 1.0, %v14483_v2  ;;  %v4745_v17 = vmul.f32 1.442695, %v4672_v46 }
 0x4fb   : > { %v17914_v6 = vmax.f32 %v14280_v39, 0.0  ;;  %v5349_v22 = vsel %vm5348_vm12, %v5346_v18, %v5343_v59  ;;  %9658 = vpow2.f32 %v4775_v11  ;;  %v4779_v60 = vmul.f32 1.442695, %v4689_v16  ;;  %v9653_v25 = vpop.eup %9652 }
 0x4fc   : > { %v17915_v1 = vmax.f32 %v14204_v0, 0.0  ;;  %v17917_v5 = vmax.f32 %v14285_v44, 0.0  ;;  %v4927_v53 = vadd.f32 1.0, %v14499_v33  ;;  %v14517_v12 = vadd.f32 %v14026_v10, %v13778_v30  ;;  %v14519_v39 = vpop.eup %9654 }
 0x4fd   : > { %v14504_v9 = vadd.f32 %v5331_v54, %v17914_v6  ;;  %v5190_v20 = vmul.f32 0.6931472, %v9651_v36  ;;  %v4749_v50 = vmul.f32 1.442695, %v4674_v19  ;;  %9660 = vpow2.f32 %v4779_v60 }
 0x4fe   : > { %v14508_v43 = vadd.f32 %v5205_v32, %v17915_v1  ;;  %v14512_v41 = vadd.f32 %v5349_v22, %v17917_v5  ;;  %v5052_v0 = vsel %vm14472_vm9, %v14416_v47, %v14452_v4  ;;  %v5212_v44 = vand.u32 2147483647, %v14412_v14 }
 0x4ff   : > { %9662 = vlog2.f32 %v5332_v55  ;;  %v5070_v10 = vsel %vm14485_vm10, %v14423_v21, %v14476_v23  ;;  %v5208_v36 = vmul.f32 0.6931472, %v9653_v25  ;;  %v4945_v15 = vadd.f32 1.0, %v14519_v39 }
 0x500   : > { %17916 = vst [vmem:[#allocation43_spill] sm:$0xff] %v14508_v43  ;;  %17918 = vst [vmem:[#allocation20_spill] sm:$0xff] %v14512_v41  ;;  %9664 = vpow2.f32 %v4745_v17  ;;  %v17919_v32 = vand.u32 2147483647, %v14397_v62  ;;  %v4574_v47 = vmax.f32 %v14271_v29, 0.0  ;;  %v14543_v51 = vpop.eup %9656  ;;  %v5211_v23 = vmul.f32 %v14412_v14, %v5210_v24 }
 0x501   : > { %9666 = vlog2.f32 %v4927_v53  ;;  %v4624_v4 = vand.u32 2147483647, %v14517_v12  ;;  %v17922_v62 = vmax.f32 %v14192_v13, 0.0  ;;  %v17923_v29 = vmax.f32 %v14198_v58, 0.0  ;;  %v17925_v53 = vld [vmem:[#allocation25_spill] sm:$0xff] }
 0x502   : > { %vm14537_vm13 = vcmp.lt.f32.partialorder %v17919_v32, 0.0004427343  ;;  %9668 = vpow2.f32 %v4749_v50  ;;  %vm5213_vm14 = vcmp.lt.f32.partialorder %v5212_v44, 0.0004427343  ;;  %v5335_v54 = vmul.f32 -0.5, %v14483_v2 }
 0x503   : > { %v5196_v21 = vsel %vm14537_vm13, %v14479_v42, %v5190_v20  ;;  %v14552_v18 = vadd.f32 %v5052_v0, %v17922_v62  ;;  %v14556_v59 = vadd.f32 %v5070_v10, %v17923_v29  ;;  %v5214_v11 = vsel %vm5213_vm14, %v5211_v23, %v5208_v36  ;;  %v17926_v36 = vld [vmem:[#allocation35_spill] sm:$0xff] }
 0x504   : > { %9670 = vlog2.f32 %v4945_v15  ;;  %v17924_v14 = vmax.f32 %v14243_v28, 0.0  ;;  %v4688_v58 = vsub.f32 0.0, %v4624_v4  ;;  %v5338_v6 = vand.u32 2147483647, %v14483_v2 }
 0x505   : > { %v14567_v17 = vpop.eup %9658  ;;  %v5350_v22 = vadd.f32 1.0, %v14543_v51  ;;  %v4930_v60 = vmul.f32 -0.5, %v14499_v33  ;;  %v14573_v1 = vadd.f32 %v5214_v11, %v4574_v47  ;;  %v5353_v28 = vmul.f32 -0.5, %v14543_v51 }
 0x506   : > { %v14563_v24 = vadd.f32 %v5196_v21, %v17924_v14  ;;  %v5071_v5 = vadd.f32 1.0, %v14567_v17  ;;  %v14579_v20 = vadd.f32 %v17925_v53, %v13778_v30  ;;  %v14583_v0 = vadd.f32 1.0, %v5335_v54 }
 0x507   : > { %v14581_v50 = vpop.eup %9660  ;;  %v4933_v44 = vand.u32 2147483647, %v14499_v33  ;;  %v4948_v10 = vmul.f32 -0.5, %v14519_v39  ;;  %v14589_v15 = vadd.f32 %v17926_v36, %v13802_v63  ;;  %v4777_v47 = vmul.f32 1.442695, %v4688_v58 }
 0x508   : > { %9672 = vlog2.f32 %v5071_v5  ;;  %v5089_v35 = vadd.f32 1.0, %v14581_v50  ;;  %v14594_v4 = vadd.f32 %v14072_v3, %v13802_v63  ;;  %v4931_v62 = vadd.f32 1.0, %v4930_v60 }
 0x509   : > { %v9663_v32 = vpop.eup %9662  ;;  %9674 = vlog2.f32 %v5350_v22  ;;  %v4559_v29 = vmax.f32 %v14464_v49, 0.0  ;;  %v14600_v54 = vadd.f32 1.0, %v5353_v28  ;;  %v5074_v14 = vmul.f32 -0.5, %v14567_v17 }
 0x50a   : > { %v14596_v21 = vpop.eup %9664  ;;  %9676 = vlog2.f32 %v5089_v35  ;;  %v4626_v58 = vand.u32 2147483647, %v14579_v20  ;;  %vm14606_vm15 = vcmp.lt.f32.partialorder %v4933_v44, 0.0004427343  ;;  %v4949_v22 = vadd.f32 1.0, %v4948_v10 }
 0x50b   : > { %v9667_v11 = vpop.eup %9666  ;;  %v4951_v53 = vand.u32 2147483647, %v14519_v39  ;;  %v4561_v60 = vmax.f32 %v14468_v37, 0.0  ;;  %v4936_v49 = vadd.f32 1.0, %v14596_v21  ;;  %9678 = vpow2.f32 %v4777_v47 }
 0x50c   : > { %v14604_v5 = vpop.eup %9668  ;;  %v4639_v28 = vand.u32 2147483647, %v14589_v15  ;;  %v4641_v36 = vand.u32 2147483647, %v14594_v4  ;;  %v14615_v46 = vmul.f32 0.6931472, %v9663_v32  ;;  %v4932_v44 = vmul.f32 %v14499_v33, %v4931_v62 }
 0x50d   : > { %v4929_v16 = vmul.f32 0.6931472, %v9667_v11  ;;  %v5092_v25 = vmul.f32 -0.5, %v14581_v50  ;;  %v4954_v10 = vadd.f32 1.0, %v14604_v5  ;;  %v5075_v55 = vadd.f32 1.0, %v5074_v14  ;;  %v17931_v32 = vld [vmem:[#allocation24_spill] sm:$0xff] }
 0x50e   : > { %v9671_v35 = vpop.eup %9670  ;;  %v4690_v19 = vsub.f32 0.0, %v4626_v58  ;;  %v4703_v37 = vsub.f32 0.0, %v4639_v28  ;;  %v4950_v52 = vmul.f32 %v14519_v39, %v4949_v22  ;;  %vm14621_vm2 = vcmp.lt.f32.partialorder %v4951_v53, 0.0004427343  ;;  %v17932_v62 = vld [vmem:[#allocation53_spill] sm:$0xff] }
 0x50f   : > { %v4705_v23 = vsub.f32 0.0, %v4641_v36  ;;  %v14627_v13 = vadd.f32 %v17931_v32, %v13802_v63  ;;  %v4947_v11 = vmul.f32 0.6931472, %v9671_v35  ;;  %9680 = vlog2.f32 %v4936_v49  ;;  %v17933_v49 = vld [vmem:[#allocation29_spill] sm:$0xff] }
 0x510   : > { %v5077_v33 = vand.u32 2147483647, %v14567_v17  ;;  %v14632_v14 = vadd.f32 %v17932_v62, %v13802_v63  ;;  %v4935_v39 = vsel %vm14606_vm15, %v4932_v44, %v4929_v16  ;;  %v5093_v58 = vadd.f32 1.0, %v5092_v25  ;;  %v17950_v62 = vld [vmem:[#allocation51_spill] sm:$0xff] }
 0x511   : > { %v5095_v22 = vand.u32 2147483647, %v14581_v50  ;;  %v4807_v53 = vmul.f32 1.442695, %v4703_v37  ;;  %9682 = vlog2.f32 %v4954_v10  ;;  %v5076_v36 = vmul.f32 %v14567_v17, %v5075_v55 }
 0x512   : > { %v9673_v28 = vpop.eup %9672  ;;  %v4781_v32 = vmul.f32 1.442695, %v4690_v19  ;;  %v14640_v35 = vadd.f32 %v17933_v49, %v13836_v40  ;;  %vm14644_vm3 = vcmp.lt.f32.partialorder %v5338_v6, 0.0004427343  ;;  %v4811_v25 = vmul.f32 1.442695, %v4705_v23 }
 0x513   : > { %v9675_v42 = vpop.eup %9674  ;;  %v5073_v16 = vmul.f32 0.6931472, %v9673_v28  ;;  %9684 = vpow2.f32 %v4807_v53  ;;  %v4640_v3 = vand.u32 2147483647, %v14627_v13  ;;  %v17936_v55 = vmax.f32 %v14387_v31, 0.0 }
 0x514   : > { %v9677_v44 = vpop.eup %9676  ;;  %v4953_v17 = vsel %vm14621_vm2, %v4950_v52, %v4947_v11  ;;  %vm5078_vm4 = vcmp.lt.f32.partialorder %v5077_v33, 0.0004427343  ;;  %v4642_v10 = vand.u32 2147483647, %v14632_v14  ;;  %v5094_v49 = vmul.f32 %v14581_v50, %v5093_v58 }
 0x515   : > { %v14651_v19 = vadd.f32 %v4935_v39, %v17936_v55  ;;  %v5079_v6 = vsel %vm5078_vm4, %v5076_v36, %v5073_v16  ;;  %v5091_v37 = vmul.f32 0.6931472, %v9677_v44  ;;  %vm5096_vm5 = vcmp.lt.f32.partialorder %v5095_v22, 0.0004427343  ;;  %v14657_v53 = vpop.eup %9678  ;;  %v17939_v39 = vld [vmem:[#allocation55_spill] sm:$0xff] }
 0x516   : > { %v14659_v23 = vadd.f32 %v5079_v6, %v4559_v29  ;;  %9686 = vpow2.f32 %v4781_v32  ;;  %v4655_v31 = vand.u32 2147483647, %v14640_v35  ;;  %v14664_v28 = vadd.f32 %v17939_v39, %v13836_v40  ;;  %v17947_v6 = vld [vmem:[#allocation59_spill] sm:$0xff] }
 0x517   : > { %17937 = vst [vmem:[#allocation25_spill] sm:$0xff] %v14651_v19  ;;  %v17940_v52 = vmax.f32 %v14410_v38, 0.0  ;;  %v5097_v11 = vsel %vm5096_vm5, %v5094_v49, %v5091_v37  ;;  %9688 = vpow2.f32 %v4811_v25  ;;  %v4704_v33 = vsub.f32 0.0, %v4640_v3  ;;  %v17948_v49 = vld [vmem:[#allocation22_spill] sm:$0xff] }
 0x518   : > { %17938 = vst [vmem:[#allocation35_spill] sm:$0xff] %v14659_v23  ;;  %v14672_v58 = vadd.f32 %v5097_v11, %v4561_v60  ;;  %v4706_v29 = vsub.f32 0.0, %v4642_v10  ;;  %v4719_v22 = vsub.f32 0.0, %v4655_v31  ;;  %v5337_v36 = vmul.f32 %v14483_v2, %v14583_v0  ;;  %v17946_v10 = vld [vmem:[#allocation23_spill] sm:$0xff]  ;;  %v17949_v31 = vld [vmem:[#allocation38_spill] sm:$0xff] }
 0x519   : > { %v14668_v47 = vadd.f32 %v4953_v17, %v17940_v52  ;;  %v17943_v32 = vand.u32 2147483647, %v14543_v51  ;;  %v4939_v38 = vmul.f32 -0.5, %v14596_v21  ;;  %v5080_v25 = vadd.f32 1.0, %v14657_v53  ;;  %v9681_v3 = vpop.eup %9680 }
 0x51a   : > { %17942 = vst [vmem:[#allocation53_spill] sm:$0xff] %v14672_v58  ;;  %v4957_v44 = vmul.f32 -0.5, %v14604_v5  ;;  %v4839_v55 = vmul.f32 1.442695, %v4719_v22  ;;  %v4657_v17 = vand.u32 2147483647, %v14664_v28  ;;  %v5355_v2 = vmul.f32 %v14543_v51, %v14600_v54 }
 0x51b   : > { %17941 = vst [vmem:[#allocation24_spill] sm:$0xff] %v14668_v47  ;;  %vm14678_vm6 = vcmp.lt.f32.partialorder %v17943_v32, 0.0004427343  ;;  %v4809_v0 = vmul.f32 1.442695, %v4704_v33  ;;  %v8816_v37 = vpack.c.bf16 %v17947_v6, %v17946_v10  ;;  %v8824_v39 = vpack.c.bf16 %v17949_v31, %v17948_v49  ;;  %v9683_v52 = vpop.eup %9682 }
 0x51c   : > { %v5340_v11 = vsel %vm14644_vm3, %v5337_v36, %v14615_v46  ;;  %v4813_v32 = vmul.f32 1.442695, %v4706_v29  ;;  %9690 = vpow2.f32 %v4839_v55  ;;  %v4721_v22 = vsub.f32 0.0, %v4657_v17  ;;  %v17951_v46 = vld [vmem:[#allocation42_spill] sm:$0xff]  ;;  %v17953_v36 = vld [vmem:[#allocation39_spill] sm:$0xff]  ;;  %v17954_v55 = vld [vmem:[#allocation40_spill] sm:$0xff] }
 0x51d   : > { %v14697_v60 = vpop.eup %9684  ;;  %v5352_v50 = vmul.f32 0.6931472, %v9675_v42  ;;  %v4940_v47 = vadd.f32 1.0, %v4939_v38  ;;  %v4942_v51 = vand.u32 2147483647, %v14596_v21  ;;  %9692 = vlog2.f32 %v5080_v25  ;;  %8817 = vmatprep.subr.bf16.mxu0 %v8816_v37  ;;  %8825 = vmatprep.subr.bf16.mxu1 %v8824_v39 }
 0x51e   : > { %v4958_v54 = vadd.f32 1.0, %v4957_v44  ;;  %v4960_v33 = vand.u32 2147483647, %v14604_v5  ;;  %v4843_v6 = vmul.f32 1.442695, %v4721_v22  ;;  %v17952_v29 = vpack.c.bf16 %v17950_v62, %v17951_v46 }
 0x51f   : > { %v17955_v17 = vpack.c.bf16 %v17953_v36, %v17954_v55  ;;  %v4938_v42 = vmul.f32 0.6931472, %v9681_v3  ;;  %v5215_v25 = vadd.f32 1.0, %v14697_v60  ;;  %9694 = vpow2.f32 %v4809_v0  ;;  %v17964_v55 = vld [vmem:[#allocation34_spill] sm:$0xff] }
 0x520   : > { %8819 = vmatpush1.bf16.msra.mxu0 %v17952_v29  ;;  %v14710_v44 = vpop.eup %9686  ;;  %v17956_v37 = vmax.f32 %v14341_v8, 0.0  ;;  %v4956_v31 = vmul.f32 0.6931472, %v9683_v52  ;;  %v5083_v39 = vmul.f32 -0.5, %v14657_v53  ;;  %9696 = vpow2.f32 %v4813_v32  ;;  %v17963_v29 = vld [vmem:[#allocation27_spill] sm:$0xff] }
 0x521   : > { %8827 = vmatpush1.bf16.msra.mxu1 %v17955_v17  ;;  %v14717_v22 = vpop.eup %9688  ;;  %v5358_v3 = vsel %vm14678_vm6, %v5355_v2, %v5352_v50  ;;  %v4941_v62 = vmul.f32 %v14596_v21, %v4940_v47  ;;  %vm14722_vm8 = vcmp.lt.f32.partialorder %v4942_v51, 0.0004427343  ;;  %v4959_v8 = vmul.f32 %v14604_v5, %v4958_v54  ;;  %v17961_v47 = vld [vmem:[#allocation56_spill] sm:$0xff] }
 0x522   : > { %v14714_v49 = vadd.f32 %v5340_v11, %v17956_v37  ;;  %vm14728_vm9 = vcmp.lt.f32.partialorder %v4960_v33, 0.0004427343  ;;  %v5086_v11 = vand.u32 2147483647, %v14657_v53  ;;  %9698 = vpow2.f32 %v4843_v6 }
 0x523   : > { %v4944_v50 = vsel %vm14722_vm8, %v4941_v62, %v4938_v42  ;;  %v5101_v21 = vmul.f32 -0.5, %v14710_v44  ;;  %9700 = vlog2.f32 %v5215_v25  ;;  %v14738_v16 = vadd.f32 %v17961_v47, %v13836_v40 }
 0x524   : > { %v17962_v2 = vmax.f32 %v14394_v27, 0.0  ;;  %v4962_v32 = vsel %vm14728_vm9, %v4959_v8, %v4956_v31  ;;  %v5084_v51 = vadd.f32 1.0, %v5083_v39  ;;  %v5233_v54 = vadd.f32 1.0, %v14717_v22 }
 0x525   : > { %v14751_v36 = vadd.f32 %v17963_v29, %v13836_v40  ;;  %v14755_v17 = vadd.f32 %v17964_v55, %v13769_v56  ;;  %v17965_v42 = vmax.f32 %v14443_v7, 0.0  ;;  %vm14763_vm10 = vcmp.lt.f32.partialorder %v5086_v11, 0.0004427343 }
 0x526   : > { %v14742_v5 = vadd.f32 %v5358_v3, %v17962_v2  ;;  %v14757_v27 = vpop.eup %9690  ;;  %v5098_v31 = vadd.f32 1.0, %v14710_v44  ;;  %v17968_v62 = vmax.f32 %v14457_v61, 0.0  ;;  %v5102_v8 = vadd.f32 1.0, %v5101_v21  ;;  %v17969_v21 = vld [vmem:[#allocation30_spill] sm:$0xff] }
 0x527   : > { %v14761_v25 = vadd.f32 %v4944_v50, %v17965_v42  ;;  %v9693_v3 = vpop.eup %9692  ;;  %v5359_v52 = vadd.f32 1.0, %v14757_v27  ;;  %v4656_v7 = vand.u32 2147483647, %v14738_v16  ;;  %v14776_v50 = vmul.f32 %v14657_v53, %v5084_v51 }
 0x528   : > { %v14771_v46 = vadd.f32 %v4962_v32, %v17968_v62  ;;  %v5104_v11 = vand.u32 2147483647, %v14710_v44  ;;  %9702 = vlog2.f32 %v5233_v54  ;;  %v4658_v61 = vand.u32 2147483647, %v14751_v36 }
 0x529   : > { %v14780_v2 = vpop.eup %9694  ;;  %9704 = vlog2.f32 %v5359_v52  ;;  %v4611_v32 = vand.u32 2147483647, %v14755_v17  ;;  %v14786_v29 = vadd.f32 %v17969_v21, %v13769_v56  ;;  %v14790_v53 = vmul.f32 0.6931472, %v9693_v3 }
 0x52a   : > { %v14788_v55 = vpop.eup %9696  ;;  %9706 = vlog2.f32 %v5098_v31  ;;  %v5218_v51 = vmul.f32 -0.5, %v14697_v60  ;;  %v14795_v42 = vmul.f32 %v14710_v44, %v5102_v8  ;;  %v5236_v62 = vmul.f32 -0.5, %v14717_v22 }
 0x52b   : > { %v4720_v52 = vsub.f32 0.0, %v4656_v7  ;;  %v4675_v39 = vsub.f32 0.0, %v4611_v32  ;;  %v5224_v21 = vadd.f32 1.0, %v14780_v2  ;;  %v5362_v38 = vmul.f32 -0.5, %v14757_v27 }
 0x52c   : > { %v14798_v6 = vpop.eup %9698  ;;  %v4613_v31 = vand.u32 2147483647, %v14786_v29  ;;  %v5221_v54 = vand.u32 2147483647, %v14697_v60  ;;  %v5242_v44 = vadd.f32 1.0, %v14788_v55  ;;  %v4722_v10 = vsub.f32 0.0, %v4658_v61 }
 0x52d   : > { %v9701_v33 = vpop.eup %9700  ;;  %v5377_v8 = vadd.f32 1.0, %v14798_v6  ;;  %v5088_v7 = vsel %vm14763_vm10, %v14776_v50, %v14790_v53  ;;  %v5219_v32 = vadd.f32 1.0, %v5218_v51  ;;  %v4751_v0 = vmul.f32 1.442695, %v4675_v39 }
 0x52e   : > { %v5237_v3 = vadd.f32 1.0, %v5236_v62  ;;  %v5239_v58 = vand.u32 2147483647, %v14717_v22  ;;  %v4841_v19 = vmul.f32 1.442695, %v4720_v52  ;;  %v5363_v43 = vadd.f32 1.0, %v5362_v38 }
 0x52f   : > { %9708 = vlog2.f32 %v5377_v8  ;;  %v5217_v23 = vmul.f32 0.6931472, %v9701_v33  ;;  %v4677_v41 = vsub.f32 0.0, %v4613_v31  ;;  %vm14813_vm11 = vcmp.lt.f32.partialorder %v5221_v54, 0.0004427343  ;;  %v17972_v62 = vld [vmem:[#allocation28_spill] sm:$0xff] }
 0x530   : > { %9710 = vlog2.f32 %v5224_v21  ;;  %v5365_v37 = vand.u32 2147483647, %v14757_v27  ;;  %v4845_v50 = vmul.f32 1.442695, %v4722_v10  ;;  %v5220_v39 = vmul.f32 %v14697_v60, %v5219_v32  ;;  %v17975_v8 = vld [vmem:[#allocation31_spill] sm:$0xff] }
 0x531   : > { %9712 = vlog2.f32 %v5242_v44  ;;  %v5380_v51 = vmul.f32 -0.5, %v14798_v6  ;;  %v14822_v33 = vadd.f32 %v17972_v62, %v13769_v56  ;;  %v5238_v54 = vmul.f32 %v14717_v22, %v5237_v3  ;;  %v17976_v62 = vld [vmem:[#allocation26_spill] sm:$0xff] }
 0x532   : > { %v9703_v53 = vpop.eup %9702  ;;  %9714 = vpow2.f32 %v4751_v0  ;;  %v5227_v52 = vmul.f32 -0.5, %v14780_v2  ;;  %v4755_v21 = vmul.f32 1.442695, %v4677_v41  ;;  %vm14826_vm12 = vcmp.lt.f32.partialorder %v5104_v11, 0.0004427343 }
 0x533   : > { %v9705_v38 = vpop.eup %9704  ;;  %9716 = vpow2.f32 %v4841_v19  ;;  %v5223_v60 = vsel %vm14813_vm11, %v5220_v39, %v5217_v23  ;;  %v5364_v44 = vmul.f32 %v14757_v27, %v5363_v43  ;;  %v14835_v32 = vadd.f32 %v17975_v8, %v13778_v30 }
 0x534   : > { %v9707_v31 = vpop.eup %9706  ;;  %v5361_v0 = vmul.f32 0.6931472, %v9705_v38  ;;  %v5235_v22 = vmul.f32 0.6931472, %v9703_v53  ;;  %v5245_v3 = vmul.f32 -0.5, %v14788_v55  ;;  %9718 = vpow2.f32 %v4845_v50 }
 0x535   : > { %vm5366_vm13 = vcmp.lt.f32.partialorder %v5365_v37, 0.0004427343  ;;  %v5381_v19 = vadd.f32 1.0, %v5380_v51  ;;  %v4612_v11 = vand.u32 2147483647, %v14822_v33  ;;  %v14841_v61 = vadd.f32 %v17976_v62, %v13769_v56 }
 0x536   : > { %v5367_v41 = vsel %vm5366_vm13, %v5364_v44, %v5361_v0  ;;  %v17977_v23 = vmax.f32 %v14589_v15, 0.0  ;;  %v17979_v27 = vmax.f32 %v14640_v35, 0.0  ;;  %v5383_v53 = vand.u32 2147483647, %v14798_v6 }
 0x537   : > { %9720 = vpow2.f32 %v4755_v21  ;;  %v17981_v37 = vmax.f32 %v14517_v12, 0.0  ;;  %vm14856_vm14 = vcmp.lt.f32.partialorder %v5239_v58, 0.0004427343  ;;  %v5230_v56 = vand.u32 2147483647, %v14780_v2  ;;  %v17984_v12 = vld [vmem:[#allocation58_spill] sm:$0xff] }
 0x538   : > { %v14845_v43 = vadd.f32 %v5223_v60, %v17977_v23  ;;  %v14849_v39 = vadd.f32 %v5367_v41, %v17979_v27  ;;  %v4627_v15 = vand.u32 2147483647, %v14835_v32  ;;  %v5100_v60 = vmul.f32 0.6931472, %v9707_v31 }
 0x539   : > { %v14854_v50 = vadd.f32 %v5088_v7, %v17981_v37  ;;  %v9709_v38 = vpop.eup %9708  ;;  %v5241_v35 = vsel %vm14856_vm14, %v5238_v54, %v5235_v22  ;;  %v14868_v7 = vadd.f32 %v17984_v12, %v13778_v30  ;;  %v5382_v44 = vmul.f32 %v14798_v6, %v5381_v19 }
 0x53a   : > { %17978 = vst [vmem:[#allocation29_spill] sm:$0xff] %v14845_v43  ;;  %17980 = vst [vmem:[#allocation55_spill] sm:$0xff] %v14849_v39  ;;  %v9711_v58 = vpop.eup %9710  ;;  %v5379_v0 = vmul.f32 0.6931472, %v9709_v38  ;;  %v4676_v8 = vsub.f32 0.0, %v4612_v11  ;;  %v4691_v41 = vsub.f32 0.0, %v4627_v15  ;;  %v5106_v6 = vsel %vm14826_vm12, %v14795_v42, %v5100_v60 }
 0x53b   : > { %v9713_v62 = vpop.eup %9712  ;;  %v5228_v23 = vadd.f32 1.0, %v5227_v52  ;;  %v5246_v27 = vadd.f32 1.0, %v5245_v3  ;;  %vm5384_vm15 = vcmp.lt.f32.partialorder %v5383_v53, 0.0004427343  ;;  %v4614_v31 = vand.u32 2147483647, %v14841_v61 }
 0x53c   : > { %v14872_v54 = vpop.eup %9714  ;;  %v5248_v22 = vand.u32 2147483647, %v14788_v55  ;;  %v5385_v37 = vsel %vm5384_vm15, %v5382_v44, %v5379_v0  ;;  %v4783_v51 = vmul.f32 1.442695, %v4691_v41  ;;  %v4629_v12 = vand.u32 2147483647, %v14868_v7 }
 0x53d   : > { %v14876_v21 = vpop.eup %9716  ;;  %v17985_v52 = vmax.f32 %v14594_v4, 0.0  ;;  %v5226_v19 = vmul.f32 0.6931472, %v9711_v58  ;;  %v17987_v11 = vmax.f32 %v14664_v28, 0.0  ;;  %v4753_v15 = vmul.f32 1.442695, %v4676_v8 }
 0x53e   : > { %9722 = vpow2.f32 %v4783_v51  ;;  %v4693_v38 = vsub.f32 0.0, %v4629_v12  ;;  %v17989_v0 = vld [vmem:[#allocation50_spill] sm:$0xff]  ;;  %v14893_v41 = vpop.eup %9718  ;;  %v5229_v42 = vmul.f32 %v14780_v2, %v5228_v23  ;;  %v4963_v10 = vadd.f32 1.0, %v14872_v54  ;;  %v17992_v8 = vld [vmem:[#allocation57_spill] sm:$0xff] }
 0x53f   : > { %v14883_v3 = vadd.f32 %v5241_v35, %v17985_v52  ;;  %v14887_v53 = vadd.f32 %v5385_v37, %v17987_v11  ;;  %v14891_v44 = vadd.f32 %v17989_v0, %v13778_v30  ;;  %v4678_v60 = vsub.f32 0.0, %v4614_v31  ;;  %v17994_v0 = vld [vmem:[#allocation37_spill] sm:$0xff] }
 0x540   : > { %vm14899_vm2 = vcmp.lt.f32.partialorder %v5230_v56, 0.0004427343  ;;  %v5368_v35 = vadd.f32 1.0, %v14876_v21  ;;  %v8820_v37 = vpack.c.bf16 %v14350_v34, %v17992_v8  ;;  %v17993_v2 = vmax.f32 %v14579_v20, 0.0  ;;  %v14925_v20 = vld [vmem:[%s17084_s2 + $0x40] sm:$0xff] }
 0x541   : > { %17986 = vst [vmem:[#allocation23_spill] sm:$0xff] %v14883_v3  ;;  %17988 = vst [vmem:[#allocation59_spill] sm:$0xff] %v14887_v53  ;;  %v14907_v51 = vpop.eup %9720  ;;  %v5232_v31 = vsel %vm14899_vm2, %v5229_v42, %v5226_v19  ;;  %v5247_v56 = vmul.f32 %v14788_v55, %v5246_v27  ;;  %v4787_v12 = vmul.f32 1.442695, %v4693_v38  ;;  %v5386_v52 = vadd.f32 1.0, %v14893_v41  ;;  %v17998_v27 = vld [vmem:[#allocation36_spill] sm:$0xff] }
 0x542   : > { %v14911_v23 = vadd.f32 %v5106_v6, %v17993_v2  ;;  %9724 = vpow2.f32 %v4753_v15  ;;  %v4628_v11 = vand.u32 2147483647, %v14891_v44  ;;  %v14920_v34 = vadd.f32 %v17994_v0, %v13778_v30  ;;  %8821 = vmatprep.subr.bf16.mxu0 %v8820_v37  ;;  %17995 = vst [vmem:[#allocation22_spill] sm:$0xff] %v14925_v20  ;;  %v17999_v15 = vld [vmem:[#allocation33_spill] sm:$0xff] }
 0x543   : > { %v5244_v6 = vmul.f32 0.6931472, %v9713_v62  ;;  %vm14927_vm3 = vcmp.lt.f32.partialorder %v5248_v22, 0.0004427343  ;;  %9726 = vlog2.f32 %v4963_v10  ;;  %v4757_v55 = vmul.f32 1.442695, %v4678_v60 }
 0x544   : > { %v18000_v38 = vpack.c.bf16 %v17998_v27, %v17999_v15  ;;  %9728 = vlog2.f32 %v5368_v35  ;;  %v5371_v30 = vmul.f32 -0.5, %v14876_v21  ;;  %v4981_v28 = vadd.f32 1.0, %v14907_v51  ;;  %v18003_v0 = vld [vmem:[#allocation49_spill] sm:$0xff] }
 0x545   : > { %v18001_v8 = vmax.f32 %v14627_v13, 0.0  ;;  %v5389_v22 = vmul.f32 -0.5, %v14893_v41  ;;  %9730 = vpow2.f32 %v4787_v12  ;;  %v4692_v37 = vsub.f32 0.0, %v4628_v11  ;;  %v18002_v13 = vld [vmem:[#allocation47_spill] sm:$0xff] }
 0x546   : > { %8823 = vmatpush1.bf16.msra.mxu0 %v18000_v38  ;;  %9732 = vlog2.f32 %v5386_v52  ;;  %v4630_v35 = vand.u32 2147483647, %v14920_v34  ;;  %v5250_v2 = vsel %vm14927_vm3, %v5247_v56, %v5244_v6  ;;  %v14953_v27 = vadd.f32 %v18003_v0, %v13802_v63  ;;  %v14959_v52 = vld [vmem:[%s17084_s2 + $0x48] sm:$0xff]  ;;  %v18007_v38 = vld [vmem:[#allocation48_spill] sm:$0xff] }
 0x547   : > { %v14939_v62 = vadd.f32 %v5232_v31, %v18001_v8  ;;  %9734 = vpow2.f32 %v4757_v55  ;;  %v8828_v31 = vpack.c.bf16 %v14377_v45, %v18002_v13  ;;  %v18005_v12 = vmov 0.0   ;;  %18006 = vst [vmem:[#allocation51_spill] sm:$0xff] %v14959_v52 }
 0x548   : > { %18004 = vst [vmem:[#allocation38_spill] sm:$0xff] %v14953_v27  ;;  %v14961_v11 = vpop.eup %9722  ;;  %v5372_v15 = vadd.f32 1.0, %v5371_v30  ;;  %9736 = vlog2.f32 %v4981_v28  ;;  %v4785_v56 = vmul.f32 1.442695, %v4692_v37  ;;  %v4694_v6 = vsub.f32 0.0, %v4630_v35  ;;  %v18010_v30 = vld [vmem:[#allocation32_spill] sm:$0xff] }
 0x549   : > { %8617 = vmatmul.mubr.msk.f32.vlgmr.msra.gmra.mrb[96].mxu0 %vm2096_vm7, %v14925_v20  ;;  %v5390_v19 = vadd.f32 1.0, %v5389_v22  ;;  %v4966_v45 = vmul.f32 -0.5, %v14872_v54  ;;  %v5107_v55 = vadd.f32 1.0, %v14961_v11  ;;  %8829 = vmatprep.subr.bf16.mxu1 %v8828_v31  ;;  %v14967_v8 = vadd.f32 %v18007_v38, %v13802_v63  ;;  %v18011_v28 = vld [vmem:[#allocation41_spill] sm:$0xff]  ;;  %v14982_v35 = vld [vmem:[%s17084_s2 + $0x50] sm:$0xff] }
 0x54a   : > { %5607 = vmatprep.mubr.f32.mxu0 %v18005_v12  ;;  %v18009_v13 = vmax.f32 %v14632_v14, 0.0  ;;  %9738 = vpow2.f32 %v4785_v56  ;;  %v4789_v4 = vmul.f32 1.442695, %v4694_v6  ;;  %v18012_v37 = vpack.c.bf16 %v18010_v30, %v18011_v28  ;;  %18013 = vst [vmem:[#allocation39_spill] sm:$0xff] %v14982_v35 }
 0x54b   : > { %18008 = vst [vmem:[#allocation42_spill] sm:$0xff] %v14967_v8  ;;  %v4643_v22 = vand.u32 2147483647, %v14953_v27  ;;  %v5374_v14 = vand.u32 2147483647, %v14876_v21  ;;  %9740 = vlog2.f32 %v5107_v55  ;;  %v14991_v6 = vmul.f32 %v14876_v21, %v5372_v15 }
 0x54c   : > { %v14971_v0 = vadd.f32 %v5250_v2, %v18009_v13  ;;  %8831 = vmatpush1.bf16.msra.mxu1 %v18012_v37  ;;  %v4969_v31 = vand.u32 2147483647, %v14872_v54  ;;  %v14988_v56 = vpop.eup %9724  ;;  %9742 = vpow2.f32 %v4789_v4  ;;  %v14995_v28 = vmul.f32 %v14893_v41, %v5390_v19  ;;  %v15014_v19 = vld [vmem:[%s17084_s2 + $0x58] sm:$0xff] }
 0x54d   : > { %8618 = vmatmul.mubr.msk.f32.gmra.mrb[98].mxu0 %vm2096_vm7, %v14959_v52  ;;  %v4707_v13 = vsub.f32 0.0, %v4643_v22  ;;  %v9727_v30 = vpop.eup %9726  ;;  %v4967_v37 = vadd.f32 1.0, %v4966_v45  ;;  %v4984_v60 = vmul.f32 -0.5, %v14907_v51  ;;  %v4645_v55 = vand.u32 2147483647, %v14967_v8  ;;  %v18014_v22 = vld [vmem:[#allocation44_spill] sm:$0xff] }
 0x54e   : > { %5613 = vmatprep.mubr.f32.mxu0 %v18005_v12  ;;  %v9729_v10 = vpop.eup %9728  ;;  %v5110_v21 = vmul.f32 -0.5, %v14961_v11  ;;  %v15006_v47 = vadd.f32 %v18014_v22, %v13802_v63  ;;  %vm15018_vm4 = vcmp.lt.f32.partialorder %v4969_v31, 0.0004427343  ;;  %v4965_v58 = vmul.f32 0.6931472, %v9727_v30 }
 0x54f   : > { %8621 = vmatmul.mubr.msk.f32.vlgmr.msra.gmra.mrb[96].mxu1 %vm2096_vm7, %v14925_v20  ;;  %v15016_v45 = vpop.eup %9730  ;;  %v4815_v22 = vmul.f32 1.442695, %v4707_v13  ;;  %v4709_v42 = vsub.f32 0.0, %v4645_v55  ;;  %v4987_v2 = vand.u32 2147483647, %v14907_v51  ;;  %v4972_v3 = vadd.f32 1.0, %v14988_v56 }
 0x550   : > { %18015 = vst [vmem:[#allocation40_spill] sm:$0xff] %v15006_v47  ;;  %5696 = vmatprep.mubr.f32.mxu1 %v18005_v12  ;;  %v15024_v38 = vpop.eup %9732  ;;  %v5125_v53 = vadd.f32 1.0, %v15016_v45  ;;  %v15031_v31 = vmul.f32 0.6931472, %v9729_v10  ;;  %v4968_v39 = vmul.f32 %v14872_v54, %v4967_v37  ;;  %v4985_v4 = vadd.f32 1.0, %v4984_v60  ;;  %v18018_v20 = vld [vmem:[#allocation45_spill] sm:$0xff] }
 0x551   : > { %8619 = vmatmul.mubr.msk.f32.gmra.mrb[100].mxu0 %vm2096_vm7, %v14982_v35  ;;  %v15029_v43 = vpop.eup %9734  ;;  %v5113_v13 = vand.u32 2147483647, %v14961_v11  ;;  %v5111_v30 = vadd.f32 1.0, %v5110_v21  ;;  %v4644_v8 = vand.u32 2147483647, %v15006_v47  ;;  %v15040_v27 = vadd.f32 %v18018_v20, %v13836_v40  ;;  %v18022_v60 = vld [vmem:[#allocation16_spill] sm:$0xff] }
 0x552   : > { %5619 = vmatprep.mubr.f32.mxu0 %v18005_v12  ;;  %v9737_v55 = vpop.eup %9736  ;;  %9744 = vlog2.f32 %v5125_v53  ;;  %vm15045_vm5 = vcmp.lt.f32.partialorder %v5374_v14, 0.0004427343  ;;  %v15050_v10 = vmul.f32 -0.5, %v14988_v56  ;;  %v4819_v53 = vmul.f32 1.442695, %v4709_v42 }
 0x553   : > { %8622 = vmatmul.mubr.msk.f32.gmra.mrb[98].mxu1 %vm2096_vm7, %v14959_v52  ;;  %18019 = vst [vmem:[#allocation56_spill] sm:$0xff] %v15040_v27  ;;  %9746 = vpow2.f32 %v4815_v22  ;;  %v15054_v37 = vadd.f32 %v18022_v60, %v13802_v63  ;;  %v4971_v21 = vsel %vm15018_vm4, %v4968_v39, %v4965_v58  ;;  %vm15061_vm6 = vcmp.lt.f32.partialorder %v4987_v2, 0.0004427343 }
 0x554   : > { %5702 = vmatprep.mubr.f32.mxu1 %v18005_v12  ;;  %v15057_v20 = vpop.eup %9738  ;;  %9748 = vlog2.f32 %v4972_v3  ;;  %v4990_v47 = vadd.f32 1.0, %v15029_v43  ;;  %v4983_v42 = vmul.f32 0.6931472, %v9737_v55  ;;  %vm15066_vm8 = vcmp.lt.f32.partialorder %v5113_v13, 0.0004427343 }
 0x555   : > { %8620 = vmatmul.mubr.msk.f32.gmra.mrb[102].mxu0 %vm2096_vm7, %v15014_v19  ;;  %18023 = vst [vmem:[#allocation27_spill] sm:$0xff] %v15054_v37  ;;  %v9741_v22 = vpop.eup %9740  ;;  %v5128_v63 = vmul.f32 -0.5, %v15016_v45  ;;  %v5116_v60 = vadd.f32 1.0, %v15057_v20  ;;  %v5112_v3 = vmul.f32 %v14961_v11, %v5111_v30  ;;  %v4708_v2 = vsub.f32 0.0, %v4644_v8 }
 0x556   : > { %5779 = vmatprep.mubr.f32.mxu0 %v18005_v12  ;;  %v15074_v39 = vpop.eup %9742  ;;  %v5109_v58 = vmul.f32 0.6931472, %v9741_v22  ;;  %v4659_v15 = vand.u32 2147483647, %v15040_v27  ;;  %9750 = vpow2.f32 %v4819_v53  ;;  %v4646_v55 = vand.u32 2147483647, %v15054_v37 }
 0x557   : > { %8623 = vmatmul.mubr.msk.f32.gmra.mrb[100].mxu1 %vm2096_vm7, %v14982_v35  ;;  %v5134_v13 = vadd.f32 1.0, %v15074_v39  ;;  %v18028_v35 = vand.u32 2147483647, %v14893_v41  ;;  %v18031_v11 = vmax.f32 %v14755_v17, 0.0  ;;  %v4986_v30 = vmul.f32 %v14907_v51, %v4985_v4 }
 0x558   : > { %5708 = vmatprep.mubr.f32.mxu1 %v18005_v12  ;;  %v5115_v53 = vsel %vm15066_vm8, %v5112_v3, %v5109_v58  ;;  %9752 = vlog2.f32 %v5116_v60  ;;  %v18032_v37 = vmax.f32 %v14835_v32, 0.0  ;;  %v5129_v27 = vadd.f32 1.0, %v5128_v63 }
 0x559   : > { %vm15087_vm9 = vcmp.lt.f32.partialorder %v18028_v35, 0.0004427343  ;;  %v15093_v8 = vadd.f32 %v4971_v21, %v18031_v11  ;;  %9754 = vlog2.f32 %v5134_v13  ;;  %v4723_v41 = vsub.f32 0.0, %v4659_v15 }
 0x55a   : > { %v15100_v26 = vadd.f32 %v5115_v53, %v18032_v37  ;;  %v4989_v17 = vsel %vm15061_vm6, %v4986_v30, %v4983_v42  ;;  %9756 = vlog2.f32 %v4990_v47  ;;  %v5131_v51 = vand.u32 2147483647, %v15016_v45 }
 0x55b   : > { %8624 = vmatmul.mubr.msk.f32.gmra.mrb[102].mxu1 %vm2096_vm7, %v15014_v19  ;;  %v4817_v35 = vmul.f32 1.442695, %v4708_v2  ;;  %v4710_v52 = vsub.f32 0.0, %v4646_v55  ;;  %v4847_v4 = vmul.f32 1.442695, %v4723_v41  ;;  %v5376_v14 = vsel %vm15045_vm5, %v14991_v6, %v15031_v31 }
 0x55c   : > { %5868 = vmatprep.mubr.f32.mxu1 %v18005_v12  ;;  %v8866_v32 = vpack.c.bf16 %v15100_v26, %v15093_v8  ;;  %v4661_v37 = vand.u32 2147483647, %v15083_v48  ;;  %v9745_v21 = vpop.eup %9744  ;;  %v5388_v47 = vmul.f32 0.6931472, %v15024_v38  ;;  %v4978_v42 = vand.u32 2147483647, %v14988_v56 }
 0x55d   : > { %v15119_v63 = vadd.f32 %v14326_v57, %v13836_v40  ;;  %v15121_v60 = vpop.eup %9746  ;;  %v5127_v58 = vmul.f32 0.6931472, %v9745_v21  ;;  %v5130_v3 = vmul.f32 %v15016_v45, %v5129_v27  ;;  %9758 = vpow2.f32 %v4847_v4  ;;  %v18091_v26 = vld [vmem:[#allocation8_spill] sm:$0xff] }
 0x55e   : > { %v4725_v2 = vsub.f32 0.0, %v4661_v37  ;;  %v9749_v15 = vpop.eup %9748  ;;  %v18033_v13 = vmax.f32 %v14786_v29, 0.0  ;;  %v4993_v6 = vmul.f32 -0.5, %v15029_v43  ;;  %vm5132_vm10 = vcmp.lt.f32.partialorder %v5131_v51, 0.0004427343 }
 0x55f   : > { %v5119_v38 = vmul.f32 -0.5, %v15057_v20  ;;  %v5133_v31 = vsel %vm5132_vm10, %v5130_v3, %v5127_v58  ;;  %9760 = vpow2.f32 %v4817_v35  ;;  %v4821_v57 = vmul.f32 1.442695, %v4710_v52 }
 0x560   : > { %v15126_v54 = vadd.f32 %v4989_v17, %v18033_v13  ;;  %v4851_v55 = vmul.f32 1.442695, %v4725_v2  ;;  %v18034_v11 = vmax.f32 %v14868_v7, 0.0  ;;  %v5137_v27 = vmul.f32 -0.5, %v15074_v39  ;;  %v15137_v53 = vpop.eup %9750 }
 0x561   : > { %v5251_v45 = vadd.f32 1.0, %v15121_v60  ;;  %v4660_v29 = vand.u32 2147483647, %v15119_v63  ;;  %v18035_v41 = vmax.f32 %v14738_v16, 0.0  ;;  %v5394_v51 = vsel %vm15087_vm9, %v14995_v28, %v5388_v47 }
 0x562   : > { %v15132_v30 = vadd.f32 %v5133_v31, %v18034_v11  ;;  %v4976_v7 = vadd.f32 1.0, %v15050_v10  ;;  %v4996_v35 = vand.u32 2147483647, %v15029_v43  ;;  %v9753_v52 = vpop.eup %9752  ;;  %vm15148_vm11 = vcmp.lt.f32.partialorder %v4978_v42, 0.0004427343  ;;  %v18038_v42 = vld [vmem:[#allocation19_spill] sm:$0xff] }
 0x563   : > { %v15141_v17 = vadd.f32 %v5376_v14, %v18035_v41  ;;  %v4994_v37 = vadd.f32 1.0, %v4993_v6  ;;  %9762 = vpow2.f32 %v4851_v55  ;;  %v9755_v16 = vpop.eup %9754  ;;  %v5120_v14 = vadd.f32 1.0, %v5119_v38 }
 0x564   : > { %v8874_v21 = vpack.c.bf16 %v15132_v30, %v15126_v54  ;;  %v5122_v58 = vand.u32 2147483647, %v15057_v20  ;;  %9764 = vpow2.f32 %v4821_v57  ;;  %v4724_v28 = vsub.f32 0.0, %v4660_v29  ;;  %v9757_v22 = vpop.eup %9756  ;;  %v10042_v54 = vld [vmem:[%s10300_s17] sm:$0x77] }
 0x565   : > { %v5138_v10 = vadd.f32 1.0, %v5137_v27  ;;  %9766 = vlog2.f32 %v5251_v45  ;;  %v5269_v47 = vadd.f32 1.0, %v15137_v53  ;;  %v15158_v3 = vadd.f32 %v18038_v42, %v13836_v40  ;;  %v10043_v30 = vld [vmem:[%s10300_s17 + $0x8] sm:$0x77] }
 0x566   : > { %v18039_v2 = vmax.f32 %v14751_v36, 0.0  ;;  %vm15164_vm12 = vcmp.lt.f32.partialorder %v4996_v35, 0.0004427343  ;;  %v5118_v38 = vmul.f32 0.6931472, %v9753_v52  ;;  %v4977_v55 = vmul.f32 %v14988_v56, %v4976_v7 }
 0x567   : > { %v5140_v31 = vand.u32 2147483647, %v15074_v39  ;;  %v4974_v57 = vmul.f32 0.6931472, %v9749_v15  ;;  %v5136_v11 = vmul.f32 0.6931472, %v9755_v16  ;;  %v15170_v45 = vpop.eup %9758  ;;  %v4995_v29 = vmul.f32 %v15029_v43, %v4994_v37 }
 0x568   : > { %v15162_v13 = vadd.f32 %v5394_v51, %v18039_v2  ;;  %v4849_v27 = vmul.f32 1.442695, %v4724_v28  ;;  %v4992_v40 = vmul.f32 0.6931472, %v9757_v22  ;;  %v5121_v36 = vmul.f32 %v15057_v20, %v5120_v14  ;;  %v18046_v37 = vld [vmem:[#allocation46_spill] sm:$0xff]  ;;  %v18047_v22 = vld [vmem:[#allocation60_spill] sm:$0xff] }
 0x569   : > { %v4662_v41 = vand.u32 2147483647, %v15158_v3  ;;  %vm15175_vm13 = vcmp.lt.f32.partialorder %v5122_v58, 0.0004427343  ;;  %v5139_v35 = vmul.f32 %v15074_v39, %v5138_v10  ;;  %9768 = vlog2.f32 %v5269_v47  ;;  %v15181_v15 = vpop.eup %9760 }
 0x56a   : > { %v5395_v56 = vadd.f32 1.0, %v15170_v45  ;;  %v5124_v7 = vsel %vm15175_vm13, %v5121_v36, %v5118_v38  ;;  %vm15185_vm14 = vcmp.lt.f32.partialorder %v5140_v31, 0.0004427343  ;;  %9770 = vpow2.f32 %v4849_v27  ;;  %v18051_v27 = vld [vmem:[#allocation21_spill] sm:$0xff] }
 0x56b   : > { %v4726_v20 = vsub.f32 0.0, %v4662_v41  ;;  %v4980_v52 = vsel %vm15148_vm11, %v4977_v55, %v4974_v57  ;;  %v5142_v39 = vsel %vm15185_vm14, %v5139_v35, %v5136_v11  ;;  %v8832_v16 = vpack.c.bf16 %v14552_v18, %v18046_v37 }
 0x56c   : > { %9772 = vlog2.f32 %v5395_v56  ;;  %v4998_v14 = vsel %vm15164_vm12, %v4995_v29, %v4992_v40  ;;  %v5254_v58 = vmul.f32 -0.5, %v15121_v60  ;;  %v8840_v10 = vpack.c.bf16 %v14556_v59, %v18047_v22  ;;  %v18056_v29 = vld [vmem:[#allocation52_spill] sm:$0xff] }
 0x56d   : > { %v4853_v28 = vmul.f32 1.442695, %v4726_v20  ;;  %v15200_v47 = vpop.eup %9762  ;;  %v18048_v4 = vmax.f32 %v14891_v44, 0.0  ;;  %v5260_v2 = vadd.f32 1.0, %v15181_v15  ;;  %8833 = vmatprep.subr.bf16.mxu0 %v8832_v16  ;;  %v8836_v18 = vpack.c.bf16 %v14714_v49, %v14563_v24  ;;  %v18052_v24 = vld [vmem:[#allocation18_spill] sm:$0xff] }
 0x56e   : > { %v8844_v6 = vpack.c.bf16 %v14742_v5, %v14573_v1  ;;  %v15211_v38 = vpop.eup %9764  ;;  %v18049_v31 = vmax.f32 %v14822_v33, 0.0  ;;  %v18050_v57 = vmax.f32 %v14920_v34, 0.0  ;;  %v5398_v55 = vmul.f32 -0.5, %v15170_v45  ;;  %8841 = vmatprep.subr.bf16.mxu1 %v8840_v10  ;;  %v18055_v34 = vld [vmem:[#allocation17_spill] sm:$0xff] }
 0x56f   : > { %v15204_v42 = vadd.f32 %v5124_v7, %v18048_v4  ;;  %v5413_v11 = vadd.f32 1.0, %v15200_v47  ;;  %v18053_v49 = vpack.c.bf16 %v18051_v27, %v18052_v24  ;;  %v9767_v1 = vpop.eup %9766  ;;  %v18054_v5 = vmax.f32 %v14841_v61, 0.0  ;;  %v18068_v24 = vld [vmem:[#allocation35_spill] sm:$0xff] }
 0x570   : > { %v15215_v59 = vadd.f32 %v4980_v52, %v18049_v31  ;;  %v15219_v44 = vadd.f32 %v5142_v39, %v18050_v57  ;;  %v5257_v33 = vand.u32 2147483647, %v15121_v60  ;;  %9774 = vpow2.f32 %v4853_v28  ;;  %v18058_v52 = vld [vmem:[#allocation54_spill] sm:$0xff]  ;;  %v18064_v28 = vld [vmem:[#allocation56_spill] sm:$0xff] }
 0x571   : > { %8835 = vmatpush1.bf16.msra.mxu0 %v18053_v49  ;;  %v15228_v40 = vadd.f32 %v4998_v14, %v18054_v5  ;;  %v18057_v36 = vpack.c.bf16 %v18055_v34, %v18056_v29  ;;  %v8848_v41 = vpack.c.bf16 %v14854_v50, %v14761_v25  ;;  %v5255_v51 = vadd.f32 1.0, %v5254_v58  ;;  %v18063_v14 = vld [vmem:[#allocation38_spill] sm:$0xff]  ;;  %v18069_v49 = vld [vmem:[#allocation25_spill] sm:$0xff]  ;;  %v18072_v29 = vld [vmem:[#allocation24_spill] sm:$0xff] }
 0x572   : > { %8837 = vmatprep.subr.bf16.mxu0 %v8836_v18  ;;  %v5272_v35 = vmul.f32 -0.5, %v15137_v53  ;;  %9776 = vlog2.f32 %v5413_v11  ;;  %v8856_v61 = vpack.c.bf16 %v14911_v23, %v14771_v46  ;;  %v8852_v56 = vpack.c.bf16 %v15141_v17, %v14939_v62  ;;  %v18067_v31 = vld [vmem:[#allocation22_spill] sm:$0xff]  ;;  %v18071_v34 = vld [vmem:[#allocation53_spill] sm:$0xff] }
 0x573   : > { %8843 = vmatpush1.bf16.msra.mxu1 %v18057_v36  ;;  %9778 = vlog2.f32 %v5260_v2  ;;  %v8860_v7 = vpack.c.bf16 %v15162_v13, %v14971_v0  ;;  %v8864_v43 = vpack.c.bf16 %v15204_v42, %v15215_v59  ;;  %v5253_v20 = vmul.f32 0.6931472, %v9767_v1  ;;  %v9769_v23 = vpop.eup %9768  ;;  %v18060_v0 = vld [vmem:[#allocation20_spill] sm:$0xff]  ;;  %v18061_v13 = vld [vmem:[#allocation43_spill] sm:$0xff] }
 0x574   : > { %8845 = vmatprep.subr.bf16.mxu1 %v8844_v6  ;;  %v5278_v25 = vadd.f32 1.0, %v15211_v38  ;;  %v5399_v50 = vadd.f32 1.0, %v5398_v55  ;;  %v18059_v39 = vpack.c.bf16 %v14504_v9, %v18058_v52  ;;  %v8872_v46 = vpack.c.bf16 %v15219_v44, %v15228_v40  ;;  %v15256_v16 = vpop.eup %9770 }
 0x575   : > { %v5401_v62 = vand.u32 2147483647, %v15170_v45  ;;  %v5416_v17 = vmul.f32 -0.5, %v15200_v47  ;;  %v18062_v37 = vpack.c.bf16 %v18060_v0, %v18061_v13  ;;  %v4579_v58 = vmax.f32 %v18063_v14, 0.0  ;;  %v18078_v13 = vld [vmem:[#allocation55_spill] sm:$0xff] }
 0x576   : > { %8839 = vmatpush1.bf16.msra.mxu0 %v18059_v39  ;;  %v5256_v9 = vmul.f32 %v15121_v60, %v5255_v51  ;;  %v4595_v22 = vmax.f32 %v18064_v28, 0.0  ;;  %v9773_v10 = vpop.eup %9772  ;;  %vm15261_vm15 = vcmp.lt.f32.partialorder %v5257_v33, 0.0004427343  ;;  %v5273_v2 = vadd.f32 1.0, %v5272_v35  ;;  %v18081_v28 = vld [vmem:[#allocation59_spill] sm:$0xff] }
 0x577   : > { %8847 = vmatpush1.bf16.msra.mxu1 %v18062_v37  ;;  %8849 = vmatprep.subr.bf16.mxu0 %v8848_v41  ;;  %v5275_v18 = vand.u32 2147483647, %v15137_v53  ;;  %v5404_v6 = vadd.f32 1.0, %v15256_v16  ;;  %9780 = vlog2.f32 %v5278_v25  ;;  %v5397_v60 = vmul.f32 0.6931472, %v9773_v10  ;;  %v18079_v37 = vld [vmem:[#allocation29_spill] sm:$0xff] }
 0x578   : > { %8857 = vmatprep.subr.bf16.mxu1 %v8856_v61  ;;  %v5259_v57 = vsel %vm15261_vm15, %v5256_v9, %v5253_v20  ;;  %v5400_v55 = vmul.f32 %v15170_v45, %v5399_v50  ;;  %v5271_v11 = vmul.f32 0.6931472, %v9769_v23  ;;  %vm5402_vm2 = vcmp.lt.f32.partialorder %v5401_v62, 0.0004427343  ;;  %v18074_v20 = vld [vmem:[#allocation51_spill] sm:$0xff]  ;;  %v18075_v50 = vld [vmem:[#allocation42_spill] sm:$0xff] }
 0x579   : > { %8625 = vmatmul.mubr.msk.f32.vlgmr.msra.gmra.mrb[104].mxu0 %vm2096_vm7, %v18067_v31  ;;  %v5417_v27 = vadd.f32 1.0, %v5416_v17  ;;  %9782 = vlog2.f32 %v5404_v6  ;;  %v18070_v1 = vpack.c.bf16 %v18068_v24, %v18069_v49  ;;  %v5263_v5 = vmul.f32 -0.5, %v15181_v15 }
 0x57a   : > { %8629 = vmatmul.mubr.msk.f32.vlgmr.msra.gmra.mrb[104].mxu1 %vm2096_vm7, %v18067_v31  ;;  %5785 = vmatprep.mubr.f32.mxu0 %v18005_v12  ;;  %v5403_v33 = vsel %vm5402_vm2, %v5400_v55, %v5397_v60  ;;  %v5419_v45 = vand.u32 2147483647, %v15200_v47  ;;  %v18073_v36 = vpack.c.bf16 %v18071_v34, %v18072_v29  ;;  %v15284_v41 = vpop.eup %9774  ;;  %v15286_v51 = vadd.f32 %v5259_v57, %v4579_v58  ;;  %v18085_v55 = vld [vmem:[#allocation40_spill] sm:$0xff] }
 0x57b   : > { %5874 = vmatprep.mubr.f32.mxu1 %v18005_v12  ;;  %8851 = vmatpush1.bf16.msra.mxu0 %v18070_v1  ;;  %v5274_v35 = vmul.f32 %v15137_v53, %v5273_v2  ;;  %v15289_v61 = vadd.f32 %v5403_v33, %v4595_v22  ;;  %v4581_v52 = vmax.f32 %v18075_v50, 0.0  ;;  %vm15294_vm3 = vcmp.lt.f32.partialorder %v5275_v18, 0.0004427343  ;;  %v18082_v22 = vld [vmem:[#allocation23_spill] sm:$0xff] }
 0x57c   : > { %8859 = vmatpush1.bf16.msra.mxu1 %v18073_v36  ;;  %8853 = vmatprep.subr.bf16.mxu0 %v8852_v56  ;;  %v9777_v25 = vpop.eup %9776  ;;  %v5407_v56 = vmul.f32 -0.5, %v15256_v16  ;;  %v5422_v23 = vadd.f32 1.0, %v15284_v41  ;;  %v5418_v0 = vmul.f32 %v15200_v47, %v5417_v27  ;;  %v18080_v14 = vpack.c.bf16 %v18078_v13, %v18079_v37  ;;  %v18084_v18 = vld [vmem:[#allocation39_spill] sm:$0xff]  ;;  %v15441_v37 = vpop.permute.xlu1 %5512 }
 0x57d   : > { %8626 = vmatmul.mubr.msk.f32.gmra.mrb[106].mxu0 %vm2096_vm7, %v18074_v20  ;;  %8861 = vmatprep.subr.bf16.mxu1 %v8860_v7  ;;  %v9779_v53 = vpop.eup %9778  ;;  %v5277_v7 = vsel %vm15294_vm3, %v5274_v35, %v5271_v11  ;;  %v8870_v62 = vpack.c.bf16 %v15289_v61, %v15286_v51  ;;  %v5415_v17 = vmul.f32 0.6931472, %v9777_v25  ;;  %v5264_v58 = vadd.f32 1.0, %v5263_v5 }
 0x57e   : > { %8630 = vmatmul.mubr.msk.f32.gmra.mrb[106].mxu1 %vm2096_vm7, %v18074_v20  ;;  %5791 = vmatprep.mubr.f32.mxu0 %v18005_v12  ;;  %v4597_v9 = vmax.f32 %v15083_v48, 0.0  ;;  %vm5420_vm4 = vcmp.lt.f32.partialorder %v5419_v45, 0.0004427343  ;;  %9784 = vlog2.f32 %v5422_v23  ;;  %v18083_v10 = vpack.c.bf16 %v18081_v28, %v18082_v22  ;;  %v18090_v23 = vld [vmem:[#allocation27_spill] sm:$0xff]  ;;  %v15449_v28 = vld [vmem:[%s17087_s5] sm:$0xff] }
 0x57f   : > { %5880 = vmatprep.mubr.f32.mxu1 %v18005_v12  ;;  %8855 = vmatpush1.bf16.msra.mxu0 %v18080_v14  ;;  %v5266_v47 = vand.u32 2147483647, %v15181_v15  ;;  %v5281_v4 = vmul.f32 -0.5, %v15211_v38  ;;  %v5421_v2 = vsel %vm5420_vm4, %v5418_v0, %v5415_v17  ;;  %v15326_v48 = vadd.f32 %v5277_v7, %v4581_v52 }
 0x580   : > { %8863 = vmatpush1.bf16.msra.mxu1 %v18083_v10  ;;  %8865 = vmatprep.subr.bf16.mxu0 %v8864_v43  ;;  %v5262_v6 = vmul.f32 0.6931472, %v9779_v53  ;;  %v5493_v57 = vadd.f32 %v5421_v2, %v4597_v9  ;;  %v5408_v60 = vadd.f32 1.0, %v5407_v56  ;;  %v5410_v42 = vand.u32 2147483647, %v15256_v16 }
 0x581   : > { %8627 = vmatmul.mubr.msk.f32.gmra.mrb[108].mxu0 %vm2096_vm7, %v18084_v18  ;;  %8873 = vmatprep.subr.bf16.mxu1 %v8872_v46  ;;  %v5425_v59 = vmul.f32 -0.5, %v15284_v41  ;;  %v9781_v43 = vpop.eup %9780  ;;  %v5265_v44 = vmul.f32 %v15181_v15, %v5264_v58  ;;  %v4580_v11 = vmax.f32 %v18085_v55, 0.0  ;;  %vm15337_vm5 = vcmp.lt.f32.partialorder %v5266_v47, 0.0004427343 }
 0x582   : > { %8631 = vmatmul.mubr.msk.f32.gmra.mrb[108].mxu1 %vm2096_vm7, %v18084_v18  ;;  %5797 = vmatprep.mubr.f32.mxu0 %v18005_v12  ;;  %v8878_v40 = vpack.c.bf16 %v5493_v57, %v15326_v48  ;;  %v5282_v24 = vadd.f32 1.0, %v5281_v4  ;;  %v5284_v1 = vand.u32 2147483647, %v15211_v38  ;;  %v5409_v15 = vmul.f32 %v15256_v16, %v5408_v60  ;;  %v10045_v57 = vld [vmem:[%s10300_s17 + $0x18] sm:$0x77] }
 0x583   : > { %5886 = vmatprep.mubr.f32.mxu1 %v18005_v12  ;;  %v9783_v46 = vpop.eup %9782  ;;  %v5268_v49 = vsel %vm15337_vm5, %v5265_v44, %v5262_v6  ;;  %v5280_v33 = vmul.f32 0.6931472, %v9781_v43  ;;  %v4596_v45 = vmax.f32 %v15119_v63, 0.0  ;;  %vm5411_vm6 = vcmp.lt.f32.partialorder %v5410_v42, 0.0004427343  ;;  %v18095_v44 = vld [vmem:[#allocation12_spill] sm:$0xff] }
 0x584   : > { %v5406_v5 = vmul.f32 0.6931472, %v9783_v46  ;;  %v5426_v34 = vadd.f32 1.0, %v5425_v59  ;;  %v5428_v36 = vand.u32 2147483647, %v15284_v41  ;;  %v5476_v35 = vadd.f32 %v5268_v49, %v4580_v11 }
 0x585   : > { %8628 = vmatmul.mubr.msk.f32.gmra.mrb[110].mxu0 %vm2096_vm7, %v15014_v19  ;;  %v5283_v25 = vmul.f32 %v15211_v38, %v5282_v24  ;;  %vm15356_vm8 = vcmp.lt.f32.partialorder %v5284_v1, 0.0004427343  ;;  %v4582_v53 = vmax.f32 %v18090_v23, 0.0  ;;  %v4598_v7 = vmax.f32 %v15158_v3, 0.0  ;;  %v18094_v3 = vld [vmem:[#allocation11_spill] sm:$0xff] }
 0x586   : > { %8632 = vmatmul.mubr.msk.f32.gmra.mrb[110].mxu1 %vm2096_vm7, %v15014_v19  ;;  %5957 = vmatprep.mubr.f32.mxu0 %v18005_v12  ;;  %v5412_v29 = vsel %vm5411_vm6, %v5409_v15, %v5406_v5  ;;  %v5427_v38 = vmul.f32 %v15284_v41, %v5426_v34  ;;  %vm5429_vm9 = vcmp.lt.f32.partialorder %v5428_v36, 0.0004427343  ;;  %v10046_v1 = vld [vmem:[%s10300_s17 + $0x20] sm:$0x77]  ;;  %v10047_v34 = vld [vmem:[%s10300_s17 + $0x28] sm:$0x77] }
 0x587   : > { %6046 = vmatprep.mubr.f32.mxu1 %v18005_v12  ;;  %v5492_v50 = vadd.f32 %v5412_v29, %v4596_v45  ;;  %v5286_v63 = vsel %vm15356_vm8, %v5283_v25, %v5280_v33  ;;  %v18097_v25 = vld [vmem:[#allocation14_spill] sm:$0xff]  ;;  %v10049_v23 = vld [vmem:[%s10300_s17 + $0x38] sm:$0x77] }
 0x588   : > { %v9785_v16 = vpop.eup %9784  ;;  %v5478_v41 = vadd.f32 %v5286_v63, %v4582_v53 }
 0x589   : > { %8633 = vmatmul.mubr.msk.f32.vlgmr.msra.gmra.mrb[112].mxu0 %vm2096_vm7, %v18067_v31  ;;  %v5424_v39 = vmul.f32 0.6931472, %v9785_v16  ;;  %v8868_v56 = vpack.c.bf16 %v5492_v50, %v5476_v35  ;;  %v18098_v50 = vld [vmem:[#allocation15_spill] sm:$0xff] }
 0x58a   : > { %8637 = vmatmul.mubr.msk.f32.vlgmr.msra.gmra.mrb[112].mxu1 %vm2096_vm7, %v18067_v31  ;;  %5963 = vmatprep.mubr.f32.mxu0 %v18005_v12 }
 0x58b   : > { %6052 = vmatprep.mubr.f32.mxu1 %v18005_v12  ;;  %8867 = vmatpush1.bf16.msra.mxu0 %v8866_v32  ;;  %v5430_v17 = vsel %vm5429_vm9, %v5427_v38, %v5424_v39  ;;  %v18092_v32 = vld [vmem:[#allocation9_spill] sm:$0xff] }
 0x58c   : > { %8875 = vmatpush1.bf16.msra.mxu1 %v8874_v21  ;;  %8869 = vmatprep.subr.bf16.mxu0 %v8868_v56  ;;  %v5494_v0 = vadd.f32 %v5430_v17, %v4598_v7  ;;  %v18093_v21 = vld [vmem:[#allocation10_spill] sm:$0xff] }
 0x58d   : > { %8634 = vmatmul.mubr.msk.f32.gmra.mrb[114].mxu0 %vm2096_vm7, %v18074_v20  ;;  %v10048_v56 = vld [vmem:[%s10300_s17 + $0x30] sm:$0x77] }
 0x58e   : > { %8638 = vmatmul.mubr.msk.f32.gmra.mrb[114].mxu1 %vm2096_vm7, %v18074_v20  ;;  %5969 = vmatprep.mubr.f32.mxu0 %v18005_v12  ;;  %v8876_v8 = vpack.c.bf16 %v5494_v0, %v5478_v41 }
 0x58f   : > { %6058 = vmatprep.mubr.f32.mxu1 %v18005_v12  ;;  %8871 = vmatpush1.bf16.msra.mxu0 %v8870_v62 }
 0x590   : > { %8649 = vmatprep.subr.msk.mxu0 %vm362_vm0, %v18091_v26  ;;  %8877 = vmatprep.subr.bf16.mxu1 %v8876_v8 }
 0x591   : > { %8635 = vmatmul.mubr.msk.f32.gmra.mrb[116].mxu0 %vm2096_vm7, %v18084_v18  ;;  %8879 = vmatpush1.bf16.msra.mxu1 %v8878_v40  ;;  %v18096_v40 = vld [vmem:[#allocation13_spill] sm:$0xff] }
 0x592   : > { %8639 = vmatmul.mubr.msk.f32.gmra.mrb[116].mxu1 %vm2096_vm7, %v18084_v18  ;;  %5975 = vmatprep.mubr.f32.mxu0 %v18005_v12 }
 0x593   : > { %6064 = vmatprep.mubr.f32.mxu1 %v18005_v12  ;;  %8652 = vmatprep.subr.msk.mxu1 %vm362_vm0, %v18092_v32 }
 0x595   : > { %8636 = vmatmul.mubr.msk.f32.gmra.mrb[118].mxu0 %vm2096_vm7, %v15014_v19 }
 0x596   : > { %8640 = vmatmul.mubr.msk.f32.gmra.mrb[118].mxu1 %vm2096_vm7, %v15014_v19  ;;  %6135 = vmatprep.mubr.f32.mxu0 %v18005_v12 }
 0x597   : > { %6224 = vmatprep.mubr.f32.mxu1 %v18005_v12 }
 0x599   : > { %8641 = vmatmul.mubr.msk.f32.vlgmr.msra.gmra.mrb[120].mxu0 %vm2096_vm7, %v18067_v31 }
 0x59a   : > { %8645 = vmatmul.mubr.msk.f32.vlgmr.msra.gmra.mrb[120].mxu1 %vm2096_vm7, %v18067_v31  ;;  %6141 = vmatprep.mubr.f32.mxu0 %v18005_v12  ;;  %v15432_v31 = vpop.permute.xlu0 %5507 }
 0x59b   : > { %6230 = vmatprep.mubr.f32.mxu1 %v18005_v12  ;;  %8650 = vmatpush1.msk.msra.mxu0 %vm362_vm0, %v10042_v54 }
 0x59c   : > { %8653 = vmatpush1.msk.msra.mxu1 %vm362_vm0, %v10043_v30  ;;  %8655 = vmatprep.subr.msk.mxu0 %vm362_vm0, %v18093_v21 }
 0x59d   : > { %8642 = vmatmul.mubr.msk.f32.gmra.mrb[122].mxu0 %vm2096_vm7, %v18074_v20  ;;  %8658 = vmatprep.subr.msk.mxu1 %vm362_vm0, %v18094_v3 }
 0x59e   : > { %8646 = vmatmul.mubr.msk.f32.gmra.mrb[122].mxu1 %vm2096_vm7, %v18074_v20  ;;  %6147 = vmatprep.mubr.f32.mxu0 %v18005_v12  ;;  %v15519_v0 = vpop.permute.xlu0 %5517 }
 0x59f   : > { %6236 = vmatprep.mubr.f32.mxu1 %v18005_v12 }
 0x5a1   : > { %8643 = vmatmul.mubr.msk.f32.gmra.mrb[124].mxu0 %vm2096_vm7, %v18084_v18 }
 0x5a2   : > { %8647 = vmatmul.mubr.msk.f32.gmra.mrb[124].mxu1 %vm2096_vm7, %v18084_v18  ;;  %6153 = vmatprep.mubr.f32.mxu0 %v18005_v12  ;;  %v10044_v18 = vld [vmem:[%s10300_s17 + $0x10] sm:$0x77] }
 0x5a3   : > { %6242 = vmatprep.mubr.f32.mxu1 %v18005_v12 }
 0x5a5   : > { %8644 = vmatmul.mubr.msk.f32.gmra.mrb[126].mxu0 %vm2096_vm7, %v15014_v19 }
 0x5a6   : > { %8648 = vmatmul.mubr.msk.f32.gmra.mrb[126].mxu1 %vm2096_vm7, %v15014_v19  ;;  %7278 = vmatprep.mubr.f32.mxu0 %v18005_v12 }
 0x5a7   : > { %7349 = vmatprep.mubr.f32.mxu1 %v18005_v12 }
 0x5a9   : > { %8651 = vmatmul.mubr.msk.f32.vlgmr.msra.gmra.mrb[128].mxu0 %vm349_vm1, %v15449_v28 }
 0x5aa   : > { %8654 = vmatmul.mubr.msk.f32.vlgmr.msra.gmra.mrb[128].mxu1 %vm349_vm1, %v15449_v28  ;;  %8656 = vmatpush1.msk.msra.mxu0 %vm362_vm0, %v10044_v18 }
 0x5ab   : > { %7420 = vmatprep.mubr.f32.mxu0 %v18005_v12  ;;  %8659 = vmatpush1.msk.msra.mxu1 %vm362_vm0, %v10045_v57 }
 0x5ac   : > { %7491 = vmatprep.mubr.f32.mxu1 %v18005_v12  ;;  %8661 = vmatprep.subr.msk.mxu0 %vm362_vm0, %v18095_v44 }
 0x5ad   : > { %8664 = vmatprep.subr.msk.mxu1 %vm362_vm0, %v18096_v40  ;;  %8657 = vmatmul.mubr.msk.f32.vlgmr.msra.gmra.mrb[130].mxu0 %vm349_vm1, %v15449_v28 }
 0x5ae   : > { %8660 = vmatmul.mubr.msk.f32.vlgmr.msra.gmra.mrb[130].mxu1 %vm349_vm1, %v15449_v28  ;;  %8662 = vmatpush1.msk.msra.mxu0 %vm362_vm0, %v10046_v1 }
 0x5af   : > { %7562 = vmatprep.mubr.f32.mxu0 %v18005_v12  ;;  %8665 = vmatpush1.msk.msra.mxu1 %vm362_vm0, %v10047_v34 }
 0x5b0   : > { %7633 = vmatprep.mubr.f32.mxu1 %v18005_v12  ;;  %8667 = vmatprep.subr.msk.mxu0 %vm362_vm0, %v18097_v25  ;;  %v15564_v25 = vpop.permute.xlu1 %5522 }
 0x5b1   : > { %8670 = vmatprep.subr.msk.mxu1 %vm362_vm0, %v18098_v50  ;;  %8663 = vmatmul.mubr.msk.f32.vlgmr.msra.gmra.mrb[132].mxu0 %vm349_vm1, %v15449_v28 }
 0x5b2   : > { %8666 = vmatmul.mubr.msk.f32.vlgmr.msra.gmra.mrb[132].mxu1 %vm349_vm1, %v15449_v28  ;;  %8668 = vmatpush1.msk.msra.mxu0 %vm362_vm0, %v10048_v56 }
 0x5b3   : > { %8671 = vmatpush1.msk.msra.mxu1 %vm362_vm0, %v10049_v23  ;;  %7704 = vmatprep.mubr.f32.mxu0 %v18005_v12 }
 0x5b4   : > { %7775 = vmatprep.mubr.f32.mxu1 %v18005_v12 }
 0x5b5   : > { %8669 = vmatmul.mubr.msk.f32.vlgmr.msra.gmra.mrb[134].mxu0 %vm349_vm1, %v15449_v28 }
 0x5b6   : > { %8672 = vmatmul.mubr.msk.f32.vlgmr.msra.gmra.mrb[134].mxu1 %vm349_vm1, %v15449_v28  ;;  %7849 = vmatprep.mubr.f32.mxu0 %v18005_v12 }
 0x5b7   : > { %7920 = vmatprep.mubr.f32.mxu1 %v18005_v12 }
 0x61c   : > { %v5603_v51 = vpop.f32.mrb[96].mxu0 }
 0x61d   : > { %v15435_v61 = vadd.f32 %v5603_v51, %v15432_v31  ;;  %v5605_v20 = vpop.f32.mrb[97].mxu0 }
 0x61e   : > { %v15438_v62 = vadd.f32 %v5605_v20, %v15432_v31 }
 0x61f   : > { %v6313_v13 = vand.u32 2147483647, %v15435_v61  ;;  %v6249_v18 = vmax.f32 %v15435_v61, 0.0 }
 0x620   : > { %v5609_v19 = vpop.f32.mrb[98].mxu0  ;;  %v6314_v22 = vand.u32 2147483647, %v15438_v62  ;;  %v6250_v57 = vmax.f32 %v15438_v62, 0.0 }
 0x621   : > { %v6377_v14 = vsub.f32 0.0, %v6313_v13  ;;  %v15444_v58 = vadd.f32 %v5609_v19, %v15441_v37  ;;  %v5611_v9 = vpop.f32.mrb[99].mxu0 }
 0x622   : > { %v15453_v10 = vadd.f32 %v5611_v9, %v15441_v37  ;;  %v5692_v4 = vpop.f32.mrb[96].mxu1  ;;  %v6378_v11 = vsub.f32 0.0, %v6314_v22 }
 0x623   : > { %v6441_v47 = vmul.f32 1.442695, %v6377_v14  ;;  %v6329_v2 = vand.u32 2147483647, %v15444_v58  ;;  %v15464_v48 = vadd.f32 %v5692_v4, %v15432_v31  ;;  %v5694_v6 = vpop.f32.mrb[97].mxu1 }
 0x624   : > { %v15470_v60 = vadd.f32 %v5694_v6, %v15432_v31  ;;  %v6330_v59 = vand.u32 2147483647, %v15453_v10  ;;  %v5615_v43 = vpop.f32.mrb[100].mxu0  ;;  %v6443_v63 = vmul.f32 1.442695, %v6378_v11  ;;  %v6266_v40 = vmax.f32 %v15453_v10, 0.0 }
 0x625   : > { %9786 = vpow2.f32 %v6441_v47  ;;  %v6393_v42 = vsub.f32 0.0, %v6329_v2  ;;  %v6315_v46 = vand.u32 2147483647, %v15464_v48  ;;  %v15478_v55 = vpop.f32.mrb[101].mxu0  ;;  %v15526_v54 = vadd.f32 %v5615_v43, %v15519_v0 }
 0x626   : > { %v6316_v27 = vand.u32 2147483647, %v15470_v60  ;;  %v5698_v49 = vpop.f32.mrb[98].mxu1  ;;  %v6394_v29 = vsub.f32 0.0, %v6330_v59  ;;  %v15542_v22 = vadd.f32 %v15478_v55, %v15519_v0  ;;  %v6251_v44 = vmax.f32 %v15464_v48, 0.0 }
 0x627   : > { %v6473_v24 = vmul.f32 1.442695, %v6393_v42  ;;  %v6379_v5 = vsub.f32 0.0, %v6315_v46  ;;  %v15489_v15 = vadd.f32 %v5698_v49, %v15441_v37  ;;  %v5700_v33 = vpop.f32.mrb[99].mxu1  ;;  %v6345_v13 = vand.u32 2147483647, %v15526_v54 }
 0x628   : > { %v15491_v45 = vpop.f32.mrb[102].mxu0  ;;  %v15497_v36 = vadd.f32 %v5700_v33, %v15441_v37  ;;  %v6380_v39 = vsub.f32 0.0, %v6316_v27  ;;  %v6475_v41 = vmul.f32 1.442695, %v6394_v29  ;;  %v6265_v42 = vmax.f32 %v15444_v58, 0.0 }
 0x629   : > { %9788 = vpow2.f32 %v6473_v24  ;;  %v15499_v35 = vpop.f32.mrb[103].mxu0  ;;  %v6445_v16 = vmul.f32 1.442695, %v6379_v5  ;;  %v6331_v52 = vand.u32 2147483647, %v15489_v15  ;;  %v6409_v2 = vsub.f32 0.0, %v6345_v13 }
 0x62a   : > { %v5704_v38 = vpop.f32.mrb[100].mxu1  ;;  %v6332_v7 = vand.u32 2147483647, %v15497_v36  ;;  %v6447_v32 = vmul.f32 1.442695, %v6380_v39  ;;  %v6252_v27 = vmax.f32 %v15470_v60, 0.0  ;;  %v15570_v56 = vadd.f32 %v15491_v45, %v15564_v25 }
 0x62b   : > { %9790 = vpow2.f32 %v6445_v16  ;;  %v6395_v53 = vsub.f32 0.0, %v6331_v52  ;;  %v15515_v17 = vpop.f32.mrb[101].mxu1  ;;  %v15538_v28 = vadd.f32 %v5704_v38, %v15519_v0  ;;  %v6346_v55 = vand.u32 2147483647, %v15542_v22 }
 0x62c   : > { %9792 = vpow2.f32 %v6443_v63  ;;  %v6396_v3 = vsub.f32 0.0, %v6332_v7  ;;  %v6505_v49 = vmul.f32 1.442695, %v6409_v2  ;;  %v6267_v33 = vmax.f32 %v15489_v15, 0.0 }
 0x62d   : > { %v6477_v8 = vmul.f32 1.442695, %v6395_v53  ;;  %v6347_v46 = vand.u32 2147483647, %v15538_v28  ;;  %v6410_v38 = vsub.f32 0.0, %v6346_v55  ;;  %v15575_v7 = vadd.f32 %v15515_v17, %v15519_v0 }
 0x62e   : > { %v15528_v30 = vpop.f32.mrb[102].mxu1  ;;  %v6479_v14 = vmul.f32 1.442695, %v6396_v3 }
 0x62f   : > { %v9787_v26 = vpop.eup %9786  ;;  %9794 = vpow2.f32 %v6477_v8  ;;  %v15532_v51 = vpop.f32.mrb[103].mxu1  ;;  %v6411_v39 = vsub.f32 0.0, %v6347_v46  ;;  %v6348_v46 = vand.u32 2147483647, %v15575_v7  ;;  %v15598_v55 = vadd.f32 %v15528_v30, %v15564_v25 }
 0x630   : > { %v6569_v21 = vadd.f32 1.0, %v9787_v26  ;;  %9796 = vpow2.f32 %v6475_v41  ;;  %v6572_v47 = vmul.f32 -0.5, %v9787_v26  ;;  %v6575_v1 = vand.u32 2147483647, %v9787_v26 }
 0x631   : > { %v6363_v30 = vand.u32 2147483647, %v15598_v55 }
 0x632   : > { %9798 = vlog2.f32 %v6569_v21  ;;  %v6573_v11 = vadd.f32 1.0, %v6572_v47  ;;  %vm15577_vm0 = vcmp.lt.f32.partialorder %v6575_v1, 0.0004427343  ;;  %v6509_v47 = vmul.f32 1.442695, %v6411_v39 }
 0x633   : > { %v9789_v20 = vpop.eup %9788  ;;  %9800 = vpow2.f32 %v6447_v32  ;;  %v6427_v21 = vsub.f32 0.0, %v6363_v30 }
 0x634   : > { %v6713_v19 = vadd.f32 1.0, %v9789_v20  ;;  %v6716_v59 = vmul.f32 -0.5, %v9789_v20  ;;  %v6719_v5 = vand.u32 2147483647, %v9789_v20  ;;  %v6574_v23 = vmul.f32 %v9787_v26, %v6573_v11 }
 0x635   : > { %v15535_v9 = vpop.eup %9790 }
 0x636   : > { %9802 = vlog2.f32 %v6713_v19  ;;  %v6587_v4 = vadd.f32 1.0, %v15535_v9  ;;  %v15546_v6 = vpop.eup %9792  ;;  %v6590_v16 = vmul.f32 -0.5, %v15535_v9  ;;  %v6717_v52 = vadd.f32 1.0, %v6716_v59 }
 0x637   : > { %9804 = vpow2.f32 %v6479_v14  ;;  %v6578_v63 = vadd.f32 1.0, %v15546_v6  ;;  %vm15582_vm1 = vcmp.lt.f32.partialorder %v6719_v5, 0.0004427343  ;;  %v6593_v14 = vand.u32 2147483647, %v15535_v9 }
 0x638   : > { %9806 = vlog2.f32 %v6587_v4  ;;  %v6591_v3 = vadd.f32 1.0, %v6590_v16  ;;  %v6718_v17 = vmul.f32 %v9789_v20, %v6717_v52  ;;  %v6361_v4 = vand.u32 2147483647, %v15570_v56 }
 0x639   : > { %v15550_v43 = vpop.eup %9794  ;;  %vm15610_vm10 = vcmp.lt.f32.partialorder %v6593_v14, 0.0004427343  ;;  %v15633_v14 = vadd.f32 %v15499_v35, %v15564_v25 }
 0x63a   : > { %v15556_v61 = vpop.eup %9796  ;;  %v6731_v24 = vadd.f32 1.0, %v15550_v43  ;;  %v6734_v45 = vmul.f32 -0.5, %v15550_v43  ;;  %v6737_v1 = vand.u32 2147483647, %v15550_v43  ;;  %v6425_v5 = vsub.f32 0.0, %v6361_v4 }
 0x63b   : > { %v6722_v53 = vadd.f32 1.0, %v15556_v61 }
 0x63c   : > { %v9799_v58 = vpop.eup %9798  ;;  %9808 = vlog2.f32 %v6731_v24  ;;  %vm6738_vm11 = vcmp.lt.f32.partialorder %v6737_v1, 0.0004427343 }
 0x63d   : > { %v15562_v29 = vpop.eup %9800  ;;  %v6571_v50 = vmul.f32 0.6931472, %v9799_v58  ;;  %9810 = vpow2.f32 %v6505_v49  ;;  %v6735_v49 = vadd.f32 1.0, %v6734_v45  ;;  %v6592_v58 = vmul.f32 %v15535_v9, %v6591_v3 }
 0x63e   : > { %v6596_v32 = vadd.f32 1.0, %v15562_v29  ;;  %9812 = vlog2.f32 %v6578_v63  ;;  %v6412_v9 = vsub.f32 0.0, %v6348_v46  ;;  %v6537_v63 = vmul.f32 1.442695, %v6425_v5 }
 0x63f   : > { %v6577_v26 = vsel %vm15577_vm0, %v6574_v23, %v6571_v50  ;;  %9814 = vlog2.f32 %v6722_v53  ;;  %v6736_v53 = vmul.f32 %v15550_v43, %v6735_v49  ;;  %v6584_v45 = vand.u32 2147483647, %v15546_v6 }
 0x640   : > { %v9803_v41 = vpop.eup %9802  ;;  %v15600_v20 = vadd.f32 %v6577_v26, %v6249_v18  ;;  %9816 = vlog2.f32 %v6596_v32  ;;  %v6581_v32 = vmul.f32 -0.5, %v15546_v6  ;;  %v6599_v26 = vmul.f32 -0.5, %v15562_v29 }
 0x641   : > { %v6715_v13 = vmul.f32 0.6931472, %v9803_v41  ;;  %v15589_v19 = vpop.eup %9804  ;;  %9818 = vpow2.f32 %v6509_v47  ;;  %v6507_v41 = vmul.f32 1.442695, %v6410_v38  ;;  %v6511_v38 = vmul.f32 1.442695, %v6412_v9 }
 0x642   : > { %v9807_v2 = vpop.eup %9806  ;;  %18103 = vst [vmem:[#allocation34_spill] sm:$0xff] %v15600_v20  ;;  %v6740_v16 = vadd.f32 1.0, %v15589_v19  ;;  %9820 = vpow2.f32 %v6537_v63  ;;  %v6743_v35 = vmul.f32 -0.5, %v15589_v19  ;;  %v6541_v49 = vmul.f32 1.442695, %v6427_v21 }
 0x643   : > { %v6721_v59 = vsel %vm15582_vm1, %v6718_v17, %v6715_v13  ;;  %v6589_v11 = vmul.f32 0.6931472, %v9807_v2  ;;  %vm15646_vm12 = vcmp.lt.f32.partialorder %v6584_v45, 0.0004427343  ;;  %v6728_v5 = vand.u32 2147483647, %v15556_v61 }
 0x644   : > { %v15602_v24 = vadd.f32 %v6721_v59, %v6265_v42  ;;  %9822 = vlog2.f32 %v6740_v16  ;;  %v6725_v59 = vmul.f32 -0.5, %v15556_v61  ;;  %v6602_v52 = vand.u32 2147483647, %v15562_v29 }
 0x645   : > { %v6595_v39 = vsel %vm15610_vm10, %v6592_v58, %v6589_v11  ;;  %9824 = vpow2.f32 %v6507_v41  ;;  %v6582_v58 = vadd.f32 1.0, %v6581_v32  ;;  %v6362_v9 = vand.u32 2147483647, %v15633_v14 }
 0x646   : > { %18104 = vst [vmem:[#allocation30_spill] sm:$0xff] %v15602_v24  ;;  %v9809_v18 = vpop.eup %9808  ;;  %v15625_v17 = vadd.f32 %v6595_v39, %v6251_v44  ;;  %9826 = vpow2.f32 %v6511_v38  ;;  %v15661_v41 = vadd.f32 %v15532_v51, %v15564_v25  ;;  %v6744_v21 = vadd.f32 1.0, %v6743_v35 }
 0x647   : > { %v6733_v23 = vmul.f32 0.6931472, %v9809_v18  ;;  %v15618_v8 = vpop.eup %9810  ;;  %v6600_v18 = vadd.f32 1.0, %v6599_v26  ;;  %v6746_v45 = vand.u32 2147483647, %v15589_v19  ;;  %v6583_v38 = vmul.f32 %v15546_v6, %v6582_v58 }
 0x648   : > { %18107 = vst [vmem:[#allocation28_spill] sm:$0xff] %v15625_v17  ;;  %v9813_v2 = vpop.eup %9812  ;;  %v6857_v46 = vadd.f32 1.0, %v15618_v8  ;;  %vm15678_vm13 = vcmp.lt.f32.partialorder %v6602_v52, 0.0004427343  ;;  %vm15693_vm14 = vcmp.lt.f32.partialorder %v6728_v5, 0.0004427343  ;;  %v15698_v52 = vmul.f32 %v15589_v19, %v6744_v21 }
 0x649   : > { %v6739_v3 = vsel %vm6738_vm11, %v6736_v53, %v6733_v23  ;;  %v9815_v15 = vpop.eup %9814  ;;  %v6580_v23 = vmul.f32 0.6931472, %v9813_v2  ;;  %v6726_v53 = vadd.f32 1.0, %v6725_v59  ;;  %v6601_v35 = vmul.f32 %v15562_v29, %v6600_v18 }
 0x64a   : > { %v15629_v43 = vadd.f32 %v6739_v3, %v6267_v33  ;;  %v9817_v30 = vpop.eup %9816  ;;  %9828 = vlog2.f32 %v6857_v46  ;;  %v6724_v59 = vmul.f32 0.6931472, %v9815_v15  ;;  %vm15709_vm15 = vcmp.lt.f32.partialorder %v6746_v45, 0.0004427343 }
 0x64b   : > { %v15657_v39 = vpop.eup %9818  ;;  %9830 = vpow2.f32 %v6541_v49  ;;  %v6598_v2 = vmul.f32 0.6931472, %v9817_v30  ;;  %v6426_v49 = vsub.f32 0.0, %v6362_v9  ;;  %v6727_v15 = vmul.f32 %v15556_v61, %v6726_v53 }
 0x64c   : > { %v5781_v13 = vpop.f32.mrb[104].mxu0  ;;  %18108 = vst [vmem:[#allocation31_spill] sm:$0xff] %v15629_v43  ;;  %v15675_v51 = vpop.eup %9820  ;;  %v6364_v30 = vand.u32 2147483647, %v15661_v41  ;;  %v6586_v29 = vsel %vm15646_vm12, %v6583_v38, %v6580_v23  ;;  %v6860_v21 = vmul.f32 -0.5, %v15618_v8 }
 0x64d   : > { %v5870_v47 = vpop.f32.mrb[104].mxu1  ;;  %v15635_v4 = vpop.f32.mrb[105].mxu0  ;;  %v15667_v26 = vadd.f32 %v5781_v13, %v15432_v31  ;;  %v6875_v13 = vadd.f32 1.0, %v15657_v39  ;;  %v7001_v58 = vadd.f32 1.0, %v15675_v51  ;;  %v6730_v1 = vsel %vm15693_vm14, %v6727_v15, %v6724_v59 }
 0x64e   : > { %v15640_v44 = vpop.f32.mrb[105].mxu1  ;;  %v9823_v6 = vpop.eup %9822  ;;  %v15689_v11 = vadd.f32 %v5870_v47, %v15432_v31  ;;  %v6604_v47 = vsel %vm15678_vm13, %v6601_v35, %v6598_v2  ;;  %v6539_v38 = vmul.f32 1.442695, %v6426_v49  ;;  %v15724_v45 = vadd.f32 %v6586_v29, %v6250_v57 }
 0x64f   : > { %v6317_v9 = vand.u32 2147483647, %v15667_v26  ;;  %v15703_v53 = vpop.eup %9824  ;;  %9832 = vlog2.f32 %v7001_v58  ;;  %v7004_v2 = vmul.f32 -0.5, %v15675_v51  ;;  %v6428_v59 = vsub.f32 0.0, %v6364_v30 }
 0x650   : > { %v15651_v16 = vpop.f32.mrb[106].mxu0  ;;  %9834 = vlog2.f32 %v6875_v13  ;;  %18117 = vst [vmem:[#allocation26_spill] sm:$0xff] %v15724_v45  ;;  %v6319_v35 = vand.u32 2147483647, %v15689_v11  ;;  %v15730_v58 = vpop.eup %9826  ;;  %v15734_v13 = vadd.f32 %v6730_v1, %v6266_v40  ;;  %v15736_v49 = vmul.f32 0.6931472, %v9823_v6 }
 0x651   : > { %v15655_v63 = vpop.f32.mrb[106].mxu1  ;;  %v15663_v32 = vpop.f32.mrb[107].mxu0  ;;  %v6381_v42 = vsub.f32 0.0, %v6317_v9  ;;  %v6866_v18 = vadd.f32 1.0, %v15703_v53  ;;  %v15742_v30 = vadd.f32 %v6604_v47, %v6252_v27  ;;  %v6863_v29 = vand.u32 2147483647, %v15618_v8 }
 0x652   : > { %v15669_v3 = vpop.f32.mrb[107].mxu1  ;;  %18118 = vst [vmem:[#allocation58_spill] sm:$0xff] %v15734_v13  ;;  %v6861_v6 = vadd.f32 1.0, %v6860_v21  ;;  %9836 = vpow2.f32 %v6539_v38  ;;  %v6383_v12 = vsub.f32 0.0, %v6319_v35  ;;  %v7005_v17 = vadd.f32 1.0, %v7004_v2 }
 0x653   : > { %18119 = vst [vmem:[#allocation50_spill] sm:$0xff] %v15742_v30  ;;  %v6449_v1 = vmul.f32 1.442695, %v6381_v42  ;;  %v6543_v27 = vmul.f32 1.442695, %v6428_v59  ;;  %v15756_v47 = vadd.f32 %v15635_v4, %v15432_v31  ;;  %v6878_v38 = vmul.f32 -0.5, %v15657_v39 }
 0x654   : > { %v15673_v33 = vpop.f32.mrb[108].mxu0  ;;  %v9829_v57 = vpop.eup %9828  ;;  %9838 = vlog2.f32 %v6866_v18  ;;  %v6884_v2 = vadd.f32 1.0, %v15730_v58  ;;  %v7007_v59 = vand.u32 2147483647, %v15675_v51  ;;  %v15771_v4 = vadd.f32 %v15640_v44, %v15432_v31 }
 0x655   : > { %v15683_v48 = vpop.f32.mrb[108].mxu1  ;;  %v15701_v61 = vpop.f32.mrb[109].mxu0  ;;  %v6859_v21 = vmul.f32 0.6931472, %v9829_v57  ;;  %v6862_v43 = vmul.f32 %v15618_v8, %v6861_v6  ;;  %vm15776_vm2 = vcmp.lt.f32.partialorder %v6863_v29, 0.0004427343 }
 0x656   : > { %v15713_v23 = vpop.f32.mrb[109].mxu1  ;;  %v15749_v40 = vpop.eup %9830  ;;  %v6453_v57 = vmul.f32 1.442695, %v6383_v12  ;;  %v6869_v24 = vmul.f32 -0.5, %v15703_v53  ;;  %v6318_v44 = vand.u32 2147483647, %v15756_v47  ;;  %v15792_v12 = vadd.f32 %v15651_v16, %v15441_v37 }
 0x657   : > { %v7019_v60 = vadd.f32 1.0, %v15749_v40  ;;  %v6865_v8 = vsel %vm15776_vm2, %v6862_v43, %v6859_v21  ;;  %v7022_v6 = vmul.f32 -0.5, %v15749_v40  ;;  %v6879_v45 = vadd.f32 1.0, %v6878_v38 }
 0x658   : > { %v15715_v19 = vpop.f32.mrb[110].mxu0  ;;  %vm7008_vm3 = vcmp.lt.f32.partialorder %v7007_v59, 0.0004427343  ;;  %v6872_v20 = vand.u32 2147483647, %v15703_v53  ;;  %v18128_v16 = vmax.f32 %v15526_v54, 0.0  ;;  %v15821_v54 = vadd.f32 %v15655_v63, %v15441_v37 }
 0x659   : > { %v15718_v46 = vpop.f32.mrb[110].mxu1  ;;  %v15720_v50 = vpop.f32.mrb[111].mxu0  ;;  %9840 = vlog2.f32 %v7019_v60  ;;  %v7006_v60 = vmul.f32 %v15675_v51, %v7005_v17  ;;  %v6320_v17 = vand.u32 2147483647, %v15771_v4 }
 0x65a   : > { %v15728_v15 = vpop.f32.mrb[111].mxu1  ;;  %9842 = vpow2.f32 %v6449_v1  ;;  %v9833_v42 = vpop.eup %9832  ;;  %v6335_v63 = vand.u32 2147483647, %v15821_v54  ;;  %vm15848_vm6 = vcmp.lt.f32.partialorder %v6872_v20, 0.0004427343 }
 0x65b   : > { %9844 = vpow2.f32 %v6543_v27  ;;  %v9835_v13 = vpop.eup %9834  ;;  %v7003_v29 = vmul.f32 0.6931472, %v9833_v42  ;;  %v6881_v27 = vand.u32 2147483647, %v15657_v39 }
 0x65c   : > { %v15747_v10 = vpop.f32.mrb[112].mxu0  ;;  %9846 = vlog2.f32 %v6884_v2  ;;  %v6877_v38 = vmul.f32 0.6931472, %v9835_v13  ;;  %v18130_v2 = vmax.f32 %v15570_v56, 0.0  ;;  %v6880_v13 = vmul.f32 %v15657_v39, %v6879_v45 }
 0x65d   : > { %v15751_v62 = vpop.f32.mrb[112].mxu1  ;;  %v15758_v9 = vpop.f32.mrb[113].mxu0  ;;  %v7009_v43 = vsel %vm7008_vm3, %v7006_v60, %v7003_v29  ;;  %9848 = vpow2.f32 %v6453_v57  ;;  %v7023_v57 = vadd.f32 1.0, %v7022_v6  ;;  %v6382_v60 = vsub.f32 0.0, %v6318_v44 }
 0x65e   : > { %v15760_v34 = vpop.f32.mrb[113].mxu1  ;;  %v15811_v59 = vadd.f32 %v7009_v43, %v18130_v2  ;;  %v6333_v29 = vand.u32 2147483647, %v15792_v12  ;;  %v6384_v43 = vsub.f32 0.0, %v6320_v17  ;;  %vm15828_vm4 = vcmp.lt.f32.partialorder %v6881_v27, 0.0004427343 }
 0x65f   : > { %v6887_v44 = vmul.f32 -0.5, %v15730_v58  ;;  %v18143_v17 = vsel %vm15709_vm15, %v15698_v52, %v15736_v49  ;;  %v18148_v49 = vmax.f32 %v15538_v28, 0.0 }
 0x660   : > { %v15773_v35 = vpop.f32.mrb[114].mxu0  ;;  %18131 = vst [vmem:[#allocation32_spill] sm:$0xff] %v15811_v59  ;;  %v6397_v6 = vsub.f32 0.0, %v6333_v29 }
 0x661   : > { %v15780_v18 = vpop.f32.mrb[114].mxu1  ;;  %v15785_v30 = vpop.f32.mrb[115].mxu0 }
 0x662   : > { %18122 = vst [vmem:[#allocation57_spill] sm:$0xff] %v15780_v18  ;;  %18123 = vst [vmem:[#allocation37_spill] sm:$0xff] %v15785_v30  ;;  %v15794_v1 = vpop.f32.mrb[115].mxu1  ;;  %v15816_v18 = vpop.eup %9836 }
 0x663   : > { %18124 = vst [vmem:[#allocation36_spill] sm:$0xff] %v15794_v1  ;;  %v15807_v1 = vadd.f32 %v6865_v8, %v18128_v16  ;;  %v6870_v8 = vadd.f32 1.0, %v6869_v24  ;;  %v9839_v2 = vpop.eup %9838  ;;  %v6883_v24 = vsel %vm15828_vm4, %v6880_v13, %v6877_v38  ;;  %v7010_v45 = vadd.f32 1.0, %v15816_v18 }
 0x664   : > { %v15797_v51 = vpop.f32.mrb[116].mxu0  ;;  %v6451_v38 = vmul.f32 1.442695, %v6382_v60  ;;  %v6481_v13 = vmul.f32 1.442695, %v6397_v6 }
 0x665   : > { %18125 = vst [vmem:[#allocation33_spill] sm:$0xff] %v15797_v51  ;;  %v15801_v42 = vpop.f32.mrb[116].mxu1  ;;  %v15803_v21 = vpop.f32.mrb[117].mxu0  ;;  %18129 = vst [vmem:[#allocation48_spill] sm:$0xff] %v15807_v1  ;;  %v7025_v51 = vand.u32 2147483647, %v15749_v40  ;;  %v6871_v20 = vmul.f32 %v15703_v53, %v6870_v8  ;;  %v15881_v8 = vadd.f32 %v6883_v24, %v18148_v49 }
 0x666   : > { %18126 = vst [vmem:[#allocation47_spill] sm:$0xff] %v15801_v42  ;;  %18127 = vst [vmem:[#allocation49_spill] sm:$0xff] %v15803_v21  ;;  %v15814_v30 = vpop.f32.mrb[117].mxu1  ;;  %v9841_v21 = vpop.eup %9840  ;;  %v6399_v42 = vsub.f32 0.0, %v6335_v63  ;;  %9850 = vpow2.f32 %v6481_v13  ;;  %v7013_v63 = vmul.f32 -0.5, %v15816_v18 }
 0x667   : > { %18132 = vst [vmem:[#allocation41_spill] sm:$0xff] %v15814_v30  ;;  %vm15836_vm5 = vcmp.lt.f32.partialorder %v7025_v51, 0.0004427343  ;;  %v15846_v1 = vpop.eup %9842  ;;  %v7021_v30 = vmul.f32 0.6931472, %v9841_v21  ;;  %v7024_v51 = vmul.f32 %v15749_v40, %v7023_v57  ;;  %v6888_v57 = vadd.f32 1.0, %v6887_v44 }
 0x668   : > { %v15826_v16 = vpop.f32.mrb[118].mxu0  ;;  %v15853_v59 = vpop.eup %9844  ;;  %18149 = vst [vmem:[#allocation18_spill] sm:$0xff] %v15881_v8  ;;  %9852 = vlog2.f32 %v7010_v45  ;;  %v6605_v44 = vadd.f32 1.0, %v15846_v1  ;;  %v6868_v28 = vmul.f32 0.6931472, %v9839_v2  ;;  %v15907_v2 = vadd.f32 %v15673_v33, %v15519_v0 }
 0x669   : > { %18133 = vst [vmem:[#allocation44_spill] sm:$0xff] %v15826_v16  ;;  %v15842_v27 = vpop.f32.mrb[118].mxu1  ;;  %v15844_v56 = vpop.f32.mrb[119].mxu0  ;;  %v18142_v16 = vmax.f32 %v15497_v36, 0.0  ;;  %v7027_v60 = vsel %vm15836_vm5, %v7024_v51, %v7021_v30  ;;  %v15873_v36 = vadd.f32 %v15663_v32, %v15441_v37  ;;  %v7028_v39 = vadd.f32 1.0, %v15853_v59 }
 0x66a   : > { %18138 = vst [vmem:[#allocation45_spill] sm:$0xff] %v15842_v27  ;;  %18139 = vst [vmem:[#allocation16_spill] sm:$0xff] %v15844_v56  ;;  %v6455_v27 = vmul.f32 1.442695, %v6384_v43  ;;  %v15865_v21 = vpop.f32.mrb[119].mxu1  ;;  %v9847_v53 = vpop.eup %9846  ;;  %v18150_v43 = vmax.f32 %v15598_v55, 0.0  ;;  %9854 = vpow2.f32 %v6451_v38  ;;  %v6874_v55 = vsel %vm15848_vm6, %v6871_v20, %v6868_v28 }
 0x66b   : > { %v15862_v56 = vadd.f32 %v18143_v17, %v18142_v16  ;;  %v15890_v32 = vpop.eup %9848  ;;  %v6485_v17 = vmul.f32 1.442695, %v6399_v42  ;;  %v6890_v24 = vand.u32 2147483647, %v15730_v58  ;;  %v6886_v30 = vmul.f32 0.6931472, %v9847_v53 }
 0x66c   : > { %v15867_v40 = vpop.f32.mrb[120].mxu0  ;;  %v15885_v16 = vadd.f32 %v7027_v60, %v18150_v43  ;;  %9856 = vpow2.f32 %v6455_v27  ;;  %v6334_v13 = vand.u32 2147483647, %v15873_v36  ;;  %v7031_v38 = vmul.f32 -0.5, %v15853_v59 }
 0x66d   : > { %18144 = vst [vmem:[#allocation19_spill] sm:$0xff] %v15862_v56  ;;  %18145 = vst [vmem:[#allocation46_spill] sm:$0xff] %v15867_v40  ;;  %v15875_v52 = vpop.f32.mrb[120].mxu1  ;;  %v15877_v5 = vpop.f32.mrb[121].mxu0  ;;  %9858 = vpow2.f32 %v6485_v17  ;;  %v6623_v42 = vadd.f32 1.0, %v15890_v32  ;;  %v6889_v53 = vmul.f32 %v15730_v58, %v6888_v57  ;;  %v7014_v43 = vadd.f32 1.0, %v7013_v63 }
 0x66e   : > { %18146 = vst [vmem:[#allocation60_spill] sm:$0xff] %v15875_v52  ;;  %18147 = vst [vmem:[#allocation21_spill] sm:$0xff] %v15877_v5  ;;  %v15888_v6 = vpop.f32.mrb[121].mxu1  ;;  %9860 = vlog2.f32 %v6605_v44  ;;  %v7016_v17 = vand.u32 2147483647, %v15816_v18  ;;  %v6608_v33 = vmul.f32 -0.5, %v15846_v1 }
 0x66f   : > { %18151 = vst [vmem:[#allocation17_spill] sm:$0xff] %v15885_v16  ;;  %18152 = vst [vmem:[#allocation52_spill] sm:$0xff] %v15888_v6  ;;  %9862 = vlog2.f32 %v7028_v39  ;;  %vm15917_vm8 = vcmp.lt.f32.partialorder %v6890_v24, 0.0004427343  ;;  %v6398_v63 = vsub.f32 0.0, %v6334_v13  ;;  %v7032_v39 = vadd.f32 1.0, %v7031_v38 }
 0x670   : > { %v15897_v45 = vpop.f32.mrb[122].mxu0  ;;  %v6892_v8 = vsel %vm15917_vm8, %v6889_v53, %v6886_v30  ;;  %v6611_v29 = vand.u32 2147483647, %v15846_v1  ;;  %9864 = vlog2.f32 %v6623_v42  ;;  %v6349_v20 = vand.u32 2147483647, %v15907_v2  ;;  %v15929_v28 = vpop.eup %9850 }
 0x671   : > { %18153 = vst [vmem:[#allocation54_spill] sm:$0xff] %v15897_v45  ;;  %v15901_v60 = vpop.f32.mrb[122].mxu1  ;;  %v15909_v27 = vpop.f32.mrb[123].mxu0  ;;  %v18159_v24 = vmax.f32 %v15542_v22, 0.0  ;;  %v15936_v44 = vmul.f32 %v15816_v18, %v7014_v43  ;;  %vm15938_vm9 = vcmp.lt.f32.partialorder %v7016_v17, 0.0004427343  ;;  %v15944_v13 = vadd.f32 %v15683_v48, %v15519_v0 }
 0x672   : > { %18154 = vst [vmem:[#allocation20_spill] sm:$0xff] %v15901_v60  ;;  %18155 = vst [vmem:[#allocation43_spill] sm:$0xff] %v15909_v27  ;;  %v15911_v49 = vpop.f32.mrb[123].mxu1  ;;  %v9853_v38 = vpop.eup %9852  ;;  %v7034_v42 = vand.u32 2147483647, %v15853_v59  ;;  %v6609_v53 = vadd.f32 1.0, %v6608_v33  ;;  %v15950_v22 = vadd.f32 %v15669_v3, %v15441_v37  ;;  %v15962_v33 = vmul.f32 %v15853_v59, %v7032_v39 }
 0x673   : > { %18156 = vst [vmem:[#allocation38_spill] sm:$0xff] %v15911_v49  ;;  %v15933_v16 = vadd.f32 %v6874_v55, %v18159_v24  ;;  %v6749_v57 = vadd.f32 1.0, %v15929_v28  ;;  %v18163_v55 = vmax.f32 %v15575_v7, 0.0  ;;  %v6483_v17 = vmul.f32 1.442695, %v6398_v63 }
 0x674   : > { %v15952_v18 = vpop.eup %9854  ;;  %v6413_v24 = vsub.f32 0.0, %v6349_v20  ;;  %v6351_v48 = vand.u32 2147483647, %v15944_v13  ;;  %vm15964_vm0 = vcmp.lt.f32.partialorder %v6611_v29, 0.0004427343  ;;  %v6610_v59 = vmul.f32 %v15846_v1, %v6609_v53 }
 0x675   : > { %18160 = vst [vmem:[#allocation56_spill] sm:$0xff] %v15933_v16  ;;  %v15956_v43 = vadd.f32 %v6892_v8, %v18163_v55  ;;  %9866 = vlog2.f32 %v6749_v57  ;;  %v15971_v7 = vmul.f32 0.6931472, %v9853_v38  ;;  %v6626_v8 = vmul.f32 -0.5, %v15890_v32  ;;  %v15980_v57 = vpop.f32.mrb[124].mxu0 }
 0x676   : > { %v15959_v58 = vpop.eup %9856  ;;  %v6629_v63 = vand.u32 2147483647, %v15890_v32  ;;  %v6614_v39 = vadd.f32 1.0, %v15952_v18  ;;  %v6336_v3 = vand.u32 2147483647, %v15950_v22  ;;  %18167 = vst [vmem:[#allocation35_spill] sm:$0xff] %v15980_v57  ;;  %9868 = vpow2.f32 %v6483_v17 }
 0x677   : > { %18164 = vst [vmem:[#allocation22_spill] sm:$0xff] %v15956_v43  ;;  %v15969_v49 = vpop.eup %9858  ;;  %v15982_v43 = vpop.f32.mrb[124].mxu1  ;;  %v6752_v27 = vmul.f32 -0.5, %v15929_v28  ;;  %v6513_v16 = vmul.f32 1.442695, %v6413_v24  ;;  %v6415_v60 = vsub.f32 0.0, %v6351_v48  ;;  %v15998_v24 = vadd.f32 %v15701_v61, %v15519_v0 }
 0x678   : > { %v9861_v55 = vpop.eup %9860  ;;  %v6767_v29 = vadd.f32 1.0, %v15969_v49  ;;  %18168 = vst [vmem:[#allocation25_spill] sm:$0xff] %v15982_v43  ;;  %v15985_v20 = vpop.f32.mrb[125].mxu0  ;;  %v6632_v1 = vadd.f32 1.0, %v15959_v58  ;;  %v6627_v17 = vadd.f32 1.0, %v6626_v8  ;;  %v6770_v5 = vmul.f32 -0.5, %v15969_v49 }
 0x679   : > { %v9863_v38 = vpop.eup %9862  ;;  %18169 = vst [vmem:[#allocation53_spill] sm:$0xff] %v15985_v20  ;;  %v15987_v45 = vpop.f32.mrb[125].mxu1  ;;  %v6607_v57 = vmul.f32 0.6931472, %v9861_v55  ;;  %v6517_v20 = vmul.f32 1.442695, %v6415_v60 }
 0x67a   : > { %18170 = vst [vmem:[#allocation24_spill] sm:$0xff] %v15987_v45  ;;  %9870 = vlog2.f32 %v6767_v29  ;;  %v9865_v48 = vpop.eup %9864  ;;  %v16000_v45 = vmul.f32 0.6931472, %v9863_v38  ;;  %v6400_v29 = vsub.f32 0.0, %v6336_v3  ;;  %vm16002_vm1 = vcmp.lt.f32.partialorder %v6629_v63, 0.0004427343 }
 0x67b   : > { %9872 = vlog2.f32 %v6614_v39  ;;  %v6753_v6 = vadd.f32 1.0, %v6752_v27  ;;  %vm16007_vm10 = vcmp.lt.f32.partialorder %v7034_v42, 0.0004427343  ;;  %v6617_v61 = vmul.f32 -0.5, %v15952_v18 }
 0x67c   : > { %9874 = vpow2.f32 %v6513_v16  ;;  %v6635_v55 = vmul.f32 -0.5, %v15959_v58  ;;  %v6755_v3 = vand.u32 2147483647, %v15929_v28  ;;  %v6613_v60 = vsel %vm15964_vm0, %v6610_v59, %v6607_v57 }
 0x67d   : > { %9876 = vlog2.f32 %v6632_v1  ;;  %v6625_v63 = vmul.f32 0.6931472, %v9865_v48  ;;  %v6350_v27 = vand.u32 2147483647, %v15998_v24  ;;  %v16019_v16 = vadd.f32 %v15715_v19, %v15564_v25 }
 0x67e   : > { %v6487_v39 = vmul.f32 1.442695, %v6400_v29  ;;  %9878 = vpow2.f32 %v6517_v20  ;;  %v16023_v38 = vadd.f32 %v15713_v23, %v15519_v0  ;;  %v16027_v1 = vadd.f32 %v15718_v46, %v15564_v25 }
 0x67f   : > { %v9867_v42 = vpop.eup %9866  ;;  %v6754_v59 = vmul.f32 %v15929_v28, %v6753_v6  ;;  %v6771_v57 = vadd.f32 1.0, %v6770_v5  ;;  %v6365_v48 = vand.u32 2147483647, %v16019_v16  ;;  %v6628_v19 = vmul.f32 %v15890_v32, %v6627_v17  ;;  %v16040_v6 = vpop.f32.mrb[126].mxu0 }
 0x680   : > { %v6751_v51 = vmul.f32 0.6931472, %v9867_v42  ;;  %vm6756_vm11 = vcmp.lt.f32.partialorder %v6755_v3, 0.0004427343  ;;  %v6773_v29 = vand.u32 2147483647, %v15969_v49  ;;  %v16034_v43 = vpop.eup %9868  ;;  %9880 = vpow2.f32 %v6487_v39 }
 0x681   : > { %v6367_v20 = vand.u32 2147483647, %v16027_v1  ;;  %v18175_v23 = vmax.f32 %v15667_v26, 0.0  ;;  %v6414_v42 = vsub.f32 0.0, %v6350_v27  ;;  %v6429_v40 = vsub.f32 0.0, %v6365_v48  ;;  %v16050_v27 = vpop.f32.mrb[126].mxu1 }
 0x682   : > { %v6757_v46 = vsel %vm6756_vm11, %v6754_v59, %v6751_v51  ;;  %v6631_v32 = vsel %vm16002_vm1, %v6628_v19, %v6625_v63  ;;  %v18177_v28 = vmax.f32 %v15792_v12, 0.0  ;;  %v6352_v3 = vand.u32 2147483647, %v16023_v38 }
 0x683   : > { %v16038_v52 = vadd.f32 %v6613_v60, %v18175_v23  ;;  %v6772_v26 = vmul.f32 %v15969_v49, %v6771_v57  ;;  %v6545_v60 = vmul.f32 1.442695, %v6429_v40  ;;  %v6431_v51 = vsub.f32 0.0, %v6367_v20 }
 0x684   : > { %v9871_v5 = vpop.eup %9870  ;;  %v16046_v17 = vadd.f32 %v6757_v46, %v18177_v28  ;;  %vm6774_vm12 = vcmp.lt.f32.partialorder %v6773_v29, 0.0004427343  ;;  %v6758_v53 = vadd.f32 1.0, %v16034_v43  ;;  %v16057_v12 = vadd.f32 %v15720_v50, %v15564_v25 }
 0x685   : > { %18176 = vst [vmem:[#allocation51_spill] sm:$0xff] %v16038_v52  ;;  %v6769_v56 = vmul.f32 0.6931472, %v9871_v5  ;;  %v9873_v59 = vpop.eup %9872  ;;  %v7036_v40 = vsel %vm16007_vm10, %v15962_v33, %v16000_v45  ;;  %v18179_v49 = vmax.f32 %v15689_v11, 0.0  ;;  %v6515_v19 = vmul.f32 1.442695, %v6414_v42 }
 0x686   : > { %18178 = vst [vmem:[#allocation42_spill] sm:$0xff] %v16046_v17  ;;  %v16059_v63 = vpop.eup %9874  ;;  %v18181_v20 = vmax.f32 %v15821_v54, 0.0  ;;  %v6416_v50 = vsub.f32 0.0, %v6352_v3  ;;  %9882 = vpow2.f32 %v6545_v60  ;;  %v6549_v46 = vmul.f32 1.442695, %v6431_v51 }
 0x687   : > { %v16067_v39 = vadd.f32 %v6631_v32, %v18179_v49  ;;  %v6775_v57 = vsel %vm6774_vm12, %v6772_v26, %v6769_v56  ;;  %v9877_v29 = vpop.eup %9876  ;;  %v6618_v5 = vadd.f32 1.0, %v6617_v61  ;;  %v6620_v28 = vand.u32 2147483647, %v15952_v18 }
 0x688   : > { %v16071_v23 = vadd.f32 %v6775_v57, %v18181_v20  ;;  %v6636_v48 = vadd.f32 1.0, %v6635_v55  ;;  %v6638_v45 = vand.u32 2147483647, %v15959_v58  ;;  %v16075_v33 = vpop.eup %9878  ;;  %9884 = vlog2.f32 %v6758_v53  ;;  %v16122_v20 = vpop.f32.mrb[127].mxu1 }
 0x689   : > { %18180 = vst [vmem:[#allocation55_spill] sm:$0xff] %v16067_v39  ;;  %v6893_v56 = vadd.f32 1.0, %v16059_v63  ;;  %v6366_v54 = vand.u32 2147483647, %v16057_v12  ;;  %v18183_v8 = vmax.f32 %v15633_v14, 0.0  ;;  %v18184_v61 = vsel %vm15938_vm9, %v15936_v44, %v15971_v7  ;;  %v16105_v7 = vpop.f32.mrb[127].mxu0 }
 0x68a   : > { %18182 = vst [vmem:[#allocation29_spill] sm:$0xff] %v16071_v23  ;;  %v18185_v42 = vmax.f32 %v15661_v41, 0.0  ;;  %v6616_v3 = vmul.f32 0.6931472, %v9873_v59  ;;  %9886 = vpow2.f32 %v6515_v19  ;;  %v6634_v26 = vmul.f32 0.6931472, %v9877_v29  ;;  %v16107_v59 = vpop.eup %9880 }
 0x68b   : > { %v16088_v55 = vadd.f32 %v18184_v61, %v18183_v8  ;;  %v6761_v60 = vmul.f32 -0.5, %v16034_v43  ;;  %v6519_v51 = vmul.f32 1.442695, %v6416_v50  ;;  %9888 = vpow2.f32 %v6549_v46 }
 0x68c   : > { %v16092_v32 = vadd.f32 %v7036_v40, %v18185_v42  ;;  %v6619_v14 = vmul.f32 %v15952_v18, %v6618_v5  ;;  %vm16096_vm13 = vcmp.lt.f32.partialorder %v6620_v28, 0.0004427343  ;;  %vm16100_vm14 = vcmp.lt.f32.partialorder %v6638_v45, 0.0004427343 }
 0x68d   : > { %v6911_v41 = vadd.f32 1.0, %v16075_v33  ;;  %v6637_v53 = vmul.f32 %v15959_v58, %v6636_v48  ;;  %9890 = vlog2.f32 %v6893_v56  ;;  %v6430_v40 = vsub.f32 0.0, %v6366_v54 }
 0x68e   : > { %v16112_v18 = vadd.f32 %v15728_v15, %v15564_v25  ;;  %v6622_v49 = vsel %vm16096_vm13, %v6619_v14, %v6616_v3  ;;  %v6764_v57 = vand.u32 2147483647, %v16034_v43  ;;  %v16120_v29 = vadd.f32 %v15747_v10, %v15432_v31 }
 0x68f   : > { %v6640_v58 = vsel %vm16100_vm14, %v6637_v53, %v6634_v26  ;;  %v6762_v48 = vadd.f32 1.0, %v6761_v60  ;;  %9892 = vpow2.f32 %v6519_v51  ;;  %v6779_v50 = vmul.f32 -0.5, %v16107_v59 }
 0x690   : > { %v6896_v46 = vmul.f32 -0.5, %v16059_v63  ;;  %9894 = vlog2.f32 %v6911_v41  ;;  %v16130_v28 = vpop.eup %9882  ;;  %v18190_v10 = vmax.f32 %v15756_v47, 0.0  ;;  %v6547_v54 = vmul.f32 1.442695, %v6430_v40 }
 0x691   : > { %v6368_v8 = vand.u32 2147483647, %v16112_v18  ;;  %v18191_v61 = vmax.f32 %v15771_v4, 0.0  ;;  %vm16142_vm15 = vcmp.lt.f32.partialorder %v6764_v57, 0.0004427343  ;;  %v7037_v26 = vadd.f32 1.0, %v16130_v28 }
 0x692   : > { %v16134_v45 = vadd.f32 %v6622_v49, %v18190_v10  ;;  %v6321_v60 = vand.u32 2147483647, %v16120_v29  ;;  %v9885_v47 = vpop.eup %9884  ;;  %v16149_v51 = vmul.f32 %v16034_v43, %v6762_v48  ;;  %v6776_v14 = vadd.f32 1.0, %v16107_v59 }
 0x693   : > { %v16140_v42 = vadd.f32 %v6640_v58, %v18191_v61  ;;  %v6780_v41 = vadd.f32 1.0, %v6779_v50  ;;  %v6897_v53 = vadd.f32 1.0, %v6896_v46  ;;  %v6899_v40 = vand.u32 2147483647, %v16059_v63 }
 0x694   : > { %v16154_v44 = vpop.eup %9886  ;;  %9896 = vlog2.f32 %v7037_v26  ;;  %v6914_v57 = vmul.f32 -0.5, %v16075_v33  ;;  %v6432_v43 = vsub.f32 0.0, %v6368_v8  ;;  %v16162_v58 = vadd.f32 %v15751_v62, %v15432_v31 }
 0x695   : > { %v16157_v49 = vpop.eup %9888  ;;  %9898 = vpow2.f32 %v6547_v54  ;;  %v16164_v48 = vmul.f32 0.6931472, %v9885_v47  ;;  %v7040_v10 = vmul.f32 -0.5, %v16130_v28  ;;  %v6385_v46 = vsub.f32 0.0, %v6321_v60 }
 0x696   : > { %v7055_v50 = vadd.f32 1.0, %v16157_v49  ;;  %9900 = vlog2.f32 %v6776_v14  ;;  %v6782_v26 = vand.u32 2147483647, %v16107_v59  ;;  %v6917_v11 = vand.u32 2147483647, %v16075_v33 }
 0x697   : > { %v9891_v61 = vpop.eup %9890  ;;  %v16172_v8 = vmul.f32 %v16107_v59, %v6780_v41  ;;  %v6902_v62 = vadd.f32 1.0, %v16154_v44  ;;  %v6323_v47 = vand.u32 2147483647, %v16162_v58  ;;  %v6898_v60 = vmul.f32 %v16059_v63, %v6897_v53 }
 0x698   : > { %9902 = vlog2.f32 %v7055_v50  ;;  %vm16179_vm2 = vcmp.lt.f32.partialorder %v6899_v40, 0.0004427343  ;;  %v6915_v5 = vadd.f32 1.0, %v6914_v57  ;;  %v6551_v4 = vmul.f32 1.442695, %v6432_v43 }
 0x699   : > { %v16176_v56 = vpop.eup %9892  ;;  %v6766_v59 = vsel %vm16142_vm15, %v16149_v51, %v16164_v48  ;;  %v6895_v41 = vmul.f32 0.6931472, %v9891_v61  ;;  %v7041_v50 = vadd.f32 1.0, %v7040_v10  ;;  %v6457_v54 = vmul.f32 1.442695, %v6385_v46 }
 0x69a   : > { %v9895_v15 = vpop.eup %9894  ;;  %vm16187_vm3 = vcmp.lt.f32.partialorder %v6917_v11, 0.0004427343  ;;  %v7058_v63 = vmul.f32 -0.5, %v16157_v49  ;;  %v6387_v53 = vsub.f32 0.0, %v6323_v47  ;;  %v16194_v40 = vadd.f32 %v15758_v9, %v15432_v31 }
 0x69b   : > { %9904 = vlog2.f32 %v6902_v62  ;;  %v6905_v57 = vmul.f32 -0.5, %v16154_v44  ;;  %v6920_v3 = vadd.f32 1.0, %v16176_v56  ;;  %v7043_v51 = vand.u32 2147483647, %v16130_v28 }
 0x69c   : > { %v6913_v43 = vmul.f32 0.6931472, %v9895_v15  ;;  %v6916_v11 = vmul.f32 %v16075_v33, %v6915_v5  ;;  %v6908_v48 = vand.u32 2147483647, %v16154_v44  ;;  %9906 = vpow2.f32 %v6551_v4 }
 0x69d   : > { %v6901_v46 = vsel %vm16179_vm2, %v6898_v60, %v6895_v41  ;;  %v7042_v9 = vmul.f32 %v16130_v28, %v7041_v50  ;;  %9908 = vpow2.f32 %v6457_v54  ;;  %v6461_v61 = vmul.f32 1.442695, %v6387_v53  ;;  %v18204_v53 = vld [vmem:[#allocation57_spill] sm:$0xff] }
 0x69e   : > { %v9897_v10 = vpop.eup %9896  ;;  %v7059_v19 = vadd.f32 1.0, %v7058_v63  ;;  %v6322_v39 = vand.u32 2147483647, %v16194_v40  ;;  %v16209_v33 = vadd.f32 %v15773_v35, %v15441_v37  ;;  %9910 = vlog2.f32 %v6920_v3 }
 0x69f   : > { %v16204_v62 = vpop.eup %9898  ;;  %v7039_v47 = vmul.f32 0.6931472, %v9897_v10  ;;  %vm7044_vm4 = vcmp.lt.f32.partialorder %v7043_v51, 0.0004427343  ;;  %v7061_v15 = vand.u32 2147483647, %v16157_v49  ;;  %v16214_v5 = vadd.f32 %v15760_v34, %v15432_v31 }
 0x6a0   : > { %v9901_v28 = vpop.eup %9900  ;;  %vm16216_vm5 = vcmp.lt.f32.partialorder %v6782_v26, 0.0004427343  ;;  %v18200_v54 = vmax.f32 %v15907_v2, 0.0  ;;  %v6919_v35 = vsel %vm16187_vm3, %v6916_v11, %v6913_v43  ;;  %v18202_v63 = vmax.f32 %v16019_v16, 0.0 }
 0x6a1   : > { %v7045_v14 = vsel %vm7044_vm4, %v7042_v9, %v7039_v47  ;;  %v7046_v26 = vadd.f32 1.0, %v16204_v62  ;;  %9912 = vpow2.f32 %v6461_v61  ;;  %v16234_v3 = vadd.f32 %v18204_v53, %v15441_v37 }
 0x6a2   : > { %v16222_v60 = vadd.f32 %v6901_v46, %v18200_v54  ;;  %v9903_v50 = vpop.eup %9902  ;;  %v16229_v34 = vadd.f32 %v7045_v14, %v18202_v63  ;;  %v7060_v51 = vmul.f32 %v16157_v49, %v7059_v19  ;;  %v6386_v30 = vsub.f32 0.0, %v6322_v39 }
 0x6a3   : > { %v7057_v2 = vmul.f32 0.6931472, %v9903_v50  ;;  %v6337_v43 = vand.u32 2147483647, %v16209_v33  ;;  %v6906_v11 = vadd.f32 1.0, %v6905_v57  ;;  %v6923_v9 = vmul.f32 -0.5, %v16176_v56 }
 0x6a4   : > { %18201 = vst [vmem:[#allocation59_spill] sm:$0xff] %v16222_v60  ;;  %18203 = vst [vmem:[#allocation23_spill] sm:$0xff] %v16229_v34  ;;  %vm7062_vm6 = vcmp.lt.f32.partialorder %v7061_v15, 0.0004427343  ;;  %v6324_v16 = vand.u32 2147483647, %v16214_v5  ;;  %9914 = vlog2.f32 %v7046_v26 }
 0x6a5   : > { %v6778_v46 = vmul.f32 0.6931472, %v9901_v28  ;;  %v7063_v61 = vsel %vm7062_vm6, %v7060_v51, %v7057_v2  ;;  %v6401_v47 = vsub.f32 0.0, %v6337_v43  ;;  %v9905_v54 = vpop.eup %9904  ;;  %v18205_v14 = vmax.f32 %v15944_v13, 0.0  ;;  %v18210_v26 = vld [vmem:[#allocation37_spill] sm:$0xff] }
 0x6a6   : > { %v18207_v39 = vmax.f32 %v16027_v1, 0.0  ;;  %v6339_v49 = vand.u32 2147483647, %v16234_v3  ;;  %v16251_v57 = vpop.eup %9906  ;;  %v18209_v15 = vmax.f32 %v15873_v36, 0.0  ;;  %v6926_v63 = vand.u32 2147483647, %v16176_v56 }
 0x6a7   : > { %v16244_v50 = vadd.f32 %v6919_v35, %v18205_v14  ;;  %v6459_v53 = vmul.f32 1.442695, %v6386_v30  ;;  %v6489_v2 = vmul.f32 1.442695, %v6401_v47  ;;  %v16258_v13 = vpop.eup %9908  ;;  %v6388_v35 = vsub.f32 0.0, %v6324_v16  ;;  %v18217_v1 = vld [vmem:[#allocation33_spill] sm:$0xff] }
 0x6a8   : > { %v16248_v19 = vadd.f32 %v7063_v61, %v18207_v39  ;;  %v16255_v28 = vadd.f32 %v6766_v59, %v18209_v15  ;;  %v6403_v51 = vsub.f32 0.0, %v6339_v49  ;;  %v16264_v43 = vadd.f32 %v18210_v26, %v15441_v37  ;;  %v9911_v30 = vpop.eup %9910  ;;  %v18213_v39 = vld [vmem:[#allocation36_spill] sm:$0xff] }
 0x6a9   : > { %18206 = vst [vmem:[#allocation39_spill] sm:$0xff] %v16244_v50  ;;  %v6907_v61 = vmul.f32 %v16154_v44, %v6906_v11  ;;  %vm16267_vm8 = vcmp.lt.f32.partialorder %v6908_v48, 0.0004427343  ;;  %v6924_v59 = vadd.f32 1.0, %v6923_v9  ;;  %9916 = vpow2.f32 %v6489_v2 }
 0x6aa   : > { %18208 = vst [vmem:[#allocation40_spill] sm:$0xff] %v16248_v19  ;;  %v6784_v47 = vsel %vm16216_vm5, %v16172_v8, %v6778_v46  ;;  %v7064_v16 = vadd.f32 1.0, %v16251_v57  ;;  %v16278_v49 = vadd.f32 %v18213_v39, %v15441_v37  ;;  %v6904_v44 = vmul.f32 0.6931472, %v9905_v54 }
 0x6ab   : > { %v7049_v48 = vmul.f32 -0.5, %v16204_v62  ;;  %v6641_v11 = vadd.f32 1.0, %v16258_v13  ;;  %v6493_v9 = vmul.f32 1.442695, %v6403_v51  ;;  %v16282_v15 = vpop.eup %9912  ;;  %vm16284_vm9 = vcmp.lt.f32.partialorder %v6926_v63, 0.0004427343 }
 0x6ac   : > { %9918 = vpow2.f32 %v6459_v53  ;;  %v6463_v8 = vmul.f32 1.442695, %v6388_v35  ;;  %v6338_v4 = vand.u32 2147483647, %v16264_v43  ;;  %v18216_v46 = vmax.f32 %v15950_v22, 0.0 }
 0x6ad   : > { %v6922_v54 = vmul.f32 0.6931472, %v9911_v30  ;;  %v6925_v39 = vmul.f32 %v16176_v56, %v6924_v59  ;;  %9920 = vpow2.f32 %v6493_v9  ;;  %v7052_v51 = vand.u32 2147483647, %v16204_v62 }
 0x6ae   : > { %v16291_v26 = vadd.f32 %v6784_v47, %v18216_v46  ;;  %9922 = vlog2.f32 %v7064_v16  ;;  %v6340_v63 = vand.u32 2147483647, %v16278_v49  ;;  %v16298_v10 = vadd.f32 %v18217_v1, %v15519_v0  ;;  %v9915_v30 = vpop.eup %9914 }
 0x6af   : > { %v6910_v53 = vsel %vm16267_vm8, %v6907_v61, %v6904_v44  ;;  %v7050_v35 = vadd.f32 1.0, %v7049_v48  ;;  %9924 = vlog2.f32 %v6641_v11  ;;  %v6659_v22 = vadd.f32 1.0, %v16282_v15 }
 0x6b0   : > { %v7067_v56 = vmul.f32 -0.5, %v16251_v57  ;;  %9926 = vpow2.f32 %v6463_v8  ;;  %v6402_v47 = vsub.f32 0.0, %v6338_v4  ;;  %v6928_v16 = vsel %vm16284_vm9, %v6925_v39, %v6922_v54  ;;  %v18221_v54 = vld [vmem:[#allocation47_spill] sm:$0xff] }
 0x6b1   : > { %v6644_v1 = vmul.f32 -0.5, %v16258_v13  ;;  %v6404_v36 = vsub.f32 0.0, %v6340_v63  ;;  %v18218_v61 = vmax.f32 %v15998_v24, 0.0  ;;  %vm16313_vm0 = vcmp.lt.f32.partialorder %v7052_v51, 0.0004427343 }
 0x6b2   : > { %v7070_v11 = vand.u32 2147483647, %v16251_v57  ;;  %v6353_v8 = vand.u32 2147483647, %v16298_v10  ;;  %v7048_v2 = vmul.f32 0.6931472, %v9915_v30  ;;  %v7051_v46 = vmul.f32 %v16204_v62, %v7050_v35 }
 0x6b3   : > { %v16311_v44 = vadd.f32 %v6910_v53, %v18218_v61  ;;  %v16319_v4 = vpop.eup %9916  ;;  %9928 = vlog2.f32 %v6659_v22  ;;  %v16324_v39 = vadd.f32 %v18221_v54, %v15519_v0  ;;  %v18222_v24 = vmax.f32 %v16023_v38, 0.0 }
 0x6b4   : > { %v7068_v63 = vadd.f32 1.0, %v7067_v56  ;;  %v6491_v61 = vmul.f32 1.442695, %v6402_v47  ;;  %v6645_v9 = vadd.f32 1.0, %v6644_v1  ;;  %v6647_v59 = vand.u32 2147483647, %v16258_v13 }
 0x6b5   : > { %v16328_v51 = vadd.f32 %v6928_v16, %v18222_v24  ;;  %v6785_v30 = vadd.f32 1.0, %v16319_v4  ;;  %v6495_v41 = vmul.f32 1.442695, %v6404_v36  ;;  %vm16335_vm1 = vcmp.lt.f32.partialorder %v7070_v11, 0.0004427343 }
 0x6b6   : > { %v16333_v62 = vpop.eup %9918  ;;  %v6417_v56 = vsub.f32 0.0, %v6353_v8  ;;  %v7054_v47 = vsel %vm16313_vm0, %v7051_v46, %v7048_v2  ;;  %v6662_v1 = vmul.f32 -0.5, %v16282_v15  ;;  %v6355_v36 = vand.u32 2147483647, %v16324_v39 }
 0x6b7   : > { %18223 = vst [vmem:[#allocation27_spill] sm:$0xff] %v16328_v51  ;;  %v16341_v16 = vpop.eup %9920  ;;  %9930 = vlog2.f32 %v6785_v30  ;;  %v16348_v11 = vmul.f32 %v16251_v57, %v7068_v63  ;;  %v6665_v24 = vand.u32 2147483647, %v16282_v15  ;;  %v6646_v22 = vmul.f32 %v16258_v13, %v6645_v9 }
 0x6b8   : > { %v9923_v54 = vpop.eup %9922  ;;  %v6803_v53 = vadd.f32 1.0, %v16341_v16  ;;  %9932 = vpow2.f32 %v6491_v61  ;;  %vm16353_vm10 = vcmp.lt.f32.partialorder %v6647_v59, 0.0004427343  ;;  %v6650_v2 = vadd.f32 1.0, %v16333_v62 }
 0x6b9   : > { %v9925_v8 = vpop.eup %9924  ;;  %9934 = vpow2.f32 %v6495_v41  ;;  %v18228_v57 = vmax.f32 %v16057_v12, 0.0  ;;  %v6788_v30 = vmul.f32 -0.5, %v16319_v4  ;;  %v6521_v61 = vmul.f32 1.442695, %v6417_v56  ;;  %v18232_v12 = vld [vmem:[#allocation49_spill] sm:$0xff] }
 0x6ba   : > { %v16358_v46 = vpop.eup %9926  ;;  %9936 = vlog2.f32 %v6803_v53  ;;  %v7066_v38 = vmul.f32 0.6931472, %v9923_v54  ;;  %v6663_v14 = vadd.f32 1.0, %v6662_v1  ;;  %v6419_v59 = vsub.f32 0.0, %v6355_v36 }
 0x6bb   : > { %v16362_v63 = vadd.f32 %v7054_v47, %v18228_v57  ;;  %v6643_v9 = vmul.f32 0.6931472, %v9925_v8  ;;  %vm16366_vm11 = vcmp.lt.f32.partialorder %v6665_v24, 0.0004427343  ;;  %v16373_v47 = vadd.f32 %v18232_v12, %v15519_v0  ;;  %v18233_v24 = vld [vmem:[#allocation44_spill] sm:$0xff] }
 0x6bc   : > { %9938 = vlog2.f32 %v6650_v2  ;;  %v6653_v53 = vmul.f32 -0.5, %v16333_v62  ;;  %v6668_v56 = vadd.f32 1.0, %v16358_v46  ;;  %v6806_v1 = vmul.f32 -0.5, %v16341_v16 }
 0x6bd   : > { %18229 = vst [vmem:[#allocation8_spill] sm:$0xff] %v16362_v63  ;;  %v9929_v57 = vpop.eup %9928  ;;  %v6656_v36 = vand.u32 2147483647, %v16333_v62  ;;  %v6789_v54 = vadd.f32 1.0, %v6788_v30  ;;  %9940 = vpow2.f32 %v6521_v61  ;;  %v16381_v8 = vadd.f32 %v18233_v24, %v15564_v25  ;;  %v18234_v61 = vld [vmem:[#allocation41_spill] sm:$0xff] }
 0x6be   : > { %v7072_v12 = vsel %vm16335_vm1, %v16348_v11, %v7066_v38  ;;  %v6664_v2 = vmul.f32 %v16282_v15, %v6663_v14  ;;  %v6791_v41 = vand.u32 2147483647, %v16319_v4  ;;  %v6525_v13 = vmul.f32 1.442695, %v6419_v59 }
 0x6bf   : > { %v6649_v19 = vsel %vm16353_vm10, %v6646_v22, %v6643_v9  ;;  %v6661_v60 = vmul.f32 0.6931472, %v9929_v57  ;;  %v6354_v30 = vand.u32 2147483647, %v16373_v47  ;;  %v16393_v34 = vadd.f32 %v18234_v61, %v15519_v0 }
 0x6c0   : > { %v6654_v51 = vadd.f32 1.0, %v6653_v53  ;;  %9942 = vlog2.f32 %v6668_v56  ;;  %v6807_v35 = vadd.f32 1.0, %v6806_v1  ;;  %v6790_v11 = vmul.f32 %v16319_v4, %v6789_v54  ;;  %v18237_v53 = vld [vmem:[#allocation45_spill] sm:$0xff] }
 0x6c1   : > { %v9931_v24 = vpop.eup %9930  ;;  %v6809_v22 = vand.u32 2147483647, %v16341_v16  ;;  %v6369_v48 = vand.u32 2147483647, %v16381_v8  ;;  %v18235_v9 = vmax.f32 %v16120_v29, 0.0  ;;  %9944 = vpow2.f32 %v6525_v13 }
 0x6c2   : > { %v16396_v14 = vpop.eup %9932  ;;  %v6787_v15 = vmul.f32 0.6931472, %v9931_v24  ;;  %vm6792_vm12 = vcmp.lt.f32.partialorder %v6791_v41, 0.0004427343  ;;  %v16409_v56 = vadd.f32 %v18237_v53, %v15564_v25  ;;  %v6667_v4 = vsel %vm16366_vm11, %v6664_v2, %v6661_v60 }
 0x6c3   : > { %v16401_v59 = vpop.eup %9934  ;;  %v16405_v57 = vadd.f32 %v6649_v19, %v18235_v9  ;;  %v6418_v61 = vsub.f32 0.0, %v6354_v30  ;;  %v6356_v24 = vand.u32 2147483647, %v16393_v34  ;;  %v18238_v38 = vmax.f32 %v16209_v33, 0.0 }
 0x6c4   : > { %v9937_v1 = vpop.eup %9936  ;;  %v6793_v54 = vsel %vm6792_vm12, %v6790_v11, %v6787_v15  ;;  %v6808_v19 = vmul.f32 %v16341_v16, %v6807_v35  ;;  %v6794_v13 = vadd.f32 1.0, %v16396_v14  ;;  %v18240_v41 = vmax.f32 %v16112_v18, 0.0 }
 0x6c5   : > { %18236 = vst [vmem:[#allocation9_spill] sm:$0xff] %v16405_v57  ;;  %v16416_v23 = vadd.f32 %v6793_v54, %v18238_v38  ;;  %v6805_v29 = vmul.f32 0.6931472, %v9937_v1  ;;  %vm16424_vm13 = vcmp.lt.f32.partialorder %v6656_v36, 0.0004427343  ;;  %v6812_v60 = vadd.f32 1.0, %v16401_v59 }
 0x6c6   : > { %v16422_v9 = vadd.f32 %v7072_v12, %v18240_v41  ;;  %vm6810_vm14 = vcmp.lt.f32.partialorder %v6809_v22, 0.0004427343  ;;  %v6433_v2 = vsub.f32 0.0, %v6369_v48  ;;  %v9939_v33 = vpop.eup %9938  ;;  %v6671_v30 = vmul.f32 -0.5, %v16358_v46  ;;  %v18248_v54 = vld [vmem:[#allocation16_spill] sm:$0xff] }
 0x6c7   : > { %18239 = vst [vmem:[#allocation10_spill] sm:$0xff] %v16416_v23  ;;  %v6811_v35 = vsel %vm6810_vm14, %v6808_v19, %v6805_v29  ;;  %v6371_v38 = vand.u32 2147483647, %v16409_v56  ;;  %v16433_v18 = vpop.eup %9940  ;;  %v18244_v36 = vmax.f32 %v16162_v58, 0.0  ;;  %v18246_v15 = vmax.f32 %v16234_v3, 0.0  ;;  %v18276_v57 = vld [vmem:[#allocation52_spill] sm:$0xff] }
 0x6c8   : > { %18241 = vst [vmem:[#allocation11_spill] sm:$0xff] %v16422_v9  ;;  %v6523_v22 = vmul.f32 1.442695, %v6418_v61  ;;  %v6420_v48 = vsub.f32 0.0, %v6356_v24  ;;  %9946 = vlog2.f32 %v6794_v13  ;;  %v6553_v53 = vmul.f32 1.442695, %v6433_v2 }
 0x6c9   : > { %v16437_v12 = vadd.f32 %v6667_v4, %v18244_v36  ;;  %v16441_v11 = vadd.f32 %v6811_v35, %v18246_v15  ;;  %v6435_v1 = vsub.f32 0.0, %v6371_v38  ;;  %v16445_v29 = vadd.f32 %v18248_v54, %v15564_v25  ;;  %v18249_v36 = vld [vmem:[#allocation26_spill] sm:$0xff]  ;;  %v18252_v54 = vld [vmem:[#allocation19_spill] sm:$0xff] }
 0x6ca   : > { %v6655_v19 = vmul.f32 %v16333_v62, %v6654_v51  ;;  %9948 = vlog2.f32 %v6812_v60  ;;  %v16452_v3 = vadd.f32 %v15865_v21, %v15564_v25  ;;  %v9943_v4 = vpop.eup %9942  ;;  %v6652_v61 = vmul.f32 0.6931472, %v9939_v33  ;;  %v18250_v15 = vld [vmem:[#allocation58_spill] sm:$0xff] }
 0x6cb   : > { %18245 = vst [vmem:[#allocation12_spill] sm:$0xff] %v16437_v12  ;;  %18247 = vst [vmem:[#allocation13_spill] sm:$0xff] %v16441_v11  ;;  %v6929_v24 = vadd.f32 1.0, %v16433_v18  ;;  %9950 = vpow2.f32 %v6553_v53  ;;  %v6557_v13 = vmul.f32 1.442695, %v6435_v1  ;;  %v16457_v62 = vpop.eup %9944  ;;  %v6672_v35 = vadd.f32 1.0, %v6671_v30 }
 0x6cc   : > { %v6674_v41 = vand.u32 2147483647, %v16358_v46  ;;  %9952 = vpow2.f32 %v6523_v22  ;;  %v6527_v2 = vmul.f32 1.442695, %v6420_v48  ;;  %v6370_v51 = vand.u32 2147483647, %v16445_v29 }
 0x6cd   : > { %v6797_v60 = vmul.f32 -0.5, %v16396_v14  ;;  %9954 = vpow2.f32 %v6557_v13  ;;  %v6372_v33 = vand.u32 2147483647, %v16452_v3  ;;  %v8880_v53 = vpack.c.bf16 %v18250_v15, %v18249_v36  ;;  %v18251_v1 = vld [vmem:[#allocation50_spill] sm:$0xff] }
 0x6ce   : > { %v6434_v38 = vsub.f32 0.0, %v6370_v51  ;;  %v8888_v22 = vpack.c.bf16 %v18252_v54, %v18251_v1  ;;  %v6658_v48 = vsel %vm16424_vm13, %v6655_v19, %v6652_v61  ;;  %v6670_v58 = vmul.f32 0.6931472, %v9943_v4  ;;  %v18253_v51 = vld [vmem:[#allocation46_spill] sm:$0xff] }
 0x6cf   : > { %v6815_v30 = vmul.f32 -0.5, %v16401_v59  ;;  %9956 = vlog2.f32 %v6929_v24  ;;  %v6800_v16 = vand.u32 2147483647, %v16396_v14  ;;  %v6947_v13 = vadd.f32 1.0, %v16457_v62  ;;  %8881 = vmatprep.subr.bf16.mxu0 %v8880_v53  ;;  %v18256_v61 = vld [vmem:[#allocation30_spill] sm:$0xff]  ;;  %v18260_v53 = vld [vmem:[#allocation28_spill] sm:$0xff] }
 0x6d0   : > { %9958 = vpow2.f32 %v6527_v2  ;;  %8889 = vmatprep.subr.bf16.mxu1 %v8888_v22  ;;  %v16473_v36 = vadd.f32 %v18253_v51, %v15432_v31  ;;  %v6673_v15 = vmul.f32 %v16358_v46, %v6672_v35  ;;  %vm16476_vm15 = vcmp.lt.f32.partialorder %v6674_v41, 0.0004427343  ;;  %v18257_v24 = vld [vmem:[#allocation34_spill] sm:$0xff]  ;;  %v18259_v2 = vld [vmem:[#allocation31_spill] sm:$0xff] }
 0x6d1   : > { %v6555_v4 = vmul.f32 1.442695, %v6434_v38  ;;  %v18258_v1 = vpack.c.bf16 %v18256_v61, %v18257_v24  ;;  %v18261_v54 = vpack.c.bf16 %v18259_v2, %v18260_v53  ;;  %v18262_v22 = vmax.f32 %v16194_v40, 0.0 }
 0x6d2   : > { %v6798_v46 = vadd.f32 1.0, %v6797_v60  ;;  %v6436_v35 = vsub.f32 0.0, %v6372_v33  ;;  %v9947_v21 = vpop.eup %9946  ;;  %v6676_v38 = vsel %vm16476_vm15, %v6673_v15, %v6670_v58  ;;  %v6816_v19 = vadd.f32 1.0, %v6815_v30  ;;  %v18266_v30 = vld [vmem:[#allocation60_spill] sm:$0xff] }
 0x6d3   : > { %8883 = vmatpush1.bf16.msra.mxu0 %v18258_v1  ;;  %8891 = vmatpush1.bf16.msra.mxu1 %v18261_v54  ;;  %v16489_v51 = vadd.f32 %v6658_v48, %v18262_v22  ;;  %v6818_v61 = vand.u32 2147483647, %v16401_v59  ;;  %v6932_v24 = vmul.f32 -0.5, %v16433_v18  ;;  %vm16496_vm2 = vcmp.lt.f32.partialorder %v6800_v16, 0.0004427343 }
 0x6d4   : > { %v9949_v1 = vpop.eup %9948  ;;  %9960 = vlog2.f32 %v6947_v13  ;;  %v6325_v60 = vand.u32 2147483647, %v16473_v36  ;;  %v6935_v48 = vand.u32 2147483647, %v16433_v18  ;;  %v6950_v58 = vmul.f32 -0.5, %v16457_v62 }
 0x6d5   : > { %18263 = vst [vmem:[#allocation14_spill] sm:$0xff] %v16489_v51  ;;  %v16502_v33 = vpop.eup %9950  ;;  %9962 = vpow2.f32 %v6555_v4  ;;  %v16508_v15 = vadd.f32 %v18266_v30, %v15432_v31  ;;  %v18267_v50 = vmax.f32 %v16214_v5, 0.0  ;;  %v16517_v53 = vmul.f32 %v16396_v14, %v6798_v46 }
 0x6d6   : > { %v16510_v16 = vpop.eup %9952  ;;  %v7073_v54 = vadd.f32 1.0, %v16502_v33  ;;  %v6559_v22 = vmul.f32 1.442695, %v6436_v35  ;;  %v16523_v4 = vmul.f32 %v16401_v59, %v6816_v19  ;;  %vm16525_vm3 = vcmp.lt.f32.partialorder %v6818_v61, 0.0004427343 }
 0x6d7   : > { %v16514_v13 = vadd.f32 %v6676_v38, %v18267_v50  ;;  %v16520_v41 = vpop.eup %9954  ;;  %v6933_v40 = vadd.f32 1.0, %v6932_v24  ;;  %v6327_v5 = vand.u32 2147483647, %v16508_v15  ;;  %v16530_v38 = vmul.f32 0.6931472, %v9947_v21 }
 0x6d8   : > { %v6953_v14 = vand.u32 2147483647, %v16457_v62  ;;  %9964 = vlog2.f32 %v7073_v54  ;;  %v6389_v46 = vsub.f32 0.0, %v6325_v60  ;;  %vm16533_vm4 = vcmp.lt.f32.partialorder %v6935_v48, 0.0004427343 }
 0x6d9   : > { %18268 = vst [vmem:[#allocation15_spill] sm:$0xff] %v16514_v13  ;;  %v9957_v50 = vpop.eup %9956  ;;  %v6951_v59 = vadd.f32 1.0, %v6950_v58  ;;  %v7091_v61 = vadd.f32 1.0, %v16520_v41  ;;  %v16541_v24 = vmul.f32 0.6931472, %v9949_v1  ;;  %v7076_v21 = vmul.f32 -0.5, %v16502_v33 }
 0x6da   : > { %v16539_v12 = vpop.eup %9958  ;;  %9966 = vpow2.f32 %v6559_v22  ;;  %v6391_v11 = vsub.f32 0.0, %v6327_v5  ;;  %v6934_v60 = vmul.f32 %v16433_v18, %v6933_v40  ;;  %v6938_v48 = vadd.f32 1.0, %v16510_v16  ;;  %v18282_v1 = vld [vmem:[#allocation32_spill] sm:$0xff] }
 0x6db   : > { %v6941_v54 = vmul.f32 -0.5, %v16510_v16  ;;  %9968 = vlog2.f32 %v7091_v61  ;;  %v6802_v58 = vsel %vm16496_vm2, %v16517_v53, %v16530_v38  ;;  %v6931_v19 = vmul.f32 0.6931472, %v9957_v50  ;;  %v18275_v61 = vld [vmem:[#allocation21_spill] sm:$0xff] }
 0x6dc   : > { %vm16551_vm5 = vcmp.lt.f32.partialorder %v6953_v14, 0.0004427343  ;;  %v6465_v5 = vmul.f32 1.442695, %v6389_v46  ;;  %v6952_v18 = vmul.f32 %v16457_v62, %v6951_v59  ;;  %v6956_v40 = vadd.f32 1.0, %v16539_v12 }
 0x6dd   : > { %v16561_v23 = vadd.f32 %v18275_v61, %v15432_v31  ;;  %v6820_v53 = vsel %vm16525_vm3, %v16523_v4, %v16541_v24  ;;  %v7077_v38 = vadd.f32 1.0, %v7076_v21  ;;  %v7094_v14 = vmul.f32 -0.5, %v16520_v41 }
 0x6de   : > { %v9961_v2 = vpop.eup %9960  ;;  %v6469_v46 = vmul.f32 1.442695, %v6391_v11  ;;  %9970 = vlog2.f32 %v6938_v48  ;;  %v6942_v62 = vadd.f32 1.0, %v6941_v54  ;;  %v6944_v59 = vand.u32 2147483647, %v16510_v16 }
 0x6df   : > { %v16568_v50 = vpop.eup %9962  ;;  %v16573_v61 = vadd.f32 %v18276_v57, %v15432_v31  ;;  %v6937_v22 = vsel %vm16533_vm4, %v6934_v60, %v6931_v19  ;;  %v6959_v30 = vmul.f32 -0.5, %v16539_v12  ;;  %v7079_v4 = vand.u32 2147483647, %v16502_v33  ;;  %v18277_v19 = vld [vmem:[#allocation54_spill] sm:$0xff] }
 0x6e0   : > { %9972 = vpow2.f32 %v6465_v5  ;;  %v6949_v24 = vmul.f32 0.6931472, %v9961_v2  ;;  %v7097_v11 = vand.u32 2147483647, %v16520_v41  ;;  %v6326_v21 = vand.u32 2147483647, %v16561_v23 }
 0x6e1   : > { %9974 = vlog2.f32 %v6956_v40  ;;  %v7078_v54 = vmul.f32 %v16502_v33, %v7077_v38  ;;  %v7095_v13 = vadd.f32 1.0, %v7094_v14  ;;  %v7082_v31 = vadd.f32 1.0, %v16568_v50  ;;  %v18278_v5 = vld [vmem:[#allocation20_spill] sm:$0xff] }
 0x6e2   : > { %v9965_v48 = vpop.eup %9964  ;;  %9976 = vpow2.f32 %v6469_v46  ;;  %v6328_v35 = vand.u32 2147483647, %v16573_v61  ;;  %v16586_v60 = vadd.f32 %v18277_v19, %v15441_v37  ;;  %v16590_v40 = vadd.f32 %v18278_v5, %v15441_v37  ;;  %v18280_v14 = vld [vmem:[#allocation56_spill] sm:$0xff] }
 0x6e3   : > { %v7075_v57 = vmul.f32 0.6931472, %v9965_v48  ;;  %v18279_v51 = vmax.f32 %v16298_v10, 0.0  ;;  %v6962_v38 = vand.u32 2147483647, %v16539_v12  ;;  %v8884_v46 = vpack.c.bf16 %v16088_v55, %v18280_v14 }
 0x6e4   : > { %v16592_v2 = vpop.eup %9966  ;;  %vm7080_vm6 = vcmp.lt.f32.partialorder %v7079_v4, 0.0004427343  ;;  %v6955_v19 = vsel %vm16551_vm5, %v6952_v18, %v6949_v24  ;;  %v6390_v52 = vsub.f32 0.0, %v6326_v21  ;;  %v6341_v5 = vand.u32 2147483647, %v16586_v60  ;;  %v18283_v18 = vld [vmem:[#allocation48_spill] sm:$0xff] }
 0x6e5   : > { %v16596_v33 = vadd.f32 %v6937_v22, %v18279_v51  ;;  %v9969_v48 = vpop.eup %9968  ;;  %v7081_v9 = vsel %vm7080_vm6, %v7078_v54, %v7075_v57  ;;  %v18281_v17 = vmax.f32 %v16381_v8, 0.0  ;;  %v7096_v51 = vmul.f32 %v16520_v41, %v7095_v13  ;;  %8885 = vmatprep.subr.bf16.mxu0 %v8884_v46  ;;  %v16616_v8 = vld [vmem:[%s17086_s4] sm:$0xff] }
 0x6e6   : > { %v7093_v10 = vmul.f32 0.6931472, %v9969_v48  ;;  %v6343_v22 = vand.u32 2147483647, %v16590_v40  ;;  %vm7098_vm8 = vcmp.lt.f32.partialorder %v7097_v11, 0.0004427343  ;;  %9978 = vlog2.f32 %v7082_v31 }
 0x6e7   : > { %v16606_v63 = vadd.f32 %v7081_v9, %v18281_v17  ;;  %v6392_v55 = vsub.f32 0.0, %v6328_v35  ;;  %v6405_v4 = vsub.f32 0.0, %v6341_v5  ;;  %v18284_v24 = vpack.c.bf16 %v18282_v1, %v18283_v18 }
 0x6e8   : > { %v7099_v9 = vsel %vm7098_vm8, %v7096_v51, %v7093_v10  ;;  %v7100_v41 = vadd.f32 1.0, %v16592_v2  ;;  %v6407_v13 = vsub.f32 0.0, %v6343_v22  ;;  %v9971_v11 = vpop.eup %9970  ;;  %v18285_v21 = vmax.f32 %v16264_v43, 0.0  ;;  %v18297_v43 = vld [vmem:[#allocation35_spill] sm:$0xff] }
 0x6e9   : > { %8887 = vmatpush1.bf16.msra.mxu0 %v18284_v24  ;;  %v18286_v31 = vmax.f32 %v16324_v39, 0.0  ;;  %v18287_v35 = vmax.f32 %v16409_v56, 0.0  ;;  %v6467_v46 = vmul.f32 1.442695, %v6390_v52  ;;  %v18288_v5 = vmax.f32 %v16278_v49, 0.0  ;;  %v18291_v49 = vld [vmem:[#allocation43_spill] sm:$0xff] }
 0x6ea   : > { %v16623_v54 = vadd.f32 %v6802_v58, %v18285_v21  ;;  %v16633_v48 = vpop.eup %9972  ;;  %v6943_v51 = vmul.f32 %v16510_v16, %v6942_v62  ;;  %vm16640_vm9 = vcmp.lt.f32.partialorder %v6944_v59, 0.0004427343  ;;  %v6960_v39 = vadd.f32 1.0, %v6959_v30 }
 0x6eb   : > { %v16627_v57 = vadd.f32 %v6955_v19, %v18286_v31  ;;  %v16631_v14 = vadd.f32 %v7099_v9, %v18287_v35  ;;  %v16637_v10 = vadd.f32 %v6820_v53, %v18288_v5  ;;  %v9975_v56 = vpop.eup %9974  ;;  %v6471_v58 = vmul.f32 1.442695, %v6392_v55  ;;  %v18296_v5 = vld [vmem:[#allocation22_spill] sm:$0xff] }
 0x6ec   : > { %8673 = vmatmul.mubr.msk.f32.vlgmr.msra.gmra.mrb[128].mxu0 %vm2096_vm7, %v16616_v8  ;;  %v6497_v19 = vmul.f32 1.442695, %v6405_v4  ;;  %v16650_v53 = vadd.f32 %v18291_v49, %v15441_v37  ;;  %v18292_v22 = vmov 0.0   ;;  %v16653_v16 = vpop.eup %9976  ;;  %v6940_v62 = vmul.f32 0.6931472, %v9971_v11  ;;  %v18295_v4 = vld [vmem:[#allocation38_spill] sm:$0xff] }
 0x6ed   : > { %7991 = vmatprep.mubr.f32.mxu0 %v18292_v22  ;;  %vm16655_vm0 = vcmp.lt.f32.partialorder %v6962_v38, 0.0004427343  ;;  %9980 = vlog2.f32 %v7100_v41  ;;  %v6501_v30 = vmul.f32 1.442695, %v6407_v13  ;;  %v6677_v55 = vadd.f32 1.0, %v16633_v48 }
 0x6ee   : > { %9982 = vpow2.f32 %v6467_v46  ;;  %v16663_v18 = vadd.f32 %v18295_v4, %v15441_v37  ;;  %v6958_v24 = vmul.f32 0.6931472, %v9975_v56  ;;  %v6961_v9 = vmul.f32 %v16539_v12, %v6960_v39 }
 0x6ef   : > { %9984 = vpow2.f32 %v6497_v19  ;;  %v7085_v38 = vmul.f32 -0.5, %v16568_v50  ;;  %v6695_v41 = vadd.f32 1.0, %v16653_v16  ;;  %v6342_v13 = vand.u32 2147483647, %v16650_v53 }
 0x6f0   : > { %9986 = vpow2.f32 %v6471_v58  ;;  %v6946_v21 = vsel %vm16640_vm9, %v6943_v51, %v6940_v62  ;;  %v7088_v31 = vand.u32 2147483647, %v16568_v50  ;;  %v7103_v37 = vmul.f32 -0.5, %v16592_v2  ;;  %v9979_v35 = vpop.eup %9978 }
 0x6f1   : > { %9988 = vpow2.f32 %v6501_v30  ;;  %v6406_v12 = vsub.f32 0.0, %v6342_v13  ;;  %v6344_v46 = vand.u32 2147483647, %v16663_v18  ;;  %v8892_v39 = vpack.c.bf16 %v16092_v32, %v18296_v5  ;;  %v18302_v13 = vld [vmem:[#allocation18_spill] sm:$0xff] }
 0x6f2   : > { %9990 = vlog2.f32 %v6677_v55  ;;  %v6964_v56 = vsel %vm16655_vm0, %v6961_v9, %v6958_v24  ;;  %v6680_v58 = vmul.f32 -0.5, %v16633_v48  ;;  %v16683_v19 = vadd.f32 %v18297_v43, %v15519_v0  ;;  %v18301_v9 = vld [vmem:[#allocation17_spill] sm:$0xff] }
 0x6f3   : > { %v7086_v49 = vadd.f32 1.0, %v7085_v38  ;;  %v7106_v62 = vand.u32 2147483647, %v16592_v2  ;;  %9992 = vlog2.f32 %v6695_v41  ;;  %v6499_v30 = vmul.f32 1.442695, %v6406_v12  ;;  %8893 = vmatprep.subr.bf16.mxu1 %v8892_v39 }
 0x6f4   : > { %v18298_v55 = vmax.f32 %v16373_v47, 0.0  ;;  %vm16690_vm1 = vcmp.lt.f32.partialorder %v7088_v31, 0.0004427343  ;;  %v7104_v4 = vadd.f32 1.0, %v7103_v37  ;;  %v6408_v24 = vsub.f32 0.0, %v6344_v46 }
 0x6f5   : > { %v18303_v5 = vpack.c.bf16 %v18301_v9, %v18302_v13  ;;  %v18304_v38 = vmax.f32 %v16393_v34, 0.0  ;;  %v7084_v41 = vmul.f32 0.6931472, %v9979_v35  ;;  %v6683_v12 = vand.u32 2147483647, %v16633_v48 }
 0x6f6   : > { %v16688_v32 = vadd.f32 %v6946_v21, %v18298_v55  ;;  %v6698_v47 = vmul.f32 -0.5, %v16653_v16  ;;  %v6681_v31 = vadd.f32 1.0, %v6680_v58  ;;  %9994 = vpow2.f32 %v6499_v30 }
 0x6f7   : > { %8895 = vmatpush1.bf16.msra.mxu1 %v18303_v5  ;;  %v16699_v43 = vadd.f32 %v6964_v56, %v18304_v38  ;;  %v9981_v21 = vpop.eup %9980  ;;  %v6503_v39 = vmul.f32 1.442695, %v6408_v24  ;;  %v6357_v37 = vand.u32 2147483647, %v16683_v19  ;;  %v7087_v55 = vmul.f32 %v16568_v50, %v7086_v49  ;;  %v18307_v50 = vld [vmem:[#allocation25_spill] sm:$0xff] }
 0x6f8   : > { %v16704_v46 = vpop.eup %9982  ;;  %vm16707_vm10 = vcmp.lt.f32.partialorder %v7106_v62, 0.0004427343  ;;  %v6701_v34 = vand.u32 2147483647, %v16653_v16  ;;  %v7105_v58 = vmul.f32 %v16592_v2, %v7104_v4  ;;  %v16721_v49 = vadd.f32 %v18307_v50, %v15519_v0 }
 0x6f9   : > { %v16715_v56 = vpop.eup %9984  ;;  %9996 = vpow2.f32 %v6503_v39  ;;  %v7090_v24 = vsel %vm16690_vm1, %v7087_v55, %v7084_v41  ;;  %v7102_v13 = vmul.f32 0.6931472, %v9981_v21  ;;  %v6699_v5 = vadd.f32 1.0, %v6698_v47  ;;  %v18312_v41 = vld [vmem:[#allocation53_spill] sm:$0xff] }
 0x6fa   : > { %8674 = vmatmul.mubr.msk.f32.vlgmr.msra.gmra.mrb[128].mxu1 %vm2096_vm7, %v16616_v8  ;;  %v16724_v62 = vpop.eup %9986  ;;  %v6821_v38 = vadd.f32 1.0, %v16715_v56  ;;  %v6682_v2 = vmul.f32 %v16633_v48, %v6681_v31  ;;  %vm16732_vm11 = vcmp.lt.f32.partialorder %v6683_v12, 0.0004427343  ;;  %v6421_v50 = vsub.f32 0.0, %v6357_v37 }
 0x6fb   : > { %8062 = vmatprep.mubr.f32.mxu1 %v18292_v22  ;;  %v16729_v52 = vpop.eup %9988  ;;  %vm16737_vm12 = vcmp.lt.f32.partialorder %v6701_v34, 0.0004427343  ;;  %v16744_v47 = vadd.f32 %v18312_v41, %v15519_v0  ;;  %v18314_v48 = vmax.f32 %v16445_v29, 0.0  ;;  %v6686_v21 = vadd.f32 1.0, %v16704_v46 }
 0x6fc   : > { %v9991_v17 = vpop.eup %9990  ;;  %9998 = vlog2.f32 %v6821_v38  ;;  %v6839_v59 = vadd.f32 1.0, %v16729_v52  ;;  %v6689_v31 = vmul.f32 -0.5, %v16704_v46  ;;  %v6359_v37 = vand.u32 2147483647, %v16721_v49 }
 0x6fd   : > { %18313 = vst [vmem:[#allocation57_spill] sm:$0xff] %v16744_v47  ;;  %v16748_v12 = vadd.f32 %v7090_v24, %v18314_v48  ;;  %v9993_v55 = vpop.eup %9992  ;;  %v7108_v34 = vsel %vm16707_vm10, %v7105_v58, %v7102_v13  ;;  %v6700_v38 = vmul.f32 %v16653_v16, %v6699_v5  ;;  %v6704_v51 = vadd.f32 1.0, %v16724_v62  ;;  %v18315_v48 = vld [vmem:[#allocation24_spill] sm:$0xff] }
 0x6fe   : > { %10000 = vlog2.f32 %v6839_v59  ;;  %v6679_v41 = vmul.f32 0.6931472, %v9991_v17  ;;  %v6824_v29 = vmul.f32 -0.5, %v16715_v56  ;;  %v6529_v24 = vmul.f32 1.442695, %v6421_v50 }
 0x6ff   : > { %v16760_v39 = vadd.f32 %v18315_v48, %v15519_v0  ;;  %v6692_v30 = vand.u32 2147483647, %v16704_v46  ;;  %v6358_v9 = vand.u32 2147483647, %v16744_v47  ;;  %v16767_v16 = vadd.f32 %v16040_v6, %v15564_v25 }
 0x700   : > { %v16769_v58 = vpop.eup %9994  ;;  %v6697_v17 = vmul.f32 0.6931472, %v9993_v55  ;;  %10002 = vlog2.f32 %v6686_v21  ;;  %v6842_v13 = vmul.f32 -0.5, %v16729_v52  ;;  %v6423_v5 = vsub.f32 0.0, %v6359_v37 }
 0x701   : > { %v18316_v0 = vmax.f32 %v16452_v3, 0.0  ;;  %v6690_v59 = vadd.f32 1.0, %v6689_v31  ;;  %10004 = vlog2.f32 %v6704_v51  ;;  %v6830_v48 = vadd.f32 1.0, %v16769_v58 }
 0x702   : > { %v6685_v6 = vsel %vm16732_vm11, %v6682_v2, %v6679_v41  ;;  %v6825_v1 = vadd.f32 1.0, %v6824_v29  ;;  %10006 = vpow2.f32 %v6529_v24  ;;  %v6360_v21 = vand.u32 2147483647, %v16760_v39 }
 0x703   : > { %v16774_v50 = vadd.f32 %v7108_v34, %v18316_v0  ;;  %v16777_v11 = vpop.eup %9996  ;;  %v6827_v55 = vand.u32 2147483647, %v16715_v56  ;;  %10008 = vlog2.f32 %v6830_v48  ;;  %v6422_v37 = vsub.f32 0.0, %v6358_v9 }
 0x704   : > { %v6373_v3 = vand.u32 2147483647, %v16767_v16  ;;  %v6703_v51 = vsel %vm16737_vm12, %v6700_v38, %v6697_v17  ;;  %v6843_v31 = vadd.f32 1.0, %v6842_v13  ;;  %v6848_v34 = vadd.f32 1.0, %v16777_v11 }
 0x705   : > { %v6533_v0 = vmul.f32 1.442695, %v6423_v5  ;;  %v18317_v2 = vmax.f32 %v16473_v36, 0.0  ;;  %v16792_v41 = vmul.f32 %v16704_v46, %v6690_v59  ;;  %v6707_v29 = vmul.f32 -0.5, %v16724_v62 }
 0x706   : > { %v9999_v47 = vpop.eup %9998  ;;  %v6845_v24 = vand.u32 2147483647, %v16729_v52  ;;  %v6826_v35 = vmul.f32 %v16715_v56, %v6825_v1  ;;  %10010 = vlog2.f32 %v6848_v34  ;;  %v6424_v38 = vsub.f32 0.0, %v6360_v21 }
 0x707   : > { %v16789_v4 = vadd.f32 %v6685_v6, %v18317_v2  ;;  %v6823_v9 = vmul.f32 0.6931472, %v9999_v47  ;;  %v18318_v13 = vmax.f32 %v16508_v15, 0.0  ;;  %vm6828_vm13 = vcmp.lt.f32.partialorder %v6827_v55, 0.0004427343 }
 0x708   : > { %v10001_v17 = vpop.eup %10000  ;;  %v6531_v36 = vmul.f32 1.442695, %v6422_v37  ;;  %v6437_v48 = vsub.f32 0.0, %v6373_v3  ;;  %v6844_v59 = vmul.f32 %v16729_v52, %v6843_v31  ;;  %10012 = vpow2.f32 %v6533_v0 }
 0x709   : > { %v16799_v5 = vadd.f32 %v6703_v51, %v18318_v13  ;;  %v6829_v6 = vsel %vm6828_vm13, %v6826_v35, %v6823_v9  ;;  %v6841_v46 = vmul.f32 0.6931472, %v10001_v17  ;;  %v18319_v2 = vmax.f32 %v16586_v60, 0.0 }
 0x70a   : > { %vm6846_vm14 = vcmp.lt.f32.partialorder %v6845_v24, 0.0004427343  ;;  %v6833_v1 = vmul.f32 -0.5, %v16769_v58  ;;  %v16809_v15 = vadd.f32 %v16050_v27, %v15564_v25  ;;  %v10003_v56 = vpop.eup %10002  ;;  %v6851_v55 = vmul.f32 -0.5, %v16777_v11 }
 0x70b   : > { %v16804_v47 = vadd.f32 %v6829_v6, %v18319_v2  ;;  %v6847_v21 = vsel %vm6846_vm14, %v6844_v59, %v6841_v46  ;;  %v6535_v37 = vmul.f32 1.442695, %v6424_v38  ;;  %v6561_v3 = vmul.f32 1.442695, %v6437_v48  ;;  %v10005_v51 = vpop.eup %10004  ;;  %v18337_v2 = vld [vmem:[#allocation27_spill] sm:$0xff] }
 0x70c   : > { %v18320_v60 = vmax.f32 %v16590_v40, 0.0  ;;  %10014 = vpow2.f32 %v6531_v36  ;;  %v16820_v34 = vadd.f32 %v16105_v7, %v15564_v25  ;;  %v16822_v27 = vpop.eup %10006  ;;  %vm16824_vm15 = vcmp.lt.f32.partialorder %v6692_v30, 0.0004427343 }
 0x70d   : > { %v6708_v24 = vadd.f32 1.0, %v6707_v29  ;;  %v6710_v9 = vand.u32 2147483647, %v16724_v62  ;;  %v6836_v35 = vand.u32 2147483647, %v16769_v58  ;;  %v16832_v40 = vadd.f32 %v16122_v20, %v15564_v25  ;;  %v10009_v38 = vpop.eup %10008 }
 0x70e   : > { %v16816_v31 = vadd.f32 %v6847_v21, %v18320_v60  ;;  %v6834_v17 = vadd.f32 1.0, %v6833_v1  ;;  %10016 = vpow2.f32 %v6561_v3  ;;  %v6375_v30 = vand.u32 2147483647, %v16809_v15 }
 0x70f   : > { %v6688_v13 = vmul.f32 0.6931472, %v10003_v56  ;;  %v6852_v36 = vadd.f32 1.0, %v6851_v55  ;;  %v6854_v29 = vand.u32 2147483647, %v16777_v11  ;;  %10018 = vpow2.f32 %v6535_v37 }
 0x710   : > { %v6832_v48 = vmul.f32 0.6931472, %v10009_v38  ;;  %v6965_v6 = vadd.f32 1.0, %v16822_v27  ;;  %v6439_v46 = vsub.f32 0.0, %v6375_v30  ;;  %v6374_v25 = vand.u32 2147483647, %v16820_v34  ;;  %v10011_v20 = vpop.eup %10010 }
 0x711   : > { %v6706_v59 = vmul.f32 0.6931472, %v10005_v51  ;;  %vm16840_vm2 = vcmp.lt.f32.partialorder %v6836_v35, 0.0004427343  ;;  %v6376_v1 = vand.u32 2147483647, %v16832_v40  ;;  %v8896_v56 = vpack.c.bf16 %v16255_v28, %v16134_v45 }
 0x712   : > { %v6835_v21 = vmul.f32 %v16769_v58, %v6834_v17  ;;  %v6850_v55 = vmul.f32 0.6931472, %v10011_v20  ;;  %v6565_v37 = vmul.f32 1.442695, %v6439_v46  ;;  %v6438_v3 = vsub.f32 0.0, %v6374_v25  ;;  %v16848_v60 = vpop.eup %10012  ;;  %v18325_v35 = vld [vmem:[#allocation8_spill] sm:$0xff] }
 0x713   : > { %v6853_v38 = vmul.f32 %v16777_v11, %v6852_v36  ;;  %v6440_v30 = vsub.f32 0.0, %v6376_v1  ;;  %8897 = vmatprep.subr.bf16.mxu0 %v8896_v56  ;;  %v8904_v51 = vpack.c.bf16 %v16291_v26, %v16140_v42  ;;  %v8900_v7 = vpack.c.bf16 %v18325_v35, %v16311_v44  ;;  %v18328_v58 = vld [vmem:[#allocation42_spill] sm:$0xff]  ;;  %v18329_v11 = vld [vmem:[#allocation51_spill] sm:$0xff] }
 0x714   : > { %v6709_v52 = vmul.f32 %v16724_v62, %v6708_v24  ;;  %v6838_v45 = vsel %vm16840_vm2, %v6835_v21, %v6832_v48  ;;  %vm16858_vm3 = vcmp.lt.f32.partialorder %v6854_v29, 0.0004427343  ;;  %10020 = vlog2.f32 %v6965_v6  ;;  %v18333_v48 = vld [vmem:[#allocation29_spill] sm:$0xff]  ;;  %v18334_v6 = vld [vmem:[#allocation55_spill] sm:$0xff]  ;;  %v18342_v56 = vld [vmem:[#allocation14_spill] sm:$0xff] }
 0x715   : > { %v18330_v17 = vpack.c.bf16 %v18328_v58, %v18329_v11  ;;  %vm16865_vm4 = vcmp.lt.f32.partialorder %v6710_v9, 0.0004427343  ;;  %v6856_v42 = vsel %vm16858_vm3, %v6853_v38, %v6850_v55  ;;  %10022 = vpow2.f32 %v6565_v37  ;;  %8905 = vmatprep.subr.bf16.mxu1 %v8904_v51  ;;  %v18338_v1 = vld [vmem:[#allocation11_spill] sm:$0xff]  ;;  %v18349_v11 = vld [vmem:[#allocation10_spill] sm:$0xff] }
 0x716   : > { %v6563_v26 = vmul.f32 1.442695, %v6438_v3  ;;  %v16871_v44 = vpop.eup %10014  ;;  %v6694_v62 = vsel %vm16824_vm15, %v16792_v41, %v6688_v13  ;;  %v6712_v24 = vsel %vm16865_vm4, %v6709_v52, %v6706_v59  ;;  %v6280_v9 = vmax.f32 %v16663_v18, 0.0  ;;  %v18339_v52 = vld [vmem:[#allocation23_spill] sm:$0xff] }
 0x717   : > { %8899 = vmatpush1.bf16.msra.mxu0 %v18330_v17  ;;  %v6983_v29 = vadd.f32 1.0, %v16848_v60  ;;  %v18335_v46 = vpack.c.bf16 %v18333_v48, %v18334_v6  ;;  %v18336_v25 = vmax.f32 %v16650_v53, 0.0  ;;  %v6567_v20 = vmul.f32 1.442695, %v6440_v30  ;;  %v18340_v59 = vld [vmem:[#allocation59_spill] sm:$0xff]  ;;  %v18350_v17 = vld [vmem:[#allocation9_spill] sm:$0xff] }
 0x718   : > { %8901 = vmatprep.subr.bf16.mxu0 %v8900_v7  ;;  %10024 = vpow2.f32 %v6563_v26  ;;  %v8908_v0 = vpack.c.bf16 %v18338_v1, %v18337_v2  ;;  %v16887_v41 = vpop.eup %10016  ;;  %v7176_v13 = vadd.f32 %v6856_v42, %v6280_v9  ;;  %v18341_v18 = vpack.c.bf16 %v18339_v52, %v18340_v59  ;;  %v18343_v55 = vld [vmem:[#allocation15_spill] sm:$0xff]  ;;  %v18352_v26 = vld [vmem:[#allocation13_spill] sm:$0xff] }
 0x719   : > { %8907 = vmatpush1.bf16.msra.mxu1 %v18335_v46  ;;  %v7174_v7 = vadd.f32 %v6838_v45, %v18336_v25  ;;  %v8912_v21 = vpack.c.bf16 %v16623_v54, %v18342_v56  ;;  %v8920_v37 = vpack.c.bf16 %v16637_v10, %v18343_v55  ;;  %v8916_v53 = vpack.c.bf16 %v16748_v12, %v16688_v32  ;;  %v16898_v3 = vpop.eup %10018  ;;  %v18346_v54 = vld [vmem:[#allocation40_spill] sm:$0xff]  ;;  %v18347_v58 = vld [vmem:[#allocation39_spill] sm:$0xff] }
 0x71a   : > { %v18344_v38 = vmax.f32 %v16561_v23, 0.0  ;;  %v6974_v51 = vadd.f32 1.0, %v16871_v44  ;;  %v7109_v35 = vadd.f32 1.0, %v16887_v41  ;;  %8909 = vmatprep.subr.bf16.mxu1 %v8908_v0  ;;  %v18345_v45 = vmax.f32 %v16573_v61, 0.0 }
 0x71b   : > { %8903 = vmatpush1.bf16.msra.mxu0 %v18341_v18  ;;  %10026 = vpow2.f32 %v6567_v20  ;;  %v18348_v10 = vpack.c.bf16 %v18346_v54, %v18347_v58  ;;  %v8924_v32 = vpack.c.bf16 %v16774_v50, %v16699_v43  ;;  %v6968_v12 = vmul.f32 -0.5, %v16822_v27 }
 0x71c   : > { %v7158_v30 = vadd.f32 %v6694_v62, %v18344_v38  ;;  %v7160_v28 = vadd.f32 %v6712_v24, %v18345_v45  ;;  %8913 = vmatprep.subr.bf16.mxu0 %v8912_v21  ;;  %10028 = vlog2.f32 %v7109_v35  ;;  %v6992_v61 = vadd.f32 1.0, %v16898_v3  ;;  %v18353_v62 = vld [vmem:[#allocation12_spill] sm:$0xff] }
 0x71d   : > { %8911 = vmatpush1.bf16.msra.mxu1 %v18348_v10  ;;  %10030 = vlog2.f32 %v6983_v29  ;;  %v18351_v36 = vpack.c.bf16 %v18349_v11, %v18350_v17  ;;  %v7112_v50 = vmul.f32 -0.5, %v16887_v41  ;;  %v18354_v24 = vpack.c.bf16 %v18352_v26, %v18353_v62 }
 0x71e   : > { %8675 = vmatmul.mubr.msk.f32.vlgmr.msra.gmra.mrb[130].mxu0 %vm2096_vm7, %v16616_v8  ;;  %8921 = vmatprep.subr.bf16.mxu1 %v8920_v37  ;;  %v8928_v23 = vpack.c.bf16 %v7174_v7, %v7158_v30  ;;  %v8936_v42 = vpack.c.bf16 %v7176_v13, %v7160_v28  ;;  %10032 = vlog2.f32 %v6974_v51  ;;  %v10021_v43 = vpop.eup %10020  ;;  %v6969_v29 = vadd.f32 1.0, %v6968_v12 }
 0x71f   : > { %8915 = vmatpush1.bf16.msra.mxu0 %v18351_v36  ;;  %8133 = vmatprep.mubr.f32.mxu0 %v18292_v22  ;;  %v16926_v9 = vpop.eup %10022  ;;  %10034 = vlog2.f32 %v6992_v61  ;;  %v18355_v6 = vpack.c.bf16 %v16606_v63, %v16596_v33  ;;  %v6293_v25 = vmax.f32 %v16683_v19, 0.0  ;;  %v6971_v7 = vand.u32 2147483647, %v16822_v27  ;;  %v18357_v33 = vld [vmem:[#allocation57_spill] sm:$0xff] }
 0x720   : > { %8676 = vmatmul.mubr.msk.f32.vlgmr.msra.gmra.mrb[130].mxu1 %vm2096_vm7, %v16616_v8  ;;  %8917 = vmatprep.subr.bf16.mxu0 %v8916_v53  ;;  %v7127_v48 = vadd.f32 1.0, %v16926_v9  ;;  %v6986_v20 = vmul.f32 -0.5, %v16848_v60  ;;  %v6967_v2 = vmul.f32 0.6931472, %v10021_v43  ;;  %v7113_v1 = vadd.f32 1.0, %v7112_v50 }
 0x721   : > { %8923 = vmatpush1.bf16.msra.mxu1 %v18354_v24  ;;  %8204 = vmatprep.mubr.f32.mxu1 %v18292_v22  ;;  %v18356_v13 = vpack.c.bf16 %v16631_v14, %v16627_v57  ;;  %v6295_v63 = vmax.f32 %v16721_v49, 0.0  ;;  %v6294_v52 = vmax.f32 %v18357_v33, 0.0  ;;  %v6309_v19 = vmax.f32 %v16767_v16, 0.0 }
 0x722   : > { %8925 = vmatprep.subr.bf16.mxu1 %v8924_v32  ;;  %v16932_v46 = vpop.eup %10024  ;;  %10036 = vlog2.f32 %v7127_v48  ;;  %v7115_v59 = vand.u32 2147483647, %v16887_v41  ;;  %v6970_v56 = vmul.f32 %v16822_v27, %v6969_v29  ;;  %v6989_v21 = vand.u32 2147483647, %v16848_v60 }
 0x723   : > { %8919 = vmatpush1.bf16.msra.mxu0 %v18355_v6  ;;  %v7118_v0 = vadd.f32 1.0, %v16932_v46  ;;  %v6977_v57 = vmul.f32 -0.5, %v16871_v44  ;;  %v18358_v14 = vpack.c.bf16 %v16804_v47, %v16789_v4  ;;  %vm16956_vm5 = vcmp.lt.f32.partialorder %v6971_v7, 0.0004427343 }
 0x724   : > { %8929 = vmatprep.subr.bf16.mxu0 %v8928_v23  ;;  %v6987_v37 = vadd.f32 1.0, %v6986_v20  ;;  %v7130_v53 = vmul.f32 -0.5, %v16926_v9  ;;  %v6973_v4 = vsel %vm16956_vm5, %v6970_v56, %v6967_v2  ;;  %v6995_v47 = vmul.f32 -0.5, %v16898_v3 }
 0x725   : > { %8927 = vmatpush1.bf16.msra.mxu1 %v18356_v13  ;;  %v16947_v18 = vpop.eup %10026  ;;  %10038 = vlog2.f32 %v7118_v0  ;;  %v7114_v51 = vmul.f32 %v16887_v41, %v7113_v1  ;;  %v18361_v35 = vpack.c.bf16 %v16816_v31, %v16799_v5  ;;  %v6980_v28 = vand.u32 2147483647, %v16871_v44 }
 0x726   : > { %8677 = vmatmul.mubr.msk.f32.vlgmr.msra.gmra.mrb[132].mxu0 %vm2096_vm7, %v16616_v8  ;;  %8937 = vmatprep.subr.bf16.mxu1 %v8936_v42  ;;  %v10029_v16 = vpop.eup %10028  ;;  %v7136_v27 = vadd.f32 1.0, %v16947_v18  ;;  %vm7116_vm6 = vcmp.lt.f32.partialorder %v7115_v59, 0.0004427343  ;;  %v7121_v54 = vmul.f32 -0.5, %v16932_v46  ;;  %vm16974_vm8 = vcmp.lt.f32.partialorder %v6989_v21, 0.0004427343 }
 0x727   : > { %8931 = vmatpush1.bf16.msra.mxu0 %v18358_v14  ;;  %8275 = vmatprep.mubr.f32.mxu0 %v18292_v22  ;;  %v10031_v38 = vpop.eup %10030  ;;  %v7111_v30 = vmul.f32 0.6931472, %v10029_v16  ;;  %v6978_v10 = vadd.f32 1.0, %v6977_v57  ;;  %v6311_v41 = vmax.f32 %v16809_v15, 0.0  ;;  %v7189_v23 = vadd.f32 %v6973_v4, %v6293_v25 }
 0x728   : > { %8678 = vmatmul.mubr.msk.f32.vlgmr.msra.gmra.mrb[132].mxu1 %vm2096_vm7, %v16616_v8  ;;  %v10033_v45 = vpop.eup %10032  ;;  %10040 = vlog2.f32 %v7136_v27  ;;  %v6985_v5 = vmul.f32 0.6931472, %v10031_v38  ;;  %v7131_v12 = vadd.f32 1.0, %v7130_v53  ;;  %v6996_v11 = vadd.f32 1.0, %v6995_v47 }
 0x729   : > { %8939 = vmatpush1.bf16.msra.mxu1 %v18361_v35  ;;  %8346 = vmatprep.mubr.f32.mxu1 %v18292_v22  ;;  %v7117_v32 = vsel %vm7116_vm6, %v7114_v51, %v7111_v30  ;;  %v10035_v22 = vpop.eup %10034  ;;  %v6976_v61 = vmul.f32 0.6931472, %v10033_v45  ;;  %v7133_v17 = vand.u32 2147483647, %v16926_v9  ;;  %v7139_v36 = vmul.f32 -0.5, %v16947_v18 }
 0x72a   : > { %v7205_v31 = vadd.f32 %v7117_v32, %v6309_v19  ;;  %v6988_v42 = vmul.f32 %v16848_v60, %v6987_v37  ;;  %vm16982_vm9 = vcmp.lt.f32.partialorder %v6980_v28, 0.0004427343  ;;  %v7122_v26 = vadd.f32 1.0, %v7121_v54 }
 0x72b   : > { %v6979_v62 = vmul.f32 %v16871_v44, %v6978_v10  ;;  %v6998_v24 = vand.u32 2147483647, %v16898_v3  ;;  %v6310_v29 = vmax.f32 %v16820_v34, 0.0  ;;  %v7124_v48 = vand.u32 2147483647, %v16932_v46 }
 0x72c   : > { %v8934_v50 = vpack.c.bf16 %v7205_v31, %v7189_v23  ;;  %v10037_v15 = vpop.eup %10036  ;;  %v6991_v6 = vsel %vm16974_vm8, %v6988_v42, %v6985_v5  ;;  %v6994_v25 = vmul.f32 0.6931472, %v10035_v22  ;;  %v7132_v7 = vmul.f32 %v16926_v9, %v7131_v12 }
 0x72d   : > { %v7129_v60 = vmul.f32 0.6931472, %v10037_v15  ;;  %v6982_v2 = vsel %vm16982_vm9, %v6979_v62, %v6976_v61  ;;  %v6997_v1 = vmul.f32 %v16898_v3, %v6996_v11  ;;  %vm7134_vm0 = vcmp.lt.f32.partialorder %v7133_v17, 0.0004427343 }
 0x72e   : > { %v7140_v44 = vadd.f32 1.0, %v7139_v36  ;;  %v7123_v34 = vmul.f32 %v16932_v46, %v7122_v26  ;;  %v7142_v19 = vand.u32 2147483647, %v16947_v18  ;;  %v7191_v59 = vadd.f32 %v6991_v6, %v6295_v63 }
 0x72f   : > { %v10039_v20 = vpop.eup %10038  ;;  %v7135_v0 = vsel %vm7134_vm0, %v7132_v7, %v7129_v60  ;;  %vm17000_vm1 = vcmp.lt.f32.partialorder %v6998_v24, 0.0004427343  ;;  %vm7125_vm10 = vcmp.lt.f32.partialorder %v7124_v48, 0.0004427343  ;;  %v7190_v3 = vadd.f32 %v6982_v2, %v6294_v52 }
 0x730   : > { %v7120_v13 = vmul.f32 0.6931472, %v10039_v20  ;;  %v7207_v9 = vadd.f32 %v7135_v0, %v6311_v41  ;;  %v7000_v57 = vsel %vm17000_vm1, %v6997_v1, %v6994_v25  ;;  %v7141_v49 = vmul.f32 %v16947_v18, %v7140_v44 }
 0x731   : > { %v6296_v63 = vmax.f32 %v16760_v39, 0.0  ;;  %v6312_v37 = vmax.f32 %v16832_v40, 0.0  ;;  %vm7143_vm11 = vcmp.lt.f32.partialorder %v7142_v19, 0.0004427343  ;;  %v8357_v39 = vpop.permute.xlu0 %8356 }
 0x732   : > { %v10041_v21 = vpop.eup %10040  ;;  %v7126_v14 = vsel %vm7125_vm10, %v7123_v34, %v7120_v13  ;;  %v8942_v46 = vpack.c.bf16 %v7207_v9, %v7191_v59 }
 0x733   : > { %v7206_v16 = vadd.f32 %v7126_v14, %v6310_v29  ;;  %v7138_v55 = vmul.f32 0.6931472, %v10041_v21  ;;  %v7192_v38 = vadd.f32 %v7000_v57, %v6296_v63 }
 0x735   : > { %v7144_v53 = vsel %vm7143_vm11, %v7141_v49, %v7138_v55  ;;  %v8932_v27 = vpack.c.bf16 %v7206_v16, %v7190_v3 }
 0x736   : > { %v7208_v33 = vadd.f32 %v7144_v53, %v6312_v37 }
 0x737   : > { %8933 = vmatprep.subr.bf16.mxu0 %v8932_v27 }
 0x738   : > { %v8940_v52 = vpack.c.bf16 %v7208_v33, %v7192_v38  ;;  %8935 = vmatpush1.bf16.msra.mxu0 %v8934_v50 }
 0x73a   : > { %8941 = vmatprep.subr.bf16.mxu1 %v8940_v52 }
 0x73b   : > { %8943 = vmatpush1.bf16.msra.mxu1 %v8942_v46  ;;  %8679 = vmatmul.mubr.msk.f32.vlgmr.msra.gmra.mrb[134].mxu0 %vm2096_vm7, %v16616_v8 }
 0x73e   : > { %8680 = vmatmul.mubr.msk.f32.vlgmr.msra.gmra.mrb[134].mxu1 %vm2096_vm7, %v16616_v8 }
 0x7bf   : > { %v7851_v18 = vpop.f32.mrb[128].mxu0 }
 0x7c0   : > { %v8359_v40 = vadd.f32 %v8357_v39, %v7851_v18  ;;  %v7853_v4 = vpop.f32.mrb[129].mxu0 }
 0x7c1   : > { %v8360_v47 = vadd.f32 %v8357_v39, %v7853_v4 }
 0x7c2   : > { %8375 = vst [vmem:[%s17016_s11] sm:$0xff] %v8359_v40 }
 0x7c3   : > { %8376 = vst [vmem:[%s17016_s11 + $0x8] sm:$0xff] %v8360_v47 }
 0x7cd   : > { %v7922_v30 = vpop.f32.mrb[128].mxu1 }
 0x7ce   : > { %v8361_v51 = vadd.f32 %v8357_v39, %v7922_v30  ;;  %v7924_v8 = vpop.f32.mrb[129].mxu1 }
 0x7cf   : > { %v8362_v35 = vadd.f32 %v8357_v39, %v7924_v8 }
 0x7d0   : > { %8377 = vst [vmem:[%s17016_s11 + $0x10] sm:$0xff] %v8361_v51 }
 0x7d1   : > { %8378 = vst [vmem:[%s17016_s11 + $0x18] sm:$0xff] %v8362_v35 }
 0x7f1   : > { %v7993_v45 = vpop.f32.mrb[130].mxu0 }
 0x7f2   : > { %v8363_v28 = vadd.f32 %v8357_v39, %v7993_v45  ;;  %v7995_v54 = vpop.f32.mrb[131].mxu0 }
 0x7f3   : > { %v8064_v58 = vpop.f32.mrb[130].mxu1  ;;  %v8364_v10 = vadd.f32 %v8357_v39, %v7995_v54 }
 0x7f4   : > { %8379 = vst [vmem:[%s17016_s11 + $0x20] sm:$0xff] %v8363_v28  ;;  %v8365_v32 = vadd.f32 %v8357_v39, %v8064_v58  ;;  %v8066_v41 = vpop.f32.mrb[131].mxu1 }
 0x7f5   : > { %8380 = vst [vmem:[%s17016_s11 + $0x28] sm:$0xff] %v8364_v10  ;;  %v8366_v23 = vadd.f32 %v8357_v39, %v8066_v41 }
 0x7f6   : > { %8381 = vst [vmem:[%s17016_s11 + $0x30] sm:$0xff] %v8365_v32 }
 0x7f7   : > { %8382 = vst [vmem:[%s17016_s11 + $0x38] sm:$0xff] %v8366_v23 }
 0x7f9   : > { %v8135_v5 = vpop.f32.mrb[132].mxu0 }
 0x7fa   : > { %v8367_v31 = vadd.f32 %v8357_v39, %v8135_v5  ;;  %v8137_v12 = vpop.f32.mrb[133].mxu0 }
 0x7fb   : > { %v8206_v22 = vpop.f32.mrb[132].mxu1  ;;  %v8368_v61 = vadd.f32 %v8357_v39, %v8137_v12 }
 0x7fc   : > { %8383 = vst [vmem:[%s17016_s11 + $0x40] sm:$0xff] %v8367_v31  ;;  %v8369_v11 = vadd.f32 %v8357_v39, %v8206_v22  ;;  %v8208_v17 = vpop.f32.mrb[133].mxu1 }
 0x7fd   : > { %8384 = vst [vmem:[%s17016_s11 + $0x48] sm:$0xff] %v8368_v61  ;;  %v8370_v36 = vadd.f32 %v8357_v39, %v8208_v17 }
 0x7fe   : > { %8385 = vst [vmem:[%s17016_s11 + $0x50] sm:$0xff] %v8369_v11 }
 0x7ff   : > { %8386 = vst [vmem:[%s17016_s11 + $0x58] sm:$0xff] %v8370_v36 }
 0x80e   : > { %v8277_v42 = vpop.f32.mrb[134].mxu0 }
 0x80f   : > { %v8371_v43 = vadd.f32 %v8357_v39, %v8277_v42  ;;  %v8279_v50 = vpop.f32.mrb[135].mxu0 }
 0x810   : > { %v8372_v26 = vadd.f32 %v8357_v39, %v8279_v50 }
 0x811   : > { %8387 = vst [vmem:[%s17016_s11 + $0x60] sm:$0xff] %v8371_v43  ;;  %v8348_v15 = vpop.f32.mrb[134].mxu1 }
 0x812   : > { %v8373_v62 = vadd.f32 %v8357_v39, %v8348_v15  ;;  %8388 = vst [vmem:[%s17016_s11 + $0x68] sm:$0xff] %v8372_v26  ;;  %v8350_v24 = vpop.f32.mrb[135].mxu1 }
 0x813   : > { %v8374_v29 = vadd.f32 %v8357_v39, %v8350_v24 }
 0x814   : > { %8389 = vst [vmem:[%s17016_s11 + $0x70] sm:$0xff] %v8373_v62 }
 0x815   : > { %8390 = vst [vmem:[%s17016_s11 + $0x78] sm:$0xff] %v8374_v29 }
 0x816   : > { %10093 = shalt.err (!%p10090_p3)
}
 0x817   : > { %s10094_s8 = scalar_lea.hbm %s17037_s23, 2048  ;;  %s10098_s9 = scalar_lea.hbm %s17089_s7, 8192 }
 0x818   : > { %p10095_p5 = scmp.ne.s32.totalorder %s17037_s23, %s10094_s8  ;;  %p10099_p13 = scmp.lt.u32.totalorder %s17037_s23, %s17089_s7 }
 0x819   : > { %p10100_p0 = scmp.lt.u32.totalorder %s10098_s9, %s10094_s8  ;;  %p10102_p6 = scmp.lt.u32.totalorder %s10094_s8, %s17037_s23 }
 0x81a   : > { %p10096_p7 = pnand %p10095_p5, %p18368_p10 }
 0x81b   : > { %p10101_p2 = por %p10100_p0, %p10099_p13 }
 0x81c   : > { %p10097_p8 = pneg %p10096_p7 }
 0x81d   : > { %p10103_p11 = por %p10102_p6, %p10101_p2 }
 0x81f   : > { %p10104_p12 = pnand %p10103_p11, %p10097_p8 }
 0x821   : > { %10107 = shalt.err (!%p10104_p12)
}
 0x822   : > { %8962 = dma.vmem_to_hbm [thread:$0]  (%p18368_p10), %s17039_s12, 2048, %s17037_s23, %s8392_s28  }
 0x823 PF: > { %p8973_p4 = scmp.ge.s32.totalorder %s10146_s27, 2  ;;  %s8418_s20 = sand.u32 1, %s10134_s24  }
 0x824   : > { %p18369_p9 = scmp.ne.s32.totalorder %s17221_s14, 0  ;;  %s8419_s22 = scalar_lea.sflag [#allocation4], %s8418_s20 }
 0x826   : > { %p8969_p1 = pnand %p8973_p4, %p18369_p9 }
 0x828   : > { %10129 = dma.done.wait (!%p8969_p1), %s8419_s22, 2048  }
 0x829   : > { %10131 = vsyncadd (!%p8969_p1), %s8419_s22, 4294965248  ;;  %p20_p3 = scmp.ge.s32.totalorder %s10217_s30, 6   ;;  %s18370_s24 = smov %s10138_s25 }
 0x82a   : > { %s18371_s25 = smov %s10142_s26  ;;  %s18372_s26 = smov %s10229_s10 }
 0x82b   : > { %s18373_s27 = smov %s10217_s30  ;;  %22 = sbr.rel (!%p20_p3) target bundleno = 5 (0x5), region = 98 }
 0x832   :  { %8424 = vsyncpa [#allocation3], 1 }
 0x833   :  { %8426 = vsyncpa [#allocation3 + $0x1], 1 }
 0x834   :  { %8427 = vsyncpa [#allocation4], 1 }
 0x835   :  { %8429 = vsyncpa [#allocation4 + $0x1], 1 }

</bundles_post_ra>
